<compile_context>
chip_gen: v6e
topology: v6e:2x2x1
jax: 0.10.0
libtpu: 0.0.40
codegen_flags: <defaults>
</compile_context>

<pallas_src>
import functools

import jax
import jax.numpy as jnp
from jax import lax
from jax.experimental import pallas as pl
from jax.experimental.pallas import tpu as pltpu


# -----------------------------------------------------------------------------
# Pallas kernel: clustering head.
# Reproduces exactly (for latent = F.normalize(feature, dim=-1)):
#   dis = sqrt(sum((latent.unsqueeze(1) - W) ** 2, dim=2)).t()
#   dis = dis ** (-2 / (fuzzifier - 1))
#   c   = dis.sum(dim=0, keepdim=True)
#   u   = (dis / (ones(class_number, 1) * c)).t()
# NOTE: the PyTorch broadcast of (B,1,512) with W of shape (512, class_number)
# only type-checks when class_number == 512, i.e. W is square.  We keep that
# constraint; the distance is between latent[b, :] and row i of W, i.e.
#   d2[b, i] = 1 + ||W[i, :]||^2 - 2 * latent[b, :] . W[i, :]
# -----------------------------------------------------------------------------
def _cluster_head_kernel(feat_ref, wt_ref, wn2_ref, out_ref, *, fuzzifier):
    feat = feat_ref[...]                                   # (TB, D)
    wt = wt_ref[...]                                       # (D, R), f32 or bf16

    # MXU matmul on the raw (un-normalized) feature; the 1/||x|| scale is
    # folded into the -2*x.w term below (saves a (TB, D) multiply + a cast).
    xw = jnp.dot(feat.astype(wt.dtype), wt,
                 preferred_element_type=jnp.float32)       # (TB, R)

    # F.normalize(feature, dim=-1): eps = 1e-12 on the norm, as in torch.
    # rsqrt goes to the EUP slot.
    feat32 = feat.astype(jnp.float32)
    norm2 = jnp.sum(feat32 * feat32, axis=-1, keepdims=True)       # (TB, 1)
    scale = 2.0 * lax.rsqrt(jnp.maximum(norm2, 1e-24))              # 2/||x||

    # Squared distance; ||latent||^2 == 1.  Clamp: rounding can make it
    # slightly negative when a sample coincides with a cluster row.
    d2 = 1.0 + wn2_ref[...].astype(jnp.float32) - xw * scale
    d2 = jnp.maximum(d2, 1e-12)

    if fuzzifier == 2.0:
        # d ** (-2/(m-1)) == 1/d2 ; approx reciprocal is safe because the final
        # normalization below makes the row sums 1 by construction.
        p = pl.reciprocal(d2, approx=True)
    else:
        # d ** expo == exp((expo/2) * log(d2)) ; folds the sqrt into the power.
        p = jnp.exp((-1.0 / (fuzzifier - 1.0)) * jnp.log(d2))

    c = jnp.sum(p, axis=-1, keepdims=True)                 # sum over clusters
    # EUP reciprocal (exact) + VPU multiply instead of a multi-op divide.
    out_ref[...] = (p * pl.reciprocal(c, approx=False)).astype(out_ref.dtype)


def _round_up(x, m):
    return ((x + m - 1) // m) * m


def _choose_batch_tile(batch):
    """Batch tile: multiple of 8, up to 1024 rows, >=2 tiles when batch allows
    (so the 'parallel' grid axis can split across v7x's 2 TensorCores)."""
    b8 = _round_up(max(batch, 1), 8)
    if b8 <= 8:
        return b8
    return min(1024, _round_up((b8 + 1) // 2, 8))


def clustering_head(feature, clustering_layer, fuzzifier, *, use_bf16_matmul=True):
    """feature: (B, D) pre-normalization embedding; clustering_layer: (R, C), C == D."""
    B, D = feature.shape
    R, C = clustering_layer.shape
    assert C == D, (
        "PyTorch broadcast in clustering_model.forward requires class_number "
        "== embedding dim"
    )

    # Hoist all W-dependent preprocessing out of the kernel grid loop:
    #  - row norms of W (f32),
    #  - W transposed so the kernel matmul contracts the embedding dim directly.
    w_f32 = clustering_layer.astype(jnp.float32)
    wnorm2 = jnp.sum(w_f32 * w_f32, axis=1)[None, :]      # (1, R)
    wt = w_f32.T                                          # (D, R)
    if use_bf16_matmul:
        wt = wt.astype(jnp.bfloat16)                      # halves W DMA/VMEM footprint

    feature = feature.astype(jnp.float32)

    # Batch tiling: large sublane-aligned tiles (mem-/overhead-bound kernel),
    # pipelined + parallel across cores.
    TB = _choose_batch_tile(B)
    B_pad = _round_up(B, TB)
    if B_pad != B:
        feature = jnp.pad(feature, ((0, B_pad - B), (0, 0)))

    wt_bytes = wt.size * (2 if use_bf16_matmul else 4)
    cost = pl.CostEstimate(
        flops=2 * B_pad * D * R,
        transcendentals=B_pad * (R + 2),                  # rsqrt + 1/d2 + 1/c
        bytes_accessed=B_pad * D * 4 + wt_bytes + R * 4 + B_pad * R * 4,
    )

    # NOTE: W / wn2 BlockSpecs have constant index maps, so Pallas does not
    # re-DMA them across grid steps; an explicit single-buffer hint would only
    # save ~1 MiB of dead VMEM and is skipped for portability.
    kernel = functools.partial(_cluster_head_kernel, fuzzifier=float(fuzzifier))
    out = pl.pallas_call(
        kernel,
        out_shape=jax.ShapeDtypeStruct((B_pad, R), jnp.float32),
        grid=(B_pad // TB,),
        in_specs=[
            pl.BlockSpec((TB, D), lambda i: (i, 0)),      # batch tile (pipelined)
            pl.BlockSpec((D, R), lambda i: (0, 0)),       # W resident
            pl.BlockSpec((1, R), lambda i: (0, 0)),       # ||w_i||^2 resident
        ],
        out_specs=pl.BlockSpec((TB, R), lambda i: (i, 0)),
        compiler_params=pltpu.CompilerParams(dimension_semantics=("parallel",)),
        cost_estimate=cost,
    )(feature, wt, wnorm2)
    return out[:B]


# -----------------------------------------------------------------------------
# ResNet18 feature backbone (`model_simple.f`) in plain JAX, NHWC.
# conv1 replaced with 3x3 / stride 1 / pad 1 (as in model_simple.__init__),
# the final Linear (fc) is dropped, avgpool -> flatten gives a 512-d feature.
# BatchNorm is applied in eval mode with PyTorch-default stats
# (gamma=1, beta=0, running_mean=0, running_var=1).
# -----------------------------------------------------------------------------
def _conv(x, w, stride, padding):
    return lax.conv_general_dilated(
        x, w, (stride, stride),
        [(padding, padding), (padding, padding)],
        dimension_numbers=("NHWC", "HWIO", "NHWC"),
    )


def _bn(x):
    # eval-mode BatchNorm2d with default init parameters / running stats.
    return x / jnp.sqrt(1.0 + 1e-5)


def _basic_block(x, p, stride):
    out = jax.nn.relu(_bn(_conv(x, p["conv1"], stride, 1)))
    out = _bn(_conv(out, p["conv2"], 1, 1))
    if "down" in p:
        sc = _bn(_conv(x, p["down"], stride, 0))
    else:
        sc = x
    return jax.nn.relu(out + sc)


def resnet18_features(x_nhwc, params):
    x = jax.nn.relu(_bn(_conv(x_nhwc, params["conv1"], 1, 1)))
    # maxpool 3x3, stride 2, pad 1
    x = lax.reduce_window(
        x, -jnp.inf, lax.max,
        (1, 3, 3, 1), (1, 2, 2, 1),
        ((0, 0), (1, 1), (1, 1), (0, 0)),
    )
    strides = {"layer1": 1, "layer2": 2, "layer3": 2, "layer4": 2}
    for name in ("layer1", "layer2", "layer3", "layer4"):
        blocks = params[name]
        x = _basic_block(x, blocks[0], strides[name])
        x = _basic_block(x, blocks[1], 1)
    # AdaptiveAvgPool2d((1,1)) + flatten(start_dim=1)  -> (B, 512)
    return jnp.mean(x, axis=(1, 2))


def init_resnet18_params(key):
    keys = iter(jax.random.split(key, 64))

    def conv_w(kh, kw, cin, cout):
        return 0.05 * jax.random.normal(next(keys), (kh, kw, cin, cout), jnp.float32)

    def block(cin, cout, stride):
        p = {"conv1": conv_w(3, 3, cin, cout), "conv2": conv_w(3, 3, cout, cout)}
        if stride != 1 or cin != cout:
            p["down"] = conv_w(1, 1, cin, cout)
        return p

    return {
        "conv1": conv_w(3, 3, 3, 64),
        "layer1": [block(64, 64, 1), block(64, 64, 1)],
        "layer2": [block(64, 128, 2), block(128, 128, 1)],
        "layer3": [block(128, 256, 2), block(256, 256, 1)],
        "layer4": [block(256, 512, 2), block(512, 512, 1)],
    }


# -----------------------------------------------------------------------------
# clustering_model.forward
# -----------------------------------------------------------------------------
def clustering_model_forward(x_nchw, params, clustering_layer, fuzzifier):
    # layout: PyTorch input is NCHW; convert to NHWC for the conv backbone.
    x = jnp.transpose(x_nchw, (0, 2, 3, 1))
    feature = resnet18_features(x, params)                       # (B, 512)
    # F.normalize + fuzzy-membership computed in the Pallas kernel.
    return clustering_head(feature, clustering_layer, fuzzifier)  # (B, class_number)


if __name__ == "__main__":
    key = jax.random.PRNGKey(0)
    k_params, k_w, k_x = jax.random.split(key, 3)

    params = init_resnet18_params(k_params)

    embedding_size = 512
    # PyTorch broadcasting in clustering_model.forward requires
    # class_number == embedding_size (512).
    class_number = embedding_size
    clustering_layer = jax.random.normal(
        k_w, (embedding_size, class_number), jnp.float32
    )

    fuzzifier = 2.0
    # Small input consistent with the module: NCHW, 3 channels.
    x = jax.random.normal(k_x, (2, 3, 16, 16), jnp.float32)

    fwd = jax.jit(functools.partial(clustering_model_forward, fuzzifier=fuzzifier))
    u_matrix = fwd(x, params, clustering_layer)
    jax.block_until_ready(u_matrix)

    assert u_matrix.shape == (2, class_number)
    assert bool(jnp.all(jnp.isfinite(u_matrix)))
    # fuzzy memberships sum to 1 per sample
    assert bool(jnp.allclose(jnp.sum(u_matrix, axis=1), 1.0, atol=1e-4))
    print("KERNEL_OK")
</pallas_src>

<mosaic_0001>
module attributes {stable_mosaic.version = 11 : i64} {
  func.func @_cluster_head_kernel(%arg0: i32, %arg1: memref<8x512xf32, #tpu.memory_space<vmem>>, %arg2: memref<512x512xbf16, #tpu.memory_space<vmem>>, %arg3: memref<1x512xf32, #tpu.memory_space<vmem>>, %arg4: memref<8x512xf32, #tpu.memory_space<vmem>>) attributes {dimension_semantics = [#tpu.dimension_semantics<parallel>], iteration_bounds = array<i64: 1>, scalar_prefetch = 0 : i64, scratch_operands = 0 : i64, tpu.core_type = #tpu.core_type<tc>, window_params = [{transform_indices = @transform_0, window_bounds = array<i64: 8, 512>}, {pipeline_mode = #tpu.pipeline_mode<synchronous>, transform_indices = @transform_1, window_bounds = array<i64: 512, 512>}, {pipeline_mode = #tpu.pipeline_mode<synchronous>, transform_indices = @transform_2, window_bounds = array<i64: 1, 512>}, {transform_indices = @transform_3, window_bounds = array<i64: 8, 512>}]} {
    %c0 = arith.constant 0 : index
    %c0_0 = arith.constant 0 : index
    %0 = vector.load %arg1[%c0, %c0_0] : memref<8x512xf32, #tpu.memory_space<vmem>>, vector<8x512xf32>
    %c0_1 = arith.constant 0 : index
    %c0_2 = arith.constant 0 : index
    %1 = vector.load %arg2[%c0_1, %c0_2] : memref<512x512xbf16, #tpu.memory_space<vmem>>, vector<512x512xbf16>
    %2 = arith.truncf %0 : vector<8x512xf32> to vector<8x512xbf16>
    %cst = arith.constant dense<0.000000e+00> : vector<8x512xf32>
    %3 = tpu.matmul %2, %1, %cst {dimension_numbers = #tpu.dot_dimension_numbers<[1], [0], [0], [1], [0, 0, 1, 1], [], []>} : vector<8x512xbf16>, vector<512x512xbf16>, vector<8x512xf32> -> vector<8x512xf32>
    %4 = arith.mulf %0, %0 : vector<8x512xf32>
    %cst_3 = arith.constant dense<0.000000e+00> : vector<8xf32>
    %5 = vector.multi_reduction <add>, %4, %cst_3 [1] : vector<8x512xf32> to vector<8xf32>
    %6 = vector.shape_cast %5 : vector<8xf32> to vector<8x1xf32>
    %cst_4 = arith.constant 1.000000e-24 : f32
    %7 = vector.broadcast %cst_4 : f32 to vector<8x1xf32>
    %8 = arith.maximumf %6, %7 : vector<8x1xf32>
    %9 = math.rsqrt %8 : vector<8x1xf32>
    %cst_5 = arith.constant 2.000000e+00 : f32
    %10 = vector.broadcast %cst_5 : f32 to vector<8x1xf32>
    %11 = arith.mulf %10, %9 : vector<8x1xf32>
    %c0_6 = arith.constant 0 : index
    %c0_7 = arith.constant 0 : index
    %12 = vector.load %arg3[%c0_6, %c0_7] : memref<1x512xf32, #tpu.memory_space<vmem>>, vector<1x512xf32>
    %cst_8 = arith.constant 1.000000e+00 : f32
    %13 = vector.broadcast %cst_8 : f32 to vector<1x512xf32>
    %14 = arith.addf %13, %12 : vector<1x512xf32>
    %15 = vector.broadcast %11 : vector<8x1xf32> to vector<8x512xf32>
    %16 = arith.mulf %3, %15 : vector<8x512xf32>
    %17 = vector.broadcast %14 : vector<1x512xf32> to vector<8x512xf32>
    %18 = arith.subf %17, %16 : vector<8x512xf32>
    %cst_9 = arith.constant 9.99999996E-13 : f32
    %19 = vector.broadcast %cst_9 : f32 to vector<8x512xf32>
    %20 = arith.maximumf %18, %19 : vector<8x512xf32>
    %21 = tpu.reciprocal %20 {approx = true} : vector<8x512xf32> -> vector<8x512xf32>
    %cst_10 = arith.constant dense<0.000000e+00> : vector<8xf32>
    %22 = vector.multi_reduction <add>, %21, %cst_10 [1] : vector<8x512xf32> to vector<8xf32>
    %23 = vector.shape_cast %22 : vector<8xf32> to vector<8x1xf32>
    %24 = tpu.reciprocal %23 : vector<8x1xf32> -> vector<8x1xf32>
    %25 = vector.broadcast %24 : vector<8x1xf32> to vector<8x512xf32>
    %26 = arith.mulf %21, %25 : vector<8x512xf32>
    %c0_11 = arith.constant 0 : index
    %c0_12 = arith.constant 0 : index
    %27 = vector.load %arg4[%c0_11, %c0_12] : memref<8x512xf32, #tpu.memory_space<vmem>>, vector<8x512xf32>
    tpu.vector_store %arg4[%c0_11, %c0_12], %26 {strides = array<i32>} : memref<8x512xf32, #tpu.memory_space<vmem>>, vector<8x512xf32>,
    return
  }
  func.func @transform_0(%arg0: i32) -> (i32, i32) {
    %c0_i32 = arith.constant 0 : i32
    %c0_i32_0 = arith.constant 0 : i32
    return %arg0, %c0_i32 : i32, i32
  }
  func.func @transform_1(%arg0: i32) -> (i32, i32) {
    %c0_i32 = arith.constant 0 : i32
    %c0_i32_0 = arith.constant 0 : i32
    %c0_i32_1 = arith.constant 0 : i32
    return %c0_i32, %c0_i32_0 : i32, i32
  }
  func.func @transform_2(%arg0: i32) -> (i32, i32) {
    %c0_i32 = arith.constant 0 : i32
    %c0_i32_0 = arith.constant 0 : i32
    %c0_i32_1 = arith.constant 0 : i32
    return %c0_i32, %c0_i32_0 : i32, i32
  }
  func.func @transform_3(%arg0: i32) -> (i32, i32) {
    %c0_i32 = arith.constant 0 : i32
    %c0_i32_0 = arith.constant 0 : i32
    return %arg0, %c0_i32 : i32, i32
  }
}

</mosaic_0001>

<bundles_post_ra>
// kernel: reverse
= control target key start
LH: loop header
LB: loop body
LE: loop exit
PB: predicated region body
PF: predicated region fallthrough
CT: control target
= control target key end

     0   :  { %s8325_s0 = inlined_call_operand.vmem [shape: f32[3,3,256,256], index: 0, kind: input, shape index: {}]   ;;  %s8326_s1 = inlined_call_operand.vmem [shape: bf16[3,3,256,256], index: 1, kind: output, shape index: {}]  }
   0x1   :  { %v3744_v0 = vld [vmem:[%s8325_s0 + $0x1000] sm:$0xff]  ;;  %v4935_v9 = vld [vmem:[%s8325_s0 + $0x1010] sm:$0xff]  ;;  %v4031_v15 = vld [vmem:[%s8325_s0 + $0x1008] sm:$0xff] }
   0x2   :  { %v3745_v1 = vld [vmem:[%s8325_s0 + $0xa00] sm:$0xff]  ;;  %v4940_v10 = vld [vmem:[%s8325_s0 + $0xa10] sm:$0xff]  ;;  %v4034_v16 = vld [vmem:[%s8325_s0 + $0xa08] sm:$0xff]  ;;  %v870_v21 = vpack.c.bf16 %v4031_v15, %v3744_v0 }
   0x3   :  { %v3746_v2 = vld [vmem:[%s8325_s0 + $0x400] sm:$0xff]  ;;  %v4945_v11 = vld [vmem:[%s8325_s0 + $0x410] sm:$0xff]  ;;  %v4037_v17 = vld [vmem:[%s8325_s0 + $0x408] sm:$0xff]  ;;  %v878_v22 = vpack.c.bf16 %v4034_v16, %v3745_v1 }
   0x4   :  { %v3747_v3 = vld [vmem:[%s8325_s0 + $0xe00] sm:$0xff]  ;;  %v4950_v12 = vld [vmem:[%s8325_s0 + $0xe10] sm:$0xff]  ;;  %v886_v23 = vpack.c.bf16 %v4037_v17, %v3746_v2  ;;  %v4040_v24 = vld [vmem:[%s8325_s0 + $0xe08] sm:$0xff]  ;;  %4033 = vst [vmem:[%s8326_s1] sm:$0xff] %v870_v21 }
   0x5   :  { %v3748_v4 = vld [vmem:[%s8325_s0 + $0x800] sm:$0xff]  ;;  %v4955_v13 = vld [vmem:[%s8325_s0 + $0x810] sm:$0xff]  ;;  %v4043_v25 = vld [vmem:[%s8325_s0 + $0x808] sm:$0xff]  ;;  %v894_v30 = vpack.c.bf16 %v4040_v24, %v3747_v3  ;;  %4036 = vst [vmem:[%s8326_s1 + $0x300] sm:$0xff] %v878_v22 }
   0x6   :  { %v3749_v5 = vld [vmem:[%s8325_s0 + $0x200] sm:$0xff]  ;;  %v4960_v14 = vld [vmem:[%s8325_s0 + $0x210] sm:$0xff]  ;;  %v4046_v26 = vld [vmem:[%s8325_s0 + $0x208] sm:$0xff]  ;;  %v902_v31 = vpack.c.bf16 %v4043_v25, %v3748_v4  ;;  %4039 = vst [vmem:[%s8326_s1 + $0x600] sm:$0xff] %v886_v23 }
   0x7   :  { %v3750_v6 = vld [vmem:[%s8325_s0 + $0xc00] sm:$0xff]  ;;  %v4974_v18 = vld [vmem:[%s8325_s0 + $0xc10] sm:$0xff]  ;;  %v910_v32 = vpack.c.bf16 %v4046_v26, %v3749_v5  ;;  %v4049_v33 = vld [vmem:[%s8325_s0 + $0xc08] sm:$0xff]  ;;  %4042 = vst [vmem:[%s8326_s1 + $0x100] sm:$0xff] %v894_v30 }
   0x8   :  { %v3751_v7 = vld [vmem:[%s8325_s0 + $0x600] sm:$0xff]  ;;  %v4979_v19 = vld [vmem:[%s8325_s0 + $0x610] sm:$0xff]  ;;  %v4052_v34 = vld [vmem:[%s8325_s0 + $0x608] sm:$0xff]  ;;  %v918_v39 = vpack.c.bf16 %v4049_v33, %v3750_v6  ;;  %4045 = vst [vmem:[%s8326_s1 + $0x400] sm:$0xff] %v902_v31 }
   0x9   :  { %v25_v8 = vld [vmem:[%s8325_s0] sm:$0xff]  ;;  %v4984_v20 = vld [vmem:[%s8325_s0 + $0x10] sm:$0xff]  ;;  %v4055_v35 = vld [vmem:[%s8325_s0 + $0x8] sm:$0xff]  ;;  %v926_v40 = vpack.c.bf16 %v4052_v34, %v3751_v7  ;;  %4048 = vst [vmem:[%s8326_s1 + $0x700] sm:$0xff] %v910_v32 }
   0xa   :  { %v4998_v27 = vld [vmem:[%s8325_s0 + $0x1020] sm:$0xff]  ;;  %v934_v41 = vpack.c.bf16 %v4055_v35, %v25_v8  ;;  %v4058_v42 = vld [vmem:[%s8325_s0 + $0x1018] sm:$0xff]  ;;  %v5091_v54 = vld [vmem:[%s8325_s0 + $0x1030] sm:$0xff]  ;;  %4051 = vst [vmem:[%s8326_s1 + $0x200] sm:$0xff] %v918_v39 }
   0xb   :  { %v5003_v28 = vld [vmem:[%s8325_s0 + $0xa20] sm:$0xff]  ;;  %v4061_v43 = vld [vmem:[%s8325_s0 + $0xa18] sm:$0xff]  ;;  %v942_v48 = vpack.c.bf16 %v4058_v42, %v4935_v9  ;;  %v5096_v55 = vld [vmem:[%s8325_s0 + $0xa30] sm:$0xff]  ;;  %4054 = vst [vmem:[%s8326_s1 + $0x500] sm:$0xff] %v926_v40 }
   0xc   :  { %v5008_v29 = vld [vmem:[%s8325_s0 + $0x420] sm:$0xff]  ;;  %v4064_v44 = vld [vmem:[%s8325_s0 + $0x418] sm:$0xff]  ;;  %v950_v49 = vpack.c.bf16 %v4061_v43, %v4940_v10  ;;  %v5101_v56 = vld [vmem:[%s8325_s0 + $0x430] sm:$0xff]  ;;  %4057 = vst [vmem:[%s8326_s1 + $0x800] sm:$0xff] %v934_v41 }
   0xd   :  { %v5022_v36 = vld [vmem:[%s8325_s0 + $0xe20] sm:$0xff]  ;;  %v958_v50 = vpack.c.bf16 %v4064_v44, %v4945_v11  ;;  %v4067_v51 = vld [vmem:[%s8325_s0 + $0xe18] sm:$0xff]  ;;  %v5127_v63 = vld [vmem:[%s8325_s0 + $0xe30] sm:$0xff]  ;;  %4060 = vst [vmem:[%s8326_s1 + $0x8] sm:$0xff] %v942_v48 }
   0xe   :  { %v5027_v37 = vld [vmem:[%s8325_s0 + $0x820] sm:$0xff]  ;;  %v4070_v52 = vld [vmem:[%s8325_s0 + $0x818] sm:$0xff]  ;;  %v966_v57 = vpack.c.bf16 %v4067_v51, %v4950_v12  ;;  %v5132_v0 = vld [vmem:[%s8325_s0 + $0x830] sm:$0xff]  ;;  %4063 = vst [vmem:[%s8326_s1 + $0x308] sm:$0xff] %v950_v49 }
   0xf   :  { %v5032_v38 = vld [vmem:[%s8325_s0 + $0x220] sm:$0xff]  ;;  %v4073_v53 = vld [vmem:[%s8325_s0 + $0x218] sm:$0xff]  ;;  %v974_v58 = vpack.c.bf16 %v4070_v52, %v4955_v13  ;;  %v5137_v1 = vld [vmem:[%s8325_s0 + $0x230] sm:$0xff]  ;;  %4066 = vst [vmem:[%s8326_s1 + $0x608] sm:$0xff] %v958_v50 }
  0x10   :  { %v5055_v45 = vld [vmem:[%s8325_s0 + $0xc20] sm:$0xff]  ;;  %v982_v59 = vpack.c.bf16 %v4073_v53, %v4960_v14  ;;  %v4076_v60 = vld [vmem:[%s8325_s0 + $0xc18] sm:$0xff]  ;;  %v4085_v5 = vld [vmem:[%s8325_s0 + $0x1028] sm:$0xff]  ;;  %4069 = vst [vmem:[%s8326_s1 + $0x108] sm:$0xff] %v966_v57 }
  0x11   :  { %v5060_v46 = vld [vmem:[%s8325_s0 + $0x620] sm:$0xff]  ;;  %v4079_v61 = vld [vmem:[%s8325_s0 + $0x618] sm:$0xff]  ;;  %v990_v2 = vpack.c.bf16 %v4076_v60, %v4974_v18  ;;  %v4088_v6 = vld [vmem:[%s8325_s0 + $0xa28] sm:$0xff]  ;;  %4072 = vst [vmem:[%s8326_s1 + $0x408] sm:$0xff] %v974_v58  ;;  %v1014_v11 = vpack.c.bf16 %v4085_v5, %v4998_v27 }
  0x12   :  { %v5065_v47 = vld [vmem:[%s8325_s0 + $0x20] sm:$0xff]  ;;  %v4082_v62 = vld [vmem:[%s8325_s0 + $0x18] sm:$0xff]  ;;  %v998_v3 = vpack.c.bf16 %v4079_v61, %v4979_v19  ;;  %v4091_v7 = vld [vmem:[%s8325_s0 + $0x428] sm:$0xff]  ;;  %4075 = vst [vmem:[%s8326_s1 + $0x708] sm:$0xff] %v982_v59  ;;  %v1022_v12 = vpack.c.bf16 %v4088_v6, %v5003_v28 }
  0x13   :  { %v1006_v4 = vpack.c.bf16 %v4082_v62, %v4984_v20  ;;  %v5163_v8 = vld [vmem:[%s8325_s0 + $0xc30] sm:$0xff]  ;;  %v1030_v13 = vpack.c.bf16 %v4091_v7, %v5008_v29  ;;  %v4094_v14 = vld [vmem:[%s8325_s0 + $0xe28] sm:$0xff]  ;;  %v5199_v17 = vld [vmem:[%s8325_s0 + $0x1040] sm:$0xff]  ;;  %4078 = vst [vmem:[%s8326_s1 + $0x208] sm:$0xff] %v990_v2 }
  0x14   :  { %v5168_v9 = vld [vmem:[%s8325_s0 + $0x630] sm:$0xff]  ;;  %v4097_v15 = vld [vmem:[%s8325_s0 + $0x828] sm:$0xff]  ;;  %v5204_v18 = vld [vmem:[%s8325_s0 + $0xa40] sm:$0xff]  ;;  %4081 = vst [vmem:[%s8326_s1 + $0x508] sm:$0xff] %v998_v3  ;;  %v1038_v20 = vpack.c.bf16 %v4094_v14, %v5022_v36 }
  0x15   :  { %v5173_v10 = vld [vmem:[%s8325_s0 + $0x30] sm:$0xff]  ;;  %v4100_v16 = vld [vmem:[%s8325_s0 + $0x228] sm:$0xff]  ;;  %v5209_v19 = vld [vmem:[%s8325_s0 + $0x440] sm:$0xff]  ;;  %4084 = vst [vmem:[%s8326_s1 + $0x808] sm:$0xff] %v1006_v4  ;;  %v1046_v21 = vpack.c.bf16 %v4097_v15, %v5027_v37 }
  0x16   :  { %v1054_v22 = vpack.c.bf16 %v4100_v16, %v5032_v38  ;;  %v4103_v23 = vld [vmem:[%s8325_s0 + $0xc28] sm:$0xff]  ;;  %v5235_v26 = vld [vmem:[%s8325_s0 + $0xe40] sm:$0xff]  ;;  %4087 = vst [vmem:[%s8326_s1 + $0x10] sm:$0xff] %v1014_v11  ;;  %4090 = vst [vmem:[%s8326_s1 + $0x310] sm:$0xff] %v1022_v12 }
  0x17   :  { %v4106_v24 = vld [vmem:[%s8325_s0 + $0x628] sm:$0xff]  ;;  %v5240_v27 = vld [vmem:[%s8325_s0 + $0x840] sm:$0xff]  ;;  %4093 = vst [vmem:[%s8326_s1 + $0x610] sm:$0xff] %v1030_v13  ;;  %v1062_v29 = vpack.c.bf16 %v4103_v23, %v5055_v45  ;;  %v4112_v32 = vld [vmem:[%s8325_s0 + $0x1038] sm:$0xff] }
  0x18   :  { %v4109_v25 = vld [vmem:[%s8325_s0 + $0x28] sm:$0xff]  ;;  %v5245_v28 = vld [vmem:[%s8325_s0 + $0x240] sm:$0xff]  ;;  %v1070_v30 = vpack.c.bf16 %v4106_v24, %v5060_v46  ;;  %v4115_v33 = vld [vmem:[%s8325_s0 + $0xa38] sm:$0xff]  ;;  %4096 = vst [vmem:[%s8326_s1 + $0x110] sm:$0xff] %v1038_v20  ;;  %v1086_v38 = vpack.c.bf16 %v4112_v32, %v5091_v54 }
  0x19   :  { %v1078_v31 = vpack.c.bf16 %v4109_v25, %v5065_v47  ;;  %v4118_v34 = vld [vmem:[%s8325_s0 + $0x438] sm:$0xff]  ;;  %v5271_v35 = vld [vmem:[%s8325_s0 + $0xc40] sm:$0xff]  ;;  %4099 = vst [vmem:[%s8326_s1 + $0x410] sm:$0xff] %v1046_v21  ;;  %4102 = vst [vmem:[%s8326_s1 + $0x710] sm:$0xff] %v1054_v22  ;;  %v1094_v39 = vpack.c.bf16 %v4115_v33, %v5096_v55 }
  0x1a   :  { %v5276_v36 = vld [vmem:[%s8325_s0 + $0x640] sm:$0xff]  ;;  %v1102_v40 = vpack.c.bf16 %v4118_v34, %v5101_v56  ;;  %v4121_v41 = vld [vmem:[%s8325_s0 + $0xe38] sm:$0xff]  ;;  %v5307_v44 = vld [vmem:[%s8325_s0 + $0x1050] sm:$0xff]  ;;  %4105 = vst [vmem:[%s8326_s1 + $0x210] sm:$0xff] %v1062_v29 }
  0x1b   :  { %v5281_v37 = vld [vmem:[%s8325_s0 + $0x40] sm:$0xff]  ;;  %v4124_v42 = vld [vmem:[%s8325_s0 + $0x838] sm:$0xff]  ;;  %v5312_v45 = vld [vmem:[%s8325_s0 + $0xa50] sm:$0xff]  ;;  %4108 = vst [vmem:[%s8326_s1 + $0x510] sm:$0xff] %v1070_v30  ;;  %v1110_v47 = vpack.c.bf16 %v4121_v41, %v5127_v63 }
  0x1c   :  { %v4127_v43 = vld [vmem:[%s8325_s0 + $0x238] sm:$0xff]  ;;  %v5317_v46 = vld [vmem:[%s8325_s0 + $0x450] sm:$0xff]  ;;  %4111 = vst [vmem:[%s8326_s1 + $0x810] sm:$0xff] %v1078_v31  ;;  %v1118_v48 = vpack.c.bf16 %v4124_v42, %v5132_v0  ;;  %4114 = vst [vmem:[%s8326_s1 + $0x18] sm:$0xff] %v1086_v38 }
  0x1d   :  { %v1126_v49 = vpack.c.bf16 %v4127_v43, %v5137_v1  ;;  %v4130_v50 = vld [vmem:[%s8325_s0 + $0xc38] sm:$0xff]  ;;  %v5343_v53 = vld [vmem:[%s8325_s0 + $0xe50] sm:$0xff]  ;;  %4117 = vst [vmem:[%s8326_s1 + $0x318] sm:$0xff] %v1094_v39  ;;  %4120 = vst [vmem:[%s8326_s1 + $0x618] sm:$0xff] %v1102_v40 }
  0x1e   :  { %v4133_v51 = vld [vmem:[%s8325_s0 + $0x638] sm:$0xff]  ;;  %v5348_v54 = vld [vmem:[%s8325_s0 + $0x850] sm:$0xff]  ;;  %v1134_v56 = vpack.c.bf16 %v4130_v50, %v5163_v8  ;;  %v4139_v59 = vld [vmem:[%s8325_s0 + $0x1048] sm:$0xff]  ;;  %4123 = vst [vmem:[%s8326_s1 + $0x118] sm:$0xff] %v1110_v47 }
  0x1f   :  { %v4136_v52 = vld [vmem:[%s8325_s0 + $0x38] sm:$0xff]  ;;  %v5353_v55 = vld [vmem:[%s8325_s0 + $0x250] sm:$0xff]  ;;  %v1142_v57 = vpack.c.bf16 %v4133_v51, %v5168_v9  ;;  %v4142_v60 = vld [vmem:[%s8325_s0 + $0xa48] sm:$0xff]  ;;  %4126 = vst [vmem:[%s8326_s1 + $0x418] sm:$0xff] %v1118_v48  ;;  %v1158_v1 = vpack.c.bf16 %v4139_v59, %v5199_v17 }
  0x20   :  { %v1150_v58 = vpack.c.bf16 %v4136_v52, %v5173_v10  ;;  %v4145_v61 = vld [vmem:[%s8325_s0 + $0x448] sm:$0xff]  ;;  %v5379_v62 = vld [vmem:[%s8325_s0 + $0xc50] sm:$0xff]  ;;  %4129 = vst [vmem:[%s8326_s1 + $0x718] sm:$0xff] %v1126_v49  ;;  %v1166_v2 = vpack.c.bf16 %v4142_v60, %v5204_v18  ;;  %v5415_v7 = vld [vmem:[%s8325_s0 + $0x1060] sm:$0xff] }
  0x21   :  { %v5384_v63 = vld [vmem:[%s8325_s0 + $0x650] sm:$0xff]  ;;  %v1174_v3 = vpack.c.bf16 %v4145_v61, %v5209_v19  ;;  %v4148_v4 = vld [vmem:[%s8325_s0 + $0xe48] sm:$0xff]  ;;  %v5420_v8 = vld [vmem:[%s8325_s0 + $0xa60] sm:$0xff]  ;;  %4132 = vst [vmem:[%s8326_s1 + $0x218] sm:$0xff] %v1134_v56 }
  0x22   :  { %v5389_v0 = vld [vmem:[%s8325_s0 + $0x50] sm:$0xff]  ;;  %v4151_v5 = vld [vmem:[%s8325_s0 + $0x848] sm:$0xff]  ;;  %v5425_v9 = vld [vmem:[%s8325_s0 + $0x460] sm:$0xff]  ;;  %4135 = vst [vmem:[%s8326_s1 + $0x518] sm:$0xff] %v1142_v57  ;;  %v1182_v10 = vpack.c.bf16 %v4148_v4, %v5235_v26 }
  0x23   :  { %v4154_v6 = vld [vmem:[%s8325_s0 + $0x248] sm:$0xff]  ;;  %4138 = vst [vmem:[%s8326_s1 + $0x818] sm:$0xff] %v1150_v58  ;;  %v1190_v11 = vpack.c.bf16 %v4151_v5, %v5240_v27  ;;  %v5451_v16 = vld [vmem:[%s8325_s0 + $0xe60] sm:$0xff]  ;;  %4141 = vst [vmem:[%s8326_s1 + $0x20] sm:$0xff] %v1158_v1 }
  0x24   :  { %v1198_v12 = vpack.c.bf16 %v4154_v6, %v5245_v28  ;;  %v4157_v13 = vld [vmem:[%s8325_s0 + $0xc48] sm:$0xff]  ;;  %v5456_v17 = vld [vmem:[%s8325_s0 + $0x860] sm:$0xff]  ;;  %4144 = vst [vmem:[%s8326_s1 + $0x320] sm:$0xff] %v1166_v2  ;;  %4147 = vst [vmem:[%s8326_s1 + $0x620] sm:$0xff] %v1174_v3 }
  0x25   :  { %v4160_v14 = vld [vmem:[%s8325_s0 + $0x648] sm:$0xff]  ;;  %v5461_v18 = vld [vmem:[%s8325_s0 + $0x260] sm:$0xff]  ;;  %v1206_v19 = vpack.c.bf16 %v4157_v13, %v5271_v35  ;;  %v4166_v22 = vld [vmem:[%s8325_s0 + $0x1058] sm:$0xff]  ;;  %4150 = vst [vmem:[%s8326_s1 + $0x120] sm:$0xff] %v1182_v10 }
  0x26   :  { %v4163_v15 = vld [vmem:[%s8325_s0 + $0x48] sm:$0xff]  ;;  %v1214_v20 = vpack.c.bf16 %v4160_v14, %v5276_v36  ;;  %v4169_v23 = vld [vmem:[%s8325_s0 + $0xa58] sm:$0xff]  ;;  %v5487_v25 = vld [vmem:[%s8325_s0 + $0xc60] sm:$0xff]  ;;  %4153 = vst [vmem:[%s8326_s1 + $0x420] sm:$0xff] %v1190_v11  ;;  %v1230_v28 = vpack.c.bf16 %v4166_v22, %v5307_v44 }
  0x27   :  { %v1222_v21 = vpack.c.bf16 %v4163_v15, %v5281_v37  ;;  %v4172_v24 = vld [vmem:[%s8325_s0 + $0x458] sm:$0xff]  ;;  %v5492_v26 = vld [vmem:[%s8325_s0 + $0x660] sm:$0xff]  ;;  %4156 = vst [vmem:[%s8326_s1 + $0x720] sm:$0xff] %v1198_v12  ;;  %v1238_v29 = vpack.c.bf16 %v4169_v23, %v5312_v45  ;;  %v5523_v34 = vld [vmem:[%s8325_s0 + $0x1070] sm:$0xff] }
  0x28   :  { %v5497_v27 = vld [vmem:[%s8325_s0 + $0x60] sm:$0xff]  ;;  %v1246_v30 = vpack.c.bf16 %v4172_v24, %v5317_v46  ;;  %v4175_v31 = vld [vmem:[%s8325_s0 + $0xe58] sm:$0xff]  ;;  %v5528_v35 = vld [vmem:[%s8325_s0 + $0xa70] sm:$0xff]  ;;  %4159 = vst [vmem:[%s8326_s1 + $0x220] sm:$0xff] %v1206_v19 }
  0x29   :  { %v4178_v32 = vld [vmem:[%s8325_s0 + $0x858] sm:$0xff]  ;;  %v5533_v36 = vld [vmem:[%s8325_s0 + $0x470] sm:$0xff]  ;;  %4162 = vst [vmem:[%s8326_s1 + $0x520] sm:$0xff] %v1214_v20  ;;  %4165 = vst [vmem:[%s8326_s1 + $0x820] sm:$0xff] %v1222_v21  ;;  %v1254_v37 = vpack.c.bf16 %v4175_v31, %v5343_v53 }
  0x2a   :  { %v4181_v33 = vld [vmem:[%s8325_s0 + $0x258] sm:$0xff]  ;;  %v1262_v38 = vpack.c.bf16 %v4178_v32, %v5348_v54  ;;  %v5559_v43 = vld [vmem:[%s8325_s0 + $0xe70] sm:$0xff]  ;;  %4168 = vst [vmem:[%s8326_s1 + $0x28] sm:$0xff] %v1230_v28  ;;  %4171 = vst [vmem:[%s8326_s1 + $0x328] sm:$0xff] %v1238_v29 }
  0x2b   :  { %v1270_v39 = vpack.c.bf16 %v4181_v33, %v5353_v55  ;;  %v4184_v40 = vld [vmem:[%s8325_s0 + $0xc58] sm:$0xff]  ;;  %v5564_v44 = vld [vmem:[%s8325_s0 + $0x870] sm:$0xff]  ;;  %4174 = vst [vmem:[%s8326_s1 + $0x628] sm:$0xff] %v1246_v30  ;;  %v4193_v49 = vld [vmem:[%s8325_s0 + $0x1068] sm:$0xff] }
  0x2c   :  { %v4187_v41 = vld [vmem:[%s8325_s0 + $0x658] sm:$0xff]  ;;  %v5569_v45 = vld [vmem:[%s8325_s0 + $0x270] sm:$0xff]  ;;  %v1278_v46 = vpack.c.bf16 %v4184_v40, %v5379_v62  ;;  %v4196_v50 = vld [vmem:[%s8325_s0 + $0xa68] sm:$0xff]  ;;  %4177 = vst [vmem:[%s8326_s1 + $0x128] sm:$0xff] %v1254_v37  ;;  %v1302_v55 = vpack.c.bf16 %v4193_v49, %v5415_v7 }
  0x2d   :  { %v4190_v42 = vld [vmem:[%s8325_s0 + $0x58] sm:$0xff]  ;;  %v1286_v47 = vpack.c.bf16 %v4187_v41, %v5384_v63  ;;  %v4199_v51 = vld [vmem:[%s8325_s0 + $0x468] sm:$0xff]  ;;  %v5595_v52 = vld [vmem:[%s8325_s0 + $0xc70] sm:$0xff]  ;;  %4180 = vst [vmem:[%s8326_s1 + $0x428] sm:$0xff] %v1262_v38  ;;  %v1310_v56 = vpack.c.bf16 %v4196_v50, %v5420_v8 }
  0x2e   :  { %v1294_v48 = vpack.c.bf16 %v4190_v42, %v5389_v0  ;;  %v5600_v53 = vld [vmem:[%s8325_s0 + $0x670] sm:$0xff]  ;;  %4183 = vst [vmem:[%s8326_s1 + $0x728] sm:$0xff] %v1270_v39  ;;  %v1318_v57 = vpack.c.bf16 %v4199_v51, %v5425_v9  ;;  %v4202_v58 = vld [vmem:[%s8325_s0 + $0xe68] sm:$0xff]  ;;  %v5631_v61 = vld [vmem:[%s8325_s0 + $0x1080] sm:$0xff] }
  0x2f   :  { %v5605_v54 = vld [vmem:[%s8325_s0 + $0x70] sm:$0xff]  ;;  %v4205_v59 = vld [vmem:[%s8325_s0 + $0x868] sm:$0xff]  ;;  %v5636_v62 = vld [vmem:[%s8325_s0 + $0xa80] sm:$0xff]  ;;  %4186 = vst [vmem:[%s8326_s1 + $0x228] sm:$0xff] %v1278_v46  ;;  %v1326_v0 = vpack.c.bf16 %v4202_v58, %v5451_v16 }
  0x30   :  { %v4208_v60 = vld [vmem:[%s8325_s0 + $0x268] sm:$0xff]  ;;  %v5641_v63 = vld [vmem:[%s8325_s0 + $0x480] sm:$0xff]  ;;  %4189 = vst [vmem:[%s8326_s1 + $0x528] sm:$0xff] %v1286_v47  ;;  %4192 = vst [vmem:[%s8326_s1 + $0x828] sm:$0xff] %v1294_v48  ;;  %v1334_v1 = vpack.c.bf16 %v4205_v59, %v5456_v17 }
  0x31   :  { %v1342_v2 = vpack.c.bf16 %v4208_v60, %v5461_v18  ;;  %v4211_v3 = vld [vmem:[%s8325_s0 + $0xc68] sm:$0xff]  ;;  %v5667_v6 = vld [vmem:[%s8325_s0 + $0xe80] sm:$0xff]  ;;  %4195 = vst [vmem:[%s8326_s1 + $0x30] sm:$0xff] %v1302_v55  ;;  %4198 = vst [vmem:[%s8326_s1 + $0x330] sm:$0xff] %v1310_v56 }
  0x32   :  { %v4214_v4 = vld [vmem:[%s8325_s0 + $0x668] sm:$0xff]  ;;  %v5672_v7 = vld [vmem:[%s8325_s0 + $0x880] sm:$0xff]  ;;  %4201 = vst [vmem:[%s8326_s1 + $0x630] sm:$0xff] %v1318_v57  ;;  %v1350_v9 = vpack.c.bf16 %v4211_v3, %v5487_v25  ;;  %v4220_v12 = vld [vmem:[%s8325_s0 + $0x1078] sm:$0xff] }
  0x33   :  { %v4217_v5 = vld [vmem:[%s8325_s0 + $0x68] sm:$0xff]  ;;  %v5677_v8 = vld [vmem:[%s8325_s0 + $0x280] sm:$0xff]  ;;  %v1358_v10 = vpack.c.bf16 %v4214_v4, %v5492_v26  ;;  %v4223_v13 = vld [vmem:[%s8325_s0 + $0xa78] sm:$0xff]  ;;  %4204 = vst [vmem:[%s8326_s1 + $0x130] sm:$0xff] %v1326_v0  ;;  %v1374_v18 = vpack.c.bf16 %v4220_v12, %v5523_v34 }
  0x34   :  { %v1366_v11 = vpack.c.bf16 %v4217_v5, %v5497_v27  ;;  %v4226_v14 = vld [vmem:[%s8325_s0 + $0x478] sm:$0xff]  ;;  %v5703_v15 = vld [vmem:[%s8325_s0 + $0xc80] sm:$0xff]  ;;  %4207 = vst [vmem:[%s8326_s1 + $0x430] sm:$0xff] %v1334_v1  ;;  %4210 = vst [vmem:[%s8326_s1 + $0x730] sm:$0xff] %v1342_v2  ;;  %v1382_v19 = vpack.c.bf16 %v4223_v13, %v5528_v35 }
  0x35   :  { %v5708_v16 = vld [vmem:[%s8325_s0 + $0x680] sm:$0xff]  ;;  %v1390_v20 = vpack.c.bf16 %v4226_v14, %v5533_v36  ;;  %v4229_v21 = vld [vmem:[%s8325_s0 + $0xe78] sm:$0xff]  ;;  %v5739_v24 = vld [vmem:[%s8325_s0 + $0x1090] sm:$0xff]  ;;  %4213 = vst [vmem:[%s8326_s1 + $0x230] sm:$0xff] %v1350_v9 }
  0x36   :  { %v5713_v17 = vld [vmem:[%s8325_s0 + $0x80] sm:$0xff]  ;;  %v4232_v22 = vld [vmem:[%s8325_s0 + $0x878] sm:$0xff]  ;;  %v5744_v25 = vld [vmem:[%s8325_s0 + $0xa90] sm:$0xff]  ;;  %4216 = vst [vmem:[%s8326_s1 + $0x530] sm:$0xff] %v1358_v10  ;;  %v1398_v27 = vpack.c.bf16 %v4229_v21, %v5559_v43 }
  0x37   :  { %v4235_v23 = vld [vmem:[%s8325_s0 + $0x278] sm:$0xff]  ;;  %v5749_v26 = vld [vmem:[%s8325_s0 + $0x490] sm:$0xff]  ;;  %4219 = vst [vmem:[%s8326_s1 + $0x830] sm:$0xff] %v1366_v11  ;;  %v1406_v28 = vpack.c.bf16 %v4232_v22, %v5564_v44  ;;  %4222 = vst [vmem:[%s8326_s1 + $0x38] sm:$0xff] %v1374_v18 }
  0x38   :  { %v1414_v29 = vpack.c.bf16 %v4235_v23, %v5569_v45  ;;  %v4238_v30 = vld [vmem:[%s8325_s0 + $0xc78] sm:$0xff]  ;;  %v5775_v33 = vld [vmem:[%s8325_s0 + $0xe90] sm:$0xff]  ;;  %4225 = vst [vmem:[%s8326_s1 + $0x338] sm:$0xff] %v1382_v19  ;;  %4228 = vst [vmem:[%s8326_s1 + $0x638] sm:$0xff] %v1390_v20 }
  0x39   :  { %v4241_v31 = vld [vmem:[%s8325_s0 + $0x678] sm:$0xff]  ;;  %v5780_v34 = vld [vmem:[%s8325_s0 + $0x890] sm:$0xff]  ;;  %v1422_v36 = vpack.c.bf16 %v4238_v30, %v5595_v52  ;;  %v4247_v39 = vld [vmem:[%s8325_s0 + $0x1088] sm:$0xff]  ;;  %4231 = vst [vmem:[%s8326_s1 + $0x138] sm:$0xff] %v1398_v27 }
  0x3a   :  { %v4244_v32 = vld [vmem:[%s8325_s0 + $0x78] sm:$0xff]  ;;  %v5785_v35 = vld [vmem:[%s8325_s0 + $0x290] sm:$0xff]  ;;  %v1430_v37 = vpack.c.bf16 %v4241_v31, %v5600_v53  ;;  %v4250_v40 = vld [vmem:[%s8325_s0 + $0xa88] sm:$0xff]  ;;  %4234 = vst [vmem:[%s8326_s1 + $0x438] sm:$0xff] %v1406_v28  ;;  %v1446_v45 = vpack.c.bf16 %v4247_v39, %v5631_v61 }
  0x3b   :  { %v1438_v38 = vpack.c.bf16 %v4244_v32, %v5605_v54  ;;  %v4253_v41 = vld [vmem:[%s8325_s0 + $0x488] sm:$0xff]  ;;  %v5811_v42 = vld [vmem:[%s8325_s0 + $0xc90] sm:$0xff]  ;;  %4237 = vst [vmem:[%s8326_s1 + $0x738] sm:$0xff] %v1414_v29  ;;  %v1454_v46 = vpack.c.bf16 %v4250_v40, %v5636_v62  ;;  %v5847_v51 = vld [vmem:[%s8325_s0 + $0x10a0] sm:$0xff] }
  0x3c   :  { %v5816_v43 = vld [vmem:[%s8325_s0 + $0x690] sm:$0xff]  ;;  %v1462_v47 = vpack.c.bf16 %v4253_v41, %v5641_v63  ;;  %v4256_v48 = vld [vmem:[%s8325_s0 + $0xe88] sm:$0xff]  ;;  %v5852_v52 = vld [vmem:[%s8325_s0 + $0xaa0] sm:$0xff]  ;;  %4240 = vst [vmem:[%s8326_s1 + $0x238] sm:$0xff] %v1422_v36 }
  0x3d   :  { %v5821_v44 = vld [vmem:[%s8325_s0 + $0x90] sm:$0xff]  ;;  %v4259_v49 = vld [vmem:[%s8325_s0 + $0x888] sm:$0xff]  ;;  %v5857_v53 = vld [vmem:[%s8325_s0 + $0x4a0] sm:$0xff]  ;;  %4243 = vst [vmem:[%s8326_s1 + $0x538] sm:$0xff] %v1430_v37  ;;  %v1470_v54 = vpack.c.bf16 %v4256_v48, %v5667_v6 }
  0x3e   :  { %v4262_v50 = vld [vmem:[%s8325_s0 + $0x288] sm:$0xff]  ;;  %4246 = vst [vmem:[%s8326_s1 + $0x838] sm:$0xff] %v1438_v38  ;;  %v1478_v55 = vpack.c.bf16 %v4259_v49, %v5672_v7  ;;  %v5883_v60 = vld [vmem:[%s8325_s0 + $0xea0] sm:$0xff]  ;;  %4249 = vst [vmem:[%s8326_s1 + $0x40] sm:$0xff] %v1446_v45 }
  0x3f   :  { %v1486_v56 = vpack.c.bf16 %v4262_v50, %v5677_v8  ;;  %v4265_v57 = vld [vmem:[%s8325_s0 + $0xc88] sm:$0xff]  ;;  %v5888_v61 = vld [vmem:[%s8325_s0 + $0x8a0] sm:$0xff]  ;;  %4252 = vst [vmem:[%s8326_s1 + $0x340] sm:$0xff] %v1454_v46  ;;  %4255 = vst [vmem:[%s8326_s1 + $0x640] sm:$0xff] %v1462_v47 }
  0x40   :  { %v4268_v58 = vld [vmem:[%s8325_s0 + $0x688] sm:$0xff]  ;;  %v5893_v62 = vld [vmem:[%s8325_s0 + $0x2a0] sm:$0xff]  ;;  %v1494_v63 = vpack.c.bf16 %v4265_v57, %v5703_v15  ;;  %v4274_v2 = vld [vmem:[%s8325_s0 + $0x1098] sm:$0xff]  ;;  %4258 = vst [vmem:[%s8326_s1 + $0x140] sm:$0xff] %v1470_v54 }
  0x41   :  { %v4271_v59 = vld [vmem:[%s8325_s0 + $0x88] sm:$0xff]  ;;  %v1502_v0 = vpack.c.bf16 %v4268_v58, %v5708_v16  ;;  %v4277_v3 = vld [vmem:[%s8325_s0 + $0xa98] sm:$0xff]  ;;  %v5919_v5 = vld [vmem:[%s8325_s0 + $0xca0] sm:$0xff]  ;;  %4261 = vst [vmem:[%s8326_s1 + $0x440] sm:$0xff] %v1478_v55  ;;  %v1518_v8 = vpack.c.bf16 %v4274_v2, %v5739_v24 }
  0x42   :  { %v1510_v1 = vpack.c.bf16 %v4271_v59, %v5713_v17  ;;  %v4280_v4 = vld [vmem:[%s8325_s0 + $0x498] sm:$0xff]  ;;  %v5924_v6 = vld [vmem:[%s8325_s0 + $0x6a0] sm:$0xff]  ;;  %4264 = vst [vmem:[%s8326_s1 + $0x740] sm:$0xff] %v1486_v56  ;;  %v1526_v9 = vpack.c.bf16 %v4277_v3, %v5744_v25  ;;  %v5955_v14 = vld [vmem:[%s8325_s0 + $0x10b0] sm:$0xff] }
  0x43   :  { %v5929_v7 = vld [vmem:[%s8325_s0 + $0xa0] sm:$0xff]  ;;  %v1534_v10 = vpack.c.bf16 %v4280_v4, %v5749_v26  ;;  %v4283_v11 = vld [vmem:[%s8325_s0 + $0xe98] sm:$0xff]  ;;  %v5960_v15 = vld [vmem:[%s8325_s0 + $0xab0] sm:$0xff]  ;;  %4267 = vst [vmem:[%s8326_s1 + $0x240] sm:$0xff] %v1494_v63 }
  0x44   :  { %v4286_v12 = vld [vmem:[%s8325_s0 + $0x898] sm:$0xff]  ;;  %v5965_v16 = vld [vmem:[%s8325_s0 + $0x4b0] sm:$0xff]  ;;  %4270 = vst [vmem:[%s8326_s1 + $0x540] sm:$0xff] %v1502_v0  ;;  %4273 = vst [vmem:[%s8326_s1 + $0x840] sm:$0xff] %v1510_v1  ;;  %v1542_v17 = vpack.c.bf16 %v4283_v11, %v5775_v33 }
  0x45   :  { %v4289_v13 = vld [vmem:[%s8325_s0 + $0x298] sm:$0xff]  ;;  %v1550_v18 = vpack.c.bf16 %v4286_v12, %v5780_v34  ;;  %v5991_v23 = vld [vmem:[%s8325_s0 + $0xeb0] sm:$0xff]  ;;  %4276 = vst [vmem:[%s8326_s1 + $0x48] sm:$0xff] %v1518_v8  ;;  %4279 = vst [vmem:[%s8326_s1 + $0x348] sm:$0xff] %v1526_v9 }
  0x46   :  { %v1558_v19 = vpack.c.bf16 %v4289_v13, %v5785_v35  ;;  %v4292_v20 = vld [vmem:[%s8325_s0 + $0xc98] sm:$0xff]  ;;  %v5996_v24 = vld [vmem:[%s8325_s0 + $0x8b0] sm:$0xff]  ;;  %4282 = vst [vmem:[%s8326_s1 + $0x648] sm:$0xff] %v1534_v10  ;;  %v4301_v29 = vld [vmem:[%s8325_s0 + $0x10a8] sm:$0xff] }
  0x47   :  { %v4295_v21 = vld [vmem:[%s8325_s0 + $0x698] sm:$0xff]  ;;  %v6001_v25 = vld [vmem:[%s8325_s0 + $0x2b0] sm:$0xff]  ;;  %v1566_v26 = vpack.c.bf16 %v4292_v20, %v5811_v42  ;;  %v4304_v30 = vld [vmem:[%s8325_s0 + $0xaa8] sm:$0xff]  ;;  %4285 = vst [vmem:[%s8326_s1 + $0x148] sm:$0xff] %v1542_v17  ;;  %v1590_v35 = vpack.c.bf16 %v4301_v29, %v5847_v51 }
  0x48   :  { %v4298_v22 = vld [vmem:[%s8325_s0 + $0x98] sm:$0xff]  ;;  %v1574_v27 = vpack.c.bf16 %v4295_v21, %v5816_v43  ;;  %v4307_v31 = vld [vmem:[%s8325_s0 + $0x4a8] sm:$0xff]  ;;  %v6027_v32 = vld [vmem:[%s8325_s0 + $0xcb0] sm:$0xff]  ;;  %4288 = vst [vmem:[%s8326_s1 + $0x448] sm:$0xff] %v1550_v18  ;;  %v1598_v36 = vpack.c.bf16 %v4304_v30, %v5852_v52 }
  0x49   :  { %v1582_v28 = vpack.c.bf16 %v4298_v22, %v5821_v44  ;;  %v6032_v33 = vld [vmem:[%s8325_s0 + $0x6b0] sm:$0xff]  ;;  %4291 = vst [vmem:[%s8326_s1 + $0x748] sm:$0xff] %v1558_v19  ;;  %v1606_v37 = vpack.c.bf16 %v4307_v31, %v5857_v53  ;;  %v4310_v38 = vld [vmem:[%s8325_s0 + $0xea8] sm:$0xff]  ;;  %v6063_v41 = vld [vmem:[%s8325_s0 + $0x10c0] sm:$0xff] }
  0x4a   :  { %v6037_v34 = vld [vmem:[%s8325_s0 + $0xb0] sm:$0xff]  ;;  %v4313_v39 = vld [vmem:[%s8325_s0 + $0x8a8] sm:$0xff]  ;;  %v6068_v42 = vld [vmem:[%s8325_s0 + $0xac0] sm:$0xff]  ;;  %4294 = vst [vmem:[%s8326_s1 + $0x248] sm:$0xff] %v1566_v26  ;;  %v1614_v44 = vpack.c.bf16 %v4310_v38, %v5883_v60 }
  0x4b   :  { %v4316_v40 = vld [vmem:[%s8325_s0 + $0x2a8] sm:$0xff]  ;;  %v6073_v43 = vld [vmem:[%s8325_s0 + $0x4c0] sm:$0xff]  ;;  %4297 = vst [vmem:[%s8326_s1 + $0x548] sm:$0xff] %v1574_v27  ;;  %4300 = vst [vmem:[%s8326_s1 + $0x848] sm:$0xff] %v1582_v28  ;;  %v1622_v45 = vpack.c.bf16 %v4313_v39, %v5888_v61 }
  0x4c   :  { %v1630_v46 = vpack.c.bf16 %v4316_v40, %v5893_v62  ;;  %v4319_v47 = vld [vmem:[%s8325_s0 + $0xca8] sm:$0xff]  ;;  %v6099_v50 = vld [vmem:[%s8325_s0 + $0xec0] sm:$0xff]  ;;  %4303 = vst [vmem:[%s8326_s1 + $0x50] sm:$0xff] %v1590_v35  ;;  %4306 = vst [vmem:[%s8326_s1 + $0x350] sm:$0xff] %v1598_v36 }
  0x4d   :  { %v4322_v48 = vld [vmem:[%s8325_s0 + $0x6a8] sm:$0xff]  ;;  %v6104_v51 = vld [vmem:[%s8325_s0 + $0x8c0] sm:$0xff]  ;;  %4309 = vst [vmem:[%s8326_s1 + $0x650] sm:$0xff] %v1606_v37  ;;  %v1638_v53 = vpack.c.bf16 %v4319_v47, %v5919_v5  ;;  %v4328_v56 = vld [vmem:[%s8325_s0 + $0x10b8] sm:$0xff] }
  0x4e   :  { %v4325_v49 = vld [vmem:[%s8325_s0 + $0xa8] sm:$0xff]  ;;  %v6109_v52 = vld [vmem:[%s8325_s0 + $0x2c0] sm:$0xff]  ;;  %v1646_v54 = vpack.c.bf16 %v4322_v48, %v5924_v6  ;;  %v4331_v57 = vld [vmem:[%s8325_s0 + $0xab8] sm:$0xff]  ;;  %4312 = vst [vmem:[%s8326_s1 + $0x150] sm:$0xff] %v1614_v44  ;;  %v1662_v62 = vpack.c.bf16 %v4328_v56, %v5955_v14 }
  0x4f   :  { %v1654_v55 = vpack.c.bf16 %v4325_v49, %v5929_v7  ;;  %v4334_v58 = vld [vmem:[%s8325_s0 + $0x4b8] sm:$0xff]  ;;  %v6135_v59 = vld [vmem:[%s8325_s0 + $0xcc0] sm:$0xff]  ;;  %4315 = vst [vmem:[%s8326_s1 + $0x450] sm:$0xff] %v1622_v45  ;;  %4318 = vst [vmem:[%s8326_s1 + $0x750] sm:$0xff] %v1630_v46  ;;  %v1670_v63 = vpack.c.bf16 %v4331_v57, %v5960_v15 }
  0x50   :  { %v6140_v60 = vld [vmem:[%s8325_s0 + $0x6c0] sm:$0xff]  ;;  %v1678_v0 = vpack.c.bf16 %v4334_v58, %v5965_v16  ;;  %v4337_v1 = vld [vmem:[%s8325_s0 + $0xeb8] sm:$0xff]  ;;  %v6171_v4 = vld [vmem:[%s8325_s0 + $0x10d0] sm:$0xff]  ;;  %4321 = vst [vmem:[%s8326_s1 + $0x250] sm:$0xff] %v1638_v53 }
  0x51   :  { %v6145_v61 = vld [vmem:[%s8325_s0 + $0xc0] sm:$0xff]  ;;  %v4340_v2 = vld [vmem:[%s8325_s0 + $0x8b8] sm:$0xff]  ;;  %v6176_v5 = vld [vmem:[%s8325_s0 + $0xad0] sm:$0xff]  ;;  %4324 = vst [vmem:[%s8326_s1 + $0x550] sm:$0xff] %v1646_v54  ;;  %v1686_v7 = vpack.c.bf16 %v4337_v1, %v5991_v23 }
  0x52   :  { %v4343_v3 = vld [vmem:[%s8325_s0 + $0x2b8] sm:$0xff]  ;;  %v6181_v6 = vld [vmem:[%s8325_s0 + $0x4d0] sm:$0xff]  ;;  %4327 = vst [vmem:[%s8326_s1 + $0x850] sm:$0xff] %v1654_v55  ;;  %v1694_v8 = vpack.c.bf16 %v4340_v2, %v5996_v24  ;;  %4330 = vst [vmem:[%s8326_s1 + $0x58] sm:$0xff] %v1662_v62 }
  0x53   :  { %v1702_v9 = vpack.c.bf16 %v4343_v3, %v6001_v25  ;;  %v4346_v10 = vld [vmem:[%s8325_s0 + $0xcb8] sm:$0xff]  ;;  %v6207_v13 = vld [vmem:[%s8325_s0 + $0xed0] sm:$0xff]  ;;  %4333 = vst [vmem:[%s8326_s1 + $0x358] sm:$0xff] %v1670_v63  ;;  %4336 = vst [vmem:[%s8326_s1 + $0x658] sm:$0xff] %v1678_v0 }
  0x54   :  { %v4349_v11 = vld [vmem:[%s8325_s0 + $0x6b8] sm:$0xff]  ;;  %v6212_v14 = vld [vmem:[%s8325_s0 + $0x8d0] sm:$0xff]  ;;  %v1710_v16 = vpack.c.bf16 %v4346_v10, %v6027_v32  ;;  %v4355_v19 = vld [vmem:[%s8325_s0 + $0x10c8] sm:$0xff]  ;;  %4339 = vst [vmem:[%s8326_s1 + $0x158] sm:$0xff] %v1686_v7 }
  0x55   :  { %v4352_v12 = vld [vmem:[%s8325_s0 + $0xb8] sm:$0xff]  ;;  %v6217_v15 = vld [vmem:[%s8325_s0 + $0x2d0] sm:$0xff]  ;;  %v1718_v17 = vpack.c.bf16 %v4349_v11, %v6032_v33  ;;  %v4358_v20 = vld [vmem:[%s8325_s0 + $0xac8] sm:$0xff]  ;;  %4342 = vst [vmem:[%s8326_s1 + $0x458] sm:$0xff] %v1694_v8  ;;  %v1734_v25 = vpack.c.bf16 %v4355_v19, %v6063_v41 }
  0x56   :  { %v1726_v18 = vpack.c.bf16 %v4352_v12, %v6037_v34  ;;  %v4361_v21 = vld [vmem:[%s8325_s0 + $0x4c8] sm:$0xff]  ;;  %v6243_v22 = vld [vmem:[%s8325_s0 + $0xcd0] sm:$0xff]  ;;  %4345 = vst [vmem:[%s8326_s1 + $0x758] sm:$0xff] %v1702_v9  ;;  %v1742_v26 = vpack.c.bf16 %v4358_v20, %v6068_v42  ;;  %v6279_v31 = vld [vmem:[%s8325_s0 + $0x10e0] sm:$0xff] }
  0x57   :  { %v6248_v23 = vld [vmem:[%s8325_s0 + $0x6d0] sm:$0xff]  ;;  %v1750_v27 = vpack.c.bf16 %v4361_v21, %v6073_v43  ;;  %v4364_v28 = vld [vmem:[%s8325_s0 + $0xec8] sm:$0xff]  ;;  %v6284_v32 = vld [vmem:[%s8325_s0 + $0xae0] sm:$0xff]  ;;  %4348 = vst [vmem:[%s8326_s1 + $0x258] sm:$0xff] %v1710_v16 }
  0x58   :  { %v6253_v24 = vld [vmem:[%s8325_s0 + $0xd0] sm:$0xff]  ;;  %v4367_v29 = vld [vmem:[%s8325_s0 + $0x8c8] sm:$0xff]  ;;  %v6289_v33 = vld [vmem:[%s8325_s0 + $0x4e0] sm:$0xff]  ;;  %4351 = vst [vmem:[%s8326_s1 + $0x558] sm:$0xff] %v1718_v17  ;;  %v1758_v34 = vpack.c.bf16 %v4364_v28, %v6099_v50 }
  0x59   :  { %v4370_v30 = vld [vmem:[%s8325_s0 + $0x2c8] sm:$0xff]  ;;  %4354 = vst [vmem:[%s8326_s1 + $0x858] sm:$0xff] %v1726_v18  ;;  %v1766_v35 = vpack.c.bf16 %v4367_v29, %v6104_v51  ;;  %v6315_v40 = vld [vmem:[%s8325_s0 + $0xee0] sm:$0xff]  ;;  %4357 = vst [vmem:[%s8326_s1 + $0x60] sm:$0xff] %v1734_v25 }
  0x5a   :  { %v1774_v36 = vpack.c.bf16 %v4370_v30, %v6109_v52  ;;  %v4373_v37 = vld [vmem:[%s8325_s0 + $0xcc8] sm:$0xff]  ;;  %v6320_v41 = vld [vmem:[%s8325_s0 + $0x8e0] sm:$0xff]  ;;  %4360 = vst [vmem:[%s8326_s1 + $0x360] sm:$0xff] %v1742_v26  ;;  %4363 = vst [vmem:[%s8326_s1 + $0x660] sm:$0xff] %v1750_v27 }
  0x5b   :  { %v4376_v38 = vld [vmem:[%s8325_s0 + $0x6c8] sm:$0xff]  ;;  %v6325_v42 = vld [vmem:[%s8325_s0 + $0x2e0] sm:$0xff]  ;;  %v1782_v43 = vpack.c.bf16 %v4373_v37, %v6135_v59  ;;  %v4382_v46 = vld [vmem:[%s8325_s0 + $0x10d8] sm:$0xff]  ;;  %4366 = vst [vmem:[%s8326_s1 + $0x160] sm:$0xff] %v1758_v34 }
  0x5c   :  { %v4379_v39 = vld [vmem:[%s8325_s0 + $0xc8] sm:$0xff]  ;;  %v1790_v44 = vpack.c.bf16 %v4376_v38, %v6140_v60  ;;  %v4385_v47 = vld [vmem:[%s8325_s0 + $0xad8] sm:$0xff]  ;;  %v6351_v49 = vld [vmem:[%s8325_s0 + $0xce0] sm:$0xff]  ;;  %4369 = vst [vmem:[%s8326_s1 + $0x460] sm:$0xff] %v1766_v35  ;;  %v1806_v52 = vpack.c.bf16 %v4382_v46, %v6171_v4 }
  0x5d   :  { %v1798_v45 = vpack.c.bf16 %v4379_v39, %v6145_v61  ;;  %v4388_v48 = vld [vmem:[%s8325_s0 + $0x4d8] sm:$0xff]  ;;  %v6356_v50 = vld [vmem:[%s8325_s0 + $0x6e0] sm:$0xff]  ;;  %4372 = vst [vmem:[%s8326_s1 + $0x760] sm:$0xff] %v1774_v36  ;;  %v1814_v53 = vpack.c.bf16 %v4385_v47, %v6176_v5  ;;  %v6387_v58 = vld [vmem:[%s8325_s0 + $0x10f0] sm:$0xff] }
  0x5e   :  { %v6361_v51 = vld [vmem:[%s8325_s0 + $0xe0] sm:$0xff]  ;;  %v1822_v54 = vpack.c.bf16 %v4388_v48, %v6181_v6  ;;  %v4391_v55 = vld [vmem:[%s8325_s0 + $0xed8] sm:$0xff]  ;;  %v6392_v59 = vld [vmem:[%s8325_s0 + $0xaf0] sm:$0xff]  ;;  %4375 = vst [vmem:[%s8326_s1 + $0x260] sm:$0xff] %v1782_v43 }
  0x5f   :  { %v4394_v56 = vld [vmem:[%s8325_s0 + $0x8d8] sm:$0xff]  ;;  %v6397_v60 = vld [vmem:[%s8325_s0 + $0x4f0] sm:$0xff]  ;;  %4378 = vst [vmem:[%s8326_s1 + $0x560] sm:$0xff] %v1790_v44  ;;  %4381 = vst [vmem:[%s8326_s1 + $0x860] sm:$0xff] %v1798_v45  ;;  %v1830_v61 = vpack.c.bf16 %v4391_v55, %v6207_v13 }
  0x60   :  { %v4397_v57 = vld [vmem:[%s8325_s0 + $0x2d8] sm:$0xff]  ;;  %v1838_v62 = vpack.c.bf16 %v4394_v56, %v6212_v14  ;;  %v6423_v3 = vld [vmem:[%s8325_s0 + $0xef0] sm:$0xff]  ;;  %4384 = vst [vmem:[%s8326_s1 + $0x68] sm:$0xff] %v1806_v52  ;;  %4387 = vst [vmem:[%s8326_s1 + $0x368] sm:$0xff] %v1814_v53 }
  0x61   :  { %v1846_v63 = vpack.c.bf16 %v4397_v57, %v6217_v15  ;;  %v4400_v0 = vld [vmem:[%s8325_s0 + $0xcd8] sm:$0xff]  ;;  %v6428_v4 = vld [vmem:[%s8325_s0 + $0x8f0] sm:$0xff]  ;;  %4390 = vst [vmem:[%s8326_s1 + $0x668] sm:$0xff] %v1822_v54  ;;  %v4409_v9 = vld [vmem:[%s8325_s0 + $0x10e8] sm:$0xff] }
  0x62   :  { %v4403_v1 = vld [vmem:[%s8325_s0 + $0x6d8] sm:$0xff]  ;;  %v6433_v5 = vld [vmem:[%s8325_s0 + $0x2f0] sm:$0xff]  ;;  %v1854_v6 = vpack.c.bf16 %v4400_v0, %v6243_v22  ;;  %v4412_v10 = vld [vmem:[%s8325_s0 + $0xae8] sm:$0xff]  ;;  %4393 = vst [vmem:[%s8326_s1 + $0x168] sm:$0xff] %v1830_v61  ;;  %v1878_v15 = vpack.c.bf16 %v4409_v9, %v6279_v31 }
  0x63   :  { %v4406_v2 = vld [vmem:[%s8325_s0 + $0xd8] sm:$0xff]  ;;  %v1862_v7 = vpack.c.bf16 %v4403_v1, %v6248_v23  ;;  %v4415_v11 = vld [vmem:[%s8325_s0 + $0x4e8] sm:$0xff]  ;;  %v6459_v12 = vld [vmem:[%s8325_s0 + $0xcf0] sm:$0xff]  ;;  %4396 = vst [vmem:[%s8326_s1 + $0x468] sm:$0xff] %v1838_v62  ;;  %v1886_v16 = vpack.c.bf16 %v4412_v10, %v6284_v32 }
  0x64   :  { %v1870_v8 = vpack.c.bf16 %v4406_v2, %v6253_v24  ;;  %v6464_v13 = vld [vmem:[%s8325_s0 + $0x6f0] sm:$0xff]  ;;  %4399 = vst [vmem:[%s8326_s1 + $0x768] sm:$0xff] %v1846_v63  ;;  %v1894_v17 = vpack.c.bf16 %v4415_v11, %v6289_v33  ;;  %v4418_v18 = vld [vmem:[%s8325_s0 + $0xee8] sm:$0xff]  ;;  %v6495_v21 = vld [vmem:[%s8325_s0 + $0x1100] sm:$0xff] }
  0x65   :  { %v6469_v14 = vld [vmem:[%s8325_s0 + $0xf0] sm:$0xff]  ;;  %v4421_v19 = vld [vmem:[%s8325_s0 + $0x8e8] sm:$0xff]  ;;  %v6500_v22 = vld [vmem:[%s8325_s0 + $0xb00] sm:$0xff]  ;;  %4402 = vst [vmem:[%s8326_s1 + $0x268] sm:$0xff] %v1854_v6  ;;  %v1902_v24 = vpack.c.bf16 %v4418_v18, %v6315_v40 }
  0x66   :  { %v4424_v20 = vld [vmem:[%s8325_s0 + $0x2e8] sm:$0xff]  ;;  %v6505_v23 = vld [vmem:[%s8325_s0 + $0x500] sm:$0xff]  ;;  %4405 = vst [vmem:[%s8326_s1 + $0x568] sm:$0xff] %v1862_v7  ;;  %4408 = vst [vmem:[%s8326_s1 + $0x868] sm:$0xff] %v1870_v8  ;;  %v1910_v25 = vpack.c.bf16 %v4421_v19, %v6320_v41 }
  0x67   :  { %v1918_v26 = vpack.c.bf16 %v4424_v20, %v6325_v42  ;;  %v4427_v27 = vld [vmem:[%s8325_s0 + $0xce8] sm:$0xff]  ;;  %v6531_v30 = vld [vmem:[%s8325_s0 + $0xf00] sm:$0xff]  ;;  %4411 = vst [vmem:[%s8326_s1 + $0x70] sm:$0xff] %v1878_v15  ;;  %4414 = vst [vmem:[%s8326_s1 + $0x370] sm:$0xff] %v1886_v16 }
  0x68   :  { %v4430_v28 = vld [vmem:[%s8325_s0 + $0x6e8] sm:$0xff]  ;;  %v6536_v31 = vld [vmem:[%s8325_s0 + $0x900] sm:$0xff]  ;;  %4417 = vst [vmem:[%s8326_s1 + $0x670] sm:$0xff] %v1894_v17  ;;  %v1926_v33 = vpack.c.bf16 %v4427_v27, %v6351_v49  ;;  %v4436_v36 = vld [vmem:[%s8325_s0 + $0x10f8] sm:$0xff] }
  0x69   :  { %v4433_v29 = vld [vmem:[%s8325_s0 + $0xe8] sm:$0xff]  ;;  %v6541_v32 = vld [vmem:[%s8325_s0 + $0x300] sm:$0xff]  ;;  %v1934_v34 = vpack.c.bf16 %v4430_v28, %v6356_v50  ;;  %v4439_v37 = vld [vmem:[%s8325_s0 + $0xaf8] sm:$0xff]  ;;  %4420 = vst [vmem:[%s8326_s1 + $0x170] sm:$0xff] %v1902_v24  ;;  %v1950_v42 = vpack.c.bf16 %v4436_v36, %v6387_v58 }
  0x6a   :  { %v1942_v35 = vpack.c.bf16 %v4433_v29, %v6361_v51  ;;  %v4442_v38 = vld [vmem:[%s8325_s0 + $0x4f8] sm:$0xff]  ;;  %v6567_v39 = vld [vmem:[%s8325_s0 + $0xd00] sm:$0xff]  ;;  %4423 = vst [vmem:[%s8326_s1 + $0x470] sm:$0xff] %v1910_v25  ;;  %4426 = vst [vmem:[%s8326_s1 + $0x770] sm:$0xff] %v1918_v26  ;;  %v1958_v43 = vpack.c.bf16 %v4439_v37, %v6392_v59 }
  0x6b   :  { %v6572_v40 = vld [vmem:[%s8325_s0 + $0x700] sm:$0xff]  ;;  %v1966_v44 = vpack.c.bf16 %v4442_v38, %v6397_v60  ;;  %v4445_v45 = vld [vmem:[%s8325_s0 + $0xef8] sm:$0xff]  ;;  %v6603_v48 = vld [vmem:[%s8325_s0 + $0x1110] sm:$0xff]  ;;  %4429 = vst [vmem:[%s8326_s1 + $0x270] sm:$0xff] %v1926_v33 }
  0x6c   :  { %v6577_v41 = vld [vmem:[%s8325_s0 + $0x100] sm:$0xff]  ;;  %v4448_v46 = vld [vmem:[%s8325_s0 + $0x8f8] sm:$0xff]  ;;  %v6608_v49 = vld [vmem:[%s8325_s0 + $0xb10] sm:$0xff]  ;;  %4432 = vst [vmem:[%s8326_s1 + $0x570] sm:$0xff] %v1934_v34  ;;  %v1974_v51 = vpack.c.bf16 %v4445_v45, %v6423_v3 }
  0x6d   :  { %v4451_v47 = vld [vmem:[%s8325_s0 + $0x2f8] sm:$0xff]  ;;  %v6613_v50 = vld [vmem:[%s8325_s0 + $0x510] sm:$0xff]  ;;  %4435 = vst [vmem:[%s8326_s1 + $0x870] sm:$0xff] %v1942_v35  ;;  %v1982_v52 = vpack.c.bf16 %v4448_v46, %v6428_v4  ;;  %4438 = vst [vmem:[%s8326_s1 + $0x78] sm:$0xff] %v1950_v42 }
  0x6e   :  { %v1990_v53 = vpack.c.bf16 %v4451_v47, %v6433_v5  ;;  %v4454_v54 = vld [vmem:[%s8325_s0 + $0xcf8] sm:$0xff]  ;;  %v6639_v57 = vld [vmem:[%s8325_s0 + $0xf10] sm:$0xff]  ;;  %4441 = vst [vmem:[%s8326_s1 + $0x378] sm:$0xff] %v1958_v43  ;;  %4444 = vst [vmem:[%s8326_s1 + $0x678] sm:$0xff] %v1966_v44 }
  0x6f   :  { %v4457_v55 = vld [vmem:[%s8325_s0 + $0x6f8] sm:$0xff]  ;;  %v6644_v58 = vld [vmem:[%s8325_s0 + $0x910] sm:$0xff]  ;;  %v1998_v60 = vpack.c.bf16 %v4454_v54, %v6459_v12  ;;  %v4463_v63 = vld [vmem:[%s8325_s0 + $0x1108] sm:$0xff]  ;;  %4447 = vst [vmem:[%s8326_s1 + $0x178] sm:$0xff] %v1974_v51 }
  0x70   :  { %v4460_v56 = vld [vmem:[%s8325_s0 + $0xf8] sm:$0xff]  ;;  %v6649_v59 = vld [vmem:[%s8325_s0 + $0x310] sm:$0xff]  ;;  %v2006_v61 = vpack.c.bf16 %v4457_v55, %v6464_v13  ;;  %v4466_v0 = vld [vmem:[%s8325_s0 + $0xb08] sm:$0xff]  ;;  %4450 = vst [vmem:[%s8326_s1 + $0x478] sm:$0xff] %v1982_v52  ;;  %v2022_v5 = vpack.c.bf16 %v4463_v63, %v6495_v21 }
  0x71   :  { %v2014_v62 = vpack.c.bf16 %v4460_v56, %v6469_v14  ;;  %v4469_v1 = vld [vmem:[%s8325_s0 + $0x508] sm:$0xff]  ;;  %v6675_v2 = vld [vmem:[%s8325_s0 + $0xd10] sm:$0xff]  ;;  %4453 = vst [vmem:[%s8326_s1 + $0x778] sm:$0xff] %v1990_v53  ;;  %v2030_v6 = vpack.c.bf16 %v4466_v0, %v6500_v22  ;;  %v6711_v11 = vld [vmem:[%s8325_s0 + $0x1120] sm:$0xff] }
  0x72   :  { %v6680_v3 = vld [vmem:[%s8325_s0 + $0x710] sm:$0xff]  ;;  %v2038_v7 = vpack.c.bf16 %v4469_v1, %v6505_v23  ;;  %v4472_v8 = vld [vmem:[%s8325_s0 + $0xf08] sm:$0xff]  ;;  %v6716_v12 = vld [vmem:[%s8325_s0 + $0xb20] sm:$0xff]  ;;  %4456 = vst [vmem:[%s8326_s1 + $0x278] sm:$0xff] %v1998_v60 }
  0x73   :  { %v6685_v4 = vld [vmem:[%s8325_s0 + $0x110] sm:$0xff]  ;;  %v4475_v9 = vld [vmem:[%s8325_s0 + $0x908] sm:$0xff]  ;;  %v6721_v13 = vld [vmem:[%s8325_s0 + $0x520] sm:$0xff]  ;;  %4459 = vst [vmem:[%s8326_s1 + $0x578] sm:$0xff] %v2006_v61  ;;  %v2046_v14 = vpack.c.bf16 %v4472_v8, %v6531_v30 }
  0x74   :  { %v4478_v10 = vld [vmem:[%s8325_s0 + $0x308] sm:$0xff]  ;;  %4462 = vst [vmem:[%s8326_s1 + $0x878] sm:$0xff] %v2014_v62  ;;  %v2054_v15 = vpack.c.bf16 %v4475_v9, %v6536_v31  ;;  %v6747_v20 = vld [vmem:[%s8325_s0 + $0xf20] sm:$0xff]  ;;  %4465 = vst [vmem:[%s8326_s1 + $0x80] sm:$0xff] %v2022_v5 }
  0x75   :  { %v2062_v16 = vpack.c.bf16 %v4478_v10, %v6541_v32  ;;  %v4481_v17 = vld [vmem:[%s8325_s0 + $0xd08] sm:$0xff]  ;;  %v6752_v21 = vld [vmem:[%s8325_s0 + $0x920] sm:$0xff]  ;;  %4468 = vst [vmem:[%s8326_s1 + $0x380] sm:$0xff] %v2030_v6  ;;  %4471 = vst [vmem:[%s8326_s1 + $0x680] sm:$0xff] %v2038_v7 }
  0x76   :  { %v4484_v18 = vld [vmem:[%s8325_s0 + $0x708] sm:$0xff]  ;;  %v6757_v22 = vld [vmem:[%s8325_s0 + $0x320] sm:$0xff]  ;;  %v2070_v23 = vpack.c.bf16 %v4481_v17, %v6567_v39  ;;  %v4490_v26 = vld [vmem:[%s8325_s0 + $0x1118] sm:$0xff]  ;;  %4474 = vst [vmem:[%s8326_s1 + $0x180] sm:$0xff] %v2046_v14 }
  0x77   :  { %v4487_v19 = vld [vmem:[%s8325_s0 + $0x108] sm:$0xff]  ;;  %v2078_v24 = vpack.c.bf16 %v4484_v18, %v6572_v40  ;;  %v4493_v27 = vld [vmem:[%s8325_s0 + $0xb18] sm:$0xff]  ;;  %v6783_v29 = vld [vmem:[%s8325_s0 + $0xd20] sm:$0xff]  ;;  %4477 = vst [vmem:[%s8326_s1 + $0x480] sm:$0xff] %v2054_v15  ;;  %v2094_v32 = vpack.c.bf16 %v4490_v26, %v6603_v48 }
  0x78   :  { %v2086_v25 = vpack.c.bf16 %v4487_v19, %v6577_v41  ;;  %v4496_v28 = vld [vmem:[%s8325_s0 + $0x518] sm:$0xff]  ;;  %v6788_v30 = vld [vmem:[%s8325_s0 + $0x720] sm:$0xff]  ;;  %4480 = vst [vmem:[%s8326_s1 + $0x780] sm:$0xff] %v2062_v16  ;;  %v2102_v33 = vpack.c.bf16 %v4493_v27, %v6608_v49  ;;  %v6819_v38 = vld [vmem:[%s8325_s0 + $0x1130] sm:$0xff] }
  0x79   :  { %v6793_v31 = vld [vmem:[%s8325_s0 + $0x120] sm:$0xff]  ;;  %v2110_v34 = vpack.c.bf16 %v4496_v28, %v6613_v50  ;;  %v4499_v35 = vld [vmem:[%s8325_s0 + $0xf18] sm:$0xff]  ;;  %v6824_v39 = vld [vmem:[%s8325_s0 + $0xb30] sm:$0xff]  ;;  %4483 = vst [vmem:[%s8326_s1 + $0x280] sm:$0xff] %v2070_v23 }
  0x7a   :  { %v4502_v36 = vld [vmem:[%s8325_s0 + $0x918] sm:$0xff]  ;;  %v6829_v40 = vld [vmem:[%s8325_s0 + $0x530] sm:$0xff]  ;;  %4486 = vst [vmem:[%s8326_s1 + $0x580] sm:$0xff] %v2078_v24  ;;  %4489 = vst [vmem:[%s8326_s1 + $0x880] sm:$0xff] %v2086_v25  ;;  %v2118_v41 = vpack.c.bf16 %v4499_v35, %v6639_v57 }
  0x7b   :  { %v4505_v37 = vld [vmem:[%s8325_s0 + $0x318] sm:$0xff]  ;;  %v2126_v42 = vpack.c.bf16 %v4502_v36, %v6644_v58  ;;  %v6855_v47 = vld [vmem:[%s8325_s0 + $0xf30] sm:$0xff]  ;;  %4492 = vst [vmem:[%s8326_s1 + $0x88] sm:$0xff] %v2094_v32  ;;  %4495 = vst [vmem:[%s8326_s1 + $0x388] sm:$0xff] %v2102_v33 }
  0x7c   :  { %v2134_v43 = vpack.c.bf16 %v4505_v37, %v6649_v59  ;;  %v4508_v44 = vld [vmem:[%s8325_s0 + $0xd18] sm:$0xff]  ;;  %v6860_v48 = vld [vmem:[%s8325_s0 + $0x930] sm:$0xff]  ;;  %4498 = vst [vmem:[%s8326_s1 + $0x688] sm:$0xff] %v2110_v34  ;;  %v4517_v53 = vld [vmem:[%s8325_s0 + $0x1128] sm:$0xff] }
  0x7d   :  { %v4511_v45 = vld [vmem:[%s8325_s0 + $0x718] sm:$0xff]  ;;  %v6865_v49 = vld [vmem:[%s8325_s0 + $0x330] sm:$0xff]  ;;  %v2142_v50 = vpack.c.bf16 %v4508_v44, %v6675_v2  ;;  %v4520_v54 = vld [vmem:[%s8325_s0 + $0xb28] sm:$0xff]  ;;  %4501 = vst [vmem:[%s8326_s1 + $0x188] sm:$0xff] %v2118_v41  ;;  %v2166_v59 = vpack.c.bf16 %v4517_v53, %v6711_v11 }
  0x7e   :  { %v4514_v46 = vld [vmem:[%s8325_s0 + $0x118] sm:$0xff]  ;;  %v2150_v51 = vpack.c.bf16 %v4511_v45, %v6680_v3  ;;  %v4523_v55 = vld [vmem:[%s8325_s0 + $0x528] sm:$0xff]  ;;  %v6891_v56 = vld [vmem:[%s8325_s0 + $0xd30] sm:$0xff]  ;;  %4504 = vst [vmem:[%s8326_s1 + $0x488] sm:$0xff] %v2126_v42  ;;  %v2174_v60 = vpack.c.bf16 %v4520_v54, %v6716_v12 }
  0x7f   :  { %v2158_v52 = vpack.c.bf16 %v4514_v46, %v6685_v4  ;;  %v6896_v57 = vld [vmem:[%s8325_s0 + $0x730] sm:$0xff]  ;;  %4507 = vst [vmem:[%s8326_s1 + $0x788] sm:$0xff] %v2134_v43  ;;  %v2182_v61 = vpack.c.bf16 %v4523_v55, %v6721_v13  ;;  %v4526_v62 = vld [vmem:[%s8325_s0 + $0xf28] sm:$0xff]  ;;  %v6927_v1 = vld [vmem:[%s8325_s0 + $0x1140] sm:$0xff] }
  0x80   :  { %v6901_v58 = vld [vmem:[%s8325_s0 + $0x130] sm:$0xff]  ;;  %v4529_v63 = vld [vmem:[%s8325_s0 + $0x928] sm:$0xff]  ;;  %v6932_v2 = vld [vmem:[%s8325_s0 + $0xb40] sm:$0xff]  ;;  %4510 = vst [vmem:[%s8326_s1 + $0x288] sm:$0xff] %v2142_v50  ;;  %v2190_v4 = vpack.c.bf16 %v4526_v62, %v6747_v20 }
  0x81   :  { %v4532_v0 = vld [vmem:[%s8325_s0 + $0x328] sm:$0xff]  ;;  %v6937_v3 = vld [vmem:[%s8325_s0 + $0x540] sm:$0xff]  ;;  %4513 = vst [vmem:[%s8326_s1 + $0x588] sm:$0xff] %v2150_v51  ;;  %4516 = vst [vmem:[%s8326_s1 + $0x888] sm:$0xff] %v2158_v52  ;;  %v2198_v5 = vpack.c.bf16 %v4529_v63, %v6752_v21 }
  0x82   :  { %v2206_v6 = vpack.c.bf16 %v4532_v0, %v6757_v22  ;;  %v4535_v7 = vld [vmem:[%s8325_s0 + $0xd28] sm:$0xff]  ;;  %v6963_v10 = vld [vmem:[%s8325_s0 + $0xf40] sm:$0xff]  ;;  %4519 = vst [vmem:[%s8326_s1 + $0x90] sm:$0xff] %v2166_v59  ;;  %4522 = vst [vmem:[%s8326_s1 + $0x390] sm:$0xff] %v2174_v60 }
  0x83   :  { %v4538_v8 = vld [vmem:[%s8325_s0 + $0x728] sm:$0xff]  ;;  %v6968_v11 = vld [vmem:[%s8325_s0 + $0x940] sm:$0xff]  ;;  %4525 = vst [vmem:[%s8326_s1 + $0x690] sm:$0xff] %v2182_v61  ;;  %v2214_v13 = vpack.c.bf16 %v4535_v7, %v6783_v29  ;;  %v4544_v16 = vld [vmem:[%s8325_s0 + $0x1138] sm:$0xff] }
  0x84   :  { %v4541_v9 = vld [vmem:[%s8325_s0 + $0x128] sm:$0xff]  ;;  %v6973_v12 = vld [vmem:[%s8325_s0 + $0x340] sm:$0xff]  ;;  %v2222_v14 = vpack.c.bf16 %v4538_v8, %v6788_v30  ;;  %v4547_v17 = vld [vmem:[%s8325_s0 + $0xb38] sm:$0xff]  ;;  %4528 = vst [vmem:[%s8326_s1 + $0x190] sm:$0xff] %v2190_v4  ;;  %v2238_v22 = vpack.c.bf16 %v4544_v16, %v6819_v38 }
  0x85   :  { %v2230_v15 = vpack.c.bf16 %v4541_v9, %v6793_v31  ;;  %v4550_v18 = vld [vmem:[%s8325_s0 + $0x538] sm:$0xff]  ;;  %v6999_v19 = vld [vmem:[%s8325_s0 + $0xd40] sm:$0xff]  ;;  %4531 = vst [vmem:[%s8326_s1 + $0x490] sm:$0xff] %v2198_v5  ;;  %4534 = vst [vmem:[%s8326_s1 + $0x790] sm:$0xff] %v2206_v6  ;;  %v2246_v23 = vpack.c.bf16 %v4547_v17, %v6824_v39 }
  0x86   :  { %v7004_v20 = vld [vmem:[%s8325_s0 + $0x740] sm:$0xff]  ;;  %v2254_v24 = vpack.c.bf16 %v4550_v18, %v6829_v40  ;;  %v4553_v25 = vld [vmem:[%s8325_s0 + $0xf38] sm:$0xff]  ;;  %v7035_v28 = vld [vmem:[%s8325_s0 + $0x1150] sm:$0xff]  ;;  %4537 = vst [vmem:[%s8326_s1 + $0x290] sm:$0xff] %v2214_v13 }
  0x87   :  { %v7009_v21 = vld [vmem:[%s8325_s0 + $0x140] sm:$0xff]  ;;  %v4556_v26 = vld [vmem:[%s8325_s0 + $0x938] sm:$0xff]  ;;  %v7040_v29 = vld [vmem:[%s8325_s0 + $0xb50] sm:$0xff]  ;;  %4540 = vst [vmem:[%s8326_s1 + $0x590] sm:$0xff] %v2222_v14  ;;  %v2262_v31 = vpack.c.bf16 %v4553_v25, %v6855_v47 }
  0x88   :  { %v4559_v27 = vld [vmem:[%s8325_s0 + $0x338] sm:$0xff]  ;;  %v7045_v30 = vld [vmem:[%s8325_s0 + $0x550] sm:$0xff]  ;;  %4543 = vst [vmem:[%s8326_s1 + $0x890] sm:$0xff] %v2230_v15  ;;  %v2270_v32 = vpack.c.bf16 %v4556_v26, %v6860_v48  ;;  %4546 = vst [vmem:[%s8326_s1 + $0x98] sm:$0xff] %v2238_v22 }
  0x89   :  { %v2278_v33 = vpack.c.bf16 %v4559_v27, %v6865_v49  ;;  %v4562_v34 = vld [vmem:[%s8325_s0 + $0xd38] sm:$0xff]  ;;  %v7071_v37 = vld [vmem:[%s8325_s0 + $0xf50] sm:$0xff]  ;;  %4549 = vst [vmem:[%s8326_s1 + $0x398] sm:$0xff] %v2246_v23  ;;  %4552 = vst [vmem:[%s8326_s1 + $0x698] sm:$0xff] %v2254_v24 }
  0x8a   :  { %v4565_v35 = vld [vmem:[%s8325_s0 + $0x738] sm:$0xff]  ;;  %v7076_v38 = vld [vmem:[%s8325_s0 + $0x950] sm:$0xff]  ;;  %v2286_v40 = vpack.c.bf16 %v4562_v34, %v6891_v56  ;;  %v4571_v43 = vld [vmem:[%s8325_s0 + $0x1148] sm:$0xff]  ;;  %4555 = vst [vmem:[%s8326_s1 + $0x198] sm:$0xff] %v2262_v31 }
  0x8b   :  { %v4568_v36 = vld [vmem:[%s8325_s0 + $0x138] sm:$0xff]  ;;  %v7081_v39 = vld [vmem:[%s8325_s0 + $0x350] sm:$0xff]  ;;  %v2294_v41 = vpack.c.bf16 %v4565_v35, %v6896_v57  ;;  %v4574_v44 = vld [vmem:[%s8325_s0 + $0xb48] sm:$0xff]  ;;  %4558 = vst [vmem:[%s8326_s1 + $0x498] sm:$0xff] %v2270_v32  ;;  %v2310_v49 = vpack.c.bf16 %v4571_v43, %v6927_v1 }
  0x8c   :  { %v2302_v42 = vpack.c.bf16 %v4568_v36, %v6901_v58  ;;  %v4577_v45 = vld [vmem:[%s8325_s0 + $0x548] sm:$0xff]  ;;  %v7107_v46 = vld [vmem:[%s8325_s0 + $0xd50] sm:$0xff]  ;;  %4561 = vst [vmem:[%s8326_s1 + $0x798] sm:$0xff] %v2278_v33  ;;  %v2318_v50 = vpack.c.bf16 %v4574_v44, %v6932_v2  ;;  %v7143_v55 = vld [vmem:[%s8325_s0 + $0x1160] sm:$0xff] }
  0x8d   :  { %v7112_v47 = vld [vmem:[%s8325_s0 + $0x750] sm:$0xff]  ;;  %v2326_v51 = vpack.c.bf16 %v4577_v45, %v6937_v3  ;;  %v4580_v52 = vld [vmem:[%s8325_s0 + $0xf48] sm:$0xff]  ;;  %v7148_v56 = vld [vmem:[%s8325_s0 + $0xb60] sm:$0xff]  ;;  %4564 = vst [vmem:[%s8326_s1 + $0x298] sm:$0xff] %v2286_v40 }
  0x8e   :  { %v7117_v48 = vld [vmem:[%s8325_s0 + $0x150] sm:$0xff]  ;;  %v4583_v53 = vld [vmem:[%s8325_s0 + $0x948] sm:$0xff]  ;;  %v7153_v57 = vld [vmem:[%s8325_s0 + $0x560] sm:$0xff]  ;;  %4567 = vst [vmem:[%s8326_s1 + $0x598] sm:$0xff] %v2294_v41  ;;  %v2334_v58 = vpack.c.bf16 %v4580_v52, %v6963_v10 }
  0x8f   :  { %v4586_v54 = vld [vmem:[%s8325_s0 + $0x348] sm:$0xff]  ;;  %4570 = vst [vmem:[%s8326_s1 + $0x898] sm:$0xff] %v2302_v42  ;;  %v2342_v59 = vpack.c.bf16 %v4583_v53, %v6968_v11  ;;  %v7179_v0 = vld [vmem:[%s8325_s0 + $0xf60] sm:$0xff]  ;;  %4573 = vst [vmem:[%s8326_s1 + $0xa0] sm:$0xff] %v2310_v49 }
  0x90   :  { %v2350_v60 = vpack.c.bf16 %v4586_v54, %v6973_v12  ;;  %v4589_v61 = vld [vmem:[%s8325_s0 + $0xd48] sm:$0xff]  ;;  %v7184_v1 = vld [vmem:[%s8325_s0 + $0x960] sm:$0xff]  ;;  %4576 = vst [vmem:[%s8326_s1 + $0x3a0] sm:$0xff] %v2318_v50  ;;  %4579 = vst [vmem:[%s8326_s1 + $0x6a0] sm:$0xff] %v2326_v51 }
  0x91   :  { %v4592_v62 = vld [vmem:[%s8325_s0 + $0x748] sm:$0xff]  ;;  %v7189_v2 = vld [vmem:[%s8325_s0 + $0x360] sm:$0xff]  ;;  %v2358_v3 = vpack.c.bf16 %v4589_v61, %v6999_v19  ;;  %v4598_v6 = vld [vmem:[%s8325_s0 + $0x1158] sm:$0xff]  ;;  %4582 = vst [vmem:[%s8326_s1 + $0x1a0] sm:$0xff] %v2334_v58 }
  0x92   :  { %v4595_v63 = vld [vmem:[%s8325_s0 + $0x148] sm:$0xff]  ;;  %v2366_v4 = vpack.c.bf16 %v4592_v62, %v7004_v20  ;;  %v4601_v7 = vld [vmem:[%s8325_s0 + $0xb58] sm:$0xff]  ;;  %v7215_v9 = vld [vmem:[%s8325_s0 + $0xd60] sm:$0xff]  ;;  %4585 = vst [vmem:[%s8326_s1 + $0x4a0] sm:$0xff] %v2342_v59  ;;  %v2382_v12 = vpack.c.bf16 %v4598_v6, %v7035_v28 }
  0x93   :  { %v2374_v5 = vpack.c.bf16 %v4595_v63, %v7009_v21  ;;  %v4604_v8 = vld [vmem:[%s8325_s0 + $0x558] sm:$0xff]  ;;  %v7220_v10 = vld [vmem:[%s8325_s0 + $0x760] sm:$0xff]  ;;  %4588 = vst [vmem:[%s8326_s1 + $0x7a0] sm:$0xff] %v2350_v60  ;;  %v2390_v13 = vpack.c.bf16 %v4601_v7, %v7040_v29  ;;  %v7251_v18 = vld [vmem:[%s8325_s0 + $0x1170] sm:$0xff] }
  0x94   :  { %v7225_v11 = vld [vmem:[%s8325_s0 + $0x160] sm:$0xff]  ;;  %v2398_v14 = vpack.c.bf16 %v4604_v8, %v7045_v30  ;;  %v4607_v15 = vld [vmem:[%s8325_s0 + $0xf58] sm:$0xff]  ;;  %v7256_v19 = vld [vmem:[%s8325_s0 + $0xb70] sm:$0xff]  ;;  %4591 = vst [vmem:[%s8326_s1 + $0x2a0] sm:$0xff] %v2358_v3 }
  0x95   :  { %v4610_v16 = vld [vmem:[%s8325_s0 + $0x958] sm:$0xff]  ;;  %v7261_v20 = vld [vmem:[%s8325_s0 + $0x570] sm:$0xff]  ;;  %4594 = vst [vmem:[%s8326_s1 + $0x5a0] sm:$0xff] %v2366_v4  ;;  %4597 = vst [vmem:[%s8326_s1 + $0x8a0] sm:$0xff] %v2374_v5  ;;  %v2406_v21 = vpack.c.bf16 %v4607_v15, %v7071_v37 }
  0x96   :  { %v4613_v17 = vld [vmem:[%s8325_s0 + $0x358] sm:$0xff]  ;;  %v2414_v22 = vpack.c.bf16 %v4610_v16, %v7076_v38  ;;  %v7287_v27 = vld [vmem:[%s8325_s0 + $0xf70] sm:$0xff]  ;;  %4600 = vst [vmem:[%s8326_s1 + $0xa8] sm:$0xff] %v2382_v12  ;;  %4603 = vst [vmem:[%s8326_s1 + $0x3a8] sm:$0xff] %v2390_v13 }
  0x97   :  { %v2422_v23 = vpack.c.bf16 %v4613_v17, %v7081_v39  ;;  %v4616_v24 = vld [vmem:[%s8325_s0 + $0xd58] sm:$0xff]  ;;  %v7292_v28 = vld [vmem:[%s8325_s0 + $0x970] sm:$0xff]  ;;  %4606 = vst [vmem:[%s8326_s1 + $0x6a8] sm:$0xff] %v2398_v14  ;;  %v4625_v33 = vld [vmem:[%s8325_s0 + $0x1168] sm:$0xff] }
  0x98   :  { %v4619_v25 = vld [vmem:[%s8325_s0 + $0x758] sm:$0xff]  ;;  %v7297_v29 = vld [vmem:[%s8325_s0 + $0x370] sm:$0xff]  ;;  %v2430_v30 = vpack.c.bf16 %v4616_v24, %v7107_v46  ;;  %v4628_v34 = vld [vmem:[%s8325_s0 + $0xb68] sm:$0xff]  ;;  %4609 = vst [vmem:[%s8326_s1 + $0x1a8] sm:$0xff] %v2406_v21  ;;  %v2454_v39 = vpack.c.bf16 %v4625_v33, %v7143_v55 }
  0x99   :  { %v4622_v26 = vld [vmem:[%s8325_s0 + $0x158] sm:$0xff]  ;;  %v2438_v31 = vpack.c.bf16 %v4619_v25, %v7112_v47  ;;  %v4631_v35 = vld [vmem:[%s8325_s0 + $0x568] sm:$0xff]  ;;  %v7323_v36 = vld [vmem:[%s8325_s0 + $0xd70] sm:$0xff]  ;;  %4612 = vst [vmem:[%s8326_s1 + $0x4a8] sm:$0xff] %v2414_v22  ;;  %v2462_v40 = vpack.c.bf16 %v4628_v34, %v7148_v56 }
  0x9a   :  { %v2446_v32 = vpack.c.bf16 %v4622_v26, %v7117_v48  ;;  %v7328_v37 = vld [vmem:[%s8325_s0 + $0x770] sm:$0xff]  ;;  %4615 = vst [vmem:[%s8326_s1 + $0x7a8] sm:$0xff] %v2422_v23  ;;  %v2470_v41 = vpack.c.bf16 %v4631_v35, %v7153_v57  ;;  %v4634_v42 = vld [vmem:[%s8325_s0 + $0xf68] sm:$0xff]  ;;  %v7359_v45 = vld [vmem:[%s8325_s0 + $0x1180] sm:$0xff] }
  0x9b   :  { %v7333_v38 = vld [vmem:[%s8325_s0 + $0x170] sm:$0xff]  ;;  %v4637_v43 = vld [vmem:[%s8325_s0 + $0x968] sm:$0xff]  ;;  %v7364_v46 = vld [vmem:[%s8325_s0 + $0xb80] sm:$0xff]  ;;  %4618 = vst [vmem:[%s8326_s1 + $0x2a8] sm:$0xff] %v2430_v30  ;;  %v2478_v48 = vpack.c.bf16 %v4634_v42, %v7179_v0 }
  0x9c   :  { %v4640_v44 = vld [vmem:[%s8325_s0 + $0x368] sm:$0xff]  ;;  %v7369_v47 = vld [vmem:[%s8325_s0 + $0x580] sm:$0xff]  ;;  %4621 = vst [vmem:[%s8326_s1 + $0x5a8] sm:$0xff] %v2438_v31  ;;  %4624 = vst [vmem:[%s8326_s1 + $0x8a8] sm:$0xff] %v2446_v32  ;;  %v2486_v49 = vpack.c.bf16 %v4637_v43, %v7184_v1 }
  0x9d   :  { %v2494_v50 = vpack.c.bf16 %v4640_v44, %v7189_v2  ;;  %v4643_v51 = vld [vmem:[%s8325_s0 + $0xd68] sm:$0xff]  ;;  %v7395_v54 = vld [vmem:[%s8325_s0 + $0xf80] sm:$0xff]  ;;  %4627 = vst [vmem:[%s8326_s1 + $0xb0] sm:$0xff] %v2454_v39  ;;  %4630 = vst [vmem:[%s8326_s1 + $0x3b0] sm:$0xff] %v2462_v40 }
  0x9e   :  { %v4646_v52 = vld [vmem:[%s8325_s0 + $0x768] sm:$0xff]  ;;  %v7400_v55 = vld [vmem:[%s8325_s0 + $0x980] sm:$0xff]  ;;  %4633 = vst [vmem:[%s8326_s1 + $0x6b0] sm:$0xff] %v2470_v41  ;;  %v2502_v57 = vpack.c.bf16 %v4643_v51, %v7215_v9  ;;  %v4652_v60 = vld [vmem:[%s8325_s0 + $0x1178] sm:$0xff] }
  0x9f   :  { %v4649_v53 = vld [vmem:[%s8325_s0 + $0x168] sm:$0xff]  ;;  %v7405_v56 = vld [vmem:[%s8325_s0 + $0x380] sm:$0xff]  ;;  %v2510_v58 = vpack.c.bf16 %v4646_v52, %v7220_v10  ;;  %v4655_v61 = vld [vmem:[%s8325_s0 + $0xb78] sm:$0xff]  ;;  %4636 = vst [vmem:[%s8326_s1 + $0x1b0] sm:$0xff] %v2478_v48  ;;  %v2526_v2 = vpack.c.bf16 %v4652_v60, %v7251_v18 }
  0xa0   :  { %v2518_v59 = vpack.c.bf16 %v4649_v53, %v7225_v11  ;;  %v4658_v62 = vld [vmem:[%s8325_s0 + $0x578] sm:$0xff]  ;;  %v7431_v63 = vld [vmem:[%s8325_s0 + $0xd80] sm:$0xff]  ;;  %4639 = vst [vmem:[%s8326_s1 + $0x4b0] sm:$0xff] %v2486_v49  ;;  %4642 = vst [vmem:[%s8326_s1 + $0x7b0] sm:$0xff] %v2494_v50  ;;  %v2534_v3 = vpack.c.bf16 %v4655_v61, %v7256_v19 }
  0xa1   :  { %v7436_v0 = vld [vmem:[%s8325_s0 + $0x780] sm:$0xff]  ;;  %v2542_v4 = vpack.c.bf16 %v4658_v62, %v7261_v20  ;;  %v4661_v5 = vld [vmem:[%s8325_s0 + $0xf78] sm:$0xff]  ;;  %v7467_v8 = vld [vmem:[%s8325_s0 + $0x1190] sm:$0xff]  ;;  %4645 = vst [vmem:[%s8326_s1 + $0x2b0] sm:$0xff] %v2502_v57 }
  0xa2   :  { %v7441_v1 = vld [vmem:[%s8325_s0 + $0x180] sm:$0xff]  ;;  %v4664_v6 = vld [vmem:[%s8325_s0 + $0x978] sm:$0xff]  ;;  %v7472_v9 = vld [vmem:[%s8325_s0 + $0xb90] sm:$0xff]  ;;  %4648 = vst [vmem:[%s8326_s1 + $0x5b0] sm:$0xff] %v2510_v58  ;;  %v2550_v11 = vpack.c.bf16 %v4661_v5, %v7287_v27 }
  0xa3   :  { %v4667_v7 = vld [vmem:[%s8325_s0 + $0x378] sm:$0xff]  ;;  %v7477_v10 = vld [vmem:[%s8325_s0 + $0x590] sm:$0xff]  ;;  %4651 = vst [vmem:[%s8326_s1 + $0x8b0] sm:$0xff] %v2518_v59  ;;  %v2558_v12 = vpack.c.bf16 %v4664_v6, %v7292_v28  ;;  %4654 = vst [vmem:[%s8326_s1 + $0xb8] sm:$0xff] %v2526_v2 }
  0xa4   :  { %v2566_v13 = vpack.c.bf16 %v4667_v7, %v7297_v29  ;;  %v4670_v14 = vld [vmem:[%s8325_s0 + $0xd78] sm:$0xff]  ;;  %v7503_v17 = vld [vmem:[%s8325_s0 + $0xf90] sm:$0xff]  ;;  %4657 = vst [vmem:[%s8326_s1 + $0x3b8] sm:$0xff] %v2534_v3  ;;  %4660 = vst [vmem:[%s8326_s1 + $0x6b8] sm:$0xff] %v2542_v4 }
  0xa5   :  { %v4673_v15 = vld [vmem:[%s8325_s0 + $0x778] sm:$0xff]  ;;  %v7508_v18 = vld [vmem:[%s8325_s0 + $0x990] sm:$0xff]  ;;  %v2574_v20 = vpack.c.bf16 %v4670_v14, %v7323_v36  ;;  %v4679_v23 = vld [vmem:[%s8325_s0 + $0x1188] sm:$0xff]  ;;  %4663 = vst [vmem:[%s8326_s1 + $0x1b8] sm:$0xff] %v2550_v11 }
  0xa6   :  { %v4676_v16 = vld [vmem:[%s8325_s0 + $0x178] sm:$0xff]  ;;  %v7513_v19 = vld [vmem:[%s8325_s0 + $0x390] sm:$0xff]  ;;  %v2582_v21 = vpack.c.bf16 %v4673_v15, %v7328_v37  ;;  %v4682_v24 = vld [vmem:[%s8325_s0 + $0xb88] sm:$0xff]  ;;  %4666 = vst [vmem:[%s8326_s1 + $0x4b8] sm:$0xff] %v2558_v12  ;;  %v2598_v29 = vpack.c.bf16 %v4679_v23, %v7359_v45 }
  0xa7   :  { %v2590_v22 = vpack.c.bf16 %v4676_v16, %v7333_v38  ;;  %v4685_v25 = vld [vmem:[%s8325_s0 + $0x588] sm:$0xff]  ;;  %v7539_v26 = vld [vmem:[%s8325_s0 + $0xd90] sm:$0xff]  ;;  %4669 = vst [vmem:[%s8326_s1 + $0x7b8] sm:$0xff] %v2566_v13  ;;  %v2606_v30 = vpack.c.bf16 %v4682_v24, %v7364_v46  ;;  %v7575_v35 = vld [vmem:[%s8325_s0 + $0x11a0] sm:$0xff] }
  0xa8   :  { %v7544_v27 = vld [vmem:[%s8325_s0 + $0x790] sm:$0xff]  ;;  %v2614_v31 = vpack.c.bf16 %v4685_v25, %v7369_v47  ;;  %v4688_v32 = vld [vmem:[%s8325_s0 + $0xf88] sm:$0xff]  ;;  %v7580_v36 = vld [vmem:[%s8325_s0 + $0xba0] sm:$0xff]  ;;  %4672 = vst [vmem:[%s8326_s1 + $0x2b8] sm:$0xff] %v2574_v20 }
  0xa9   :  { %v7549_v28 = vld [vmem:[%s8325_s0 + $0x190] sm:$0xff]  ;;  %v4691_v33 = vld [vmem:[%s8325_s0 + $0x988] sm:$0xff]  ;;  %v7585_v37 = vld [vmem:[%s8325_s0 + $0x5a0] sm:$0xff]  ;;  %4675 = vst [vmem:[%s8326_s1 + $0x5b8] sm:$0xff] %v2582_v21  ;;  %v2622_v38 = vpack.c.bf16 %v4688_v32, %v7395_v54 }
  0xaa   :  { %v4694_v34 = vld [vmem:[%s8325_s0 + $0x388] sm:$0xff]  ;;  %4678 = vst [vmem:[%s8326_s1 + $0x8b8] sm:$0xff] %v2590_v22  ;;  %v2630_v39 = vpack.c.bf16 %v4691_v33, %v7400_v55  ;;  %v7611_v44 = vld [vmem:[%s8325_s0 + $0xfa0] sm:$0xff]  ;;  %4681 = vst [vmem:[%s8326_s1 + $0xc0] sm:$0xff] %v2598_v29 }
  0xab   :  { %v2638_v40 = vpack.c.bf16 %v4694_v34, %v7405_v56  ;;  %v4697_v41 = vld [vmem:[%s8325_s0 + $0xd88] sm:$0xff]  ;;  %v7616_v45 = vld [vmem:[%s8325_s0 + $0x9a0] sm:$0xff]  ;;  %4684 = vst [vmem:[%s8326_s1 + $0x3c0] sm:$0xff] %v2606_v30  ;;  %4687 = vst [vmem:[%s8326_s1 + $0x6c0] sm:$0xff] %v2614_v31 }
  0xac   :  { %v4700_v42 = vld [vmem:[%s8325_s0 + $0x788] sm:$0xff]  ;;  %v7621_v46 = vld [vmem:[%s8325_s0 + $0x3a0] sm:$0xff]  ;;  %v2646_v47 = vpack.c.bf16 %v4697_v41, %v7431_v63  ;;  %v4706_v50 = vld [vmem:[%s8325_s0 + $0x1198] sm:$0xff]  ;;  %4690 = vst [vmem:[%s8326_s1 + $0x1c0] sm:$0xff] %v2622_v38 }
  0xad   :  { %v4703_v43 = vld [vmem:[%s8325_s0 + $0x188] sm:$0xff]  ;;  %v2654_v48 = vpack.c.bf16 %v4700_v42, %v7436_v0  ;;  %v4709_v51 = vld [vmem:[%s8325_s0 + $0xb98] sm:$0xff]  ;;  %v7647_v53 = vld [vmem:[%s8325_s0 + $0xda0] sm:$0xff]  ;;  %4693 = vst [vmem:[%s8326_s1 + $0x4c0] sm:$0xff] %v2630_v39  ;;  %v2670_v56 = vpack.c.bf16 %v4706_v50, %v7467_v8 }
  0xae   :  { %v2662_v49 = vpack.c.bf16 %v4703_v43, %v7441_v1  ;;  %v4712_v52 = vld [vmem:[%s8325_s0 + $0x598] sm:$0xff]  ;;  %v7652_v54 = vld [vmem:[%s8325_s0 + $0x7a0] sm:$0xff]  ;;  %4696 = vst [vmem:[%s8326_s1 + $0x7c0] sm:$0xff] %v2638_v40  ;;  %v2678_v57 = vpack.c.bf16 %v4709_v51, %v7472_v9  ;;  %v7683_v62 = vld [vmem:[%s8325_s0 + $0x11b0] sm:$0xff] }
  0xaf   :  { %v7657_v55 = vld [vmem:[%s8325_s0 + $0x1a0] sm:$0xff]  ;;  %v2686_v58 = vpack.c.bf16 %v4712_v52, %v7477_v10  ;;  %v4715_v59 = vld [vmem:[%s8325_s0 + $0xf98] sm:$0xff]  ;;  %v7688_v63 = vld [vmem:[%s8325_s0 + $0xbb0] sm:$0xff]  ;;  %4699 = vst [vmem:[%s8326_s1 + $0x2c0] sm:$0xff] %v2646_v47 }
  0xb0   :  { %v4718_v60 = vld [vmem:[%s8325_s0 + $0x998] sm:$0xff]  ;;  %v7693_v0 = vld [vmem:[%s8325_s0 + $0x5b0] sm:$0xff]  ;;  %4702 = vst [vmem:[%s8326_s1 + $0x5c0] sm:$0xff] %v2654_v48  ;;  %4705 = vst [vmem:[%s8326_s1 + $0x8c0] sm:$0xff] %v2662_v49  ;;  %v2694_v1 = vpack.c.bf16 %v4715_v59, %v7503_v17 }
  0xb1   :  { %v4721_v61 = vld [vmem:[%s8325_s0 + $0x398] sm:$0xff]  ;;  %v2702_v2 = vpack.c.bf16 %v4718_v60, %v7508_v18  ;;  %v7719_v7 = vld [vmem:[%s8325_s0 + $0xfb0] sm:$0xff]  ;;  %4708 = vst [vmem:[%s8326_s1 + $0xc8] sm:$0xff] %v2670_v56  ;;  %4711 = vst [vmem:[%s8326_s1 + $0x3c8] sm:$0xff] %v2678_v57 }
  0xb2   :  { %v2710_v3 = vpack.c.bf16 %v4721_v61, %v7513_v19  ;;  %v4724_v4 = vld [vmem:[%s8325_s0 + $0xd98] sm:$0xff]  ;;  %v7724_v8 = vld [vmem:[%s8325_s0 + $0x9b0] sm:$0xff]  ;;  %4714 = vst [vmem:[%s8326_s1 + $0x6c8] sm:$0xff] %v2686_v58  ;;  %v4733_v13 = vld [vmem:[%s8325_s0 + $0x11a8] sm:$0xff] }
  0xb3   :  { %v4727_v5 = vld [vmem:[%s8325_s0 + $0x798] sm:$0xff]  ;;  %v7729_v9 = vld [vmem:[%s8325_s0 + $0x3b0] sm:$0xff]  ;;  %v2718_v10 = vpack.c.bf16 %v4724_v4, %v7539_v26  ;;  %v4736_v14 = vld [vmem:[%s8325_s0 + $0xba8] sm:$0xff]  ;;  %4717 = vst [vmem:[%s8326_s1 + $0x1c8] sm:$0xff] %v2694_v1  ;;  %v2742_v19 = vpack.c.bf16 %v4733_v13, %v7575_v35 }
  0xb4   :  { %v4730_v6 = vld [vmem:[%s8325_s0 + $0x198] sm:$0xff]  ;;  %v2726_v11 = vpack.c.bf16 %v4727_v5, %v7544_v27  ;;  %v4739_v15 = vld [vmem:[%s8325_s0 + $0x5a8] sm:$0xff]  ;;  %v7755_v16 = vld [vmem:[%s8325_s0 + $0xdb0] sm:$0xff]  ;;  %4720 = vst [vmem:[%s8326_s1 + $0x4c8] sm:$0xff] %v2702_v2  ;;  %v2750_v20 = vpack.c.bf16 %v4736_v14, %v7580_v36 }
  0xb5   :  { %v2734_v12 = vpack.c.bf16 %v4730_v6, %v7549_v28  ;;  %v7760_v17 = vld [vmem:[%s8325_s0 + $0x7b0] sm:$0xff]  ;;  %4723 = vst [vmem:[%s8326_s1 + $0x7c8] sm:$0xff] %v2710_v3  ;;  %v2758_v21 = vpack.c.bf16 %v4739_v15, %v7585_v37  ;;  %v4742_v22 = vld [vmem:[%s8325_s0 + $0xfa8] sm:$0xff]  ;;  %v7791_v25 = vld [vmem:[%s8325_s0 + $0x11c0] sm:$0xff] }
  0xb6   :  { %v7765_v18 = vld [vmem:[%s8325_s0 + $0x1b0] sm:$0xff]  ;;  %v4745_v23 = vld [vmem:[%s8325_s0 + $0x9a8] sm:$0xff]  ;;  %v7796_v26 = vld [vmem:[%s8325_s0 + $0xbc0] sm:$0xff]  ;;  %4726 = vst [vmem:[%s8326_s1 + $0x2c8] sm:$0xff] %v2718_v10  ;;  %v2766_v28 = vpack.c.bf16 %v4742_v22, %v7611_v44 }
  0xb7   :  { %v4748_v24 = vld [vmem:[%s8325_s0 + $0x3a8] sm:$0xff]  ;;  %v7801_v27 = vld [vmem:[%s8325_s0 + $0x5c0] sm:$0xff]  ;;  %4729 = vst [vmem:[%s8326_s1 + $0x5c8] sm:$0xff] %v2726_v11  ;;  %4732 = vst [vmem:[%s8326_s1 + $0x8c8] sm:$0xff] %v2734_v12  ;;  %v2774_v29 = vpack.c.bf16 %v4745_v23, %v7616_v45 }
  0xb8   :  { %v2782_v30 = vpack.c.bf16 %v4748_v24, %v7621_v46  ;;  %v4751_v31 = vld [vmem:[%s8325_s0 + $0xda8] sm:$0xff]  ;;  %v7827_v34 = vld [vmem:[%s8325_s0 + $0xfc0] sm:$0xff]  ;;  %4735 = vst [vmem:[%s8326_s1 + $0xd0] sm:$0xff] %v2742_v19  ;;  %4738 = vst [vmem:[%s8326_s1 + $0x3d0] sm:$0xff] %v2750_v20 }
  0xb9   :  { %v4754_v32 = vld [vmem:[%s8325_s0 + $0x7a8] sm:$0xff]  ;;  %v7832_v35 = vld [vmem:[%s8325_s0 + $0x9c0] sm:$0xff]  ;;  %4741 = vst [vmem:[%s8326_s1 + $0x6d0] sm:$0xff] %v2758_v21  ;;  %v2790_v37 = vpack.c.bf16 %v4751_v31, %v7647_v53  ;;  %v4760_v40 = vld [vmem:[%s8325_s0 + $0x11b8] sm:$0xff] }
  0xba   :  { %v4757_v33 = vld [vmem:[%s8325_s0 + $0x1a8] sm:$0xff]  ;;  %v7837_v36 = vld [vmem:[%s8325_s0 + $0x3c0] sm:$0xff]  ;;  %v2798_v38 = vpack.c.bf16 %v4754_v32, %v7652_v54  ;;  %v4763_v41 = vld [vmem:[%s8325_s0 + $0xbb8] sm:$0xff]  ;;  %4744 = vst [vmem:[%s8326_s1 + $0x1d0] sm:$0xff] %v2766_v28  ;;  %v2814_v46 = vpack.c.bf16 %v4760_v40, %v7683_v62 }
  0xbb   :  { %v2806_v39 = vpack.c.bf16 %v4757_v33, %v7657_v55  ;;  %v4766_v42 = vld [vmem:[%s8325_s0 + $0x5b8] sm:$0xff]  ;;  %v7863_v43 = vld [vmem:[%s8325_s0 + $0xdc0] sm:$0xff]  ;;  %4747 = vst [vmem:[%s8326_s1 + $0x4d0] sm:$0xff] %v2774_v29  ;;  %4750 = vst [vmem:[%s8326_s1 + $0x7d0] sm:$0xff] %v2782_v30  ;;  %v2822_v47 = vpack.c.bf16 %v4763_v41, %v7688_v63 }
  0xbc   :  { %v7868_v44 = vld [vmem:[%s8325_s0 + $0x7c0] sm:$0xff]  ;;  %v2830_v48 = vpack.c.bf16 %v4766_v42, %v7693_v0  ;;  %v4769_v49 = vld [vmem:[%s8325_s0 + $0xfb8] sm:$0xff]  ;;  %v7899_v52 = vld [vmem:[%s8325_s0 + $0x11d0] sm:$0xff]  ;;  %4753 = vst [vmem:[%s8326_s1 + $0x2d0] sm:$0xff] %v2790_v37 }
  0xbd   :  { %v7873_v45 = vld [vmem:[%s8325_s0 + $0x1c0] sm:$0xff]  ;;  %v4772_v50 = vld [vmem:[%s8325_s0 + $0x9b8] sm:$0xff]  ;;  %v7904_v53 = vld [vmem:[%s8325_s0 + $0xbd0] sm:$0xff]  ;;  %4756 = vst [vmem:[%s8326_s1 + $0x5d0] sm:$0xff] %v2798_v38  ;;  %v2838_v55 = vpack.c.bf16 %v4769_v49, %v7719_v7 }
  0xbe   :  { %v4775_v51 = vld [vmem:[%s8325_s0 + $0x3b8] sm:$0xff]  ;;  %v7909_v54 = vld [vmem:[%s8325_s0 + $0x5d0] sm:$0xff]  ;;  %4759 = vst [vmem:[%s8326_s1 + $0x8d0] sm:$0xff] %v2806_v39  ;;  %v2846_v56 = vpack.c.bf16 %v4772_v50, %v7724_v8  ;;  %4762 = vst [vmem:[%s8326_s1 + $0xd8] sm:$0xff] %v2814_v46 }
  0xbf   :  { %v2854_v57 = vpack.c.bf16 %v4775_v51, %v7729_v9  ;;  %v4778_v58 = vld [vmem:[%s8325_s0 + $0xdb8] sm:$0xff]  ;;  %v7935_v61 = vld [vmem:[%s8325_s0 + $0xfd0] sm:$0xff]  ;;  %4765 = vst [vmem:[%s8326_s1 + $0x3d8] sm:$0xff] %v2822_v47  ;;  %4768 = vst [vmem:[%s8326_s1 + $0x6d8] sm:$0xff] %v2830_v48 }
  0xc0   :  { %v4781_v59 = vld [vmem:[%s8325_s0 + $0x7b8] sm:$0xff]  ;;  %v7940_v62 = vld [vmem:[%s8325_s0 + $0x9d0] sm:$0xff]  ;;  %v2862_v0 = vpack.c.bf16 %v4778_v58, %v7755_v16  ;;  %v4787_v3 = vld [vmem:[%s8325_s0 + $0x11c8] sm:$0xff]  ;;  %4771 = vst [vmem:[%s8326_s1 + $0x1d8] sm:$0xff] %v2838_v55 }
  0xc1   :  { %v4784_v60 = vld [vmem:[%s8325_s0 + $0x1b8] sm:$0xff]  ;;  %v7945_v63 = vld [vmem:[%s8325_s0 + $0x3d0] sm:$0xff]  ;;  %v2870_v1 = vpack.c.bf16 %v4781_v59, %v7760_v17  ;;  %v4790_v4 = vld [vmem:[%s8325_s0 + $0xbc8] sm:$0xff]  ;;  %4774 = vst [vmem:[%s8326_s1 + $0x4d8] sm:$0xff] %v2846_v56  ;;  %v2886_v9 = vpack.c.bf16 %v4787_v3, %v7791_v25 }
  0xc2   :  { %v2878_v2 = vpack.c.bf16 %v4784_v60, %v7765_v18  ;;  %v4793_v5 = vld [vmem:[%s8325_s0 + $0x5c8] sm:$0xff]  ;;  %v7971_v6 = vld [vmem:[%s8325_s0 + $0xdd0] sm:$0xff]  ;;  %4777 = vst [vmem:[%s8326_s1 + $0x7d8] sm:$0xff] %v2854_v57  ;;  %v2894_v10 = vpack.c.bf16 %v4790_v4, %v7796_v26  ;;  %v8007_v15 = vld [vmem:[%s8325_s0 + $0x11e0] sm:$0xff] }
  0xc3   :  { %v7976_v7 = vld [vmem:[%s8325_s0 + $0x7d0] sm:$0xff]  ;;  %v2902_v11 = vpack.c.bf16 %v4793_v5, %v7801_v27  ;;  %v4796_v12 = vld [vmem:[%s8325_s0 + $0xfc8] sm:$0xff]  ;;  %v8012_v16 = vld [vmem:[%s8325_s0 + $0xbe0] sm:$0xff]  ;;  %4780 = vst [vmem:[%s8326_s1 + $0x2d8] sm:$0xff] %v2862_v0 }
  0xc4   :  { %v7981_v8 = vld [vmem:[%s8325_s0 + $0x1d0] sm:$0xff]  ;;  %v4799_v13 = vld [vmem:[%s8325_s0 + $0x9c8] sm:$0xff]  ;;  %v8017_v17 = vld [vmem:[%s8325_s0 + $0x5e0] sm:$0xff]  ;;  %4783 = vst [vmem:[%s8326_s1 + $0x5d8] sm:$0xff] %v2870_v1  ;;  %v2910_v18 = vpack.c.bf16 %v4796_v12, %v7827_v34 }
  0xc5   :  { %v4802_v14 = vld [vmem:[%s8325_s0 + $0x3c8] sm:$0xff]  ;;  %4786 = vst [vmem:[%s8326_s1 + $0x8d8] sm:$0xff] %v2878_v2  ;;  %v2918_v19 = vpack.c.bf16 %v4799_v13, %v7832_v35  ;;  %v8043_v24 = vld [vmem:[%s8325_s0 + $0xfe0] sm:$0xff]  ;;  %4789 = vst [vmem:[%s8326_s1 + $0xe0] sm:$0xff] %v2886_v9 }
  0xc6   :  { %v2926_v20 = vpack.c.bf16 %v4802_v14, %v7837_v36  ;;  %v4805_v21 = vld [vmem:[%s8325_s0 + $0xdc8] sm:$0xff]  ;;  %v8048_v25 = vld [vmem:[%s8325_s0 + $0x9e0] sm:$0xff]  ;;  %4792 = vst [vmem:[%s8326_s1 + $0x3e0] sm:$0xff] %v2894_v10  ;;  %4795 = vst [vmem:[%s8326_s1 + $0x6e0] sm:$0xff] %v2902_v11 }
  0xc7   :  { %v4808_v22 = vld [vmem:[%s8325_s0 + $0x7c8] sm:$0xff]  ;;  %v8053_v26 = vld [vmem:[%s8325_s0 + $0x3e0] sm:$0xff]  ;;  %v2934_v27 = vpack.c.bf16 %v4805_v21, %v7863_v43  ;;  %v4814_v30 = vld [vmem:[%s8325_s0 + $0x11d8] sm:$0xff]  ;;  %4798 = vst [vmem:[%s8326_s1 + $0x1e0] sm:$0xff] %v2910_v18 }
  0xc8   :  { %v4811_v23 = vld [vmem:[%s8325_s0 + $0x1c8] sm:$0xff]  ;;  %v2942_v28 = vpack.c.bf16 %v4808_v22, %v7868_v44  ;;  %v4817_v31 = vld [vmem:[%s8325_s0 + $0xbd8] sm:$0xff]  ;;  %v8079_v33 = vld [vmem:[%s8325_s0 + $0xde0] sm:$0xff]  ;;  %4801 = vst [vmem:[%s8326_s1 + $0x4e0] sm:$0xff] %v2918_v19  ;;  %v2958_v36 = vpack.c.bf16 %v4814_v30, %v7899_v52 }
  0xc9   :  { %v2950_v29 = vpack.c.bf16 %v4811_v23, %v7873_v45  ;;  %v4820_v32 = vld [vmem:[%s8325_s0 + $0x5d8] sm:$0xff]  ;;  %v8084_v34 = vld [vmem:[%s8325_s0 + $0x7e0] sm:$0xff]  ;;  %4804 = vst [vmem:[%s8326_s1 + $0x7e0] sm:$0xff] %v2926_v20  ;;  %v2966_v37 = vpack.c.bf16 %v4817_v31, %v7904_v53  ;;  %v8115_v42 = vld [vmem:[%s8325_s0 + $0x11f0] sm:$0xff] }
  0xca   :  { %v8089_v35 = vld [vmem:[%s8325_s0 + $0x1e0] sm:$0xff]  ;;  %v2974_v38 = vpack.c.bf16 %v4820_v32, %v7909_v54  ;;  %v4823_v39 = vld [vmem:[%s8325_s0 + $0xfd8] sm:$0xff]  ;;  %v8120_v43 = vld [vmem:[%s8325_s0 + $0xbf0] sm:$0xff]  ;;  %4807 = vst [vmem:[%s8326_s1 + $0x2e0] sm:$0xff] %v2934_v27 }
  0xcb   :  { %v4826_v40 = vld [vmem:[%s8325_s0 + $0x9d8] sm:$0xff]  ;;  %v8125_v44 = vld [vmem:[%s8325_s0 + $0x5f0] sm:$0xff]  ;;  %4810 = vst [vmem:[%s8326_s1 + $0x5e0] sm:$0xff] %v2942_v28  ;;  %4813 = vst [vmem:[%s8326_s1 + $0x8e0] sm:$0xff] %v2950_v29  ;;  %v2982_v45 = vpack.c.bf16 %v4823_v39, %v7935_v61 }
  0xcc   :  { %v4829_v41 = vld [vmem:[%s8325_s0 + $0x3d8] sm:$0xff]  ;;  %v2990_v46 = vpack.c.bf16 %v4826_v40, %v7940_v62  ;;  %v8151_v51 = vld [vmem:[%s8325_s0 + $0xff0] sm:$0xff]  ;;  %4816 = vst [vmem:[%s8326_s1 + $0xe8] sm:$0xff] %v2958_v36  ;;  %4819 = vst [vmem:[%s8326_s1 + $0x3e8] sm:$0xff] %v2966_v37 }
  0xcd   :  { %v2998_v47 = vpack.c.bf16 %v4829_v41, %v7945_v63  ;;  %v4832_v48 = vld [vmem:[%s8325_s0 + $0xdd8] sm:$0xff]  ;;  %v8156_v52 = vld [vmem:[%s8325_s0 + $0x9f0] sm:$0xff]  ;;  %4822 = vst [vmem:[%s8326_s1 + $0x6e8] sm:$0xff] %v2974_v38  ;;  %v4841_v57 = vld [vmem:[%s8325_s0 + $0x11e8] sm:$0xff] }
  0xce   :  { %v4835_v49 = vld [vmem:[%s8325_s0 + $0x7d8] sm:$0xff]  ;;  %v8161_v53 = vld [vmem:[%s8325_s0 + $0x3f0] sm:$0xff]  ;;  %v3006_v54 = vpack.c.bf16 %v4832_v48, %v7971_v6  ;;  %v4844_v58 = vld [vmem:[%s8325_s0 + $0xbe8] sm:$0xff]  ;;  %4825 = vst [vmem:[%s8326_s1 + $0x1e8] sm:$0xff] %v2982_v45  ;;  %v3030_v63 = vpack.c.bf16 %v4841_v57, %v8007_v15 }
  0xcf   :  { %v4838_v50 = vld [vmem:[%s8325_s0 + $0x1d8] sm:$0xff]  ;;  %v3014_v55 = vpack.c.bf16 %v4835_v49, %v7976_v7  ;;  %v4847_v59 = vld [vmem:[%s8325_s0 + $0x5e8] sm:$0xff]  ;;  %v4028_v60 = vld [vmem:[%s8325_s0 + $0xdf0] sm:$0xff]  ;;  %4828 = vst [vmem:[%s8326_s1 + $0x4e8] sm:$0xff] %v2990_v46  ;;  %v3038_v0 = vpack.c.bf16 %v4844_v58, %v8012_v16 }
  0xd0   :  { %v3022_v56 = vpack.c.bf16 %v4838_v50, %v7981_v8  ;;  %v4029_v61 = vld [vmem:[%s8325_s0 + $0x7f0] sm:$0xff]  ;;  %4831 = vst [vmem:[%s8326_s1 + $0x7e8] sm:$0xff] %v2998_v47  ;;  %v3046_v1 = vpack.c.bf16 %v4847_v59, %v8017_v17  ;;  %v4850_v2 = vld [vmem:[%s8325_s0 + $0xfe8] sm:$0xff]  ;;  %4834 = vst [vmem:[%s8326_s1 + $0x2e8] sm:$0xff] %v3006_v54 }
  0xd1   :  { %v4030_v62 = vld [vmem:[%s8325_s0 + $0x1f0] sm:$0xff]  ;;  %v4853_v3 = vld [vmem:[%s8325_s0 + $0x9e8] sm:$0xff]  ;;  %4837 = vst [vmem:[%s8326_s1 + $0x5e8] sm:$0xff] %v3014_v55  ;;  %v3054_v5 = vpack.c.bf16 %v4850_v2, %v8043_v24  ;;  %4843 = vst [vmem:[%s8326_s1 + $0xf0] sm:$0xff] %v3030_v63 }
  0xd2   :  { %v4856_v4 = vld [vmem:[%s8325_s0 + $0x3e8] sm:$0xff]  ;;  %4840 = vst [vmem:[%s8326_s1 + $0x8e8] sm:$0xff] %v3022_v56  ;;  %v3062_v6 = vpack.c.bf16 %v4853_v3, %v8048_v25  ;;  %4846 = vst [vmem:[%s8326_s1 + $0x3f0] sm:$0xff] %v3038_v0  ;;  %v4868_v14 = vld [vmem:[%s8325_s0 + $0x11f8] sm:$0xff] }
  0xd3   :  { %v3070_v7 = vpack.c.bf16 %v4856_v4, %v8053_v26  ;;  %v4859_v8 = vld [vmem:[%s8325_s0 + $0xde8] sm:$0xff]  ;;  %4849 = vst [vmem:[%s8326_s1 + $0x6f0] sm:$0xff] %v3046_v1  ;;  %v4871_v15 = vld [vmem:[%s8325_s0 + $0xbf8] sm:$0xff]  ;;  %4852 = vst [vmem:[%s8326_s1 + $0x1f0] sm:$0xff] %v3054_v5  ;;  %v3102_v17 = vpack.c.bf16 %v4868_v14, %v8115_v42 }
  0xd4   :  { %v4862_v9 = vld [vmem:[%s8325_s0 + $0x7e8] sm:$0xff]  ;;  %v3078_v11 = vpack.c.bf16 %v4859_v8, %v8079_v33  ;;  %v4874_v16 = vld [vmem:[%s8325_s0 + $0x5f8] sm:$0xff]  ;;  %4855 = vst [vmem:[%s8326_s1 + $0x4f0] sm:$0xff] %v3062_v6  ;;  %v3110_v18 = vpack.c.bf16 %v4871_v15, %v8120_v43 }
  0xd5   :  { %v4865_v10 = vld [vmem:[%s8325_s0 + $0x1e8] sm:$0xff]  ;;  %v3086_v12 = vpack.c.bf16 %v4862_v9, %v8084_v34  ;;  %4858 = vst [vmem:[%s8326_s1 + $0x7f0] sm:$0xff] %v3070_v7  ;;  %v3118_v19 = vpack.c.bf16 %v4874_v16, %v8125_v44  ;;  %v4877_v20 = vld [vmem:[%s8325_s0 + $0xff8] sm:$0xff]  ;;  %4870 = vst [vmem:[%s8326_s1 + $0xf8] sm:$0xff] %v3102_v17 }
  0xd6   :  { %v3094_v13 = vpack.c.bf16 %v4865_v10, %v8089_v35  ;;  %v4880_v21 = vld [vmem:[%s8325_s0 + $0x9f8] sm:$0xff]  ;;  %4861 = vst [vmem:[%s8326_s1 + $0x2f0] sm:$0xff] %v3078_v11  ;;  %v3126_v23 = vpack.c.bf16 %v4877_v20, %v8151_v51  ;;  %4873 = vst [vmem:[%s8326_s1 + $0x3f8] sm:$0xff] %v3110_v18 }
  0xd7   :  { %v4883_v22 = vld [vmem:[%s8325_s0 + $0x3f8] sm:$0xff]  ;;  %4864 = vst [vmem:[%s8326_s1 + $0x5f0] sm:$0xff] %v3086_v12  ;;  %v3134_v24 = vpack.c.bf16 %v4880_v21, %v8156_v52  ;;  %4876 = vst [vmem:[%s8326_s1 + $0x6f8] sm:$0xff] %v3118_v19 }
  0xd8   :  { %4867 = vst [vmem:[%s8326_s1 + $0x8f0] sm:$0xff] %v3094_v13  ;;  %v3142_v25 = vpack.c.bf16 %v4883_v22, %v8161_v53  ;;  %v4886_v26 = vld [vmem:[%s8325_s0 + $0xdf8] sm:$0xff]  ;;  %4879 = vst [vmem:[%s8326_s1 + $0x1f8] sm:$0xff] %v3126_v23 }
  0xd9   :  { %v4889_v27 = vld [vmem:[%s8325_s0 + $0x7f8] sm:$0xff]  ;;  %v3150_v29 = vpack.c.bf16 %v4886_v26, %v4028_v60  ;;  %4882 = vst [vmem:[%s8326_s1 + $0x4f8] sm:$0xff] %v3134_v24 }
  0xda   :  { %v4892_v28 = vld [vmem:[%s8325_s0 + $0x1f8] sm:$0xff]  ;;  %v3158_v30 = vpack.c.bf16 %v4889_v27, %v4029_v61  ;;  %4885 = vst [vmem:[%s8326_s1 + $0x7f8] sm:$0xff] %v3142_v25 }
  0xdb   :  { %v3166_v31 = vpack.c.bf16 %v4892_v28, %v4030_v62  ;;  %4888 = vst [vmem:[%s8326_s1 + $0x2f8] sm:$0xff] %v3150_v29 }
  0xdc   :  { %4891 = vst [vmem:[%s8326_s1 + $0x5f8] sm:$0xff] %v3158_v30 }
  0xdd   :  { %4894 = vst [vmem:[%s8326_s1 + $0x8f8] sm:$0xff] %v3166_v31 }

// kernel: reverse.4
= control target key start
LH: loop header
LB: loop body
LE: loop exit
PB: predicated region body
PF: predicated region fallthrough
CT: control target
= control target key end

     0   :  { %s1790_s6 = smov 0   ;;  %s1792_s7 = smov 0   ;;  %s2287_s0 = inlined_call_operand.vmem [shape: f32[3,3,512,512], index: 0, kind: input, shape index: {}]   ;;  %s2288_s1 = inlined_call_operand.vmem [shape: bf16[3,3,512,512], index: 1, kind: output, shape index: {}]  }
   0x1   :  { %s1794_s8 = smov 0   ;;  %s1796_s9 = smov 0  }
   0x2   :  { %s1798_s10 = smov 0   ;;  %s1800_s11 = smov 0  }
   0x3   :  { %s1802_s12 = smov 0   ;;  %s1804_s13 = smov 0  }
   0x4   :  { %s1806_s14 = smov 0   ;;  %s1808_s15 = smov 0  }
   0x5   :  { %s1810_s16 = smov 0   ;;  %s1812_s17 = smov 0  }
   0x6   :  { %s1814_s18 = smov 0   ;;  %s1816_s19 = smov 0  }
   0x7   :  { %s1818_s20 = smov 0   ;;  %s1820_s21 = smov 0  }
   0x8   :  { %s1822_s22 = smov 0   ;;  %s1824_s23 = smov 0  }
   0x9   :  { %s1826_s24 = smov 0  }
   0xa LB: > { %s65_s25 = sadd.s32 1, %s1766_s21  ;;  %s69_s26 = sadd.s32 1, %s1770_s22  ;;  %s1778_s24 = sphi %s1826_s24, %s7_s24   ;;  %s1774_s23 = sphi %s1824_s23, %s2307_s23   ;;  %s1770_s22 = sphi %s1822_s22, %s2306_s22   ;;  %s1766_s21 = sphi %s1820_s21, %s2305_s21   ;;  %s1762_s20 = sphi %s1818_s20, %s2304_s20   ;;  %s1758_s19 = sphi %s1816_s19, %s2303_s19   ;;  %s1754_s18 = sphi %s1814_s18, %s2302_s18   ;;  %s1750_s17 = sphi %s1812_s17, %s2301_s17   ;;  %s1746_s16 = sphi %s1810_s16, %s2300_s16   ;;  %s1742_s15 = sphi %s1808_s15, %s2299_s15   ;;  %s1738_s14 = sphi %s1806_s14, %s2298_s14   ;;  %s1734_s13 = sphi %s1804_s13, %s2297_s13   ;;  %s1730_s12 = sphi %s1802_s12, %s2296_s12   ;;  %s1726_s11 = sphi %s1800_s11, %s2295_s11   ;;  %s1722_s10 = sphi %s1798_s10, %s2294_s10   ;;  %s1718_s9 = sphi %s1796_s9, %s2293_s9   ;;  %s1714_s8 = sphi %s1794_s8, %s2292_s8   ;;  %s1710_s7 = sphi %s1792_s7, %s2291_s7   ;;  %s1706_s6 = sphi %s1790_s6, %s2290_s6  }
   0xb   : > { %p67_p0 = scmp.ge.s32.totalorder %s65_s25, 2  ;;  %p1208_p1 = scmp.ge.s32.totalorder %s1778_s24, 5 }
   0xc   : > { %p113_p2 = scmp.lt.s32.totalorder %s1778_s24, 23  ;;  %s73_s27 = sadd.s32 1, %s1774_s23 }
   0xd   : > { %s2309_s25 = smov (%p67_p0, %s65_s25), 0  ;;  %s2311_s26 = smov (!%p67_p0, %s69_s26), %s1770_s22 }
   0xe   : > { %p114_p3 = pnand %p1208_p1, %p113_p2  ;;  %p71_p4 = scmp.ge.s32.totalorder %s2311_s26, 3 }
   0xf   : > { %s159_s28 = ssub.s32 (!%p114_p3), 2, %s1714_s8  ;;  %s160_s29 = ssub.s32 (!%p114_p3), 2, %s1710_s7 }
  0x10   : > { %s2313_s26 = smov (%p71_p4, %s2311_s26), 0  ;;  %s2315_s27 = smov (!%p71_p4, %s73_s27), %s1774_s23 }
  0x11   : > { %p75_p5 = scmp.ge.s32.totalorder %s2315_s27, 3  ;;  %117 = sbr.rel (%p114_p3) target bundleno = 90 (0x5a), region = 20 }
  0x12   : > { %s1209_s30 = sshll.u32 (!%p114_p3), %s1706_s6, 5  ;;  %p163_p6 = scmp.lt.s32.totalorder (!%p114_p3), %s159_s28, 2 }
  0x13   : > { %s2317_s27 = smov (%p75_p5, %s2315_s27), 0  ;;  %p165_p7 = scmp.lt.s32.totalorder (!%p114_p3), %s160_s29, 2 }
  0x14   : > { %p167_p8 = scmp.lt.s32.totalorder (!%p114_p3), %s1209_s30, 63  ;;  %p185_p9 = scmp.lt.s32.totalorder (!%p114_p3), %s1714_s8, 2 }
  0x15   : > { %p187_p10 = scmp.lt.s32.totalorder (!%p114_p3), %s1710_s7, 2 }
  0x16   : > { %s2319_s28 = smov (!%p163_p6, %s159_s28), 2  ;;  %s2321_s29 = smov (!%p165_p7, %s160_s29), 2 }
  0x17   : > { %s2323_s30 = smov (!%p167_p8, %s1209_s30), 63  ;;  %s1211_s2 = sshll.u32 %s2321_s29, 8 }
  0x18   : > { %s1474_s3 = smul.u32 768, %s2319_s28  ;;  %s1210_s4 = sshll.u32 %s2323_s30, 2 }
  0x19   : > { %s174_s5 = sadd.s32 %s1211_s2, %s1210_s4  ;;  %s2325_s8 = smov (!%p185_p9, %s1714_s8), 2 }
  0x1a   : > { %s176_s6 = sadd.s32 %s1474_s3, %s174_s5  ;;  %s2327_s7 = smov (!%p187_p10, %s1710_s7), 2 }
  0x1b   : > { %s1212_s28 = sshll.u32 %s176_s6, 3  ;;  %s1475_s8 = smul.u32 768, %s2325_s8 }
  0x1c   : > { %s1908_s2 = scalar_lea.vmem %s2287_s0, %s1212_s28  ;;  %s1215_s7 = sshll.u32 %s2327_s7, 8 }
  0x1d   : > { %s196_s3 = sadd.s32 %s1215_s7, %s1210_s4  ;;  %v203_v0 = vld [vmem:[%s1908_s2] sm:$0xff]  ;;  %v1248_v13 = vld [vmem:[%s1908_s2 + $0x8] sm:$0xff] }
  0x1e   : > { %s198_s4 = sadd.s32 %s1475_s8, %s196_s3  ;;  %v1217_v1 = vld [vmem:[%s1908_s2 + $0x20] sm:$0xff]  ;;  %v303_v17 = vpack.c.bf16 %v1248_v13, %v203_v0  ;;  %v1251_v18 = vld [vmem:[%s1908_s2 + $0x28] sm:$0xff] }
  0x1f   : > { %s1216_s5 = sshll.u32 %s198_s4, 2  ;;  %v1218_v2 = vld [vmem:[%s1908_s2 + $0x40] sm:$0xff]  ;;  %v1254_v19 = vld [vmem:[%s1908_s2 + $0x48] sm:$0xff]  ;;  %v311_v24 = vpack.c.bf16 %v1251_v18, %v1217_v1 }
  0x20   : > { %v1219_v3 = vld [vmem:[%s1908_s2 + $0x60] sm:$0xff]  ;;  %s1923_s8 = scalar_lea.vmem %s2288_s1, %s1216_s5  ;;  %v1257_v20 = vld [vmem:[%s1908_s2 + $0x68] sm:$0xff]  ;;  %v319_v25 = vpack.c.bf16 %v1254_v19, %v1218_v2 }
  0x21   : > { %v1220_v4 = vld [vmem:[%s1908_s2 + $0x80] sm:$0xff]  ;;  %v327_v26 = vpack.c.bf16 %v1257_v20, %v1219_v3  ;;  %v1260_v27 = vld [vmem:[%s1908_s2 + $0x88] sm:$0xff]  ;;  %1250 = vst [vmem:[%s1923_s8] sm:$0xff] %v303_v17  ;;  %1253 = vst [vmem:[%s1923_s8 + $0x10] sm:$0xff] %v311_v24 }
  0x22   : > { %v1221_v5 = vld [vmem:[%s1908_s2 + $0xa0] sm:$0xff]  ;;  %v1263_v28 = vld [vmem:[%s1908_s2 + $0xa8] sm:$0xff]  ;;  %v335_v33 = vpack.c.bf16 %v1260_v27, %v1220_v4  ;;  %1256 = vst [vmem:[%s1923_s8 + $0x20] sm:$0xff] %v319_v25 }
  0x23   : > { %v1222_v6 = vld [vmem:[%s1908_s2 + $0xc0] sm:$0xff]  ;;  %v1266_v29 = vld [vmem:[%s1908_s2 + $0xc8] sm:$0xff]  ;;  %v343_v34 = vpack.c.bf16 %v1263_v28, %v1221_v5  ;;  %1259 = vst [vmem:[%s1923_s8 + $0x30] sm:$0xff] %v327_v26 }
  0x24   : > { %v1223_v7 = vld [vmem:[%s1908_s2 + $0xe0] sm:$0xff]  ;;  %v351_v35 = vpack.c.bf16 %v1266_v29, %v1222_v6  ;;  %v1269_v36 = vld [vmem:[%s1908_s2 + $0xe8] sm:$0xff]  ;;  %1262 = vst [vmem:[%s1923_s8 + $0x40] sm:$0xff] %v335_v33  ;;  %v1345_v33 = vld [vmem:[%s1908_s2 + $0x30] sm:$0xff] }
  0x25   : > { %v1224_v8 = vld [vmem:[%s1908_s2 + $0x100] sm:$0xff]  ;;  %v1272_v37 = vld [vmem:[%s1908_s2 + $0x108] sm:$0xff]  ;;  %v359_v42 = vpack.c.bf16 %v1269_v36, %v1223_v7  ;;  %1265 = vst [vmem:[%s1923_s8 + $0x50] sm:$0xff] %v343_v34  ;;  %v1346_v34 = vld [vmem:[%s1908_s2 + $0x50] sm:$0xff] }
  0x26   : > { %v1225_v9 = vld [vmem:[%s1908_s2 + $0x120] sm:$0xff]  ;;  %v1275_v38 = vld [vmem:[%s1908_s2 + $0x128] sm:$0xff]  ;;  %v367_v43 = vpack.c.bf16 %v1272_v37, %v1224_v8  ;;  %1268 = vst [vmem:[%s1923_s8 + $0x60] sm:$0xff] %v351_v35  ;;  %v1347_v35 = vld [vmem:[%s1908_s2 + $0x70] sm:$0xff] }
  0x27   : > { %v1926_v10 = vld [vmem:[%s1908_s2 + $0x140] sm:$0xff]  ;;  %v375_v44 = vpack.c.bf16 %v1275_v38, %v1225_v9  ;;  %v1278_v45 = vld [vmem:[%s1908_s2 + $0x148] sm:$0xff]  ;;  %1271 = vst [vmem:[%s1923_s8 + $0x70] sm:$0xff] %v359_v42  ;;  %v1348_v36 = vld [vmem:[%s1908_s2 + $0x90] sm:$0xff] }
  0x28   : > { %v1929_v11 = vld [vmem:[%s1908_s2 + $0x160] sm:$0xff]  ;;  %v1281_v46 = vld [vmem:[%s1908_s2 + $0x168] sm:$0xff]  ;;  %v383_v51 = vpack.c.bf16 %v1278_v45, %v1926_v10  ;;  %1274 = vst [vmem:[%s1923_s8 + $0x80] sm:$0xff] %v367_v43  ;;  %v1349_v37 = vld [vmem:[%s1908_s2 + $0xb0] sm:$0xff] }
  0x29   : > { %v1932_v12 = vld [vmem:[%s1908_s2 + $0x180] sm:$0xff]  ;;  %v1284_v47 = vld [vmem:[%s1908_s2 + $0x188] sm:$0xff]  ;;  %v391_v52 = vpack.c.bf16 %v1281_v46, %v1929_v11  ;;  %1277 = vst [vmem:[%s1923_s8 + $0x90] sm:$0xff] %v375_v44  ;;  %v1350_v38 = vld [vmem:[%s1908_s2 + $0xd0] sm:$0xff] }
  0x2a   : > { %v1936_v14 = vld [vmem:[%s1908_s2 + $0x1a0] sm:$0xff]  ;;  %v399_v53 = vpack.c.bf16 %v1284_v47, %v1932_v12  ;;  %v1287_v54 = vld [vmem:[%s1908_s2 + $0x1a8] sm:$0xff]  ;;  %1280 = vst [vmem:[%s1923_s8 + $0xa0] sm:$0xff] %v383_v51  ;;  %v2078_v42 = vld [vmem:[%s1908_s2 + $0x150] sm:$0xff] }
  0x2b   : > { %v1939_v15 = vld [vmem:[%s1908_s2 + $0x1c0] sm:$0xff]  ;;  %v1290_v55 = vld [vmem:[%s1908_s2 + $0x1c8] sm:$0xff]  ;;  %v407_v60 = vpack.c.bf16 %v1287_v54, %v1936_v14  ;;  %1283 = vst [vmem:[%s1923_s8 + $0xb0] sm:$0xff] %v391_v52  ;;  %v2081_v43 = vld [vmem:[%s1908_s2 + $0x170] sm:$0xff] }
  0x2c   : > { %v1942_v16 = vld [vmem:[%s1908_s2 + $0x1e0] sm:$0xff]  ;;  %v1293_v56 = vld [vmem:[%s1908_s2 + $0x1e8] sm:$0xff]  ;;  %v415_v61 = vpack.c.bf16 %v1290_v55, %v1939_v15  ;;  %1286 = vst [vmem:[%s1923_s8 + $0xc0] sm:$0xff] %v399_v53  ;;  %v2084_v44 = vld [vmem:[%s1908_s2 + $0x190] sm:$0xff] }
  0x2d   : > { %v1948_v21 = vld [vmem:[%s1908_s2 + $0x200] sm:$0xff]  ;;  %v423_v62 = vpack.c.bf16 %v1293_v56, %v1942_v16  ;;  %v1296_v63 = vld [vmem:[%s1908_s2 + $0x208] sm:$0xff]  ;;  %1289 = vst [vmem:[%s1923_s8 + $0xd0] sm:$0xff] %v407_v60  ;;  %v2087_v45 = vld [vmem:[%s1908_s2 + $0x1b0] sm:$0xff] }
  0x2e   : > { %v1951_v22 = vld [vmem:[%s1908_s2 + $0x220] sm:$0xff]  ;;  %v1299_v0 = vld [vmem:[%s1908_s2 + $0x228] sm:$0xff]  ;;  %v431_v3 = vpack.c.bf16 %v1296_v63, %v1948_v21  ;;  %1292 = vst [vmem:[%s1923_s8 + $0xe0] sm:$0xff] %v415_v61  ;;  %v2090_v46 = vld [vmem:[%s1908_s2 + $0x1d0] sm:$0xff] }
  0x2f   : > { %v1954_v23 = vld [vmem:[%s1908_s2 + $0x240] sm:$0xff]  ;;  %v1302_v1 = vld [vmem:[%s1908_s2 + $0x248] sm:$0xff]  ;;  %v439_v4 = vpack.c.bf16 %v1299_v0, %v1951_v22  ;;  %1295 = vst [vmem:[%s1923_s8 + $0xf0] sm:$0xff] %v423_v62  ;;  %v1376_v47 = vld [vmem:[%s1908_s2 + $0x18] sm:$0xff] }
  0x30   : > { %v1960_v30 = vld [vmem:[%s1908_s2 + $0x260] sm:$0xff]  ;;  %v447_v5 = vpack.c.bf16 %v1302_v1, %v1954_v23  ;;  %v1305_v6 = vld [vmem:[%s1908_s2 + $0x268] sm:$0xff]  ;;  %1298 = vst [vmem:[%s1923_s8 + $0x100] sm:$0xff] %v431_v3  ;;  %v2099_v51 = vld [vmem:[%s1908_s2 + $0x210] sm:$0xff] }
  0x31   : > { %v1963_v31 = vld [vmem:[%s1908_s2 + $0x280] sm:$0xff]  ;;  %v1308_v7 = vld [vmem:[%s1908_s2 + $0x288] sm:$0xff]  ;;  %v455_v9 = vpack.c.bf16 %v1305_v6, %v1960_v30  ;;  %1301 = vst [vmem:[%s1923_s8 + $0x110] sm:$0xff] %v439_v4  ;;  %v2102_v52 = vld [vmem:[%s1908_s2 + $0x230] sm:$0xff] }
  0x32   : > { %v1966_v32 = vld [vmem:[%s1908_s2 + $0x2a0] sm:$0xff]  ;;  %v1311_v8 = vld [vmem:[%s1908_s2 + $0x2a8] sm:$0xff]  ;;  %v463_v10 = vpack.c.bf16 %v1308_v7, %v1963_v31  ;;  %1304 = vst [vmem:[%s1923_s8 + $0x120] sm:$0xff] %v447_v5  ;;  %v1385_v56 = vld [vmem:[%s1908_s2 + $0x78] sm:$0xff] }
  0x33   : > { %v1973_v39 = vld [vmem:[%s1908_s2 + $0x2c0] sm:$0xff]  ;;  %v471_v11 = vpack.c.bf16 %v1311_v8, %v1966_v32  ;;  %v1314_v12 = vld [vmem:[%s1908_s2 + $0x2c8] sm:$0xff]  ;;  %1307 = vst [vmem:[%s1923_s8 + $0x130] sm:$0xff] %v455_v9  ;;  %v1344_v32 = vld [vmem:[%s1908_s2 + $0x10] sm:$0xff]  ;;  %v679_v62 = vpack.c.bf16 %v1385_v56, %v1347_v35 }
  0x34   : > { %v1976_v40 = vld [vmem:[%s1908_s2 + $0x2e0] sm:$0xff]  ;;  %v1317_v13 = vld [vmem:[%s1908_s2 + $0x2e8] sm:$0xff]  ;;  %v479_v15 = vpack.c.bf16 %v1314_v12, %v1973_v39  ;;  %1310 = vst [vmem:[%s1923_s8 + $0x140] sm:$0xff] %v463_v10  ;;  %v1351_v39 = vld [vmem:[%s1908_s2 + $0xf0] sm:$0xff]  ;;  %v655_v53 = vpack.c.bf16 %v1376_v47, %v1344_v32 }
  0x35   : > { %v1979_v41 = vld [vmem:[%s1908_s2 + $0x300] sm:$0xff]  ;;  %v1320_v14 = vld [vmem:[%s1908_s2 + $0x308] sm:$0xff]  ;;  %v487_v16 = vpack.c.bf16 %v1317_v13, %v1976_v40  ;;  %1313 = vst [vmem:[%s1923_s8 + $0x150] sm:$0xff] %v471_v11  ;;  %v1352_v40 = vld [vmem:[%s1908_s2 + $0x110] sm:$0xff] }
  0x36   : > { %v1988_v48 = vld [vmem:[%s1908_s2 + $0x320] sm:$0xff]  ;;  %v495_v17 = vpack.c.bf16 %v1320_v14, %v1979_v41  ;;  %v1323_v18 = vld [vmem:[%s1908_s2 + $0x328] sm:$0xff]  ;;  %1316 = vst [vmem:[%s1923_s8 + $0x160] sm:$0xff] %v479_v15  ;;  %v2075_v41 = vld [vmem:[%s1908_s2 + $0x130] sm:$0xff] }
  0x37   : > { %v1991_v49 = vld [vmem:[%s1908_s2 + $0x340] sm:$0xff]  ;;  %v1326_v19 = vld [vmem:[%s1908_s2 + $0x348] sm:$0xff]  ;;  %v503_v21 = vpack.c.bf16 %v1323_v18, %v1988_v48  ;;  %1319 = vst [vmem:[%s1923_s8 + $0x170] sm:$0xff] %v487_v16  ;;  %v1379_v48 = vld [vmem:[%s1908_s2 + $0x38] sm:$0xff] }
  0x38   : > { %v1994_v50 = vld [vmem:[%s1908_s2 + $0x360] sm:$0xff]  ;;  %v1329_v20 = vld [vmem:[%s1908_s2 + $0x368] sm:$0xff]  ;;  %v511_v22 = vpack.c.bf16 %v1326_v19, %v1991_v49  ;;  %1322 = vst [vmem:[%s1923_s8 + $0x180] sm:$0xff] %v495_v17  ;;  %v1382_v49 = vld [vmem:[%s1908_s2 + $0x58] sm:$0xff]  ;;  %v663_v54 = vpack.c.bf16 %v1379_v48, %v1345_v33 }
  0x39   : > { %v1244_v57 = vld [vmem:[%s1908_s2 + $0x380] sm:$0xff]  ;;  %v519_v23 = vpack.c.bf16 %v1329_v20, %v1994_v50  ;;  %v1332_v24 = vld [vmem:[%s1908_s2 + $0x388] sm:$0xff]  ;;  %1325 = vst [vmem:[%s1923_s8 + $0x190] sm:$0xff] %v503_v21  ;;  %v2096_v50 = vld [vmem:[%s1908_s2 + $0x1f0] sm:$0xff]  ;;  %v671_v55 = vpack.c.bf16 %v1382_v49, %v1346_v34 }
  0x3a   : > { %v1245_v58 = vld [vmem:[%s1908_s2 + $0x3a0] sm:$0xff]  ;;  %v1335_v25 = vld [vmem:[%s1908_s2 + $0x3a8] sm:$0xff]  ;;  %v527_v27 = vpack.c.bf16 %v1332_v24, %v1244_v57  ;;  %1328 = vst [vmem:[%s1923_s8 + $0x1a0] sm:$0xff] %v511_v22  ;;  %v1388_v57 = vld [vmem:[%s1908_s2 + $0x98] sm:$0xff] }
  0x3b   : > { %v1246_v59 = vld [vmem:[%s1908_s2 + $0x3c0] sm:$0xff]  ;;  %v1338_v26 = vld [vmem:[%s1908_s2 + $0x3c8] sm:$0xff]  ;;  %v535_v28 = vpack.c.bf16 %v1335_v25, %v1245_v58  ;;  %1331 = vst [vmem:[%s1923_s8 + $0x1b0] sm:$0xff] %v519_v23  ;;  %v1391_v58 = vld [vmem:[%s1908_s2 + $0xb8] sm:$0xff]  ;;  %v687_v63 = vpack.c.bf16 %v1388_v57, %v1348_v36 }
  0x3c   : > { %v1247_v2 = vld [vmem:[%s1908_s2 + $0x3e0] sm:$0xff]  ;;  %v543_v29 = vpack.c.bf16 %v1338_v26, %v1246_v59  ;;  %v1341_v30 = vld [vmem:[%s1908_s2 + $0x3e8] sm:$0xff]  ;;  %1334 = vst [vmem:[%s1923_s8 + $0x1c0] sm:$0xff] %v527_v27  ;;  %v2108_v59 = vld [vmem:[%s1908_s2 + $0x250] sm:$0xff]  ;;  %v695_v0 = vpack.c.bf16 %v1391_v58, %v1349_v37 }
  0x3d   : > { %v551_v31 = vpack.c.bf16 %v1341_v30, %v1247_v2  ;;  %1337 = vst [vmem:[%s1923_s8 + $0x1d0] sm:$0xff] %v535_v28  ;;  %v2111_v60 = vld [vmem:[%s1908_s2 + $0x270] sm:$0xff]  ;;  %v1394_v1 = vld [vmem:[%s1908_s2 + $0xd8] sm:$0xff]  ;;  %1378 = vst [vmem:[%s1923_s8 + $0x8] sm:$0xff] %v655_v53 }
  0x3e   : > { %1340 = vst [vmem:[%s1923_s8 + $0x1e0] sm:$0xff] %v543_v29  ;;  %v2114_v61 = vld [vmem:[%s1908_s2 + $0x290] sm:$0xff]  ;;  %v1397_v2 = vld [vmem:[%s1908_s2 + $0xf8] sm:$0xff]  ;;  %1381 = vst [vmem:[%s1923_s8 + $0x18] sm:$0xff] %v663_v54  ;;  %v703_v7 = vpack.c.bf16 %v1394_v1, %v1350_v38 }
  0x3f   : > { %1343 = vst [vmem:[%s1923_s8 + $0x1f0] sm:$0xff] %v551_v31  ;;  %v1400_v3 = vld [vmem:[%s1908_s2 + $0x118] sm:$0xff]  ;;  %v2120_v4 = vld [vmem:[%s1908_s2 + $0x2b0] sm:$0xff]  ;;  %1384 = vst [vmem:[%s1923_s8 + $0x28] sm:$0xff] %v671_v55  ;;  %v711_v8 = vpack.c.bf16 %v1397_v2, %v1351_v39 }
  0x40   : > { %v2123_v5 = vld [vmem:[%s1908_s2 + $0x2d0] sm:$0xff]  ;;  %v719_v9 = vpack.c.bf16 %v1400_v3, %v1352_v40  ;;  %v1403_v10 = vld [vmem:[%s1908_s2 + $0x138] sm:$0xff]  ;;  %1387 = vst [vmem:[%s1923_s8 + $0x38] sm:$0xff] %v679_v62  ;;  %1390 = vst [vmem:[%s1923_s8 + $0x48] sm:$0xff] %v687_v63 }
  0x41   : > { %v2126_v6 = vld [vmem:[%s1908_s2 + $0x2f0] sm:$0xff]  ;;  %v1406_v11 = vld [vmem:[%s1908_s2 + $0x158] sm:$0xff]  ;;  %1393 = vst [vmem:[%s1923_s8 + $0x58] sm:$0xff] %v695_v0  ;;  %v727_v16 = vpack.c.bf16 %v1403_v10, %v2075_v41  ;;  %1396 = vst [vmem:[%s1923_s8 + $0x68] sm:$0xff] %v703_v7 }
  0x42   : > { %v1409_v12 = vld [vmem:[%s1908_s2 + $0x178] sm:$0xff]  ;;  %v2135_v13 = vld [vmem:[%s1908_s2 + $0x310] sm:$0xff]  ;;  %v735_v17 = vpack.c.bf16 %v1406_v11, %v2078_v42  ;;  %1399 = vst [vmem:[%s1923_s8 + $0x78] sm:$0xff] %v711_v8  ;;  %1402 = vst [vmem:[%s1923_s8 + $0x88] sm:$0xff] %v719_v9 }
  0x43   : > { %v2138_v14 = vld [vmem:[%s1908_s2 + $0x330] sm:$0xff]  ;;  %v743_v18 = vpack.c.bf16 %v1409_v12, %v2081_v43  ;;  %v1412_v19 = vld [vmem:[%s1908_s2 + $0x198] sm:$0xff]  ;;  %1405 = vst [vmem:[%s1923_s8 + $0x98] sm:$0xff] %v727_v16 }
  0x44   : > { %v2141_v15 = vld [vmem:[%s1908_s2 + $0x350] sm:$0xff]  ;;  %v1415_v20 = vld [vmem:[%s1908_s2 + $0x1b8] sm:$0xff]  ;;  %v751_v25 = vpack.c.bf16 %v1412_v19, %v2084_v44  ;;  %1408 = vst [vmem:[%s1923_s8 + $0xa8] sm:$0xff] %v735_v17 }
  0x45   : > { %v1418_v21 = vld [vmem:[%s1908_s2 + $0x1d8] sm:$0xff]  ;;  %v2153_v22 = vld [vmem:[%s1908_s2 + $0x370] sm:$0xff]  ;;  %v759_v26 = vpack.c.bf16 %v1415_v20, %v2087_v45  ;;  %1411 = vst [vmem:[%s1923_s8 + $0xb8] sm:$0xff] %v743_v18 }
  0x46   : > { %v2156_v23 = vld [vmem:[%s1908_s2 + $0x390] sm:$0xff]  ;;  %v767_v27 = vpack.c.bf16 %v1418_v21, %v2090_v46  ;;  %v1421_v28 = vld [vmem:[%s1908_s2 + $0x1f8] sm:$0xff]  ;;  %1414 = vst [vmem:[%s1923_s8 + $0xc8] sm:$0xff] %v751_v25 }
  0x47   : > { %v2159_v24 = vld [vmem:[%s1908_s2 + $0x3b0] sm:$0xff]  ;;  %v1424_v29 = vld [vmem:[%s1908_s2 + $0x218] sm:$0xff]  ;;  %v775_v33 = vpack.c.bf16 %v1421_v28, %v2096_v50  ;;  %1417 = vst [vmem:[%s1923_s8 + $0xd8] sm:$0xff] %v759_v26 }
  0x48   : > { %v1427_v30 = vld [vmem:[%s1908_s2 + $0x238] sm:$0xff]  ;;  %v1374_v31 = vld [vmem:[%s1908_s2 + $0x3d0] sm:$0xff]  ;;  %v783_v34 = vpack.c.bf16 %v1424_v29, %v2099_v51  ;;  %1420 = vst [vmem:[%s1923_s8 + $0xe8] sm:$0xff] %v767_v27 }
  0x49   : > { %v1375_v32 = vld [vmem:[%s1908_s2 + $0x3f0] sm:$0xff]  ;;  %v791_v35 = vpack.c.bf16 %v1427_v30, %v2102_v52  ;;  %v1430_v36 = vld [vmem:[%s1908_s2 + $0x258] sm:$0xff]  ;;  %1423 = vst [vmem:[%s1923_s8 + $0xf8] sm:$0xff] %v775_v33 }
  0x4a   : > { %v1433_v37 = vld [vmem:[%s1908_s2 + $0x278] sm:$0xff]  ;;  %v799_v39 = vpack.c.bf16 %v1430_v36, %v2108_v59  ;;  %1426 = vst [vmem:[%s1923_s8 + $0x108] sm:$0xff] %v783_v34 }
  0x4b   : > { %v1436_v38 = vld [vmem:[%s1908_s2 + $0x298] sm:$0xff]  ;;  %v807_v40 = vpack.c.bf16 %v1433_v37, %v2111_v60  ;;  %1429 = vst [vmem:[%s1923_s8 + $0x118] sm:$0xff] %v791_v35 }
  0x4c   : > { %v815_v41 = vpack.c.bf16 %v1436_v38, %v2114_v61  ;;  %v1439_v42 = vld [vmem:[%s1908_s2 + $0x2b8] sm:$0xff]  ;;  %1432 = vst [vmem:[%s1923_s8 + $0x128] sm:$0xff] %v799_v39 }
  0x4d   : > { %v1442_v43 = vld [vmem:[%s1908_s2 + $0x2d8] sm:$0xff]  ;;  %v823_v45 = vpack.c.bf16 %v1439_v42, %v2120_v4  ;;  %1435 = vst [vmem:[%s1923_s8 + $0x138] sm:$0xff] %v807_v40 }
  0x4e   : > { %v1445_v44 = vld [vmem:[%s1908_s2 + $0x2f8] sm:$0xff]  ;;  %v831_v46 = vpack.c.bf16 %v1442_v43, %v2123_v5  ;;  %1438 = vst [vmem:[%s1923_s8 + $0x148] sm:$0xff] %v815_v41 }
  0x4f   : > { %v839_v47 = vpack.c.bf16 %v1445_v44, %v2126_v6  ;;  %v1448_v48 = vld [vmem:[%s1908_s2 + $0x318] sm:$0xff]  ;;  %1441 = vst [vmem:[%s1923_s8 + $0x158] sm:$0xff] %v823_v45 }
  0x50   : > { %v1451_v49 = vld [vmem:[%s1908_s2 + $0x338] sm:$0xff]  ;;  %v847_v51 = vpack.c.bf16 %v1448_v48, %v2135_v13  ;;  %1444 = vst [vmem:[%s1923_s8 + $0x168] sm:$0xff] %v831_v46 }
  0x51   : > { %v1454_v50 = vld [vmem:[%s1908_s2 + $0x358] sm:$0xff]  ;;  %v855_v52 = vpack.c.bf16 %v1451_v49, %v2138_v14  ;;  %1447 = vst [vmem:[%s1923_s8 + $0x178] sm:$0xff] %v839_v47 }
  0x52   : > { %v863_v53 = vpack.c.bf16 %v1454_v50, %v2141_v15  ;;  %v1457_v54 = vld [vmem:[%s1908_s2 + $0x378] sm:$0xff]  ;;  %1450 = vst [vmem:[%s1923_s8 + $0x188] sm:$0xff] %v847_v51 }
  0x53   : > { %v1460_v55 = vld [vmem:[%s1908_s2 + $0x398] sm:$0xff]  ;;  %v871_v57 = vpack.c.bf16 %v1457_v54, %v2153_v22  ;;  %1453 = vst [vmem:[%s1923_s8 + $0x198] sm:$0xff] %v855_v52 }
  0x54   : > { %v1463_v56 = vld [vmem:[%s1908_s2 + $0x3b8] sm:$0xff]  ;;  %v879_v58 = vpack.c.bf16 %v1460_v55, %v2156_v23  ;;  %1456 = vst [vmem:[%s1923_s8 + $0x1a8] sm:$0xff] %v863_v53 }
  0x55   : > { %v887_v59 = vpack.c.bf16 %v1463_v56, %v2159_v24  ;;  %v1466_v60 = vld [vmem:[%s1908_s2 + $0x3d8] sm:$0xff]  ;;  %1459 = vst [vmem:[%s1923_s8 + $0x1b8] sm:$0xff] %v871_v57 }
  0x56   : > { %v1469_v61 = vld [vmem:[%s1908_s2 + $0x3f8] sm:$0xff]  ;;  %v895_v62 = vpack.c.bf16 %v1466_v60, %v1374_v31  ;;  %1462 = vst [vmem:[%s1923_s8 + $0x1c8] sm:$0xff] %v879_v58 }
  0x57   : > { %v903_v63 = vpack.c.bf16 %v1469_v61, %v1375_v32  ;;  %1465 = vst [vmem:[%s1923_s8 + $0x1d8] sm:$0xff] %v887_v59 }
  0x58   : > { %1468 = vst [vmem:[%s1923_s8 + $0x1e8] sm:$0xff] %v895_v62 }
  0x59   : > { %1471 = vst [vmem:[%s1923_s8 + $0x1f8] sm:$0xff] %v903_v63 }
  0x5a PF: > { %s7_s24 = sadd.s32 1, %s1778_s24   ;;  %s2290_s6 = smov %s1718_s9 }
  0x5b   : > { %p2225_p11 = scmp.ge.s32.totalorder %s7_s24, 28   ;;  %s2291_s7 = smov %s1722_s10 }
  0x5c   : > { %s2292_s8 = smov %s1726_s11  ;;  %s2293_s9 = smov %s1730_s12 }
  0x5d   : > { %s2294_s10 = smov %s1734_s13  ;;  %s2295_s11 = smov %s1738_s14 }
  0x5e   : > { %s2296_s12 = smov %s1742_s15  ;;  %s2297_s13 = smov %s1746_s16 }
  0x5f   : > { %s2298_s14 = smov %s1750_s17  ;;  %s2299_s15 = smov %s1754_s18 }
  0x60   : > { %s2300_s16 = smov %s1758_s19  ;;  %s2301_s17 = smov %s1762_s20 }
  0x61   : > { %s2302_s18 = smov %s1766_s21  ;;  %s2303_s19 = smov %s1770_s22 }
  0x62   : > { %s2304_s20 = smov %s1774_s23  ;;  %s2305_s21 = smov %s2309_s25 }
  0x63   : > { %s2306_s22 = smov %s2313_s26  ;;  %s2307_s23 = smov %s2317_s27 }
  0x64   :  { %6 = sbr.rel (!%p2225_p11) target bundleno = 10 (0xa), region = 359 }

// kernel: reverse.3
= control target key start
LH: loop header
LB: loop body
LE: loop exit
PB: predicated region body
PF: predicated region fallthrough
CT: control target
= control target key end

     0   :  { %s16641_s0 = inlined_call_operand.vmem [shape: f32[3,3,256,512], index: 0, kind: input, shape index: {}]   ;;  %s16642_s1 = inlined_call_operand.vmem [shape: bf16[3,3,256,512], index: 1, kind: output, shape index: {}]  }
   0x1   :  { %v7488_v0 = vld [vmem:[%s16641_s0 + $0x2000] sm:$0xff]  ;;  %v7775_v15 = vld [vmem:[%s16641_s0 + $0x2008] sm:$0xff] }
   0x2   :  { %v7489_v1 = vld [vmem:[%s16641_s0 + $0x1400] sm:$0xff]  ;;  %v7778_v16 = vld [vmem:[%s16641_s0 + $0x1408] sm:$0xff]  ;;  %v870_v21 = vpack.c.bf16 %v7775_v15, %v7488_v0 }
   0x3   :  { %v7490_v2 = vld [vmem:[%s16641_s0 + $0x800] sm:$0xff]  ;;  %v7781_v17 = vld [vmem:[%s16641_s0 + $0x808] sm:$0xff]  ;;  %v878_v22 = vpack.c.bf16 %v7778_v16, %v7489_v1 }
   0x4   :  { %v7491_v3 = vld [vmem:[%s16641_s0 + $0x1c00] sm:$0xff]  ;;  %v886_v23 = vpack.c.bf16 %v7781_v17, %v7490_v2  ;;  %v7784_v24 = vld [vmem:[%s16641_s0 + $0x1c08] sm:$0xff]  ;;  %7777 = vst [vmem:[%s16642_s1] sm:$0xff] %v870_v21 }
   0x5   :  { %v7492_v4 = vld [vmem:[%s16641_s0 + $0x1000] sm:$0xff]  ;;  %v7787_v25 = vld [vmem:[%s16641_s0 + $0x1008] sm:$0xff]  ;;  %v894_v30 = vpack.c.bf16 %v7784_v24, %v7491_v3  ;;  %7780 = vst [vmem:[%s16642_s1 + $0x600] sm:$0xff] %v878_v22 }
   0x6   :  { %v7493_v5 = vld [vmem:[%s16641_s0 + $0x400] sm:$0xff]  ;;  %v7790_v26 = vld [vmem:[%s16641_s0 + $0x408] sm:$0xff]  ;;  %v902_v31 = vpack.c.bf16 %v7787_v25, %v7492_v4  ;;  %7783 = vst [vmem:[%s16642_s1 + $0xc00] sm:$0xff] %v886_v23 }
   0x7   :  { %v7494_v6 = vld [vmem:[%s16641_s0 + $0x1800] sm:$0xff]  ;;  %v910_v32 = vpack.c.bf16 %v7790_v26, %v7493_v5  ;;  %v7793_v33 = vld [vmem:[%s16641_s0 + $0x1808] sm:$0xff]  ;;  %7786 = vst [vmem:[%s16642_s1 + $0x200] sm:$0xff] %v894_v30 }
   0x8   :  { %v7495_v7 = vld [vmem:[%s16641_s0 + $0xc00] sm:$0xff]  ;;  %v7796_v34 = vld [vmem:[%s16641_s0 + $0xc08] sm:$0xff]  ;;  %v918_v39 = vpack.c.bf16 %v7793_v33, %v7494_v6  ;;  %7789 = vst [vmem:[%s16642_s1 + $0x800] sm:$0xff] %v902_v31 }
   0x9   :  { %v25_v8 = vld [vmem:[%s16641_s0] sm:$0xff]  ;;  %v7799_v35 = vld [vmem:[%s16641_s0 + $0x8] sm:$0xff]  ;;  %v926_v40 = vpack.c.bf16 %v7796_v34, %v7495_v7  ;;  %7792 = vst [vmem:[%s16642_s1 + $0xe00] sm:$0xff] %v910_v32 }
   0xa   :  { %v9831_v9 = vld [vmem:[%s16641_s0 + $0x2020] sm:$0xff]  ;;  %v934_v41 = vpack.c.bf16 %v7799_v35, %v25_v8  ;;  %v7802_v42 = vld [vmem:[%s16641_s0 + $0x2028] sm:$0xff]  ;;  %7795 = vst [vmem:[%s16642_s1 + $0x400] sm:$0xff] %v918_v39 }
   0xb   :  { %v9836_v10 = vld [vmem:[%s16641_s0 + $0x1420] sm:$0xff]  ;;  %v7805_v43 = vld [vmem:[%s16641_s0 + $0x1428] sm:$0xff]  ;;  %v942_v48 = vpack.c.bf16 %v7802_v42, %v9831_v9  ;;  %7798 = vst [vmem:[%s16642_s1 + $0xa00] sm:$0xff] %v926_v40 }
   0xc   :  { %v9841_v11 = vld [vmem:[%s16641_s0 + $0x820] sm:$0xff]  ;;  %v7808_v44 = vld [vmem:[%s16641_s0 + $0x828] sm:$0xff]  ;;  %v950_v49 = vpack.c.bf16 %v7805_v43, %v9836_v10  ;;  %7801 = vst [vmem:[%s16642_s1 + $0x1000] sm:$0xff] %v934_v41 }
   0xd   :  { %v9846_v12 = vld [vmem:[%s16641_s0 + $0x1c20] sm:$0xff]  ;;  %v958_v50 = vpack.c.bf16 %v7808_v44, %v9841_v11  ;;  %v7811_v51 = vld [vmem:[%s16641_s0 + $0x1c28] sm:$0xff]  ;;  %7804 = vst [vmem:[%s16642_s1 + $0x10] sm:$0xff] %v942_v48 }
   0xe   :  { %v9851_v13 = vld [vmem:[%s16641_s0 + $0x1020] sm:$0xff]  ;;  %v7814_v52 = vld [vmem:[%s16641_s0 + $0x1028] sm:$0xff]  ;;  %v966_v57 = vpack.c.bf16 %v7811_v51, %v9846_v12  ;;  %7807 = vst [vmem:[%s16642_s1 + $0x610] sm:$0xff] %v950_v49 }
   0xf   :  { %v9856_v14 = vld [vmem:[%s16641_s0 + $0x420] sm:$0xff]  ;;  %v7817_v53 = vld [vmem:[%s16641_s0 + $0x428] sm:$0xff]  ;;  %v974_v58 = vpack.c.bf16 %v7814_v52, %v9851_v13  ;;  %7810 = vst [vmem:[%s16642_s1 + $0xc10] sm:$0xff] %v958_v50 }
  0x10   :  { %v9870_v18 = vld [vmem:[%s16641_s0 + $0x1820] sm:$0xff]  ;;  %v982_v59 = vpack.c.bf16 %v7817_v53, %v9856_v14  ;;  %v7820_v60 = vld [vmem:[%s16641_s0 + $0x1828] sm:$0xff]  ;;  %7813 = vst [vmem:[%s16642_s1 + $0x210] sm:$0xff] %v966_v57 }
  0x11   :  { %v9875_v19 = vld [vmem:[%s16641_s0 + $0xc20] sm:$0xff]  ;;  %v7823_v61 = vld [vmem:[%s16641_s0 + $0xc28] sm:$0xff]  ;;  %v990_v2 = vpack.c.bf16 %v7820_v60, %v9870_v18  ;;  %7816 = vst [vmem:[%s16642_s1 + $0x810] sm:$0xff] %v974_v58 }
  0x12   :  { %v9880_v20 = vld [vmem:[%s16641_s0 + $0x20] sm:$0xff]  ;;  %v7826_v62 = vld [vmem:[%s16641_s0 + $0x28] sm:$0xff]  ;;  %v998_v3 = vpack.c.bf16 %v7823_v61, %v9875_v19  ;;  %7819 = vst [vmem:[%s16642_s1 + $0xe10] sm:$0xff] %v982_v59 }
  0x13   :  { %v9894_v27 = vld [vmem:[%s16641_s0 + $0x2040] sm:$0xff]  ;;  %v1006_v4 = vpack.c.bf16 %v7826_v62, %v9880_v20  ;;  %v7829_v5 = vld [vmem:[%s16641_s0 + $0x2048] sm:$0xff]  ;;  %7822 = vst [vmem:[%s16642_s1 + $0x410] sm:$0xff] %v990_v2 }
  0x14   :  { %v9899_v28 = vld [vmem:[%s16641_s0 + $0x1440] sm:$0xff]  ;;  %v7832_v6 = vld [vmem:[%s16641_s0 + $0x1448] sm:$0xff]  ;;  %v1014_v11 = vpack.c.bf16 %v7829_v5, %v9894_v27  ;;  %7825 = vst [vmem:[%s16642_s1 + $0xa10] sm:$0xff] %v998_v3 }
  0x15   :  { %v9904_v29 = vld [vmem:[%s16641_s0 + $0x840] sm:$0xff]  ;;  %v7835_v7 = vld [vmem:[%s16641_s0 + $0x848] sm:$0xff]  ;;  %v1022_v12 = vpack.c.bf16 %v7832_v6, %v9899_v28  ;;  %7828 = vst [vmem:[%s16642_s1 + $0x1010] sm:$0xff] %v1006_v4 }
  0x16   :  { %v9918_v36 = vld [vmem:[%s16641_s0 + $0x1c40] sm:$0xff]  ;;  %v1030_v13 = vpack.c.bf16 %v7835_v7, %v9904_v29  ;;  %v7838_v14 = vld [vmem:[%s16641_s0 + $0x1c48] sm:$0xff]  ;;  %7831 = vst [vmem:[%s16642_s1 + $0x20] sm:$0xff] %v1014_v11 }
  0x17   :  { %v9923_v37 = vld [vmem:[%s16641_s0 + $0x1040] sm:$0xff]  ;;  %v7841_v15 = vld [vmem:[%s16641_s0 + $0x1048] sm:$0xff]  ;;  %v1038_v20 = vpack.c.bf16 %v7838_v14, %v9918_v36  ;;  %7834 = vst [vmem:[%s16642_s1 + $0x620] sm:$0xff] %v1022_v12 }
  0x18   :  { %v9928_v38 = vld [vmem:[%s16641_s0 + $0x440] sm:$0xff]  ;;  %v7844_v16 = vld [vmem:[%s16641_s0 + $0x448] sm:$0xff]  ;;  %v1046_v21 = vpack.c.bf16 %v7841_v15, %v9923_v37  ;;  %7837 = vst [vmem:[%s16642_s1 + $0xc20] sm:$0xff] %v1030_v13 }
  0x19   :  { %v9951_v45 = vld [vmem:[%s16641_s0 + $0x1840] sm:$0xff]  ;;  %v1054_v22 = vpack.c.bf16 %v7844_v16, %v9928_v38  ;;  %v7847_v23 = vld [vmem:[%s16641_s0 + $0x1848] sm:$0xff]  ;;  %7840 = vst [vmem:[%s16642_s1 + $0x220] sm:$0xff] %v1038_v20 }
  0x1a   :  { %v9956_v46 = vld [vmem:[%s16641_s0 + $0xc40] sm:$0xff]  ;;  %v7850_v24 = vld [vmem:[%s16641_s0 + $0xc48] sm:$0xff]  ;;  %v1062_v29 = vpack.c.bf16 %v7847_v23, %v9951_v45  ;;  %7843 = vst [vmem:[%s16642_s1 + $0x820] sm:$0xff] %v1046_v21 }
  0x1b   :  { %v9961_v47 = vld [vmem:[%s16641_s0 + $0x40] sm:$0xff]  ;;  %v7853_v25 = vld [vmem:[%s16641_s0 + $0x48] sm:$0xff]  ;;  %v1070_v30 = vpack.c.bf16 %v7850_v24, %v9956_v46  ;;  %7846 = vst [vmem:[%s16642_s1 + $0xe20] sm:$0xff] %v1054_v22 }
  0x1c   :  { %v9987_v54 = vld [vmem:[%s16641_s0 + $0x2060] sm:$0xff]  ;;  %v1078_v31 = vpack.c.bf16 %v7853_v25, %v9961_v47  ;;  %v7856_v32 = vld [vmem:[%s16641_s0 + $0x2068] sm:$0xff]  ;;  %7849 = vst [vmem:[%s16642_s1 + $0x420] sm:$0xff] %v1062_v29 }
  0x1d   :  { %v9992_v55 = vld [vmem:[%s16641_s0 + $0x1460] sm:$0xff]  ;;  %v7859_v33 = vld [vmem:[%s16641_s0 + $0x1468] sm:$0xff]  ;;  %v1086_v38 = vpack.c.bf16 %v7856_v32, %v9987_v54  ;;  %7852 = vst [vmem:[%s16642_s1 + $0xa20] sm:$0xff] %v1070_v30 }
  0x1e   :  { %v9997_v56 = vld [vmem:[%s16641_s0 + $0x860] sm:$0xff]  ;;  %v7862_v34 = vld [vmem:[%s16641_s0 + $0x868] sm:$0xff]  ;;  %v1094_v39 = vpack.c.bf16 %v7859_v33, %v9992_v55  ;;  %7855 = vst [vmem:[%s16642_s1 + $0x1020] sm:$0xff] %v1078_v31 }
  0x1f   :  { %v10023_v63 = vld [vmem:[%s16641_s0 + $0x1c60] sm:$0xff]  ;;  %v1102_v40 = vpack.c.bf16 %v7862_v34, %v9997_v56  ;;  %v7865_v41 = vld [vmem:[%s16641_s0 + $0x1c68] sm:$0xff]  ;;  %7858 = vst [vmem:[%s16642_s1 + $0x30] sm:$0xff] %v1086_v38 }
  0x20   :  { %v10028_v0 = vld [vmem:[%s16641_s0 + $0x1060] sm:$0xff]  ;;  %v7868_v42 = vld [vmem:[%s16641_s0 + $0x1068] sm:$0xff]  ;;  %v1110_v47 = vpack.c.bf16 %v7865_v41, %v10023_v63  ;;  %7861 = vst [vmem:[%s16642_s1 + $0x630] sm:$0xff] %v1094_v39 }
  0x21   :  { %v10033_v1 = vld [vmem:[%s16641_s0 + $0x460] sm:$0xff]  ;;  %v7871_v43 = vld [vmem:[%s16641_s0 + $0x468] sm:$0xff]  ;;  %v1118_v48 = vpack.c.bf16 %v7868_v42, %v10028_v0  ;;  %7864 = vst [vmem:[%s16642_s1 + $0xc30] sm:$0xff] %v1102_v40 }
  0x22   :  { %v10059_v8 = vld [vmem:[%s16641_s0 + $0x1860] sm:$0xff]  ;;  %v1126_v49 = vpack.c.bf16 %v7871_v43, %v10033_v1  ;;  %v7874_v50 = vld [vmem:[%s16641_s0 + $0x1868] sm:$0xff]  ;;  %7867 = vst [vmem:[%s16642_s1 + $0x230] sm:$0xff] %v1110_v47 }
  0x23   :  { %v10064_v9 = vld [vmem:[%s16641_s0 + $0xc60] sm:$0xff]  ;;  %v7877_v51 = vld [vmem:[%s16641_s0 + $0xc68] sm:$0xff]  ;;  %v1134_v56 = vpack.c.bf16 %v7874_v50, %v10059_v8  ;;  %7870 = vst [vmem:[%s16642_s1 + $0x830] sm:$0xff] %v1118_v48 }
  0x24   :  { %v10069_v10 = vld [vmem:[%s16641_s0 + $0x60] sm:$0xff]  ;;  %v7880_v52 = vld [vmem:[%s16641_s0 + $0x68] sm:$0xff]  ;;  %v1142_v57 = vpack.c.bf16 %v7877_v51, %v10064_v9  ;;  %7873 = vst [vmem:[%s16642_s1 + $0xe30] sm:$0xff] %v1126_v49 }
  0x25   :  { %v10095_v17 = vld [vmem:[%s16641_s0 + $0x2080] sm:$0xff]  ;;  %v1150_v58 = vpack.c.bf16 %v7880_v52, %v10069_v10  ;;  %v7883_v59 = vld [vmem:[%s16641_s0 + $0x2088] sm:$0xff]  ;;  %7876 = vst [vmem:[%s16642_s1 + $0x430] sm:$0xff] %v1134_v56 }
  0x26   :  { %v10100_v18 = vld [vmem:[%s16641_s0 + $0x1480] sm:$0xff]  ;;  %v7886_v60 = vld [vmem:[%s16641_s0 + $0x1488] sm:$0xff]  ;;  %v1158_v1 = vpack.c.bf16 %v7883_v59, %v10095_v17  ;;  %7879 = vst [vmem:[%s16642_s1 + $0xa30] sm:$0xff] %v1142_v57 }
  0x27   :  { %v10105_v19 = vld [vmem:[%s16641_s0 + $0x880] sm:$0xff]  ;;  %v7889_v61 = vld [vmem:[%s16641_s0 + $0x888] sm:$0xff]  ;;  %v1166_v2 = vpack.c.bf16 %v7886_v60, %v10100_v18  ;;  %7882 = vst [vmem:[%s16642_s1 + $0x1030] sm:$0xff] %v1150_v58 }
  0x28   :  { %v10131_v26 = vld [vmem:[%s16641_s0 + $0x1c80] sm:$0xff]  ;;  %v1174_v3 = vpack.c.bf16 %v7889_v61, %v10105_v19  ;;  %v7892_v4 = vld [vmem:[%s16641_s0 + $0x1c88] sm:$0xff]  ;;  %7885 = vst [vmem:[%s16642_s1 + $0x40] sm:$0xff] %v1158_v1 }
  0x29   :  { %v10136_v27 = vld [vmem:[%s16641_s0 + $0x1080] sm:$0xff]  ;;  %v7895_v5 = vld [vmem:[%s16641_s0 + $0x1088] sm:$0xff]  ;;  %v1182_v10 = vpack.c.bf16 %v7892_v4, %v10131_v26  ;;  %7888 = vst [vmem:[%s16642_s1 + $0x640] sm:$0xff] %v1166_v2 }
  0x2a   :  { %v10141_v28 = vld [vmem:[%s16641_s0 + $0x480] sm:$0xff]  ;;  %v7898_v6 = vld [vmem:[%s16641_s0 + $0x488] sm:$0xff]  ;;  %v1190_v11 = vpack.c.bf16 %v7895_v5, %v10136_v27  ;;  %7891 = vst [vmem:[%s16642_s1 + $0xc40] sm:$0xff] %v1174_v3 }
  0x2b   :  { %v10167_v35 = vld [vmem:[%s16641_s0 + $0x1880] sm:$0xff]  ;;  %v1198_v12 = vpack.c.bf16 %v7898_v6, %v10141_v28  ;;  %v7901_v13 = vld [vmem:[%s16641_s0 + $0x1888] sm:$0xff]  ;;  %7894 = vst [vmem:[%s16642_s1 + $0x240] sm:$0xff] %v1182_v10 }
  0x2c   :  { %v10172_v36 = vld [vmem:[%s16641_s0 + $0xc80] sm:$0xff]  ;;  %v7904_v14 = vld [vmem:[%s16641_s0 + $0xc88] sm:$0xff]  ;;  %v1206_v19 = vpack.c.bf16 %v7901_v13, %v10167_v35  ;;  %7897 = vst [vmem:[%s16642_s1 + $0x840] sm:$0xff] %v1190_v11 }
  0x2d   :  { %v10177_v37 = vld [vmem:[%s16641_s0 + $0x80] sm:$0xff]  ;;  %v7907_v15 = vld [vmem:[%s16641_s0 + $0x88] sm:$0xff]  ;;  %v1214_v20 = vpack.c.bf16 %v7904_v14, %v10172_v36  ;;  %7900 = vst [vmem:[%s16642_s1 + $0xe40] sm:$0xff] %v1198_v12 }
  0x2e   :  { %v10203_v44 = vld [vmem:[%s16641_s0 + $0x20a0] sm:$0xff]  ;;  %v1222_v21 = vpack.c.bf16 %v7907_v15, %v10177_v37  ;;  %v7910_v22 = vld [vmem:[%s16641_s0 + $0x20a8] sm:$0xff]  ;;  %7903 = vst [vmem:[%s16642_s1 + $0x440] sm:$0xff] %v1206_v19 }
  0x2f   :  { %v10208_v45 = vld [vmem:[%s16641_s0 + $0x14a0] sm:$0xff]  ;;  %v7913_v23 = vld [vmem:[%s16641_s0 + $0x14a8] sm:$0xff]  ;;  %v1230_v28 = vpack.c.bf16 %v7910_v22, %v10203_v44  ;;  %7906 = vst [vmem:[%s16642_s1 + $0xa40] sm:$0xff] %v1214_v20 }
  0x30   :  { %v10213_v46 = vld [vmem:[%s16641_s0 + $0x8a0] sm:$0xff]  ;;  %v7916_v24 = vld [vmem:[%s16641_s0 + $0x8a8] sm:$0xff]  ;;  %v1238_v29 = vpack.c.bf16 %v7913_v23, %v10208_v45  ;;  %7909 = vst [vmem:[%s16642_s1 + $0x1040] sm:$0xff] %v1222_v21 }
  0x31   :  { %v10239_v53 = vld [vmem:[%s16641_s0 + $0x1ca0] sm:$0xff]  ;;  %v1246_v30 = vpack.c.bf16 %v7916_v24, %v10213_v46  ;;  %v7919_v31 = vld [vmem:[%s16641_s0 + $0x1ca8] sm:$0xff]  ;;  %7912 = vst [vmem:[%s16642_s1 + $0x50] sm:$0xff] %v1230_v28 }
  0x32   :  { %v10244_v54 = vld [vmem:[%s16641_s0 + $0x10a0] sm:$0xff]  ;;  %v7922_v32 = vld [vmem:[%s16641_s0 + $0x10a8] sm:$0xff]  ;;  %v1254_v37 = vpack.c.bf16 %v7919_v31, %v10239_v53  ;;  %7915 = vst [vmem:[%s16642_s1 + $0x650] sm:$0xff] %v1238_v29 }
  0x33   :  { %v10249_v55 = vld [vmem:[%s16641_s0 + $0x4a0] sm:$0xff]  ;;  %v7925_v33 = vld [vmem:[%s16641_s0 + $0x4a8] sm:$0xff]  ;;  %v1262_v38 = vpack.c.bf16 %v7922_v32, %v10244_v54  ;;  %7918 = vst [vmem:[%s16642_s1 + $0xc50] sm:$0xff] %v1246_v30 }
  0x34   :  { %v10275_v62 = vld [vmem:[%s16641_s0 + $0x18a0] sm:$0xff]  ;;  %v1270_v39 = vpack.c.bf16 %v7925_v33, %v10249_v55  ;;  %v7928_v40 = vld [vmem:[%s16641_s0 + $0x18a8] sm:$0xff]  ;;  %7921 = vst [vmem:[%s16642_s1 + $0x250] sm:$0xff] %v1254_v37 }
  0x35   :  { %v10280_v63 = vld [vmem:[%s16641_s0 + $0xca0] sm:$0xff]  ;;  %v7931_v41 = vld [vmem:[%s16641_s0 + $0xca8] sm:$0xff]  ;;  %v1278_v46 = vpack.c.bf16 %v7928_v40, %v10275_v62  ;;  %7924 = vst [vmem:[%s16642_s1 + $0x850] sm:$0xff] %v1262_v38 }
  0x36   :  { %v10285_v0 = vld [vmem:[%s16641_s0 + $0xa0] sm:$0xff]  ;;  %v7934_v42 = vld [vmem:[%s16641_s0 + $0xa8] sm:$0xff]  ;;  %v1286_v47 = vpack.c.bf16 %v7931_v41, %v10280_v63  ;;  %7927 = vst [vmem:[%s16642_s1 + $0xe50] sm:$0xff] %v1270_v39 }
  0x37   :  { %v10311_v7 = vld [vmem:[%s16641_s0 + $0x20c0] sm:$0xff]  ;;  %v1294_v48 = vpack.c.bf16 %v7934_v42, %v10285_v0  ;;  %v7937_v49 = vld [vmem:[%s16641_s0 + $0x20c8] sm:$0xff]  ;;  %7930 = vst [vmem:[%s16642_s1 + $0x450] sm:$0xff] %v1278_v46 }
  0x38   :  { %v10316_v8 = vld [vmem:[%s16641_s0 + $0x14c0] sm:$0xff]  ;;  %v7940_v50 = vld [vmem:[%s16641_s0 + $0x14c8] sm:$0xff]  ;;  %v1302_v55 = vpack.c.bf16 %v7937_v49, %v10311_v7  ;;  %7933 = vst [vmem:[%s16642_s1 + $0xa50] sm:$0xff] %v1286_v47 }
  0x39   :  { %v10321_v9 = vld [vmem:[%s16641_s0 + $0x8c0] sm:$0xff]  ;;  %v7943_v51 = vld [vmem:[%s16641_s0 + $0x8c8] sm:$0xff]  ;;  %v1310_v56 = vpack.c.bf16 %v7940_v50, %v10316_v8  ;;  %7936 = vst [vmem:[%s16642_s1 + $0x1050] sm:$0xff] %v1294_v48 }
  0x3a   :  { %v10347_v16 = vld [vmem:[%s16641_s0 + $0x1cc0] sm:$0xff]  ;;  %v1318_v57 = vpack.c.bf16 %v7943_v51, %v10321_v9  ;;  %v7946_v58 = vld [vmem:[%s16641_s0 + $0x1cc8] sm:$0xff]  ;;  %7939 = vst [vmem:[%s16642_s1 + $0x60] sm:$0xff] %v1302_v55 }
  0x3b   :  { %v10352_v17 = vld [vmem:[%s16641_s0 + $0x10c0] sm:$0xff]  ;;  %v7949_v59 = vld [vmem:[%s16641_s0 + $0x10c8] sm:$0xff]  ;;  %v1326_v0 = vpack.c.bf16 %v7946_v58, %v10347_v16  ;;  %7942 = vst [vmem:[%s16642_s1 + $0x660] sm:$0xff] %v1310_v56 }
  0x3c   :  { %v10357_v18 = vld [vmem:[%s16641_s0 + $0x4c0] sm:$0xff]  ;;  %v7952_v60 = vld [vmem:[%s16641_s0 + $0x4c8] sm:$0xff]  ;;  %v1334_v1 = vpack.c.bf16 %v7949_v59, %v10352_v17  ;;  %7945 = vst [vmem:[%s16642_s1 + $0xc60] sm:$0xff] %v1318_v57 }
  0x3d   :  { %v10383_v25 = vld [vmem:[%s16641_s0 + $0x18c0] sm:$0xff]  ;;  %v1342_v2 = vpack.c.bf16 %v7952_v60, %v10357_v18  ;;  %v7955_v3 = vld [vmem:[%s16641_s0 + $0x18c8] sm:$0xff]  ;;  %7948 = vst [vmem:[%s16642_s1 + $0x260] sm:$0xff] %v1326_v0 }
  0x3e   :  { %v10388_v26 = vld [vmem:[%s16641_s0 + $0xcc0] sm:$0xff]  ;;  %v7958_v4 = vld [vmem:[%s16641_s0 + $0xcc8] sm:$0xff]  ;;  %v1350_v9 = vpack.c.bf16 %v7955_v3, %v10383_v25  ;;  %7951 = vst [vmem:[%s16642_s1 + $0x860] sm:$0xff] %v1334_v1 }
  0x3f   :  { %v10393_v27 = vld [vmem:[%s16641_s0 + $0xc0] sm:$0xff]  ;;  %v7961_v5 = vld [vmem:[%s16641_s0 + $0xc8] sm:$0xff]  ;;  %v1358_v10 = vpack.c.bf16 %v7958_v4, %v10388_v26  ;;  %7954 = vst [vmem:[%s16642_s1 + $0xe60] sm:$0xff] %v1342_v2 }
  0x40   :  { %v10419_v34 = vld [vmem:[%s16641_s0 + $0x20e0] sm:$0xff]  ;;  %v1366_v11 = vpack.c.bf16 %v7961_v5, %v10393_v27  ;;  %v7964_v12 = vld [vmem:[%s16641_s0 + $0x20e8] sm:$0xff]  ;;  %7957 = vst [vmem:[%s16642_s1 + $0x460] sm:$0xff] %v1350_v9 }
  0x41   :  { %v10424_v35 = vld [vmem:[%s16641_s0 + $0x14e0] sm:$0xff]  ;;  %v7967_v13 = vld [vmem:[%s16641_s0 + $0x14e8] sm:$0xff]  ;;  %v1374_v18 = vpack.c.bf16 %v7964_v12, %v10419_v34  ;;  %7960 = vst [vmem:[%s16642_s1 + $0xa60] sm:$0xff] %v1358_v10 }
  0x42   :  { %v10429_v36 = vld [vmem:[%s16641_s0 + $0x8e0] sm:$0xff]  ;;  %v7970_v14 = vld [vmem:[%s16641_s0 + $0x8e8] sm:$0xff]  ;;  %v1382_v19 = vpack.c.bf16 %v7967_v13, %v10424_v35  ;;  %7963 = vst [vmem:[%s16642_s1 + $0x1060] sm:$0xff] %v1366_v11 }
  0x43   :  { %v10455_v43 = vld [vmem:[%s16641_s0 + $0x1ce0] sm:$0xff]  ;;  %v1390_v20 = vpack.c.bf16 %v7970_v14, %v10429_v36  ;;  %v7973_v21 = vld [vmem:[%s16641_s0 + $0x1ce8] sm:$0xff]  ;;  %7966 = vst [vmem:[%s16642_s1 + $0x70] sm:$0xff] %v1374_v18 }
  0x44   :  { %v10460_v44 = vld [vmem:[%s16641_s0 + $0x10e0] sm:$0xff]  ;;  %v7976_v22 = vld [vmem:[%s16641_s0 + $0x10e8] sm:$0xff]  ;;  %v1398_v27 = vpack.c.bf16 %v7973_v21, %v10455_v43  ;;  %7969 = vst [vmem:[%s16642_s1 + $0x670] sm:$0xff] %v1382_v19 }
  0x45   :  { %v10465_v45 = vld [vmem:[%s16641_s0 + $0x4e0] sm:$0xff]  ;;  %v7979_v23 = vld [vmem:[%s16641_s0 + $0x4e8] sm:$0xff]  ;;  %v1406_v28 = vpack.c.bf16 %v7976_v22, %v10460_v44  ;;  %7972 = vst [vmem:[%s16642_s1 + $0xc70] sm:$0xff] %v1390_v20 }
  0x46   :  { %v10491_v52 = vld [vmem:[%s16641_s0 + $0x18e0] sm:$0xff]  ;;  %v1414_v29 = vpack.c.bf16 %v7979_v23, %v10465_v45  ;;  %v7982_v30 = vld [vmem:[%s16641_s0 + $0x18e8] sm:$0xff]  ;;  %7975 = vst [vmem:[%s16642_s1 + $0x270] sm:$0xff] %v1398_v27 }
  0x47   :  { %v10496_v53 = vld [vmem:[%s16641_s0 + $0xce0] sm:$0xff]  ;;  %v7985_v31 = vld [vmem:[%s16641_s0 + $0xce8] sm:$0xff]  ;;  %v1422_v36 = vpack.c.bf16 %v7982_v30, %v10491_v52  ;;  %7978 = vst [vmem:[%s16642_s1 + $0x870] sm:$0xff] %v1406_v28 }
  0x48   :  { %v10501_v54 = vld [vmem:[%s16641_s0 + $0xe0] sm:$0xff]  ;;  %v7988_v32 = vld [vmem:[%s16641_s0 + $0xe8] sm:$0xff]  ;;  %v1430_v37 = vpack.c.bf16 %v7985_v31, %v10496_v53  ;;  %7981 = vst [vmem:[%s16642_s1 + $0xe70] sm:$0xff] %v1414_v29 }
  0x49   :  { %v10527_v61 = vld [vmem:[%s16641_s0 + $0x2100] sm:$0xff]  ;;  %v1438_v38 = vpack.c.bf16 %v7988_v32, %v10501_v54  ;;  %v7991_v39 = vld [vmem:[%s16641_s0 + $0x2108] sm:$0xff]  ;;  %7984 = vst [vmem:[%s16642_s1 + $0x470] sm:$0xff] %v1422_v36 }
  0x4a   :  { %v10532_v62 = vld [vmem:[%s16641_s0 + $0x1500] sm:$0xff]  ;;  %v7994_v40 = vld [vmem:[%s16641_s0 + $0x1508] sm:$0xff]  ;;  %v1446_v45 = vpack.c.bf16 %v7991_v39, %v10527_v61  ;;  %7987 = vst [vmem:[%s16642_s1 + $0xa70] sm:$0xff] %v1430_v37 }
  0x4b   :  { %v10537_v63 = vld [vmem:[%s16641_s0 + $0x900] sm:$0xff]  ;;  %v7997_v41 = vld [vmem:[%s16641_s0 + $0x908] sm:$0xff]  ;;  %v1454_v46 = vpack.c.bf16 %v7994_v40, %v10532_v62  ;;  %7990 = vst [vmem:[%s16642_s1 + $0x1070] sm:$0xff] %v1438_v38 }
  0x4c   :  { %v10563_v6 = vld [vmem:[%s16641_s0 + $0x1d00] sm:$0xff]  ;;  %v1462_v47 = vpack.c.bf16 %v7997_v41, %v10537_v63  ;;  %v8000_v48 = vld [vmem:[%s16641_s0 + $0x1d08] sm:$0xff]  ;;  %7993 = vst [vmem:[%s16642_s1 + $0x80] sm:$0xff] %v1446_v45 }
  0x4d   :  { %v10568_v7 = vld [vmem:[%s16641_s0 + $0x1100] sm:$0xff]  ;;  %v8003_v49 = vld [vmem:[%s16641_s0 + $0x1108] sm:$0xff]  ;;  %v1470_v54 = vpack.c.bf16 %v8000_v48, %v10563_v6  ;;  %7996 = vst [vmem:[%s16642_s1 + $0x680] sm:$0xff] %v1454_v46 }
  0x4e   :  { %v10573_v8 = vld [vmem:[%s16641_s0 + $0x500] sm:$0xff]  ;;  %v8006_v50 = vld [vmem:[%s16641_s0 + $0x508] sm:$0xff]  ;;  %v1478_v55 = vpack.c.bf16 %v8003_v49, %v10568_v7  ;;  %7999 = vst [vmem:[%s16642_s1 + $0xc80] sm:$0xff] %v1462_v47 }
  0x4f   :  { %v10599_v15 = vld [vmem:[%s16641_s0 + $0x1900] sm:$0xff]  ;;  %v1486_v56 = vpack.c.bf16 %v8006_v50, %v10573_v8  ;;  %v8009_v57 = vld [vmem:[%s16641_s0 + $0x1908] sm:$0xff]  ;;  %8002 = vst [vmem:[%s16642_s1 + $0x280] sm:$0xff] %v1470_v54 }
  0x50   :  { %v10604_v16 = vld [vmem:[%s16641_s0 + $0xd00] sm:$0xff]  ;;  %v8012_v58 = vld [vmem:[%s16641_s0 + $0xd08] sm:$0xff]  ;;  %v1494_v63 = vpack.c.bf16 %v8009_v57, %v10599_v15  ;;  %8005 = vst [vmem:[%s16642_s1 + $0x880] sm:$0xff] %v1478_v55 }
  0x51   :  { %v10609_v17 = vld [vmem:[%s16641_s0 + $0x100] sm:$0xff]  ;;  %v8015_v59 = vld [vmem:[%s16641_s0 + $0x108] sm:$0xff]  ;;  %v1502_v0 = vpack.c.bf16 %v8012_v58, %v10604_v16  ;;  %8008 = vst [vmem:[%s16642_s1 + $0xe80] sm:$0xff] %v1486_v56 }
  0x52   :  { %v10635_v24 = vld [vmem:[%s16641_s0 + $0x2120] sm:$0xff]  ;;  %v1510_v1 = vpack.c.bf16 %v8015_v59, %v10609_v17  ;;  %v8018_v2 = vld [vmem:[%s16641_s0 + $0x2128] sm:$0xff]  ;;  %8011 = vst [vmem:[%s16642_s1 + $0x480] sm:$0xff] %v1494_v63 }
  0x53   :  { %v10640_v25 = vld [vmem:[%s16641_s0 + $0x1520] sm:$0xff]  ;;  %v8021_v3 = vld [vmem:[%s16641_s0 + $0x1528] sm:$0xff]  ;;  %v1518_v8 = vpack.c.bf16 %v8018_v2, %v10635_v24  ;;  %8014 = vst [vmem:[%s16642_s1 + $0xa80] sm:$0xff] %v1502_v0 }
  0x54   :  { %v10645_v26 = vld [vmem:[%s16641_s0 + $0x920] sm:$0xff]  ;;  %v8024_v4 = vld [vmem:[%s16641_s0 + $0x928] sm:$0xff]  ;;  %v1526_v9 = vpack.c.bf16 %v8021_v3, %v10640_v25  ;;  %8017 = vst [vmem:[%s16642_s1 + $0x1080] sm:$0xff] %v1510_v1 }
  0x55   :  { %v10671_v33 = vld [vmem:[%s16641_s0 + $0x1d20] sm:$0xff]  ;;  %v1534_v10 = vpack.c.bf16 %v8024_v4, %v10645_v26  ;;  %v8027_v11 = vld [vmem:[%s16641_s0 + $0x1d28] sm:$0xff]  ;;  %8020 = vst [vmem:[%s16642_s1 + $0x90] sm:$0xff] %v1518_v8 }
  0x56   :  { %v10676_v34 = vld [vmem:[%s16641_s0 + $0x1120] sm:$0xff]  ;;  %v8030_v12 = vld [vmem:[%s16641_s0 + $0x1128] sm:$0xff]  ;;  %v1542_v17 = vpack.c.bf16 %v8027_v11, %v10671_v33  ;;  %8023 = vst [vmem:[%s16642_s1 + $0x690] sm:$0xff] %v1526_v9 }
  0x57   :  { %v10681_v35 = vld [vmem:[%s16641_s0 + $0x520] sm:$0xff]  ;;  %v8033_v13 = vld [vmem:[%s16641_s0 + $0x528] sm:$0xff]  ;;  %v1550_v18 = vpack.c.bf16 %v8030_v12, %v10676_v34  ;;  %8026 = vst [vmem:[%s16642_s1 + $0xc90] sm:$0xff] %v1534_v10 }
  0x58   :  { %v10707_v42 = vld [vmem:[%s16641_s0 + $0x1920] sm:$0xff]  ;;  %v1558_v19 = vpack.c.bf16 %v8033_v13, %v10681_v35  ;;  %v8036_v20 = vld [vmem:[%s16641_s0 + $0x1928] sm:$0xff]  ;;  %8029 = vst [vmem:[%s16642_s1 + $0x290] sm:$0xff] %v1542_v17 }
  0x59   :  { %v10712_v43 = vld [vmem:[%s16641_s0 + $0xd20] sm:$0xff]  ;;  %v8039_v21 = vld [vmem:[%s16641_s0 + $0xd28] sm:$0xff]  ;;  %v1566_v26 = vpack.c.bf16 %v8036_v20, %v10707_v42  ;;  %8032 = vst [vmem:[%s16642_s1 + $0x890] sm:$0xff] %v1550_v18 }
  0x5a   :  { %v10717_v44 = vld [vmem:[%s16641_s0 + $0x120] sm:$0xff]  ;;  %v8042_v22 = vld [vmem:[%s16641_s0 + $0x128] sm:$0xff]  ;;  %v1574_v27 = vpack.c.bf16 %v8039_v21, %v10712_v43  ;;  %8035 = vst [vmem:[%s16642_s1 + $0xe90] sm:$0xff] %v1558_v19 }
  0x5b   :  { %v10743_v51 = vld [vmem:[%s16641_s0 + $0x2140] sm:$0xff]  ;;  %v1582_v28 = vpack.c.bf16 %v8042_v22, %v10717_v44  ;;  %v8045_v29 = vld [vmem:[%s16641_s0 + $0x2148] sm:$0xff]  ;;  %8038 = vst [vmem:[%s16642_s1 + $0x490] sm:$0xff] %v1566_v26 }
  0x5c   :  { %v10748_v52 = vld [vmem:[%s16641_s0 + $0x1540] sm:$0xff]  ;;  %v8048_v30 = vld [vmem:[%s16641_s0 + $0x1548] sm:$0xff]  ;;  %v1590_v35 = vpack.c.bf16 %v8045_v29, %v10743_v51  ;;  %8041 = vst [vmem:[%s16642_s1 + $0xa90] sm:$0xff] %v1574_v27 }
  0x5d   :  { %v10753_v53 = vld [vmem:[%s16641_s0 + $0x940] sm:$0xff]  ;;  %v8051_v31 = vld [vmem:[%s16641_s0 + $0x948] sm:$0xff]  ;;  %v1598_v36 = vpack.c.bf16 %v8048_v30, %v10748_v52  ;;  %8044 = vst [vmem:[%s16642_s1 + $0x1090] sm:$0xff] %v1582_v28 }
  0x5e   :  { %v10779_v60 = vld [vmem:[%s16641_s0 + $0x1d40] sm:$0xff]  ;;  %v1606_v37 = vpack.c.bf16 %v8051_v31, %v10753_v53  ;;  %v8054_v38 = vld [vmem:[%s16641_s0 + $0x1d48] sm:$0xff]  ;;  %8047 = vst [vmem:[%s16642_s1 + $0xa0] sm:$0xff] %v1590_v35 }
  0x5f   :  { %v10784_v61 = vld [vmem:[%s16641_s0 + $0x1140] sm:$0xff]  ;;  %v8057_v39 = vld [vmem:[%s16641_s0 + $0x1148] sm:$0xff]  ;;  %v1614_v44 = vpack.c.bf16 %v8054_v38, %v10779_v60  ;;  %8050 = vst [vmem:[%s16642_s1 + $0x6a0] sm:$0xff] %v1598_v36 }
  0x60   :  { %v10789_v62 = vld [vmem:[%s16641_s0 + $0x540] sm:$0xff]  ;;  %v8060_v40 = vld [vmem:[%s16641_s0 + $0x548] sm:$0xff]  ;;  %v1622_v45 = vpack.c.bf16 %v8057_v39, %v10784_v61  ;;  %8053 = vst [vmem:[%s16642_s1 + $0xca0] sm:$0xff] %v1606_v37 }
  0x61   :  { %v10815_v5 = vld [vmem:[%s16641_s0 + $0x1940] sm:$0xff]  ;;  %v1630_v46 = vpack.c.bf16 %v8060_v40, %v10789_v62  ;;  %v8063_v47 = vld [vmem:[%s16641_s0 + $0x1948] sm:$0xff]  ;;  %8056 = vst [vmem:[%s16642_s1 + $0x2a0] sm:$0xff] %v1614_v44 }
  0x62   :  { %v10820_v6 = vld [vmem:[%s16641_s0 + $0xd40] sm:$0xff]  ;;  %v8066_v48 = vld [vmem:[%s16641_s0 + $0xd48] sm:$0xff]  ;;  %v1638_v53 = vpack.c.bf16 %v8063_v47, %v10815_v5  ;;  %8059 = vst [vmem:[%s16642_s1 + $0x8a0] sm:$0xff] %v1622_v45 }
  0x63   :  { %v10825_v7 = vld [vmem:[%s16641_s0 + $0x140] sm:$0xff]  ;;  %v8069_v49 = vld [vmem:[%s16641_s0 + $0x148] sm:$0xff]  ;;  %v1646_v54 = vpack.c.bf16 %v8066_v48, %v10820_v6  ;;  %8062 = vst [vmem:[%s16642_s1 + $0xea0] sm:$0xff] %v1630_v46 }
  0x64   :  { %v10851_v14 = vld [vmem:[%s16641_s0 + $0x2160] sm:$0xff]  ;;  %v1654_v55 = vpack.c.bf16 %v8069_v49, %v10825_v7  ;;  %v8072_v56 = vld [vmem:[%s16641_s0 + $0x2168] sm:$0xff]  ;;  %8065 = vst [vmem:[%s16642_s1 + $0x4a0] sm:$0xff] %v1638_v53 }
  0x65   :  { %v10856_v15 = vld [vmem:[%s16641_s0 + $0x1560] sm:$0xff]  ;;  %v8075_v57 = vld [vmem:[%s16641_s0 + $0x1568] sm:$0xff]  ;;  %v1662_v62 = vpack.c.bf16 %v8072_v56, %v10851_v14  ;;  %8068 = vst [vmem:[%s16642_s1 + $0xaa0] sm:$0xff] %v1646_v54 }
  0x66   :  { %v10861_v16 = vld [vmem:[%s16641_s0 + $0x960] sm:$0xff]  ;;  %v8078_v58 = vld [vmem:[%s16641_s0 + $0x968] sm:$0xff]  ;;  %v1670_v63 = vpack.c.bf16 %v8075_v57, %v10856_v15  ;;  %8071 = vst [vmem:[%s16642_s1 + $0x10a0] sm:$0xff] %v1654_v55 }
  0x67   :  { %v10887_v23 = vld [vmem:[%s16641_s0 + $0x1d60] sm:$0xff]  ;;  %v1678_v0 = vpack.c.bf16 %v8078_v58, %v10861_v16  ;;  %v8081_v1 = vld [vmem:[%s16641_s0 + $0x1d68] sm:$0xff]  ;;  %8074 = vst [vmem:[%s16642_s1 + $0xb0] sm:$0xff] %v1662_v62 }
  0x68   :  { %v10892_v24 = vld [vmem:[%s16641_s0 + $0x1160] sm:$0xff]  ;;  %v8084_v2 = vld [vmem:[%s16641_s0 + $0x1168] sm:$0xff]  ;;  %v1686_v7 = vpack.c.bf16 %v8081_v1, %v10887_v23  ;;  %8077 = vst [vmem:[%s16642_s1 + $0x6b0] sm:$0xff] %v1670_v63 }
  0x69   :  { %v10897_v25 = vld [vmem:[%s16641_s0 + $0x560] sm:$0xff]  ;;  %v8087_v3 = vld [vmem:[%s16641_s0 + $0x568] sm:$0xff]  ;;  %v1694_v8 = vpack.c.bf16 %v8084_v2, %v10892_v24  ;;  %8080 = vst [vmem:[%s16642_s1 + $0xcb0] sm:$0xff] %v1678_v0 }
  0x6a   :  { %v10923_v32 = vld [vmem:[%s16641_s0 + $0x1960] sm:$0xff]  ;;  %v1702_v9 = vpack.c.bf16 %v8087_v3, %v10897_v25  ;;  %v8090_v10 = vld [vmem:[%s16641_s0 + $0x1968] sm:$0xff]  ;;  %8083 = vst [vmem:[%s16642_s1 + $0x2b0] sm:$0xff] %v1686_v7 }
  0x6b   :  { %v10928_v33 = vld [vmem:[%s16641_s0 + $0xd60] sm:$0xff]  ;;  %v8093_v11 = vld [vmem:[%s16641_s0 + $0xd68] sm:$0xff]  ;;  %v1710_v16 = vpack.c.bf16 %v8090_v10, %v10923_v32  ;;  %8086 = vst [vmem:[%s16642_s1 + $0x8b0] sm:$0xff] %v1694_v8 }
  0x6c   :  { %v10933_v34 = vld [vmem:[%s16641_s0 + $0x160] sm:$0xff]  ;;  %v8096_v12 = vld [vmem:[%s16641_s0 + $0x168] sm:$0xff]  ;;  %v1718_v17 = vpack.c.bf16 %v8093_v11, %v10928_v33  ;;  %8089 = vst [vmem:[%s16642_s1 + $0xeb0] sm:$0xff] %v1702_v9 }
  0x6d   :  { %v10959_v41 = vld [vmem:[%s16641_s0 + $0x2180] sm:$0xff]  ;;  %v1726_v18 = vpack.c.bf16 %v8096_v12, %v10933_v34  ;;  %v8099_v19 = vld [vmem:[%s16641_s0 + $0x2188] sm:$0xff]  ;;  %8092 = vst [vmem:[%s16642_s1 + $0x4b0] sm:$0xff] %v1710_v16 }
  0x6e   :  { %v10964_v42 = vld [vmem:[%s16641_s0 + $0x1580] sm:$0xff]  ;;  %v8102_v20 = vld [vmem:[%s16641_s0 + $0x1588] sm:$0xff]  ;;  %v1734_v25 = vpack.c.bf16 %v8099_v19, %v10959_v41  ;;  %8095 = vst [vmem:[%s16642_s1 + $0xab0] sm:$0xff] %v1718_v17 }
  0x6f   :  { %v10969_v43 = vld [vmem:[%s16641_s0 + $0x980] sm:$0xff]  ;;  %v8105_v21 = vld [vmem:[%s16641_s0 + $0x988] sm:$0xff]  ;;  %v1742_v26 = vpack.c.bf16 %v8102_v20, %v10964_v42  ;;  %8098 = vst [vmem:[%s16642_s1 + $0x10b0] sm:$0xff] %v1726_v18 }
  0x70   :  { %v10995_v50 = vld [vmem:[%s16641_s0 + $0x1d80] sm:$0xff]  ;;  %v1750_v27 = vpack.c.bf16 %v8105_v21, %v10969_v43  ;;  %v8108_v28 = vld [vmem:[%s16641_s0 + $0x1d88] sm:$0xff]  ;;  %8101 = vst [vmem:[%s16642_s1 + $0xc0] sm:$0xff] %v1734_v25 }
  0x71   :  { %v11000_v51 = vld [vmem:[%s16641_s0 + $0x1180] sm:$0xff]  ;;  %v8111_v29 = vld [vmem:[%s16641_s0 + $0x1188] sm:$0xff]  ;;  %v1758_v34 = vpack.c.bf16 %v8108_v28, %v10995_v50  ;;  %8104 = vst [vmem:[%s16642_s1 + $0x6c0] sm:$0xff] %v1742_v26 }
  0x72   :  { %v11005_v52 = vld [vmem:[%s16641_s0 + $0x580] sm:$0xff]  ;;  %v8114_v30 = vld [vmem:[%s16641_s0 + $0x588] sm:$0xff]  ;;  %v1766_v35 = vpack.c.bf16 %v8111_v29, %v11000_v51  ;;  %8107 = vst [vmem:[%s16642_s1 + $0xcc0] sm:$0xff] %v1750_v27 }
  0x73   :  { %v11031_v59 = vld [vmem:[%s16641_s0 + $0x1980] sm:$0xff]  ;;  %v1774_v36 = vpack.c.bf16 %v8114_v30, %v11005_v52  ;;  %v8117_v37 = vld [vmem:[%s16641_s0 + $0x1988] sm:$0xff]  ;;  %8110 = vst [vmem:[%s16642_s1 + $0x2c0] sm:$0xff] %v1758_v34 }
  0x74   :  { %v11036_v60 = vld [vmem:[%s16641_s0 + $0xd80] sm:$0xff]  ;;  %v8120_v38 = vld [vmem:[%s16641_s0 + $0xd88] sm:$0xff]  ;;  %v1782_v43 = vpack.c.bf16 %v8117_v37, %v11031_v59  ;;  %8113 = vst [vmem:[%s16642_s1 + $0x8c0] sm:$0xff] %v1766_v35 }
  0x75   :  { %v11041_v61 = vld [vmem:[%s16641_s0 + $0x180] sm:$0xff]  ;;  %v8123_v39 = vld [vmem:[%s16641_s0 + $0x188] sm:$0xff]  ;;  %v1790_v44 = vpack.c.bf16 %v8120_v38, %v11036_v60  ;;  %8116 = vst [vmem:[%s16642_s1 + $0xec0] sm:$0xff] %v1774_v36 }
  0x76   :  { %v11067_v4 = vld [vmem:[%s16641_s0 + $0x21a0] sm:$0xff]  ;;  %v1798_v45 = vpack.c.bf16 %v8123_v39, %v11041_v61  ;;  %v8126_v46 = vld [vmem:[%s16641_s0 + $0x21a8] sm:$0xff]  ;;  %8119 = vst [vmem:[%s16642_s1 + $0x4c0] sm:$0xff] %v1782_v43 }
  0x77   :  { %v11072_v5 = vld [vmem:[%s16641_s0 + $0x15a0] sm:$0xff]  ;;  %v8129_v47 = vld [vmem:[%s16641_s0 + $0x15a8] sm:$0xff]  ;;  %v1806_v52 = vpack.c.bf16 %v8126_v46, %v11067_v4  ;;  %8122 = vst [vmem:[%s16642_s1 + $0xac0] sm:$0xff] %v1790_v44 }
  0x78   :  { %v11077_v6 = vld [vmem:[%s16641_s0 + $0x9a0] sm:$0xff]  ;;  %v8132_v48 = vld [vmem:[%s16641_s0 + $0x9a8] sm:$0xff]  ;;  %v1814_v53 = vpack.c.bf16 %v8129_v47, %v11072_v5  ;;  %8125 = vst [vmem:[%s16642_s1 + $0x10c0] sm:$0xff] %v1798_v45 }
  0x79   :  { %v11103_v13 = vld [vmem:[%s16641_s0 + $0x1da0] sm:$0xff]  ;;  %v1822_v54 = vpack.c.bf16 %v8132_v48, %v11077_v6  ;;  %v8135_v55 = vld [vmem:[%s16641_s0 + $0x1da8] sm:$0xff]  ;;  %8128 = vst [vmem:[%s16642_s1 + $0xd0] sm:$0xff] %v1806_v52 }
  0x7a   :  { %v11108_v14 = vld [vmem:[%s16641_s0 + $0x11a0] sm:$0xff]  ;;  %v8138_v56 = vld [vmem:[%s16641_s0 + $0x11a8] sm:$0xff]  ;;  %v1830_v61 = vpack.c.bf16 %v8135_v55, %v11103_v13  ;;  %8131 = vst [vmem:[%s16642_s1 + $0x6d0] sm:$0xff] %v1814_v53 }
  0x7b   :  { %v11113_v15 = vld [vmem:[%s16641_s0 + $0x5a0] sm:$0xff]  ;;  %v8141_v57 = vld [vmem:[%s16641_s0 + $0x5a8] sm:$0xff]  ;;  %v1838_v62 = vpack.c.bf16 %v8138_v56, %v11108_v14  ;;  %8134 = vst [vmem:[%s16642_s1 + $0xcd0] sm:$0xff] %v1822_v54 }
  0x7c   :  { %v11139_v22 = vld [vmem:[%s16641_s0 + $0x19a0] sm:$0xff]  ;;  %v1846_v63 = vpack.c.bf16 %v8141_v57, %v11113_v15  ;;  %v8144_v0 = vld [vmem:[%s16641_s0 + $0x19a8] sm:$0xff]  ;;  %8137 = vst [vmem:[%s16642_s1 + $0x2d0] sm:$0xff] %v1830_v61 }
  0x7d   :  { %v11144_v23 = vld [vmem:[%s16641_s0 + $0xda0] sm:$0xff]  ;;  %v8147_v1 = vld [vmem:[%s16641_s0 + $0xda8] sm:$0xff]  ;;  %v1854_v6 = vpack.c.bf16 %v8144_v0, %v11139_v22  ;;  %8140 = vst [vmem:[%s16642_s1 + $0x8d0] sm:$0xff] %v1838_v62 }
  0x7e   :  { %v11149_v24 = vld [vmem:[%s16641_s0 + $0x1a0] sm:$0xff]  ;;  %v8150_v2 = vld [vmem:[%s16641_s0 + $0x1a8] sm:$0xff]  ;;  %v1862_v7 = vpack.c.bf16 %v8147_v1, %v11144_v23  ;;  %8143 = vst [vmem:[%s16642_s1 + $0xed0] sm:$0xff] %v1846_v63 }
  0x7f   :  { %v11175_v31 = vld [vmem:[%s16641_s0 + $0x21c0] sm:$0xff]  ;;  %v1870_v8 = vpack.c.bf16 %v8150_v2, %v11149_v24  ;;  %v8153_v9 = vld [vmem:[%s16641_s0 + $0x21c8] sm:$0xff]  ;;  %8146 = vst [vmem:[%s16642_s1 + $0x4d0] sm:$0xff] %v1854_v6 }
  0x80   :  { %v11180_v32 = vld [vmem:[%s16641_s0 + $0x15c0] sm:$0xff]  ;;  %v8156_v10 = vld [vmem:[%s16641_s0 + $0x15c8] sm:$0xff]  ;;  %v1878_v15 = vpack.c.bf16 %v8153_v9, %v11175_v31  ;;  %8149 = vst [vmem:[%s16642_s1 + $0xad0] sm:$0xff] %v1862_v7 }
  0x81   :  { %v11185_v33 = vld [vmem:[%s16641_s0 + $0x9c0] sm:$0xff]  ;;  %v8159_v11 = vld [vmem:[%s16641_s0 + $0x9c8] sm:$0xff]  ;;  %v1886_v16 = vpack.c.bf16 %v8156_v10, %v11180_v32  ;;  %8152 = vst [vmem:[%s16642_s1 + $0x10d0] sm:$0xff] %v1870_v8 }
  0x82   :  { %v11211_v40 = vld [vmem:[%s16641_s0 + $0x1dc0] sm:$0xff]  ;;  %v1894_v17 = vpack.c.bf16 %v8159_v11, %v11185_v33  ;;  %v8162_v18 = vld [vmem:[%s16641_s0 + $0x1dc8] sm:$0xff]  ;;  %8155 = vst [vmem:[%s16642_s1 + $0xe0] sm:$0xff] %v1878_v15 }
  0x83   :  { %v11216_v41 = vld [vmem:[%s16641_s0 + $0x11c0] sm:$0xff]  ;;  %v8165_v19 = vld [vmem:[%s16641_s0 + $0x11c8] sm:$0xff]  ;;  %v1902_v24 = vpack.c.bf16 %v8162_v18, %v11211_v40  ;;  %8158 = vst [vmem:[%s16642_s1 + $0x6e0] sm:$0xff] %v1886_v16 }
  0x84   :  { %v11221_v42 = vld [vmem:[%s16641_s0 + $0x5c0] sm:$0xff]  ;;  %v8168_v20 = vld [vmem:[%s16641_s0 + $0x5c8] sm:$0xff]  ;;  %v1910_v25 = vpack.c.bf16 %v8165_v19, %v11216_v41  ;;  %8161 = vst [vmem:[%s16642_s1 + $0xce0] sm:$0xff] %v1894_v17 }
  0x85   :  { %v11247_v49 = vld [vmem:[%s16641_s0 + $0x19c0] sm:$0xff]  ;;  %v1918_v26 = vpack.c.bf16 %v8168_v20, %v11221_v42  ;;  %v8171_v27 = vld [vmem:[%s16641_s0 + $0x19c8] sm:$0xff]  ;;  %8164 = vst [vmem:[%s16642_s1 + $0x2e0] sm:$0xff] %v1902_v24 }
  0x86   :  { %v11252_v50 = vld [vmem:[%s16641_s0 + $0xdc0] sm:$0xff]  ;;  %v8174_v28 = vld [vmem:[%s16641_s0 + $0xdc8] sm:$0xff]  ;;  %v1926_v33 = vpack.c.bf16 %v8171_v27, %v11247_v49  ;;  %8167 = vst [vmem:[%s16642_s1 + $0x8e0] sm:$0xff] %v1910_v25 }
  0x87   :  { %v11257_v51 = vld [vmem:[%s16641_s0 + $0x1c0] sm:$0xff]  ;;  %v8177_v29 = vld [vmem:[%s16641_s0 + $0x1c8] sm:$0xff]  ;;  %v1934_v34 = vpack.c.bf16 %v8174_v28, %v11252_v50  ;;  %8170 = vst [vmem:[%s16642_s1 + $0xee0] sm:$0xff] %v1918_v26 }
  0x88   :  { %v11283_v58 = vld [vmem:[%s16641_s0 + $0x21e0] sm:$0xff]  ;;  %v1942_v35 = vpack.c.bf16 %v8177_v29, %v11257_v51  ;;  %v8180_v36 = vld [vmem:[%s16641_s0 + $0x21e8] sm:$0xff]  ;;  %8173 = vst [vmem:[%s16642_s1 + $0x4e0] sm:$0xff] %v1926_v33 }
  0x89   :  { %v11288_v59 = vld [vmem:[%s16641_s0 + $0x15e0] sm:$0xff]  ;;  %v8183_v37 = vld [vmem:[%s16641_s0 + $0x15e8] sm:$0xff]  ;;  %v1950_v42 = vpack.c.bf16 %v8180_v36, %v11283_v58  ;;  %8176 = vst [vmem:[%s16642_s1 + $0xae0] sm:$0xff] %v1934_v34 }
  0x8a   :  { %v11293_v60 = vld [vmem:[%s16641_s0 + $0x9e0] sm:$0xff]  ;;  %v8186_v38 = vld [vmem:[%s16641_s0 + $0x9e8] sm:$0xff]  ;;  %v1958_v43 = vpack.c.bf16 %v8183_v37, %v11288_v59  ;;  %8179 = vst [vmem:[%s16642_s1 + $0x10e0] sm:$0xff] %v1942_v35 }
  0x8b   :  { %v11319_v3 = vld [vmem:[%s16641_s0 + $0x1de0] sm:$0xff]  ;;  %v1966_v44 = vpack.c.bf16 %v8186_v38, %v11293_v60  ;;  %v8189_v45 = vld [vmem:[%s16641_s0 + $0x1de8] sm:$0xff]  ;;  %8182 = vst [vmem:[%s16642_s1 + $0xf0] sm:$0xff] %v1950_v42 }
  0x8c   :  { %v11324_v4 = vld [vmem:[%s16641_s0 + $0x11e0] sm:$0xff]  ;;  %v8192_v46 = vld [vmem:[%s16641_s0 + $0x11e8] sm:$0xff]  ;;  %v1974_v51 = vpack.c.bf16 %v8189_v45, %v11319_v3  ;;  %8185 = vst [vmem:[%s16642_s1 + $0x6f0] sm:$0xff] %v1958_v43 }
  0x8d   :  { %v11329_v5 = vld [vmem:[%s16641_s0 + $0x5e0] sm:$0xff]  ;;  %v8195_v47 = vld [vmem:[%s16641_s0 + $0x5e8] sm:$0xff]  ;;  %v1982_v52 = vpack.c.bf16 %v8192_v46, %v11324_v4  ;;  %8188 = vst [vmem:[%s16642_s1 + $0xcf0] sm:$0xff] %v1966_v44 }
  0x8e   :  { %v11355_v12 = vld [vmem:[%s16641_s0 + $0x19e0] sm:$0xff]  ;;  %v1990_v53 = vpack.c.bf16 %v8195_v47, %v11329_v5  ;;  %v8198_v54 = vld [vmem:[%s16641_s0 + $0x19e8] sm:$0xff]  ;;  %8191 = vst [vmem:[%s16642_s1 + $0x2f0] sm:$0xff] %v1974_v51 }
  0x8f   :  { %v11360_v13 = vld [vmem:[%s16641_s0 + $0xde0] sm:$0xff]  ;;  %v8201_v55 = vld [vmem:[%s16641_s0 + $0xde8] sm:$0xff]  ;;  %v1998_v60 = vpack.c.bf16 %v8198_v54, %v11355_v12  ;;  %8194 = vst [vmem:[%s16642_s1 + $0x8f0] sm:$0xff] %v1982_v52 }
  0x90   :  { %v11365_v14 = vld [vmem:[%s16641_s0 + $0x1e0] sm:$0xff]  ;;  %v8204_v56 = vld [vmem:[%s16641_s0 + $0x1e8] sm:$0xff]  ;;  %v2006_v61 = vpack.c.bf16 %v8201_v55, %v11360_v13  ;;  %8197 = vst [vmem:[%s16642_s1 + $0xef0] sm:$0xff] %v1990_v53 }
  0x91   :  { %v11391_v21 = vld [vmem:[%s16641_s0 + $0x2200] sm:$0xff]  ;;  %v2014_v62 = vpack.c.bf16 %v8204_v56, %v11365_v14  ;;  %v8207_v63 = vld [vmem:[%s16641_s0 + $0x2208] sm:$0xff]  ;;  %8200 = vst [vmem:[%s16642_s1 + $0x4f0] sm:$0xff] %v1998_v60 }
  0x92   :  { %v11396_v22 = vld [vmem:[%s16641_s0 + $0x1600] sm:$0xff]  ;;  %v8210_v0 = vld [vmem:[%s16641_s0 + $0x1608] sm:$0xff]  ;;  %v2022_v5 = vpack.c.bf16 %v8207_v63, %v11391_v21  ;;  %8203 = vst [vmem:[%s16642_s1 + $0xaf0] sm:$0xff] %v2006_v61 }
  0x93   :  { %v11401_v23 = vld [vmem:[%s16641_s0 + $0xa00] sm:$0xff]  ;;  %v8213_v1 = vld [vmem:[%s16641_s0 + $0xa08] sm:$0xff]  ;;  %v2030_v6 = vpack.c.bf16 %v8210_v0, %v11396_v22  ;;  %8206 = vst [vmem:[%s16642_s1 + $0x10f0] sm:$0xff] %v2014_v62 }
  0x94   :  { %v11427_v30 = vld [vmem:[%s16641_s0 + $0x1e00] sm:$0xff]  ;;  %v2038_v7 = vpack.c.bf16 %v8213_v1, %v11401_v23  ;;  %v8216_v8 = vld [vmem:[%s16641_s0 + $0x1e08] sm:$0xff]  ;;  %8209 = vst [vmem:[%s16642_s1 + $0x100] sm:$0xff] %v2022_v5 }
  0x95   :  { %v11432_v31 = vld [vmem:[%s16641_s0 + $0x1200] sm:$0xff]  ;;  %v8219_v9 = vld [vmem:[%s16641_s0 + $0x1208] sm:$0xff]  ;;  %v2046_v14 = vpack.c.bf16 %v8216_v8, %v11427_v30  ;;  %8212 = vst [vmem:[%s16642_s1 + $0x700] sm:$0xff] %v2030_v6 }
  0x96   :  { %v11437_v32 = vld [vmem:[%s16641_s0 + $0x600] sm:$0xff]  ;;  %v8222_v10 = vld [vmem:[%s16641_s0 + $0x608] sm:$0xff]  ;;  %v2054_v15 = vpack.c.bf16 %v8219_v9, %v11432_v31  ;;  %8215 = vst [vmem:[%s16642_s1 + $0xd00] sm:$0xff] %v2038_v7 }
  0x97   :  { %v11463_v39 = vld [vmem:[%s16641_s0 + $0x1a00] sm:$0xff]  ;;  %v2062_v16 = vpack.c.bf16 %v8222_v10, %v11437_v32  ;;  %v8225_v17 = vld [vmem:[%s16641_s0 + $0x1a08] sm:$0xff]  ;;  %8218 = vst [vmem:[%s16642_s1 + $0x300] sm:$0xff] %v2046_v14 }
  0x98   :  { %v11468_v40 = vld [vmem:[%s16641_s0 + $0xe00] sm:$0xff]  ;;  %v8228_v18 = vld [vmem:[%s16641_s0 + $0xe08] sm:$0xff]  ;;  %v2070_v23 = vpack.c.bf16 %v8225_v17, %v11463_v39  ;;  %8221 = vst [vmem:[%s16642_s1 + $0x900] sm:$0xff] %v2054_v15 }
  0x99   :  { %v11473_v41 = vld [vmem:[%s16641_s0 + $0x200] sm:$0xff]  ;;  %v8231_v19 = vld [vmem:[%s16641_s0 + $0x208] sm:$0xff]  ;;  %v2078_v24 = vpack.c.bf16 %v8228_v18, %v11468_v40  ;;  %8224 = vst [vmem:[%s16642_s1 + $0xf00] sm:$0xff] %v2062_v16 }
  0x9a   :  { %v11499_v48 = vld [vmem:[%s16641_s0 + $0x2220] sm:$0xff]  ;;  %v2086_v25 = vpack.c.bf16 %v8231_v19, %v11473_v41  ;;  %v8234_v26 = vld [vmem:[%s16641_s0 + $0x2228] sm:$0xff]  ;;  %8227 = vst [vmem:[%s16642_s1 + $0x500] sm:$0xff] %v2070_v23 }
  0x9b   :  { %v11504_v49 = vld [vmem:[%s16641_s0 + $0x1620] sm:$0xff]  ;;  %v8237_v27 = vld [vmem:[%s16641_s0 + $0x1628] sm:$0xff]  ;;  %v2094_v32 = vpack.c.bf16 %v8234_v26, %v11499_v48  ;;  %8230 = vst [vmem:[%s16642_s1 + $0xb00] sm:$0xff] %v2078_v24 }
  0x9c   :  { %v11509_v50 = vld [vmem:[%s16641_s0 + $0xa20] sm:$0xff]  ;;  %v8240_v28 = vld [vmem:[%s16641_s0 + $0xa28] sm:$0xff]  ;;  %v2102_v33 = vpack.c.bf16 %v8237_v27, %v11504_v49  ;;  %8233 = vst [vmem:[%s16642_s1 + $0x1100] sm:$0xff] %v2086_v25 }
  0x9d   :  { %v11535_v57 = vld [vmem:[%s16641_s0 + $0x1e20] sm:$0xff]  ;;  %v2110_v34 = vpack.c.bf16 %v8240_v28, %v11509_v50  ;;  %v8243_v35 = vld [vmem:[%s16641_s0 + $0x1e28] sm:$0xff]  ;;  %8236 = vst [vmem:[%s16642_s1 + $0x110] sm:$0xff] %v2094_v32 }
  0x9e   :  { %v11540_v58 = vld [vmem:[%s16641_s0 + $0x1220] sm:$0xff]  ;;  %v8246_v36 = vld [vmem:[%s16641_s0 + $0x1228] sm:$0xff]  ;;  %v2118_v41 = vpack.c.bf16 %v8243_v35, %v11535_v57  ;;  %8239 = vst [vmem:[%s16642_s1 + $0x710] sm:$0xff] %v2102_v33 }
  0x9f   :  { %v11545_v59 = vld [vmem:[%s16641_s0 + $0x620] sm:$0xff]  ;;  %v8249_v37 = vld [vmem:[%s16641_s0 + $0x628] sm:$0xff]  ;;  %v2126_v42 = vpack.c.bf16 %v8246_v36, %v11540_v58  ;;  %8242 = vst [vmem:[%s16642_s1 + $0xd10] sm:$0xff] %v2110_v34 }
  0xa0   :  { %v11571_v2 = vld [vmem:[%s16641_s0 + $0x1a20] sm:$0xff]  ;;  %v2134_v43 = vpack.c.bf16 %v8249_v37, %v11545_v59  ;;  %v8252_v44 = vld [vmem:[%s16641_s0 + $0x1a28] sm:$0xff]  ;;  %8245 = vst [vmem:[%s16642_s1 + $0x310] sm:$0xff] %v2118_v41 }
  0xa1   :  { %v11576_v3 = vld [vmem:[%s16641_s0 + $0xe20] sm:$0xff]  ;;  %v8255_v45 = vld [vmem:[%s16641_s0 + $0xe28] sm:$0xff]  ;;  %v2142_v50 = vpack.c.bf16 %v8252_v44, %v11571_v2  ;;  %8248 = vst [vmem:[%s16642_s1 + $0x910] sm:$0xff] %v2126_v42 }
  0xa2   :  { %v11581_v4 = vld [vmem:[%s16641_s0 + $0x220] sm:$0xff]  ;;  %v8258_v46 = vld [vmem:[%s16641_s0 + $0x228] sm:$0xff]  ;;  %v2150_v51 = vpack.c.bf16 %v8255_v45, %v11576_v3  ;;  %8251 = vst [vmem:[%s16642_s1 + $0xf10] sm:$0xff] %v2134_v43 }
  0xa3   :  { %v11607_v11 = vld [vmem:[%s16641_s0 + $0x2240] sm:$0xff]  ;;  %v2158_v52 = vpack.c.bf16 %v8258_v46, %v11581_v4  ;;  %v8261_v53 = vld [vmem:[%s16641_s0 + $0x2248] sm:$0xff]  ;;  %8254 = vst [vmem:[%s16642_s1 + $0x510] sm:$0xff] %v2142_v50 }
  0xa4   :  { %v11612_v12 = vld [vmem:[%s16641_s0 + $0x1640] sm:$0xff]  ;;  %v8264_v54 = vld [vmem:[%s16641_s0 + $0x1648] sm:$0xff]  ;;  %v2166_v59 = vpack.c.bf16 %v8261_v53, %v11607_v11  ;;  %8257 = vst [vmem:[%s16642_s1 + $0xb10] sm:$0xff] %v2150_v51 }
  0xa5   :  { %v11617_v13 = vld [vmem:[%s16641_s0 + $0xa40] sm:$0xff]  ;;  %v8267_v55 = vld [vmem:[%s16641_s0 + $0xa48] sm:$0xff]  ;;  %v2174_v60 = vpack.c.bf16 %v8264_v54, %v11612_v12  ;;  %8260 = vst [vmem:[%s16642_s1 + $0x1110] sm:$0xff] %v2158_v52 }
  0xa6   :  { %v11643_v20 = vld [vmem:[%s16641_s0 + $0x1e40] sm:$0xff]  ;;  %v2182_v61 = vpack.c.bf16 %v8267_v55, %v11617_v13  ;;  %v8270_v62 = vld [vmem:[%s16641_s0 + $0x1e48] sm:$0xff]  ;;  %8263 = vst [vmem:[%s16642_s1 + $0x120] sm:$0xff] %v2166_v59 }
  0xa7   :  { %v11648_v21 = vld [vmem:[%s16641_s0 + $0x1240] sm:$0xff]  ;;  %v8273_v63 = vld [vmem:[%s16641_s0 + $0x1248] sm:$0xff]  ;;  %v2190_v4 = vpack.c.bf16 %v8270_v62, %v11643_v20  ;;  %8266 = vst [vmem:[%s16642_s1 + $0x720] sm:$0xff] %v2174_v60 }
  0xa8   :  { %v11653_v22 = vld [vmem:[%s16641_s0 + $0x640] sm:$0xff]  ;;  %v8276_v0 = vld [vmem:[%s16641_s0 + $0x648] sm:$0xff]  ;;  %v2198_v5 = vpack.c.bf16 %v8273_v63, %v11648_v21  ;;  %8269 = vst [vmem:[%s16642_s1 + $0xd20] sm:$0xff] %v2182_v61 }
  0xa9   :  { %v11679_v29 = vld [vmem:[%s16641_s0 + $0x1a40] sm:$0xff]  ;;  %v2206_v6 = vpack.c.bf16 %v8276_v0, %v11653_v22  ;;  %v8279_v7 = vld [vmem:[%s16641_s0 + $0x1a48] sm:$0xff]  ;;  %8272 = vst [vmem:[%s16642_s1 + $0x320] sm:$0xff] %v2190_v4 }
  0xaa   :  { %v11684_v30 = vld [vmem:[%s16641_s0 + $0xe40] sm:$0xff]  ;;  %v8282_v8 = vld [vmem:[%s16641_s0 + $0xe48] sm:$0xff]  ;;  %v2214_v13 = vpack.c.bf16 %v8279_v7, %v11679_v29  ;;  %8275 = vst [vmem:[%s16642_s1 + $0x920] sm:$0xff] %v2198_v5 }
  0xab   :  { %v11689_v31 = vld [vmem:[%s16641_s0 + $0x240] sm:$0xff]  ;;  %v8285_v9 = vld [vmem:[%s16641_s0 + $0x248] sm:$0xff]  ;;  %v2222_v14 = vpack.c.bf16 %v8282_v8, %v11684_v30  ;;  %8278 = vst [vmem:[%s16642_s1 + $0xf20] sm:$0xff] %v2206_v6 }
  0xac   :  { %v11715_v38 = vld [vmem:[%s16641_s0 + $0x2260] sm:$0xff]  ;;  %v2230_v15 = vpack.c.bf16 %v8285_v9, %v11689_v31  ;;  %v8288_v16 = vld [vmem:[%s16641_s0 + $0x2268] sm:$0xff]  ;;  %8281 = vst [vmem:[%s16642_s1 + $0x520] sm:$0xff] %v2214_v13 }
  0xad   :  { %v11720_v39 = vld [vmem:[%s16641_s0 + $0x1660] sm:$0xff]  ;;  %v8291_v17 = vld [vmem:[%s16641_s0 + $0x1668] sm:$0xff]  ;;  %v2238_v22 = vpack.c.bf16 %v8288_v16, %v11715_v38  ;;  %8284 = vst [vmem:[%s16642_s1 + $0xb20] sm:$0xff] %v2222_v14 }
  0xae   :  { %v11725_v40 = vld [vmem:[%s16641_s0 + $0xa60] sm:$0xff]  ;;  %v8294_v18 = vld [vmem:[%s16641_s0 + $0xa68] sm:$0xff]  ;;  %v2246_v23 = vpack.c.bf16 %v8291_v17, %v11720_v39  ;;  %8287 = vst [vmem:[%s16642_s1 + $0x1120] sm:$0xff] %v2230_v15 }
  0xaf   :  { %v11751_v47 = vld [vmem:[%s16641_s0 + $0x1e60] sm:$0xff]  ;;  %v2254_v24 = vpack.c.bf16 %v8294_v18, %v11725_v40  ;;  %v8297_v25 = vld [vmem:[%s16641_s0 + $0x1e68] sm:$0xff]  ;;  %8290 = vst [vmem:[%s16642_s1 + $0x130] sm:$0xff] %v2238_v22 }
  0xb0   :  { %v11756_v48 = vld [vmem:[%s16641_s0 + $0x1260] sm:$0xff]  ;;  %v8300_v26 = vld [vmem:[%s16641_s0 + $0x1268] sm:$0xff]  ;;  %v2262_v31 = vpack.c.bf16 %v8297_v25, %v11751_v47  ;;  %8293 = vst [vmem:[%s16642_s1 + $0x730] sm:$0xff] %v2246_v23 }
  0xb1   :  { %v11761_v49 = vld [vmem:[%s16641_s0 + $0x660] sm:$0xff]  ;;  %v8303_v27 = vld [vmem:[%s16641_s0 + $0x668] sm:$0xff]  ;;  %v2270_v32 = vpack.c.bf16 %v8300_v26, %v11756_v48  ;;  %8296 = vst [vmem:[%s16642_s1 + $0xd30] sm:$0xff] %v2254_v24 }
  0xb2   :  { %v11787_v56 = vld [vmem:[%s16641_s0 + $0x1a60] sm:$0xff]  ;;  %v2278_v33 = vpack.c.bf16 %v8303_v27, %v11761_v49  ;;  %v8306_v34 = vld [vmem:[%s16641_s0 + $0x1a68] sm:$0xff]  ;;  %8299 = vst [vmem:[%s16642_s1 + $0x330] sm:$0xff] %v2262_v31 }
  0xb3   :  { %v11792_v57 = vld [vmem:[%s16641_s0 + $0xe60] sm:$0xff]  ;;  %v8309_v35 = vld [vmem:[%s16641_s0 + $0xe68] sm:$0xff]  ;;  %v2286_v40 = vpack.c.bf16 %v8306_v34, %v11787_v56  ;;  %8302 = vst [vmem:[%s16642_s1 + $0x930] sm:$0xff] %v2270_v32 }
  0xb4   :  { %v11797_v58 = vld [vmem:[%s16641_s0 + $0x260] sm:$0xff]  ;;  %v8312_v36 = vld [vmem:[%s16641_s0 + $0x268] sm:$0xff]  ;;  %v2294_v41 = vpack.c.bf16 %v8309_v35, %v11792_v57  ;;  %8305 = vst [vmem:[%s16642_s1 + $0xf30] sm:$0xff] %v2278_v33 }
  0xb5   :  { %v11823_v1 = vld [vmem:[%s16641_s0 + $0x2280] sm:$0xff]  ;;  %v2302_v42 = vpack.c.bf16 %v8312_v36, %v11797_v58  ;;  %v8315_v43 = vld [vmem:[%s16641_s0 + $0x2288] sm:$0xff]  ;;  %8308 = vst [vmem:[%s16642_s1 + $0x530] sm:$0xff] %v2286_v40 }
  0xb6   :  { %v11828_v2 = vld [vmem:[%s16641_s0 + $0x1680] sm:$0xff]  ;;  %v8318_v44 = vld [vmem:[%s16641_s0 + $0x1688] sm:$0xff]  ;;  %v2310_v49 = vpack.c.bf16 %v8315_v43, %v11823_v1  ;;  %8311 = vst [vmem:[%s16642_s1 + $0xb30] sm:$0xff] %v2294_v41 }
  0xb7   :  { %v11833_v3 = vld [vmem:[%s16641_s0 + $0xa80] sm:$0xff]  ;;  %v8321_v45 = vld [vmem:[%s16641_s0 + $0xa88] sm:$0xff]  ;;  %v2318_v50 = vpack.c.bf16 %v8318_v44, %v11828_v2  ;;  %8314 = vst [vmem:[%s16642_s1 + $0x1130] sm:$0xff] %v2302_v42 }
  0xb8   :  { %v11859_v10 = vld [vmem:[%s16641_s0 + $0x1e80] sm:$0xff]  ;;  %v2326_v51 = vpack.c.bf16 %v8321_v45, %v11833_v3  ;;  %v8324_v52 = vld [vmem:[%s16641_s0 + $0x1e88] sm:$0xff]  ;;  %8317 = vst [vmem:[%s16642_s1 + $0x140] sm:$0xff] %v2310_v49 }
  0xb9   :  { %v11864_v11 = vld [vmem:[%s16641_s0 + $0x1280] sm:$0xff]  ;;  %v8327_v53 = vld [vmem:[%s16641_s0 + $0x1288] sm:$0xff]  ;;  %v2334_v58 = vpack.c.bf16 %v8324_v52, %v11859_v10  ;;  %8320 = vst [vmem:[%s16642_s1 + $0x740] sm:$0xff] %v2318_v50 }
  0xba   :  { %v11869_v12 = vld [vmem:[%s16641_s0 + $0x680] sm:$0xff]  ;;  %v8330_v54 = vld [vmem:[%s16641_s0 + $0x688] sm:$0xff]  ;;  %v2342_v59 = vpack.c.bf16 %v8327_v53, %v11864_v11  ;;  %8323 = vst [vmem:[%s16642_s1 + $0xd40] sm:$0xff] %v2326_v51 }
  0xbb   :  { %v11895_v19 = vld [vmem:[%s16641_s0 + $0x1a80] sm:$0xff]  ;;  %v2350_v60 = vpack.c.bf16 %v8330_v54, %v11869_v12  ;;  %v8333_v61 = vld [vmem:[%s16641_s0 + $0x1a88] sm:$0xff]  ;;  %8326 = vst [vmem:[%s16642_s1 + $0x340] sm:$0xff] %v2334_v58 }
  0xbc   :  { %v11900_v20 = vld [vmem:[%s16641_s0 + $0xe80] sm:$0xff]  ;;  %v8336_v62 = vld [vmem:[%s16641_s0 + $0xe88] sm:$0xff]  ;;  %v2358_v3 = vpack.c.bf16 %v8333_v61, %v11895_v19  ;;  %8329 = vst [vmem:[%s16642_s1 + $0x940] sm:$0xff] %v2342_v59 }
  0xbd   :  { %v11905_v21 = vld [vmem:[%s16641_s0 + $0x280] sm:$0xff]  ;;  %v8339_v63 = vld [vmem:[%s16641_s0 + $0x288] sm:$0xff]  ;;  %v2366_v4 = vpack.c.bf16 %v8336_v62, %v11900_v20  ;;  %8332 = vst [vmem:[%s16642_s1 + $0xf40] sm:$0xff] %v2350_v60 }
  0xbe   :  { %v11931_v28 = vld [vmem:[%s16641_s0 + $0x22a0] sm:$0xff]  ;;  %v2374_v5 = vpack.c.bf16 %v8339_v63, %v11905_v21  ;;  %v8342_v6 = vld [vmem:[%s16641_s0 + $0x22a8] sm:$0xff]  ;;  %8335 = vst [vmem:[%s16642_s1 + $0x540] sm:$0xff] %v2358_v3 }
  0xbf   :  { %v11936_v29 = vld [vmem:[%s16641_s0 + $0x16a0] sm:$0xff]  ;;  %v8345_v7 = vld [vmem:[%s16641_s0 + $0x16a8] sm:$0xff]  ;;  %v2382_v12 = vpack.c.bf16 %v8342_v6, %v11931_v28  ;;  %8338 = vst [vmem:[%s16642_s1 + $0xb40] sm:$0xff] %v2366_v4 }
  0xc0   :  { %v11941_v30 = vld [vmem:[%s16641_s0 + $0xaa0] sm:$0xff]  ;;  %v8348_v8 = vld [vmem:[%s16641_s0 + $0xaa8] sm:$0xff]  ;;  %v2390_v13 = vpack.c.bf16 %v8345_v7, %v11936_v29  ;;  %8341 = vst [vmem:[%s16642_s1 + $0x1140] sm:$0xff] %v2374_v5 }
  0xc1   :  { %v11967_v37 = vld [vmem:[%s16641_s0 + $0x1ea0] sm:$0xff]  ;;  %v2398_v14 = vpack.c.bf16 %v8348_v8, %v11941_v30  ;;  %v8351_v15 = vld [vmem:[%s16641_s0 + $0x1ea8] sm:$0xff]  ;;  %8344 = vst [vmem:[%s16642_s1 + $0x150] sm:$0xff] %v2382_v12 }
  0xc2   :  { %v11972_v38 = vld [vmem:[%s16641_s0 + $0x12a0] sm:$0xff]  ;;  %v8354_v16 = vld [vmem:[%s16641_s0 + $0x12a8] sm:$0xff]  ;;  %v2406_v21 = vpack.c.bf16 %v8351_v15, %v11967_v37  ;;  %8347 = vst [vmem:[%s16642_s1 + $0x750] sm:$0xff] %v2390_v13 }
  0xc3   :  { %v11977_v39 = vld [vmem:[%s16641_s0 + $0x6a0] sm:$0xff]  ;;  %v8357_v17 = vld [vmem:[%s16641_s0 + $0x6a8] sm:$0xff]  ;;  %v2414_v22 = vpack.c.bf16 %v8354_v16, %v11972_v38  ;;  %8350 = vst [vmem:[%s16642_s1 + $0xd50] sm:$0xff] %v2398_v14 }
  0xc4   :  { %v12003_v46 = vld [vmem:[%s16641_s0 + $0x1aa0] sm:$0xff]  ;;  %v2422_v23 = vpack.c.bf16 %v8357_v17, %v11977_v39  ;;  %v8360_v24 = vld [vmem:[%s16641_s0 + $0x1aa8] sm:$0xff]  ;;  %8353 = vst [vmem:[%s16642_s1 + $0x350] sm:$0xff] %v2406_v21 }
  0xc5   :  { %v12008_v47 = vld [vmem:[%s16641_s0 + $0xea0] sm:$0xff]  ;;  %v8363_v25 = vld [vmem:[%s16641_s0 + $0xea8] sm:$0xff]  ;;  %v2430_v30 = vpack.c.bf16 %v8360_v24, %v12003_v46  ;;  %8356 = vst [vmem:[%s16642_s1 + $0x950] sm:$0xff] %v2414_v22 }
  0xc6   :  { %v12013_v48 = vld [vmem:[%s16641_s0 + $0x2a0] sm:$0xff]  ;;  %v8366_v26 = vld [vmem:[%s16641_s0 + $0x2a8] sm:$0xff]  ;;  %v2438_v31 = vpack.c.bf16 %v8363_v25, %v12008_v47  ;;  %8359 = vst [vmem:[%s16642_s1 + $0xf50] sm:$0xff] %v2422_v23 }
  0xc7   :  { %v12039_v55 = vld [vmem:[%s16641_s0 + $0x22c0] sm:$0xff]  ;;  %v2446_v32 = vpack.c.bf16 %v8366_v26, %v12013_v48  ;;  %v8369_v33 = vld [vmem:[%s16641_s0 + $0x22c8] sm:$0xff]  ;;  %8362 = vst [vmem:[%s16642_s1 + $0x550] sm:$0xff] %v2430_v30 }
  0xc8   :  { %v12044_v56 = vld [vmem:[%s16641_s0 + $0x16c0] sm:$0xff]  ;;  %v8372_v34 = vld [vmem:[%s16641_s0 + $0x16c8] sm:$0xff]  ;;  %v2454_v39 = vpack.c.bf16 %v8369_v33, %v12039_v55  ;;  %8365 = vst [vmem:[%s16642_s1 + $0xb50] sm:$0xff] %v2438_v31 }
  0xc9   :  { %v12049_v57 = vld [vmem:[%s16641_s0 + $0xac0] sm:$0xff]  ;;  %v8375_v35 = vld [vmem:[%s16641_s0 + $0xac8] sm:$0xff]  ;;  %v2462_v40 = vpack.c.bf16 %v8372_v34, %v12044_v56  ;;  %8368 = vst [vmem:[%s16642_s1 + $0x1150] sm:$0xff] %v2446_v32 }
  0xca   :  { %v12075_v0 = vld [vmem:[%s16641_s0 + $0x1ec0] sm:$0xff]  ;;  %v2470_v41 = vpack.c.bf16 %v8375_v35, %v12049_v57  ;;  %v8378_v42 = vld [vmem:[%s16641_s0 + $0x1ec8] sm:$0xff]  ;;  %8371 = vst [vmem:[%s16642_s1 + $0x160] sm:$0xff] %v2454_v39 }
  0xcb   :  { %v12080_v1 = vld [vmem:[%s16641_s0 + $0x12c0] sm:$0xff]  ;;  %v8381_v43 = vld [vmem:[%s16641_s0 + $0x12c8] sm:$0xff]  ;;  %v2478_v48 = vpack.c.bf16 %v8378_v42, %v12075_v0  ;;  %8374 = vst [vmem:[%s16642_s1 + $0x760] sm:$0xff] %v2462_v40 }
  0xcc   :  { %v12085_v2 = vld [vmem:[%s16641_s0 + $0x6c0] sm:$0xff]  ;;  %v8384_v44 = vld [vmem:[%s16641_s0 + $0x6c8] sm:$0xff]  ;;  %v2486_v49 = vpack.c.bf16 %v8381_v43, %v12080_v1  ;;  %8377 = vst [vmem:[%s16642_s1 + $0xd60] sm:$0xff] %v2470_v41 }
  0xcd   :  { %v12111_v9 = vld [vmem:[%s16641_s0 + $0x1ac0] sm:$0xff]  ;;  %v2494_v50 = vpack.c.bf16 %v8384_v44, %v12085_v2  ;;  %v8387_v51 = vld [vmem:[%s16641_s0 + $0x1ac8] sm:$0xff]  ;;  %8380 = vst [vmem:[%s16642_s1 + $0x360] sm:$0xff] %v2478_v48 }
  0xce   :  { %v12116_v10 = vld [vmem:[%s16641_s0 + $0xec0] sm:$0xff]  ;;  %v8390_v52 = vld [vmem:[%s16641_s0 + $0xec8] sm:$0xff]  ;;  %v2502_v57 = vpack.c.bf16 %v8387_v51, %v12111_v9  ;;  %8383 = vst [vmem:[%s16642_s1 + $0x960] sm:$0xff] %v2486_v49 }
  0xcf   :  { %v12121_v11 = vld [vmem:[%s16641_s0 + $0x2c0] sm:$0xff]  ;;  %v8393_v53 = vld [vmem:[%s16641_s0 + $0x2c8] sm:$0xff]  ;;  %v2510_v58 = vpack.c.bf16 %v8390_v52, %v12116_v10  ;;  %8386 = vst [vmem:[%s16642_s1 + $0xf60] sm:$0xff] %v2494_v50 }
  0xd0   :  { %v12147_v18 = vld [vmem:[%s16641_s0 + $0x22e0] sm:$0xff]  ;;  %v2518_v59 = vpack.c.bf16 %v8393_v53, %v12121_v11  ;;  %v8396_v60 = vld [vmem:[%s16641_s0 + $0x22e8] sm:$0xff]  ;;  %8389 = vst [vmem:[%s16642_s1 + $0x560] sm:$0xff] %v2502_v57 }
  0xd1   :  { %v12152_v19 = vld [vmem:[%s16641_s0 + $0x16e0] sm:$0xff]  ;;  %v8399_v61 = vld [vmem:[%s16641_s0 + $0x16e8] sm:$0xff]  ;;  %v2526_v2 = vpack.c.bf16 %v8396_v60, %v12147_v18  ;;  %8392 = vst [vmem:[%s16642_s1 + $0xb60] sm:$0xff] %v2510_v58 }
  0xd2   :  { %v12157_v20 = vld [vmem:[%s16641_s0 + $0xae0] sm:$0xff]  ;;  %v8402_v62 = vld [vmem:[%s16641_s0 + $0xae8] sm:$0xff]  ;;  %v2534_v3 = vpack.c.bf16 %v8399_v61, %v12152_v19  ;;  %8395 = vst [vmem:[%s16642_s1 + $0x1160] sm:$0xff] %v2518_v59 }
  0xd3   :  { %v12183_v27 = vld [vmem:[%s16641_s0 + $0x1ee0] sm:$0xff]  ;;  %v2542_v4 = vpack.c.bf16 %v8402_v62, %v12157_v20  ;;  %v8405_v5 = vld [vmem:[%s16641_s0 + $0x1ee8] sm:$0xff]  ;;  %8398 = vst [vmem:[%s16642_s1 + $0x170] sm:$0xff] %v2526_v2 }
  0xd4   :  { %v12188_v28 = vld [vmem:[%s16641_s0 + $0x12e0] sm:$0xff]  ;;  %v8408_v6 = vld [vmem:[%s16641_s0 + $0x12e8] sm:$0xff]  ;;  %v2550_v11 = vpack.c.bf16 %v8405_v5, %v12183_v27  ;;  %8401 = vst [vmem:[%s16642_s1 + $0x770] sm:$0xff] %v2534_v3 }
  0xd5   :  { %v12193_v29 = vld [vmem:[%s16641_s0 + $0x6e0] sm:$0xff]  ;;  %v8411_v7 = vld [vmem:[%s16641_s0 + $0x6e8] sm:$0xff]  ;;  %v2558_v12 = vpack.c.bf16 %v8408_v6, %v12188_v28  ;;  %8404 = vst [vmem:[%s16642_s1 + $0xd70] sm:$0xff] %v2542_v4 }
  0xd6   :  { %v12219_v36 = vld [vmem:[%s16641_s0 + $0x1ae0] sm:$0xff]  ;;  %v2566_v13 = vpack.c.bf16 %v8411_v7, %v12193_v29  ;;  %v8414_v14 = vld [vmem:[%s16641_s0 + $0x1ae8] sm:$0xff]  ;;  %8407 = vst [vmem:[%s16642_s1 + $0x370] sm:$0xff] %v2550_v11 }
  0xd7   :  { %v12224_v37 = vld [vmem:[%s16641_s0 + $0xee0] sm:$0xff]  ;;  %v8417_v15 = vld [vmem:[%s16641_s0 + $0xee8] sm:$0xff]  ;;  %v2574_v20 = vpack.c.bf16 %v8414_v14, %v12219_v36  ;;  %8410 = vst [vmem:[%s16642_s1 + $0x970] sm:$0xff] %v2558_v12 }
  0xd8   :  { %v12229_v38 = vld [vmem:[%s16641_s0 + $0x2e0] sm:$0xff]  ;;  %v8420_v16 = vld [vmem:[%s16641_s0 + $0x2e8] sm:$0xff]  ;;  %v2582_v21 = vpack.c.bf16 %v8417_v15, %v12224_v37  ;;  %8413 = vst [vmem:[%s16642_s1 + $0xf70] sm:$0xff] %v2566_v13 }
  0xd9   :  { %v12255_v45 = vld [vmem:[%s16641_s0 + $0x2300] sm:$0xff]  ;;  %v2590_v22 = vpack.c.bf16 %v8420_v16, %v12229_v38  ;;  %v8423_v23 = vld [vmem:[%s16641_s0 + $0x2308] sm:$0xff]  ;;  %8416 = vst [vmem:[%s16642_s1 + $0x570] sm:$0xff] %v2574_v20 }
  0xda   :  { %v12260_v46 = vld [vmem:[%s16641_s0 + $0x1700] sm:$0xff]  ;;  %v8426_v24 = vld [vmem:[%s16641_s0 + $0x1708] sm:$0xff]  ;;  %v2598_v29 = vpack.c.bf16 %v8423_v23, %v12255_v45  ;;  %8419 = vst [vmem:[%s16642_s1 + $0xb70] sm:$0xff] %v2582_v21 }
  0xdb   :  { %v12265_v47 = vld [vmem:[%s16641_s0 + $0xb00] sm:$0xff]  ;;  %v8429_v25 = vld [vmem:[%s16641_s0 + $0xb08] sm:$0xff]  ;;  %v2606_v30 = vpack.c.bf16 %v8426_v24, %v12260_v46  ;;  %8422 = vst [vmem:[%s16642_s1 + $0x1170] sm:$0xff] %v2590_v22 }
  0xdc   :  { %v12291_v54 = vld [vmem:[%s16641_s0 + $0x1f00] sm:$0xff]  ;;  %v2614_v31 = vpack.c.bf16 %v8429_v25, %v12265_v47  ;;  %v8432_v32 = vld [vmem:[%s16641_s0 + $0x1f08] sm:$0xff]  ;;  %8425 = vst [vmem:[%s16642_s1 + $0x180] sm:$0xff] %v2598_v29 }
  0xdd   :  { %v12296_v55 = vld [vmem:[%s16641_s0 + $0x1300] sm:$0xff]  ;;  %v8435_v33 = vld [vmem:[%s16641_s0 + $0x1308] sm:$0xff]  ;;  %v2622_v38 = vpack.c.bf16 %v8432_v32, %v12291_v54  ;;  %8428 = vst [vmem:[%s16642_s1 + $0x780] sm:$0xff] %v2606_v30 }
  0xde   :  { %v12301_v56 = vld [vmem:[%s16641_s0 + $0x700] sm:$0xff]  ;;  %v8438_v34 = vld [vmem:[%s16641_s0 + $0x708] sm:$0xff]  ;;  %v2630_v39 = vpack.c.bf16 %v8435_v33, %v12296_v55  ;;  %8431 = vst [vmem:[%s16642_s1 + $0xd80] sm:$0xff] %v2614_v31 }
  0xdf   :  { %v12327_v63 = vld [vmem:[%s16641_s0 + $0x1b00] sm:$0xff]  ;;  %v2638_v40 = vpack.c.bf16 %v8438_v34, %v12301_v56  ;;  %v8441_v41 = vld [vmem:[%s16641_s0 + $0x1b08] sm:$0xff]  ;;  %8434 = vst [vmem:[%s16642_s1 + $0x380] sm:$0xff] %v2622_v38 }
  0xe0   :  { %v12332_v0 = vld [vmem:[%s16641_s0 + $0xf00] sm:$0xff]  ;;  %v8444_v42 = vld [vmem:[%s16641_s0 + $0xf08] sm:$0xff]  ;;  %v2646_v47 = vpack.c.bf16 %v8441_v41, %v12327_v63  ;;  %8437 = vst [vmem:[%s16642_s1 + $0x980] sm:$0xff] %v2630_v39 }
  0xe1   :  { %v12337_v1 = vld [vmem:[%s16641_s0 + $0x300] sm:$0xff]  ;;  %v8447_v43 = vld [vmem:[%s16641_s0 + $0x308] sm:$0xff]  ;;  %v2654_v48 = vpack.c.bf16 %v8444_v42, %v12332_v0  ;;  %8440 = vst [vmem:[%s16642_s1 + $0xf80] sm:$0xff] %v2638_v40 }
  0xe2   :  { %v12363_v8 = vld [vmem:[%s16641_s0 + $0x2320] sm:$0xff]  ;;  %v2662_v49 = vpack.c.bf16 %v8447_v43, %v12337_v1  ;;  %v8450_v50 = vld [vmem:[%s16641_s0 + $0x2328] sm:$0xff]  ;;  %8443 = vst [vmem:[%s16642_s1 + $0x580] sm:$0xff] %v2646_v47 }
  0xe3   :  { %v12368_v9 = vld [vmem:[%s16641_s0 + $0x1720] sm:$0xff]  ;;  %v8453_v51 = vld [vmem:[%s16641_s0 + $0x1728] sm:$0xff]  ;;  %v2670_v56 = vpack.c.bf16 %v8450_v50, %v12363_v8  ;;  %8446 = vst [vmem:[%s16642_s1 + $0xb80] sm:$0xff] %v2654_v48 }
  0xe4   :  { %v12373_v10 = vld [vmem:[%s16641_s0 + $0xb20] sm:$0xff]  ;;  %v8456_v52 = vld [vmem:[%s16641_s0 + $0xb28] sm:$0xff]  ;;  %v2678_v57 = vpack.c.bf16 %v8453_v51, %v12368_v9  ;;  %8449 = vst [vmem:[%s16642_s1 + $0x1180] sm:$0xff] %v2662_v49 }
  0xe5   :  { %v12399_v17 = vld [vmem:[%s16641_s0 + $0x1f20] sm:$0xff]  ;;  %v2686_v58 = vpack.c.bf16 %v8456_v52, %v12373_v10  ;;  %v8459_v59 = vld [vmem:[%s16641_s0 + $0x1f28] sm:$0xff]  ;;  %8452 = vst [vmem:[%s16642_s1 + $0x190] sm:$0xff] %v2670_v56 }
  0xe6   :  { %v12404_v18 = vld [vmem:[%s16641_s0 + $0x1320] sm:$0xff]  ;;  %v8462_v60 = vld [vmem:[%s16641_s0 + $0x1328] sm:$0xff]  ;;  %v2694_v1 = vpack.c.bf16 %v8459_v59, %v12399_v17  ;;  %8455 = vst [vmem:[%s16642_s1 + $0x790] sm:$0xff] %v2678_v57 }
  0xe7   :  { %v12409_v19 = vld [vmem:[%s16641_s0 + $0x720] sm:$0xff]  ;;  %v8465_v61 = vld [vmem:[%s16641_s0 + $0x728] sm:$0xff]  ;;  %v2702_v2 = vpack.c.bf16 %v8462_v60, %v12404_v18  ;;  %8458 = vst [vmem:[%s16642_s1 + $0xd90] sm:$0xff] %v2686_v58 }
  0xe8   :  { %v12435_v26 = vld [vmem:[%s16641_s0 + $0x1b20] sm:$0xff]  ;;  %v2710_v3 = vpack.c.bf16 %v8465_v61, %v12409_v19  ;;  %v8468_v4 = vld [vmem:[%s16641_s0 + $0x1b28] sm:$0xff]  ;;  %8461 = vst [vmem:[%s16642_s1 + $0x390] sm:$0xff] %v2694_v1 }
  0xe9   :  { %v12440_v27 = vld [vmem:[%s16641_s0 + $0xf20] sm:$0xff]  ;;  %v8471_v5 = vld [vmem:[%s16641_s0 + $0xf28] sm:$0xff]  ;;  %v2718_v10 = vpack.c.bf16 %v8468_v4, %v12435_v26  ;;  %8464 = vst [vmem:[%s16642_s1 + $0x990] sm:$0xff] %v2702_v2 }
  0xea   :  { %v12445_v28 = vld [vmem:[%s16641_s0 + $0x320] sm:$0xff]  ;;  %v8474_v6 = vld [vmem:[%s16641_s0 + $0x328] sm:$0xff]  ;;  %v2726_v11 = vpack.c.bf16 %v8471_v5, %v12440_v27  ;;  %8467 = vst [vmem:[%s16642_s1 + $0xf90] sm:$0xff] %v2710_v3 }
  0xeb   :  { %v12471_v35 = vld [vmem:[%s16641_s0 + $0x2340] sm:$0xff]  ;;  %v2734_v12 = vpack.c.bf16 %v8474_v6, %v12445_v28  ;;  %v8477_v13 = vld [vmem:[%s16641_s0 + $0x2348] sm:$0xff]  ;;  %8470 = vst [vmem:[%s16642_s1 + $0x590] sm:$0xff] %v2718_v10 }
  0xec   :  { %v12476_v36 = vld [vmem:[%s16641_s0 + $0x1740] sm:$0xff]  ;;  %v8480_v14 = vld [vmem:[%s16641_s0 + $0x1748] sm:$0xff]  ;;  %v2742_v19 = vpack.c.bf16 %v8477_v13, %v12471_v35  ;;  %8473 = vst [vmem:[%s16642_s1 + $0xb90] sm:$0xff] %v2726_v11 }
  0xed   :  { %v12481_v37 = vld [vmem:[%s16641_s0 + $0xb40] sm:$0xff]  ;;  %v8483_v15 = vld [vmem:[%s16641_s0 + $0xb48] sm:$0xff]  ;;  %v2750_v20 = vpack.c.bf16 %v8480_v14, %v12476_v36  ;;  %8476 = vst [vmem:[%s16642_s1 + $0x1190] sm:$0xff] %v2734_v12 }
  0xee   :  { %v12507_v44 = vld [vmem:[%s16641_s0 + $0x1f40] sm:$0xff]  ;;  %v2758_v21 = vpack.c.bf16 %v8483_v15, %v12481_v37  ;;  %v8486_v22 = vld [vmem:[%s16641_s0 + $0x1f48] sm:$0xff]  ;;  %8479 = vst [vmem:[%s16642_s1 + $0x1a0] sm:$0xff] %v2742_v19 }
  0xef   :  { %v12512_v45 = vld [vmem:[%s16641_s0 + $0x1340] sm:$0xff]  ;;  %v8489_v23 = vld [vmem:[%s16641_s0 + $0x1348] sm:$0xff]  ;;  %v2766_v28 = vpack.c.bf16 %v8486_v22, %v12507_v44  ;;  %8482 = vst [vmem:[%s16642_s1 + $0x7a0] sm:$0xff] %v2750_v20 }
  0xf0   :  { %v12517_v46 = vld [vmem:[%s16641_s0 + $0x740] sm:$0xff]  ;;  %v8492_v24 = vld [vmem:[%s16641_s0 + $0x748] sm:$0xff]  ;;  %v2774_v29 = vpack.c.bf16 %v8489_v23, %v12512_v45  ;;  %8485 = vst [vmem:[%s16642_s1 + $0xda0] sm:$0xff] %v2758_v21 }
  0xf1   :  { %v12543_v53 = vld [vmem:[%s16641_s0 + $0x1b40] sm:$0xff]  ;;  %v2782_v30 = vpack.c.bf16 %v8492_v24, %v12517_v46  ;;  %v8495_v31 = vld [vmem:[%s16641_s0 + $0x1b48] sm:$0xff]  ;;  %8488 = vst [vmem:[%s16642_s1 + $0x3a0] sm:$0xff] %v2766_v28 }
  0xf2   :  { %v12548_v54 = vld [vmem:[%s16641_s0 + $0xf40] sm:$0xff]  ;;  %v8498_v32 = vld [vmem:[%s16641_s0 + $0xf48] sm:$0xff]  ;;  %v2790_v37 = vpack.c.bf16 %v8495_v31, %v12543_v53  ;;  %8491 = vst [vmem:[%s16642_s1 + $0x9a0] sm:$0xff] %v2774_v29 }
  0xf3   :  { %v12553_v55 = vld [vmem:[%s16641_s0 + $0x340] sm:$0xff]  ;;  %v8501_v33 = vld [vmem:[%s16641_s0 + $0x348] sm:$0xff]  ;;  %v2798_v38 = vpack.c.bf16 %v8498_v32, %v12548_v54  ;;  %8494 = vst [vmem:[%s16642_s1 + $0xfa0] sm:$0xff] %v2782_v30 }
  0xf4   :  { %v12579_v62 = vld [vmem:[%s16641_s0 + $0x2360] sm:$0xff]  ;;  %v2806_v39 = vpack.c.bf16 %v8501_v33, %v12553_v55  ;;  %v8504_v40 = vld [vmem:[%s16641_s0 + $0x2368] sm:$0xff]  ;;  %8497 = vst [vmem:[%s16642_s1 + $0x5a0] sm:$0xff] %v2790_v37 }
  0xf5   :  { %v12584_v63 = vld [vmem:[%s16641_s0 + $0x1760] sm:$0xff]  ;;  %v8507_v41 = vld [vmem:[%s16641_s0 + $0x1768] sm:$0xff]  ;;  %v2814_v46 = vpack.c.bf16 %v8504_v40, %v12579_v62  ;;  %8500 = vst [vmem:[%s16642_s1 + $0xba0] sm:$0xff] %v2798_v38 }
  0xf6   :  { %v12589_v0 = vld [vmem:[%s16641_s0 + $0xb60] sm:$0xff]  ;;  %v8510_v42 = vld [vmem:[%s16641_s0 + $0xb68] sm:$0xff]  ;;  %v2822_v47 = vpack.c.bf16 %v8507_v41, %v12584_v63  ;;  %8503 = vst [vmem:[%s16642_s1 + $0x11a0] sm:$0xff] %v2806_v39 }
  0xf7   :  { %v12615_v7 = vld [vmem:[%s16641_s0 + $0x1f60] sm:$0xff]  ;;  %v2830_v48 = vpack.c.bf16 %v8510_v42, %v12589_v0  ;;  %v8513_v49 = vld [vmem:[%s16641_s0 + $0x1f68] sm:$0xff]  ;;  %8506 = vst [vmem:[%s16642_s1 + $0x1b0] sm:$0xff] %v2814_v46 }
  0xf8   :  { %v12620_v8 = vld [vmem:[%s16641_s0 + $0x1360] sm:$0xff]  ;;  %v8516_v50 = vld [vmem:[%s16641_s0 + $0x1368] sm:$0xff]  ;;  %v2838_v55 = vpack.c.bf16 %v8513_v49, %v12615_v7  ;;  %8509 = vst [vmem:[%s16642_s1 + $0x7b0] sm:$0xff] %v2822_v47 }
  0xf9   :  { %v12625_v9 = vld [vmem:[%s16641_s0 + $0x760] sm:$0xff]  ;;  %v8519_v51 = vld [vmem:[%s16641_s0 + $0x768] sm:$0xff]  ;;  %v2846_v56 = vpack.c.bf16 %v8516_v50, %v12620_v8  ;;  %8512 = vst [vmem:[%s16642_s1 + $0xdb0] sm:$0xff] %v2830_v48 }
  0xfa   :  { %v12651_v16 = vld [vmem:[%s16641_s0 + $0x1b60] sm:$0xff]  ;;  %v2854_v57 = vpack.c.bf16 %v8519_v51, %v12625_v9  ;;  %v8522_v58 = vld [vmem:[%s16641_s0 + $0x1b68] sm:$0xff]  ;;  %8515 = vst [vmem:[%s16642_s1 + $0x3b0] sm:$0xff] %v2838_v55 }
  0xfb   :  { %v12656_v17 = vld [vmem:[%s16641_s0 + $0xf60] sm:$0xff]  ;;  %v8525_v59 = vld [vmem:[%s16641_s0 + $0xf68] sm:$0xff]  ;;  %v2862_v0 = vpack.c.bf16 %v8522_v58, %v12651_v16  ;;  %8518 = vst [vmem:[%s16642_s1 + $0x9b0] sm:$0xff] %v2846_v56 }
  0xfc   :  { %v12661_v18 = vld [vmem:[%s16641_s0 + $0x360] sm:$0xff]  ;;  %v8528_v60 = vld [vmem:[%s16641_s0 + $0x368] sm:$0xff]  ;;  %v2870_v1 = vpack.c.bf16 %v8525_v59, %v12656_v17  ;;  %8521 = vst [vmem:[%s16642_s1 + $0xfb0] sm:$0xff] %v2854_v57 }
  0xfd   :  { %v12687_v25 = vld [vmem:[%s16641_s0 + $0x2380] sm:$0xff]  ;;  %v2878_v2 = vpack.c.bf16 %v8528_v60, %v12661_v18  ;;  %v8531_v3 = vld [vmem:[%s16641_s0 + $0x2388] sm:$0xff]  ;;  %8524 = vst [vmem:[%s16642_s1 + $0x5b0] sm:$0xff] %v2862_v0 }
  0xfe   :  { %v12692_v26 = vld [vmem:[%s16641_s0 + $0x1780] sm:$0xff]  ;;  %v8534_v4 = vld [vmem:[%s16641_s0 + $0x1788] sm:$0xff]  ;;  %v2886_v9 = vpack.c.bf16 %v8531_v3, %v12687_v25  ;;  %8527 = vst [vmem:[%s16642_s1 + $0xbb0] sm:$0xff] %v2870_v1 }
  0xff   :  { %v12697_v27 = vld [vmem:[%s16641_s0 + $0xb80] sm:$0xff]  ;;  %v8537_v5 = vld [vmem:[%s16641_s0 + $0xb88] sm:$0xff]  ;;  %v2894_v10 = vpack.c.bf16 %v8534_v4, %v12692_v26  ;;  %8530 = vst [vmem:[%s16642_s1 + $0x11b0] sm:$0xff] %v2878_v2 }
 0x100   :  { %v12723_v34 = vld [vmem:[%s16641_s0 + $0x1f80] sm:$0xff]  ;;  %v2902_v11 = vpack.c.bf16 %v8537_v5, %v12697_v27  ;;  %v8540_v12 = vld [vmem:[%s16641_s0 + $0x1f88] sm:$0xff]  ;;  %8533 = vst [vmem:[%s16642_s1 + $0x1c0] sm:$0xff] %v2886_v9 }
 0x101   :  { %v12728_v35 = vld [vmem:[%s16641_s0 + $0x1380] sm:$0xff]  ;;  %v8543_v13 = vld [vmem:[%s16641_s0 + $0x1388] sm:$0xff]  ;;  %v2910_v18 = vpack.c.bf16 %v8540_v12, %v12723_v34  ;;  %8536 = vst [vmem:[%s16642_s1 + $0x7c0] sm:$0xff] %v2894_v10 }
 0x102   :  { %v12733_v36 = vld [vmem:[%s16641_s0 + $0x780] sm:$0xff]  ;;  %v8546_v14 = vld [vmem:[%s16641_s0 + $0x788] sm:$0xff]  ;;  %v2918_v19 = vpack.c.bf16 %v8543_v13, %v12728_v35  ;;  %8539 = vst [vmem:[%s16642_s1 + $0xdc0] sm:$0xff] %v2902_v11 }
 0x103   :  { %v12759_v43 = vld [vmem:[%s16641_s0 + $0x1b80] sm:$0xff]  ;;  %v2926_v20 = vpack.c.bf16 %v8546_v14, %v12733_v36  ;;  %v8549_v21 = vld [vmem:[%s16641_s0 + $0x1b88] sm:$0xff]  ;;  %8542 = vst [vmem:[%s16642_s1 + $0x3c0] sm:$0xff] %v2910_v18 }
 0x104   :  { %v12764_v44 = vld [vmem:[%s16641_s0 + $0xf80] sm:$0xff]  ;;  %v8552_v22 = vld [vmem:[%s16641_s0 + $0xf88] sm:$0xff]  ;;  %v2934_v27 = vpack.c.bf16 %v8549_v21, %v12759_v43  ;;  %8545 = vst [vmem:[%s16642_s1 + $0x9c0] sm:$0xff] %v2918_v19 }
 0x105   :  { %v12769_v45 = vld [vmem:[%s16641_s0 + $0x380] sm:$0xff]  ;;  %v8555_v23 = vld [vmem:[%s16641_s0 + $0x388] sm:$0xff]  ;;  %v2942_v28 = vpack.c.bf16 %v8552_v22, %v12764_v44  ;;  %8548 = vst [vmem:[%s16642_s1 + $0xfc0] sm:$0xff] %v2926_v20 }
 0x106   :  { %v12795_v52 = vld [vmem:[%s16641_s0 + $0x23a0] sm:$0xff]  ;;  %v2950_v29 = vpack.c.bf16 %v8555_v23, %v12769_v45  ;;  %v8558_v30 = vld [vmem:[%s16641_s0 + $0x23a8] sm:$0xff]  ;;  %8551 = vst [vmem:[%s16642_s1 + $0x5c0] sm:$0xff] %v2934_v27 }
 0x107   :  { %v12800_v53 = vld [vmem:[%s16641_s0 + $0x17a0] sm:$0xff]  ;;  %v8561_v31 = vld [vmem:[%s16641_s0 + $0x17a8] sm:$0xff]  ;;  %v2958_v36 = vpack.c.bf16 %v8558_v30, %v12795_v52  ;;  %8554 = vst [vmem:[%s16642_s1 + $0xbc0] sm:$0xff] %v2942_v28 }
 0x108   :  { %v12805_v54 = vld [vmem:[%s16641_s0 + $0xba0] sm:$0xff]  ;;  %v8564_v32 = vld [vmem:[%s16641_s0 + $0xba8] sm:$0xff]  ;;  %v2966_v37 = vpack.c.bf16 %v8561_v31, %v12800_v53  ;;  %8557 = vst [vmem:[%s16642_s1 + $0x11c0] sm:$0xff] %v2950_v29 }
 0x109   :  { %v12831_v61 = vld [vmem:[%s16641_s0 + $0x1fa0] sm:$0xff]  ;;  %v2974_v38 = vpack.c.bf16 %v8564_v32, %v12805_v54  ;;  %v8567_v39 = vld [vmem:[%s16641_s0 + $0x1fa8] sm:$0xff]  ;;  %8560 = vst [vmem:[%s16642_s1 + $0x1d0] sm:$0xff] %v2958_v36  ;;  %v8639_v32 = vld [vmem:[%s16641_s0 + $0x2010] sm:$0xff] }
 0x10a   :  { %v12836_v62 = vld [vmem:[%s16641_s0 + $0x13a0] sm:$0xff]  ;;  %v8570_v40 = vld [vmem:[%s16641_s0 + $0x13a8] sm:$0xff]  ;;  %v2982_v45 = vpack.c.bf16 %v8567_v39, %v12831_v61  ;;  %8563 = vst [vmem:[%s16642_s1 + $0x7d0] sm:$0xff] %v2966_v37  ;;  %v8643_v36 = vld [vmem:[%s16641_s0 + $0x1010] sm:$0xff] }
 0x10b   :  { %v12841_v63 = vld [vmem:[%s16641_s0 + $0x7a0] sm:$0xff]  ;;  %v8573_v41 = vld [vmem:[%s16641_s0 + $0x7a8] sm:$0xff]  ;;  %v2990_v46 = vpack.c.bf16 %v8570_v40, %v12836_v62  ;;  %8566 = vst [vmem:[%s16642_s1 + $0xdd0] sm:$0xff] %v2974_v38  ;;  %v8644_v37 = vld [vmem:[%s16641_s0 + $0x410] sm:$0xff] }
 0x10c   :  { %v12867_v6 = vld [vmem:[%s16641_s0 + $0x1ba0] sm:$0xff]  ;;  %v2998_v47 = vpack.c.bf16 %v8573_v41, %v12841_v63  ;;  %v8576_v48 = vld [vmem:[%s16641_s0 + $0x1ba8] sm:$0xff]  ;;  %8569 = vst [vmem:[%s16642_s1 + $0x3d0] sm:$0xff] %v2982_v45  ;;  %v8645_v38 = vld [vmem:[%s16641_s0 + $0x1810] sm:$0xff] }
 0x10d   :  { %v12872_v7 = vld [vmem:[%s16641_s0 + $0xfa0] sm:$0xff]  ;;  %v8579_v49 = vld [vmem:[%s16641_s0 + $0xfa8] sm:$0xff]  ;;  %v3006_v54 = vpack.c.bf16 %v8576_v48, %v12867_v6  ;;  %8572 = vst [vmem:[%s16642_s1 + $0x9d0] sm:$0xff] %v2990_v46  ;;  %v8646_v39 = vld [vmem:[%s16641_s0 + $0xc10] sm:$0xff] }
 0x10e   :  { %v12877_v8 = vld [vmem:[%s16641_s0 + $0x3a0] sm:$0xff]  ;;  %v8582_v50 = vld [vmem:[%s16641_s0 + $0x3a8] sm:$0xff]  ;;  %v3014_v55 = vpack.c.bf16 %v8579_v49, %v12872_v7  ;;  %8575 = vst [vmem:[%s16642_s1 + $0xfd0] sm:$0xff] %v2998_v47  ;;  %v8647_v40 = vld [vmem:[%s16641_s0 + $0x10] sm:$0xff] }
 0x10f   :  { %v12903_v15 = vld [vmem:[%s16641_s0 + $0x23c0] sm:$0xff]  ;;  %v3022_v56 = vpack.c.bf16 %v8582_v50, %v12877_v8  ;;  %v8585_v57 = vld [vmem:[%s16641_s0 + $0x23c8] sm:$0xff]  ;;  %8578 = vst [vmem:[%s16642_s1 + $0x5d0] sm:$0xff] %v3006_v54  ;;  %v13251_v41 = vld [vmem:[%s16641_s0 + $0x2030] sm:$0xff] }
 0x110   :  { %v12908_v16 = vld [vmem:[%s16641_s0 + $0x17c0] sm:$0xff]  ;;  %v8588_v58 = vld [vmem:[%s16641_s0 + $0x17c8] sm:$0xff]  ;;  %v3030_v63 = vpack.c.bf16 %v8585_v57, %v12903_v15  ;;  %8581 = vst [vmem:[%s16642_s1 + $0xbd0] sm:$0xff] %v3014_v55  ;;  %v13271_v45 = vld [vmem:[%s16641_s0 + $0x1030] sm:$0xff] }
 0x111   :  { %v12913_v17 = vld [vmem:[%s16641_s0 + $0xbc0] sm:$0xff]  ;;  %v8591_v59 = vld [vmem:[%s16641_s0 + $0xbc8] sm:$0xff]  ;;  %v3038_v0 = vpack.c.bf16 %v8588_v58, %v12908_v16  ;;  %8584 = vst [vmem:[%s16642_s1 + $0x11d0] sm:$0xff] %v3022_v56  ;;  %v13276_v46 = vld [vmem:[%s16641_s0 + $0x430] sm:$0xff] }
 0x112   :  { %v12939_v24 = vld [vmem:[%s16641_s0 + $0x1fc0] sm:$0xff]  ;;  %v3046_v1 = vpack.c.bf16 %v8591_v59, %v12913_v17  ;;  %v8594_v2 = vld [vmem:[%s16641_s0 + $0x1fc8] sm:$0xff]  ;;  %8587 = vst [vmem:[%s16642_s1 + $0x1e0] sm:$0xff] %v3030_v63  ;;  %v8927_v47 = vld [vmem:[%s16641_s0 + $0x2018] sm:$0xff] }
 0x113   :  { %v12944_v25 = vld [vmem:[%s16641_s0 + $0x13c0] sm:$0xff]  ;;  %v8597_v3 = vld [vmem:[%s16641_s0 + $0x13c8] sm:$0xff]  ;;  %v3054_v5 = vpack.c.bf16 %v8594_v2, %v12939_v24  ;;  %8590 = vst [vmem:[%s16642_s1 + $0x7e0] sm:$0xff] %v3038_v0  ;;  %v8930_v48 = vld [vmem:[%s16641_s0 + $0x1418] sm:$0xff] }
 0x114   :  { %v12949_v26 = vld [vmem:[%s16641_s0 + $0x7c0] sm:$0xff]  ;;  %v8600_v4 = vld [vmem:[%s16641_s0 + $0x7c8] sm:$0xff]  ;;  %v3062_v6 = vpack.c.bf16 %v8597_v3, %v12944_v25  ;;  %8593 = vst [vmem:[%s16642_s1 + $0xde0] sm:$0xff] %v3046_v1  ;;  %v8933_v49 = vld [vmem:[%s16641_s0 + $0x818] sm:$0xff] }
 0x115   :  { %v12975_v33 = vld [vmem:[%s16641_s0 + $0x1bc0] sm:$0xff]  ;;  %v3070_v7 = vpack.c.bf16 %v8600_v4, %v12949_v26  ;;  %v8603_v8 = vld [vmem:[%s16641_s0 + $0x1bc8] sm:$0xff]  ;;  %8596 = vst [vmem:[%s16642_s1 + $0x3e0] sm:$0xff] %v3054_v5  ;;  %v13290_v50 = vld [vmem:[%s16641_s0 + $0x1830] sm:$0xff] }
 0x116   :  { %v12980_v34 = vld [vmem:[%s16641_s0 + $0xfc0] sm:$0xff]  ;;  %v8606_v9 = vld [vmem:[%s16641_s0 + $0xfc8] sm:$0xff]  ;;  %v3078_v11 = vpack.c.bf16 %v8603_v8, %v12975_v33  ;;  %8599 = vst [vmem:[%s16642_s1 + $0x9e0] sm:$0xff] %v3062_v6  ;;  %v8640_v33 = vld [vmem:[%s16641_s0 + $0x1410] sm:$0xff] }
 0x117   :  { %v12985_v35 = vld [vmem:[%s16641_s0 + $0x3c0] sm:$0xff]  ;;  %v8609_v10 = vld [vmem:[%s16641_s0 + $0x3c8] sm:$0xff]  ;;  %v3086_v12 = vpack.c.bf16 %v8606_v9, %v12980_v34  ;;  %8602 = vst [vmem:[%s16642_s1 + $0xfe0] sm:$0xff] %v3070_v7  ;;  %v8641_v34 = vld [vmem:[%s16641_s0 + $0x810] sm:$0xff]  ;;  %v4046_v54 = vpack.c.bf16 %v8930_v48, %v8640_v33 }
 0x118   :  { %v13011_v42 = vld [vmem:[%s16641_s0 + $0x23e0] sm:$0xff]  ;;  %v3094_v13 = vpack.c.bf16 %v8609_v10, %v12985_v35  ;;  %v8612_v14 = vld [vmem:[%s16641_s0 + $0x23e8] sm:$0xff]  ;;  %8605 = vst [vmem:[%s16642_s1 + $0x5e0] sm:$0xff] %v3078_v11  ;;  %v8642_v35 = vld [vmem:[%s16641_s0 + $0x1c10] sm:$0xff]  ;;  %v4054_v55 = vpack.c.bf16 %v8933_v49, %v8641_v34 }
 0x119   :  { %v13016_v43 = vld [vmem:[%s16641_s0 + $0x17e0] sm:$0xff]  ;;  %v8615_v15 = vld [vmem:[%s16641_s0 + $0x17e8] sm:$0xff]  ;;  %v3102_v17 = vpack.c.bf16 %v8612_v14, %v13011_v42  ;;  %8608 = vst [vmem:[%s16642_s1 + $0xbe0] sm:$0xff] %v3086_v12  ;;  %v13256_v42 = vld [vmem:[%s16641_s0 + $0x1430] sm:$0xff] }
 0x11a   :  { %v13021_v44 = vld [vmem:[%s16641_s0 + $0xbe0] sm:$0xff]  ;;  %v8618_v16 = vld [vmem:[%s16641_s0 + $0xbe8] sm:$0xff]  ;;  %v3110_v18 = vpack.c.bf16 %v8615_v15, %v13016_v43  ;;  %8611 = vst [vmem:[%s16642_s1 + $0x11e0] sm:$0xff] %v3094_v13  ;;  %v13261_v43 = vld [vmem:[%s16641_s0 + $0x830] sm:$0xff] }
 0x11b   :  { %v13047_v51 = vld [vmem:[%s16641_s0 + $0x1fe0] sm:$0xff]  ;;  %v3118_v19 = vpack.c.bf16 %v8618_v16, %v13021_v44  ;;  %v8621_v20 = vld [vmem:[%s16641_s0 + $0x1fe8] sm:$0xff]  ;;  %8614 = vst [vmem:[%s16642_s1 + $0x1f0] sm:$0xff] %v3102_v17  ;;  %v13266_v44 = vld [vmem:[%s16641_s0 + $0x1c30] sm:$0xff] }
 0x11c   :  { %v13052_v52 = vld [vmem:[%s16641_s0 + $0x13e0] sm:$0xff]  ;;  %v8624_v21 = vld [vmem:[%s16641_s0 + $0x13e8] sm:$0xff]  ;;  %v3126_v23 = vpack.c.bf16 %v8621_v20, %v13047_v51  ;;  %8617 = vst [vmem:[%s16642_s1 + $0x7f0] sm:$0xff] %v3110_v18  ;;  %v13295_v51 = vld [vmem:[%s16641_s0 + $0xc30] sm:$0xff] }
 0x11d   :  { %v13057_v53 = vld [vmem:[%s16641_s0 + $0x7e0] sm:$0xff]  ;;  %v8627_v22 = vld [vmem:[%s16641_s0 + $0x7e8] sm:$0xff]  ;;  %v3134_v24 = vpack.c.bf16 %v8624_v21, %v13052_v52  ;;  %8620 = vst [vmem:[%s16642_s1 + $0xdf0] sm:$0xff] %v3118_v19  ;;  %v13300_v52 = vld [vmem:[%s16641_s0 + $0x30] sm:$0xff] }
 0x11e   :  { %v7772_v60 = vld [vmem:[%s16641_s0 + $0x1be0] sm:$0xff]  ;;  %v3142_v25 = vpack.c.bf16 %v8627_v22, %v13057_v53  ;;  %v8630_v26 = vld [vmem:[%s16641_s0 + $0x1be8] sm:$0xff]  ;;  %8623 = vst [vmem:[%s16642_s1 + $0x3f0] sm:$0xff] %v3126_v23  ;;  %v4038_v53 = vpack.c.bf16 %v8927_v47, %v8639_v32  ;;  %v8936_v56 = vld [vmem:[%s16641_s0 + $0x1c18] sm:$0xff] }
 0x11f   :  { %v7773_v61 = vld [vmem:[%s16641_s0 + $0xfe0] sm:$0xff]  ;;  %v8633_v27 = vld [vmem:[%s16641_s0 + $0xfe8] sm:$0xff]  ;;  %v3150_v29 = vpack.c.bf16 %v8630_v26, %v7772_v60  ;;  %8626 = vst [vmem:[%s16642_s1 + $0x9f0] sm:$0xff] %v3134_v24  ;;  %v8939_v57 = vld [vmem:[%s16641_s0 + $0x1018] sm:$0xff] }
 0x120   :  { %v7774_v62 = vld [vmem:[%s16641_s0 + $0x3e0] sm:$0xff]  ;;  %v8636_v28 = vld [vmem:[%s16641_s0 + $0x3e8] sm:$0xff]  ;;  %v3158_v30 = vpack.c.bf16 %v8633_v27, %v7773_v61  ;;  %8629 = vst [vmem:[%s16642_s1 + $0xff0] sm:$0xff] %v3142_v25  ;;  %v8942_v58 = vld [vmem:[%s16641_s0 + $0x418] sm:$0xff]  ;;  %v4070_v63 = vpack.c.bf16 %v8939_v57, %v8643_v36 }
 0x121   :  { %v3166_v31 = vpack.c.bf16 %v8636_v28, %v7774_v62  ;;  %8632 = vst [vmem:[%s16642_s1 + $0x5f0] sm:$0xff] %v3150_v29  ;;  %v13314_v59 = vld [vmem:[%s16641_s0 + $0x2050] sm:$0xff]  ;;  %v4062_v62 = vpack.c.bf16 %v8936_v56, %v8642_v35  ;;  %v4078_v0 = vpack.c.bf16 %v8942_v58, %v8644_v37  ;;  %v8945_v1 = vld [vmem:[%s16641_s0 + $0x1818] sm:$0xff]  ;;  %8929 = vst [vmem:[%s16642_s1 + $0x8] sm:$0xff] %v4038_v53 }
 0x122   :  { %8635 = vst [vmem:[%s16642_s1 + $0xbf0] sm:$0xff] %v3158_v30  ;;  %v13319_v60 = vld [vmem:[%s16641_s0 + $0x1450] sm:$0xff]  ;;  %v8948_v2 = vld [vmem:[%s16641_s0 + $0xc18] sm:$0xff]  ;;  %8932 = vst [vmem:[%s16642_s1 + $0x608] sm:$0xff] %v4046_v54  ;;  %v4086_v7 = vpack.c.bf16 %v8945_v1, %v8645_v38 }
 0x123   :  { %8638 = vst [vmem:[%s16642_s1 + $0x11f0] sm:$0xff] %v3166_v31  ;;  %v13324_v61 = vld [vmem:[%s16641_s0 + $0x850] sm:$0xff]  ;;  %v8951_v3 = vld [vmem:[%s16641_s0 + $0x18] sm:$0xff]  ;;  %8935 = vst [vmem:[%s16642_s1 + $0xc08] sm:$0xff] %v4054_v55  ;;  %v4094_v8 = vpack.c.bf16 %v8948_v2, %v8646_v39 }
 0x124   :  { %v13338_v4 = vld [vmem:[%s16641_s0 + $0x1c50] sm:$0xff]  ;;  %v4102_v9 = vpack.c.bf16 %v8951_v3, %v8647_v40  ;;  %v8954_v10 = vld [vmem:[%s16641_s0 + $0x2038] sm:$0xff]  ;;  %8938 = vst [vmem:[%s16642_s1 + $0x208] sm:$0xff] %v4062_v62  ;;  %8941 = vst [vmem:[%s16642_s1 + $0x808] sm:$0xff] %v4070_v63 }
 0x125   :  { %v13343_v5 = vld [vmem:[%s16641_s0 + $0x1050] sm:$0xff]  ;;  %v8957_v11 = vld [vmem:[%s16641_s0 + $0x1438] sm:$0xff]  ;;  %8944 = vst [vmem:[%s16642_s1 + $0xe08] sm:$0xff] %v4078_v0  ;;  %v4110_v16 = vpack.c.bf16 %v8954_v10, %v13251_v41  ;;  %8947 = vst [vmem:[%s16642_s1 + $0x408] sm:$0xff] %v4086_v7 }
 0x126   :  { %v13348_v6 = vld [vmem:[%s16641_s0 + $0x450] sm:$0xff]  ;;  %v8960_v12 = vld [vmem:[%s16641_s0 + $0x838] sm:$0xff]  ;;  %v4118_v17 = vpack.c.bf16 %v8957_v11, %v13256_v42  ;;  %8950 = vst [vmem:[%s16642_s1 + $0xa08] sm:$0xff] %v4094_v8  ;;  %8953 = vst [vmem:[%s16642_s1 + $0x1008] sm:$0xff] %v4102_v9 }
 0x127   :  { %v13371_v13 = vld [vmem:[%s16641_s0 + $0x1850] sm:$0xff]  ;;  %v4126_v18 = vpack.c.bf16 %v8960_v12, %v13261_v43  ;;  %v8963_v19 = vld [vmem:[%s16641_s0 + $0x1c38] sm:$0xff]  ;;  %8956 = vst [vmem:[%s16642_s1 + $0x18] sm:$0xff] %v4110_v16 }
 0x128   :  { %v13376_v14 = vld [vmem:[%s16641_s0 + $0xc50] sm:$0xff]  ;;  %v8966_v20 = vld [vmem:[%s16641_s0 + $0x1038] sm:$0xff]  ;;  %v4134_v25 = vpack.c.bf16 %v8963_v19, %v13266_v44  ;;  %8959 = vst [vmem:[%s16642_s1 + $0x618] sm:$0xff] %v4118_v17 }
 0x129   :  { %v13381_v15 = vld [vmem:[%s16641_s0 + $0x50] sm:$0xff]  ;;  %v8969_v21 = vld [vmem:[%s16641_s0 + $0x438] sm:$0xff]  ;;  %v4142_v26 = vpack.c.bf16 %v8966_v20, %v13271_v45  ;;  %8962 = vst [vmem:[%s16642_s1 + $0xc18] sm:$0xff] %v4126_v18 }
 0x12a   :  { %v13407_v22 = vld [vmem:[%s16641_s0 + $0x2070] sm:$0xff]  ;;  %v4150_v27 = vpack.c.bf16 %v8969_v21, %v13276_v46  ;;  %v8972_v28 = vld [vmem:[%s16641_s0 + $0x1838] sm:$0xff]  ;;  %8965 = vst [vmem:[%s16642_s1 + $0x218] sm:$0xff] %v4134_v25 }
 0x12b   :  { %v13412_v23 = vld [vmem:[%s16641_s0 + $0x1470] sm:$0xff]  ;;  %v8975_v29 = vld [vmem:[%s16641_s0 + $0xc38] sm:$0xff]  ;;  %v4158_v34 = vpack.c.bf16 %v8972_v28, %v13290_v50  ;;  %8968 = vst [vmem:[%s16642_s1 + $0x818] sm:$0xff] %v4142_v26 }
 0x12c   :  { %v13417_v24 = vld [vmem:[%s16641_s0 + $0x870] sm:$0xff]  ;;  %v8978_v30 = vld [vmem:[%s16641_s0 + $0x38] sm:$0xff]  ;;  %v4166_v35 = vpack.c.bf16 %v8975_v29, %v13295_v51  ;;  %8971 = vst [vmem:[%s16642_s1 + $0xe18] sm:$0xff] %v4150_v27 }
 0x12d   :  { %v13443_v31 = vld [vmem:[%s16641_s0 + $0x1c70] sm:$0xff]  ;;  %v4174_v36 = vpack.c.bf16 %v8978_v30, %v13300_v52  ;;  %v8981_v37 = vld [vmem:[%s16641_s0 + $0x2058] sm:$0xff]  ;;  %8974 = vst [vmem:[%s16642_s1 + $0x418] sm:$0xff] %v4158_v34 }
 0x12e   :  { %v13448_v32 = vld [vmem:[%s16641_s0 + $0x1070] sm:$0xff]  ;;  %v8984_v38 = vld [vmem:[%s16641_s0 + $0x1458] sm:$0xff]  ;;  %v4182_v43 = vpack.c.bf16 %v8981_v37, %v13314_v59  ;;  %8977 = vst [vmem:[%s16642_s1 + $0xa18] sm:$0xff] %v4166_v35 }
 0x12f   :  { %v13453_v33 = vld [vmem:[%s16641_s0 + $0x470] sm:$0xff]  ;;  %v8987_v39 = vld [vmem:[%s16641_s0 + $0x858] sm:$0xff]  ;;  %v4190_v44 = vpack.c.bf16 %v8984_v38, %v13319_v60  ;;  %8980 = vst [vmem:[%s16642_s1 + $0x1018] sm:$0xff] %v4174_v36 }
 0x130   :  { %v13479_v40 = vld [vmem:[%s16641_s0 + $0x1870] sm:$0xff]  ;;  %v4198_v45 = vpack.c.bf16 %v8987_v39, %v13324_v61  ;;  %v8990_v46 = vld [vmem:[%s16641_s0 + $0x1c58] sm:$0xff]  ;;  %8983 = vst [vmem:[%s16642_s1 + $0x28] sm:$0xff] %v4182_v43 }
 0x131   :  { %v13484_v41 = vld [vmem:[%s16641_s0 + $0xc70] sm:$0xff]  ;;  %v8993_v47 = vld [vmem:[%s16641_s0 + $0x1058] sm:$0xff]  ;;  %v4206_v52 = vpack.c.bf16 %v8990_v46, %v13338_v4  ;;  %8986 = vst [vmem:[%s16642_s1 + $0x628] sm:$0xff] %v4190_v44 }
 0x132   :  { %v13489_v42 = vld [vmem:[%s16641_s0 + $0x70] sm:$0xff]  ;;  %v8996_v48 = vld [vmem:[%s16641_s0 + $0x458] sm:$0xff]  ;;  %v4214_v53 = vpack.c.bf16 %v8993_v47, %v13343_v5  ;;  %8989 = vst [vmem:[%s16642_s1 + $0xc28] sm:$0xff] %v4198_v45 }
 0x133   :  { %v13515_v49 = vld [vmem:[%s16641_s0 + $0x2090] sm:$0xff]  ;;  %v4222_v54 = vpack.c.bf16 %v8996_v48, %v13348_v6  ;;  %v8999_v55 = vld [vmem:[%s16641_s0 + $0x1858] sm:$0xff]  ;;  %8992 = vst [vmem:[%s16642_s1 + $0x228] sm:$0xff] %v4206_v52 }
 0x134   :  { %v13520_v50 = vld [vmem:[%s16641_s0 + $0x1490] sm:$0xff]  ;;  %v9002_v56 = vld [vmem:[%s16641_s0 + $0xc58] sm:$0xff]  ;;  %v4230_v61 = vpack.c.bf16 %v8999_v55, %v13371_v13  ;;  %8995 = vst [vmem:[%s16642_s1 + $0x828] sm:$0xff] %v4214_v53 }
 0x135   :  { %v13525_v51 = vld [vmem:[%s16641_s0 + $0x890] sm:$0xff]  ;;  %v9005_v57 = vld [vmem:[%s16641_s0 + $0x58] sm:$0xff]  ;;  %v4238_v62 = vpack.c.bf16 %v9002_v56, %v13376_v14  ;;  %8998 = vst [vmem:[%s16642_s1 + $0xe28] sm:$0xff] %v4222_v54 }
 0x136   :  { %v13551_v58 = vld [vmem:[%s16641_s0 + $0x1c90] sm:$0xff]  ;;  %v4246_v63 = vpack.c.bf16 %v9005_v57, %v13381_v15  ;;  %v9008_v0 = vld [vmem:[%s16641_s0 + $0x2078] sm:$0xff]  ;;  %9001 = vst [vmem:[%s16642_s1 + $0x428] sm:$0xff] %v4230_v61 }
 0x137   :  { %v13556_v59 = vld [vmem:[%s16641_s0 + $0x1090] sm:$0xff]  ;;  %v9011_v1 = vld [vmem:[%s16641_s0 + $0x1478] sm:$0xff]  ;;  %v4254_v6 = vpack.c.bf16 %v9008_v0, %v13407_v22  ;;  %9004 = vst [vmem:[%s16642_s1 + $0xa28] sm:$0xff] %v4238_v62 }
 0x138   :  { %v13561_v60 = vld [vmem:[%s16641_s0 + $0x490] sm:$0xff]  ;;  %v9014_v2 = vld [vmem:[%s16641_s0 + $0x878] sm:$0xff]  ;;  %v4262_v7 = vpack.c.bf16 %v9011_v1, %v13412_v23  ;;  %9007 = vst [vmem:[%s16642_s1 + $0x1028] sm:$0xff] %v4246_v63 }
 0x139   :  { %v13587_v3 = vld [vmem:[%s16641_s0 + $0x1890] sm:$0xff]  ;;  %v4270_v8 = vpack.c.bf16 %v9014_v2, %v13417_v24  ;;  %v9017_v9 = vld [vmem:[%s16641_s0 + $0x1c78] sm:$0xff]  ;;  %9010 = vst [vmem:[%s16642_s1 + $0x38] sm:$0xff] %v4254_v6 }
 0x13a   :  { %v13592_v4 = vld [vmem:[%s16641_s0 + $0xc90] sm:$0xff]  ;;  %v9020_v10 = vld [vmem:[%s16641_s0 + $0x1078] sm:$0xff]  ;;  %v4278_v15 = vpack.c.bf16 %v9017_v9, %v13443_v31  ;;  %9013 = vst [vmem:[%s16642_s1 + $0x638] sm:$0xff] %v4262_v7 }
 0x13b   :  { %v13597_v5 = vld [vmem:[%s16641_s0 + $0x90] sm:$0xff]  ;;  %v9023_v11 = vld [vmem:[%s16641_s0 + $0x478] sm:$0xff]  ;;  %v4286_v16 = vpack.c.bf16 %v9020_v10, %v13448_v32  ;;  %9016 = vst [vmem:[%s16642_s1 + $0xc38] sm:$0xff] %v4270_v8 }
 0x13c   :  { %v13623_v12 = vld [vmem:[%s16641_s0 + $0x20b0] sm:$0xff]  ;;  %v4294_v17 = vpack.c.bf16 %v9023_v11, %v13453_v33  ;;  %v9026_v18 = vld [vmem:[%s16641_s0 + $0x1878] sm:$0xff]  ;;  %9019 = vst [vmem:[%s16642_s1 + $0x238] sm:$0xff] %v4278_v15 }
 0x13d   :  { %v13628_v13 = vld [vmem:[%s16641_s0 + $0x14b0] sm:$0xff]  ;;  %v9029_v19 = vld [vmem:[%s16641_s0 + $0xc78] sm:$0xff]  ;;  %v4302_v24 = vpack.c.bf16 %v9026_v18, %v13479_v40  ;;  %9022 = vst [vmem:[%s16642_s1 + $0x838] sm:$0xff] %v4286_v16 }
 0x13e   :  { %v13633_v14 = vld [vmem:[%s16641_s0 + $0x8b0] sm:$0xff]  ;;  %v9032_v20 = vld [vmem:[%s16641_s0 + $0x78] sm:$0xff]  ;;  %v4310_v25 = vpack.c.bf16 %v9029_v19, %v13484_v41  ;;  %9025 = vst [vmem:[%s16642_s1 + $0xe38] sm:$0xff] %v4294_v17 }
 0x13f   :  { %v13659_v21 = vld [vmem:[%s16641_s0 + $0x1cb0] sm:$0xff]  ;;  %v4318_v26 = vpack.c.bf16 %v9032_v20, %v13489_v42  ;;  %v9035_v27 = vld [vmem:[%s16641_s0 + $0x2098] sm:$0xff]  ;;  %9028 = vst [vmem:[%s16642_s1 + $0x438] sm:$0xff] %v4302_v24 }
 0x140   :  { %v13664_v22 = vld [vmem:[%s16641_s0 + $0x10b0] sm:$0xff]  ;;  %v9038_v28 = vld [vmem:[%s16641_s0 + $0x1498] sm:$0xff]  ;;  %v4326_v33 = vpack.c.bf16 %v9035_v27, %v13515_v49  ;;  %9031 = vst [vmem:[%s16642_s1 + $0xa38] sm:$0xff] %v4310_v25 }
 0x141   :  { %v13669_v23 = vld [vmem:[%s16641_s0 + $0x4b0] sm:$0xff]  ;;  %v9041_v29 = vld [vmem:[%s16641_s0 + $0x898] sm:$0xff]  ;;  %v4334_v34 = vpack.c.bf16 %v9038_v28, %v13520_v50  ;;  %9034 = vst [vmem:[%s16642_s1 + $0x1038] sm:$0xff] %v4318_v26 }
 0x142   :  { %v13695_v30 = vld [vmem:[%s16641_s0 + $0x18b0] sm:$0xff]  ;;  %v4342_v35 = vpack.c.bf16 %v9041_v29, %v13525_v51  ;;  %v9044_v36 = vld [vmem:[%s16641_s0 + $0x1c98] sm:$0xff]  ;;  %9037 = vst [vmem:[%s16642_s1 + $0x48] sm:$0xff] %v4326_v33 }
 0x143   :  { %v13700_v31 = vld [vmem:[%s16641_s0 + $0xcb0] sm:$0xff]  ;;  %v9047_v37 = vld [vmem:[%s16641_s0 + $0x1098] sm:$0xff]  ;;  %v4350_v42 = vpack.c.bf16 %v9044_v36, %v13551_v58  ;;  %9040 = vst [vmem:[%s16642_s1 + $0x648] sm:$0xff] %v4334_v34 }
 0x144   :  { %v13705_v32 = vld [vmem:[%s16641_s0 + $0xb0] sm:$0xff]  ;;  %v9050_v38 = vld [vmem:[%s16641_s0 + $0x498] sm:$0xff]  ;;  %v4358_v43 = vpack.c.bf16 %v9047_v37, %v13556_v59  ;;  %9043 = vst [vmem:[%s16642_s1 + $0xc48] sm:$0xff] %v4342_v35 }
 0x145   :  { %v13731_v39 = vld [vmem:[%s16641_s0 + $0x20d0] sm:$0xff]  ;;  %v4366_v44 = vpack.c.bf16 %v9050_v38, %v13561_v60  ;;  %v9053_v45 = vld [vmem:[%s16641_s0 + $0x1898] sm:$0xff]  ;;  %9046 = vst [vmem:[%s16642_s1 + $0x248] sm:$0xff] %v4350_v42 }
 0x146   :  { %v13736_v40 = vld [vmem:[%s16641_s0 + $0x14d0] sm:$0xff]  ;;  %v9056_v46 = vld [vmem:[%s16641_s0 + $0xc98] sm:$0xff]  ;;  %v4374_v51 = vpack.c.bf16 %v9053_v45, %v13587_v3  ;;  %9049 = vst [vmem:[%s16642_s1 + $0x848] sm:$0xff] %v4358_v43 }
 0x147   :  { %v13741_v41 = vld [vmem:[%s16641_s0 + $0x8d0] sm:$0xff]  ;;  %v9059_v47 = vld [vmem:[%s16641_s0 + $0x98] sm:$0xff]  ;;  %v4382_v52 = vpack.c.bf16 %v9056_v46, %v13592_v4  ;;  %9052 = vst [vmem:[%s16642_s1 + $0xe48] sm:$0xff] %v4366_v44 }
 0x148   :  { %v13767_v48 = vld [vmem:[%s16641_s0 + $0x1cd0] sm:$0xff]  ;;  %v4390_v53 = vpack.c.bf16 %v9059_v47, %v13597_v5  ;;  %v9062_v54 = vld [vmem:[%s16641_s0 + $0x20b8] sm:$0xff]  ;;  %9055 = vst [vmem:[%s16642_s1 + $0x448] sm:$0xff] %v4374_v51 }
 0x149   :  { %v13772_v49 = vld [vmem:[%s16641_s0 + $0x10d0] sm:$0xff]  ;;  %v9065_v55 = vld [vmem:[%s16641_s0 + $0x14b8] sm:$0xff]  ;;  %v4398_v60 = vpack.c.bf16 %v9062_v54, %v13623_v12  ;;  %9058 = vst [vmem:[%s16642_s1 + $0xa48] sm:$0xff] %v4382_v52 }
 0x14a   :  { %v13777_v50 = vld [vmem:[%s16641_s0 + $0x4d0] sm:$0xff]  ;;  %v9068_v56 = vld [vmem:[%s16641_s0 + $0x8b8] sm:$0xff]  ;;  %v4406_v61 = vpack.c.bf16 %v9065_v55, %v13628_v13  ;;  %9061 = vst [vmem:[%s16642_s1 + $0x1048] sm:$0xff] %v4390_v53 }
 0x14b   :  { %v13803_v57 = vld [vmem:[%s16641_s0 + $0x18d0] sm:$0xff]  ;;  %v4414_v62 = vpack.c.bf16 %v9068_v56, %v13633_v14  ;;  %v9071_v63 = vld [vmem:[%s16641_s0 + $0x1cb8] sm:$0xff]  ;;  %9064 = vst [vmem:[%s16642_s1 + $0x58] sm:$0xff] %v4398_v60 }
 0x14c   :  { %v13808_v58 = vld [vmem:[%s16641_s0 + $0xcd0] sm:$0xff]  ;;  %v9074_v0 = vld [vmem:[%s16641_s0 + $0x10b8] sm:$0xff]  ;;  %v4422_v5 = vpack.c.bf16 %v9071_v63, %v13659_v21  ;;  %9067 = vst [vmem:[%s16642_s1 + $0x658] sm:$0xff] %v4406_v61 }
 0x14d   :  { %v13813_v59 = vld [vmem:[%s16641_s0 + $0xd0] sm:$0xff]  ;;  %v9077_v1 = vld [vmem:[%s16641_s0 + $0x4b8] sm:$0xff]  ;;  %v4430_v6 = vpack.c.bf16 %v9074_v0, %v13664_v22  ;;  %9070 = vst [vmem:[%s16642_s1 + $0xc58] sm:$0xff] %v4414_v62 }
 0x14e   :  { %v13839_v2 = vld [vmem:[%s16641_s0 + $0x20f0] sm:$0xff]  ;;  %v4438_v7 = vpack.c.bf16 %v9077_v1, %v13669_v23  ;;  %v9080_v8 = vld [vmem:[%s16641_s0 + $0x18b8] sm:$0xff]  ;;  %9073 = vst [vmem:[%s16642_s1 + $0x258] sm:$0xff] %v4422_v5 }
 0x14f   :  { %v13844_v3 = vld [vmem:[%s16641_s0 + $0x14f0] sm:$0xff]  ;;  %v9083_v9 = vld [vmem:[%s16641_s0 + $0xcb8] sm:$0xff]  ;;  %v4446_v14 = vpack.c.bf16 %v9080_v8, %v13695_v30  ;;  %9076 = vst [vmem:[%s16642_s1 + $0x858] sm:$0xff] %v4430_v6 }
 0x150   :  { %v13849_v4 = vld [vmem:[%s16641_s0 + $0x8f0] sm:$0xff]  ;;  %v9086_v10 = vld [vmem:[%s16641_s0 + $0xb8] sm:$0xff]  ;;  %v4454_v15 = vpack.c.bf16 %v9083_v9, %v13700_v31  ;;  %9079 = vst [vmem:[%s16642_s1 + $0xe58] sm:$0xff] %v4438_v7 }
 0x151   :  { %v13875_v11 = vld [vmem:[%s16641_s0 + $0x1cf0] sm:$0xff]  ;;  %v4462_v16 = vpack.c.bf16 %v9086_v10, %v13705_v32  ;;  %v9089_v17 = vld [vmem:[%s16641_s0 + $0x20d8] sm:$0xff]  ;;  %9082 = vst [vmem:[%s16642_s1 + $0x458] sm:$0xff] %v4446_v14 }
 0x152   :  { %v13880_v12 = vld [vmem:[%s16641_s0 + $0x10f0] sm:$0xff]  ;;  %v9092_v18 = vld [vmem:[%s16641_s0 + $0x14d8] sm:$0xff]  ;;  %v4470_v23 = vpack.c.bf16 %v9089_v17, %v13731_v39  ;;  %9085 = vst [vmem:[%s16642_s1 + $0xa58] sm:$0xff] %v4454_v15 }
 0x153   :  { %v13885_v13 = vld [vmem:[%s16641_s0 + $0x4f0] sm:$0xff]  ;;  %v9095_v19 = vld [vmem:[%s16641_s0 + $0x8d8] sm:$0xff]  ;;  %v4478_v24 = vpack.c.bf16 %v9092_v18, %v13736_v40  ;;  %9088 = vst [vmem:[%s16642_s1 + $0x1058] sm:$0xff] %v4462_v16 }
 0x154   :  { %v13911_v20 = vld [vmem:[%s16641_s0 + $0x18f0] sm:$0xff]  ;;  %v4486_v25 = vpack.c.bf16 %v9095_v19, %v13741_v41  ;;  %v9098_v26 = vld [vmem:[%s16641_s0 + $0x1cd8] sm:$0xff]  ;;  %9091 = vst [vmem:[%s16642_s1 + $0x68] sm:$0xff] %v4470_v23 }
 0x155   :  { %v13916_v21 = vld [vmem:[%s16641_s0 + $0xcf0] sm:$0xff]  ;;  %v9101_v27 = vld [vmem:[%s16641_s0 + $0x10d8] sm:$0xff]  ;;  %v4494_v32 = vpack.c.bf16 %v9098_v26, %v13767_v48  ;;  %9094 = vst [vmem:[%s16642_s1 + $0x668] sm:$0xff] %v4478_v24 }
 0x156   :  { %v13921_v22 = vld [vmem:[%s16641_s0 + $0xf0] sm:$0xff]  ;;  %v9104_v28 = vld [vmem:[%s16641_s0 + $0x4d8] sm:$0xff]  ;;  %v4502_v33 = vpack.c.bf16 %v9101_v27, %v13772_v49  ;;  %9097 = vst [vmem:[%s16642_s1 + $0xc68] sm:$0xff] %v4486_v25 }
 0x157   :  { %v13947_v29 = vld [vmem:[%s16641_s0 + $0x2110] sm:$0xff]  ;;  %v4510_v34 = vpack.c.bf16 %v9104_v28, %v13777_v50  ;;  %v9107_v35 = vld [vmem:[%s16641_s0 + $0x18d8] sm:$0xff]  ;;  %9100 = vst [vmem:[%s16642_s1 + $0x268] sm:$0xff] %v4494_v32 }
 0x158   :  { %v13952_v30 = vld [vmem:[%s16641_s0 + $0x1510] sm:$0xff]  ;;  %v9110_v36 = vld [vmem:[%s16641_s0 + $0xcd8] sm:$0xff]  ;;  %v4518_v41 = vpack.c.bf16 %v9107_v35, %v13803_v57  ;;  %9103 = vst [vmem:[%s16642_s1 + $0x868] sm:$0xff] %v4502_v33 }
 0x159   :  { %v13957_v31 = vld [vmem:[%s16641_s0 + $0x910] sm:$0xff]  ;;  %v9113_v37 = vld [vmem:[%s16641_s0 + $0xd8] sm:$0xff]  ;;  %v4526_v42 = vpack.c.bf16 %v9110_v36, %v13808_v58  ;;  %9106 = vst [vmem:[%s16642_s1 + $0xe68] sm:$0xff] %v4510_v34 }
 0x15a   :  { %v13983_v38 = vld [vmem:[%s16641_s0 + $0x1d10] sm:$0xff]  ;;  %v4534_v43 = vpack.c.bf16 %v9113_v37, %v13813_v59  ;;  %v9116_v44 = vld [vmem:[%s16641_s0 + $0x20f8] sm:$0xff]  ;;  %9109 = vst [vmem:[%s16642_s1 + $0x468] sm:$0xff] %v4518_v41 }
 0x15b   :  { %v13988_v39 = vld [vmem:[%s16641_s0 + $0x1110] sm:$0xff]  ;;  %v9119_v45 = vld [vmem:[%s16641_s0 + $0x14f8] sm:$0xff]  ;;  %v4542_v50 = vpack.c.bf16 %v9116_v44, %v13839_v2  ;;  %9112 = vst [vmem:[%s16642_s1 + $0xa68] sm:$0xff] %v4526_v42 }
 0x15c   :  { %v13993_v40 = vld [vmem:[%s16641_s0 + $0x510] sm:$0xff]  ;;  %v9122_v46 = vld [vmem:[%s16641_s0 + $0x8f8] sm:$0xff]  ;;  %v4550_v51 = vpack.c.bf16 %v9119_v45, %v13844_v3  ;;  %9115 = vst [vmem:[%s16642_s1 + $0x1068] sm:$0xff] %v4534_v43 }
 0x15d   :  { %v14019_v47 = vld [vmem:[%s16641_s0 + $0x1910] sm:$0xff]  ;;  %v4558_v52 = vpack.c.bf16 %v9122_v46, %v13849_v4  ;;  %v9125_v53 = vld [vmem:[%s16641_s0 + $0x1cf8] sm:$0xff]  ;;  %9118 = vst [vmem:[%s16642_s1 + $0x78] sm:$0xff] %v4542_v50 }
 0x15e   :  { %v14024_v48 = vld [vmem:[%s16641_s0 + $0xd10] sm:$0xff]  ;;  %v9128_v54 = vld [vmem:[%s16641_s0 + $0x10f8] sm:$0xff]  ;;  %v4566_v59 = vpack.c.bf16 %v9125_v53, %v13875_v11  ;;  %9121 = vst [vmem:[%s16642_s1 + $0x678] sm:$0xff] %v4550_v51 }
 0x15f   :  { %v14029_v49 = vld [vmem:[%s16641_s0 + $0x110] sm:$0xff]  ;;  %v9131_v55 = vld [vmem:[%s16641_s0 + $0x4f8] sm:$0xff]  ;;  %v4574_v60 = vpack.c.bf16 %v9128_v54, %v13880_v12  ;;  %9124 = vst [vmem:[%s16642_s1 + $0xc78] sm:$0xff] %v4558_v52 }
 0x160   :  { %v14055_v56 = vld [vmem:[%s16641_s0 + $0x2130] sm:$0xff]  ;;  %v4582_v61 = vpack.c.bf16 %v9131_v55, %v13885_v13  ;;  %v9134_v62 = vld [vmem:[%s16641_s0 + $0x18f8] sm:$0xff]  ;;  %9127 = vst [vmem:[%s16642_s1 + $0x278] sm:$0xff] %v4566_v59 }
 0x161   :  { %v14060_v57 = vld [vmem:[%s16641_s0 + $0x1530] sm:$0xff]  ;;  %v9137_v63 = vld [vmem:[%s16641_s0 + $0xcf8] sm:$0xff]  ;;  %v4590_v4 = vpack.c.bf16 %v9134_v62, %v13911_v20  ;;  %9130 = vst [vmem:[%s16642_s1 + $0x878] sm:$0xff] %v4574_v60 }
 0x162   :  { %v14065_v58 = vld [vmem:[%s16641_s0 + $0x930] sm:$0xff]  ;;  %v9140_v0 = vld [vmem:[%s16641_s0 + $0xf8] sm:$0xff]  ;;  %v4598_v5 = vpack.c.bf16 %v9137_v63, %v13916_v21  ;;  %9133 = vst [vmem:[%s16642_s1 + $0xe78] sm:$0xff] %v4582_v61 }
 0x163   :  { %v14091_v1 = vld [vmem:[%s16641_s0 + $0x1d30] sm:$0xff]  ;;  %v4606_v6 = vpack.c.bf16 %v9140_v0, %v13921_v22  ;;  %v9143_v7 = vld [vmem:[%s16641_s0 + $0x2118] sm:$0xff]  ;;  %9136 = vst [vmem:[%s16642_s1 + $0x478] sm:$0xff] %v4590_v4 }
 0x164   :  { %v14096_v2 = vld [vmem:[%s16641_s0 + $0x1130] sm:$0xff]  ;;  %v9146_v8 = vld [vmem:[%s16641_s0 + $0x1518] sm:$0xff]  ;;  %v4614_v13 = vpack.c.bf16 %v9143_v7, %v13947_v29  ;;  %9139 = vst [vmem:[%s16642_s1 + $0xa78] sm:$0xff] %v4598_v5 }
 0x165   :  { %v14101_v3 = vld [vmem:[%s16641_s0 + $0x530] sm:$0xff]  ;;  %v9149_v9 = vld [vmem:[%s16641_s0 + $0x918] sm:$0xff]  ;;  %v4622_v14 = vpack.c.bf16 %v9146_v8, %v13952_v30  ;;  %9142 = vst [vmem:[%s16642_s1 + $0x1078] sm:$0xff] %v4606_v6 }
 0x166   :  { %v14127_v10 = vld [vmem:[%s16641_s0 + $0x1930] sm:$0xff]  ;;  %v4630_v15 = vpack.c.bf16 %v9149_v9, %v13957_v31  ;;  %v9152_v16 = vld [vmem:[%s16641_s0 + $0x1d18] sm:$0xff]  ;;  %9145 = vst [vmem:[%s16642_s1 + $0x88] sm:$0xff] %v4614_v13 }
 0x167   :  { %v14132_v11 = vld [vmem:[%s16641_s0 + $0xd30] sm:$0xff]  ;;  %v9155_v17 = vld [vmem:[%s16641_s0 + $0x1118] sm:$0xff]  ;;  %v4638_v22 = vpack.c.bf16 %v9152_v16, %v13983_v38  ;;  %9148 = vst [vmem:[%s16642_s1 + $0x688] sm:$0xff] %v4622_v14 }
 0x168   :  { %v14137_v12 = vld [vmem:[%s16641_s0 + $0x130] sm:$0xff]  ;;  %v9158_v18 = vld [vmem:[%s16641_s0 + $0x518] sm:$0xff]  ;;  %v4646_v23 = vpack.c.bf16 %v9155_v17, %v13988_v39  ;;  %9151 = vst [vmem:[%s16642_s1 + $0xc88] sm:$0xff] %v4630_v15 }
 0x169   :  { %v14163_v19 = vld [vmem:[%s16641_s0 + $0x2150] sm:$0xff]  ;;  %v4654_v24 = vpack.c.bf16 %v9158_v18, %v13993_v40  ;;  %v9161_v25 = vld [vmem:[%s16641_s0 + $0x1918] sm:$0xff]  ;;  %9154 = vst [vmem:[%s16642_s1 + $0x288] sm:$0xff] %v4638_v22 }
 0x16a   :  { %v14168_v20 = vld [vmem:[%s16641_s0 + $0x1550] sm:$0xff]  ;;  %v9164_v26 = vld [vmem:[%s16641_s0 + $0xd18] sm:$0xff]  ;;  %v4662_v31 = vpack.c.bf16 %v9161_v25, %v14019_v47  ;;  %9157 = vst [vmem:[%s16642_s1 + $0x888] sm:$0xff] %v4646_v23 }
 0x16b   :  { %v14173_v21 = vld [vmem:[%s16641_s0 + $0x950] sm:$0xff]  ;;  %v9167_v27 = vld [vmem:[%s16641_s0 + $0x118] sm:$0xff]  ;;  %v4670_v32 = vpack.c.bf16 %v9164_v26, %v14024_v48  ;;  %9160 = vst [vmem:[%s16642_s1 + $0xe88] sm:$0xff] %v4654_v24 }
 0x16c   :  { %v14199_v28 = vld [vmem:[%s16641_s0 + $0x1d50] sm:$0xff]  ;;  %v4678_v33 = vpack.c.bf16 %v9167_v27, %v14029_v49  ;;  %v9170_v34 = vld [vmem:[%s16641_s0 + $0x2138] sm:$0xff]  ;;  %9163 = vst [vmem:[%s16642_s1 + $0x488] sm:$0xff] %v4662_v31 }
 0x16d   :  { %v14204_v29 = vld [vmem:[%s16641_s0 + $0x1150] sm:$0xff]  ;;  %v9173_v35 = vld [vmem:[%s16641_s0 + $0x1538] sm:$0xff]  ;;  %v4686_v40 = vpack.c.bf16 %v9170_v34, %v14055_v56  ;;  %9166 = vst [vmem:[%s16642_s1 + $0xa88] sm:$0xff] %v4670_v32 }
 0x16e   :  { %v14209_v30 = vld [vmem:[%s16641_s0 + $0x550] sm:$0xff]  ;;  %v9176_v36 = vld [vmem:[%s16641_s0 + $0x938] sm:$0xff]  ;;  %v4694_v41 = vpack.c.bf16 %v9173_v35, %v14060_v57  ;;  %9169 = vst [vmem:[%s16642_s1 + $0x1088] sm:$0xff] %v4678_v33 }
 0x16f   :  { %v14235_v37 = vld [vmem:[%s16641_s0 + $0x1950] sm:$0xff]  ;;  %v4702_v42 = vpack.c.bf16 %v9176_v36, %v14065_v58  ;;  %v9179_v43 = vld [vmem:[%s16641_s0 + $0x1d38] sm:$0xff]  ;;  %9172 = vst [vmem:[%s16642_s1 + $0x98] sm:$0xff] %v4686_v40 }
 0x170   :  { %v14240_v38 = vld [vmem:[%s16641_s0 + $0xd50] sm:$0xff]  ;;  %v9182_v44 = vld [vmem:[%s16641_s0 + $0x1138] sm:$0xff]  ;;  %v4710_v49 = vpack.c.bf16 %v9179_v43, %v14091_v1  ;;  %9175 = vst [vmem:[%s16642_s1 + $0x698] sm:$0xff] %v4694_v41 }
 0x171   :  { %v14245_v39 = vld [vmem:[%s16641_s0 + $0x150] sm:$0xff]  ;;  %v9185_v45 = vld [vmem:[%s16641_s0 + $0x538] sm:$0xff]  ;;  %v4718_v50 = vpack.c.bf16 %v9182_v44, %v14096_v2  ;;  %9178 = vst [vmem:[%s16642_s1 + $0xc98] sm:$0xff] %v4702_v42 }
 0x172   :  { %v14271_v46 = vld [vmem:[%s16641_s0 + $0x2170] sm:$0xff]  ;;  %v4726_v51 = vpack.c.bf16 %v9185_v45, %v14101_v3  ;;  %v9188_v52 = vld [vmem:[%s16641_s0 + $0x1938] sm:$0xff]  ;;  %9181 = vst [vmem:[%s16642_s1 + $0x298] sm:$0xff] %v4710_v49 }
 0x173   :  { %v14276_v47 = vld [vmem:[%s16641_s0 + $0x1570] sm:$0xff]  ;;  %v9191_v53 = vld [vmem:[%s16641_s0 + $0xd38] sm:$0xff]  ;;  %v4734_v58 = vpack.c.bf16 %v9188_v52, %v14127_v10  ;;  %9184 = vst [vmem:[%s16642_s1 + $0x898] sm:$0xff] %v4718_v50 }
 0x174   :  { %v14281_v48 = vld [vmem:[%s16641_s0 + $0x970] sm:$0xff]  ;;  %v9194_v54 = vld [vmem:[%s16641_s0 + $0x138] sm:$0xff]  ;;  %v4742_v59 = vpack.c.bf16 %v9191_v53, %v14132_v11  ;;  %9187 = vst [vmem:[%s16642_s1 + $0xe98] sm:$0xff] %v4726_v51 }
 0x175   :  { %v14307_v55 = vld [vmem:[%s16641_s0 + $0x1d70] sm:$0xff]  ;;  %v4750_v60 = vpack.c.bf16 %v9194_v54, %v14137_v12  ;;  %v9197_v61 = vld [vmem:[%s16641_s0 + $0x2158] sm:$0xff]  ;;  %9190 = vst [vmem:[%s16642_s1 + $0x498] sm:$0xff] %v4734_v58 }
 0x176   :  { %v14312_v56 = vld [vmem:[%s16641_s0 + $0x1170] sm:$0xff]  ;;  %v9200_v62 = vld [vmem:[%s16641_s0 + $0x1558] sm:$0xff]  ;;  %v4758_v3 = vpack.c.bf16 %v9197_v61, %v14163_v19  ;;  %9193 = vst [vmem:[%s16642_s1 + $0xa98] sm:$0xff] %v4742_v59 }
 0x177   :  { %v14317_v57 = vld [vmem:[%s16641_s0 + $0x570] sm:$0xff]  ;;  %v9203_v63 = vld [vmem:[%s16641_s0 + $0x958] sm:$0xff]  ;;  %v4766_v4 = vpack.c.bf16 %v9200_v62, %v14168_v20  ;;  %9196 = vst [vmem:[%s16642_s1 + $0x1098] sm:$0xff] %v4750_v60 }
 0x178   :  { %v14343_v0 = vld [vmem:[%s16641_s0 + $0x1970] sm:$0xff]  ;;  %v4774_v5 = vpack.c.bf16 %v9203_v63, %v14173_v21  ;;  %v9206_v6 = vld [vmem:[%s16641_s0 + $0x1d58] sm:$0xff]  ;;  %9199 = vst [vmem:[%s16642_s1 + $0xa8] sm:$0xff] %v4758_v3 }
 0x179   :  { %v14348_v1 = vld [vmem:[%s16641_s0 + $0xd70] sm:$0xff]  ;;  %v9209_v7 = vld [vmem:[%s16641_s0 + $0x1158] sm:$0xff]  ;;  %v4782_v12 = vpack.c.bf16 %v9206_v6, %v14199_v28  ;;  %9202 = vst [vmem:[%s16642_s1 + $0x6a8] sm:$0xff] %v4766_v4 }
 0x17a   :  { %v14353_v2 = vld [vmem:[%s16641_s0 + $0x170] sm:$0xff]  ;;  %v9212_v8 = vld [vmem:[%s16641_s0 + $0x558] sm:$0xff]  ;;  %v4790_v13 = vpack.c.bf16 %v9209_v7, %v14204_v29  ;;  %9205 = vst [vmem:[%s16642_s1 + $0xca8] sm:$0xff] %v4774_v5 }
 0x17b   :  { %v14379_v9 = vld [vmem:[%s16641_s0 + $0x2190] sm:$0xff]  ;;  %v4798_v14 = vpack.c.bf16 %v9212_v8, %v14209_v30  ;;  %v9215_v15 = vld [vmem:[%s16641_s0 + $0x1958] sm:$0xff]  ;;  %9208 = vst [vmem:[%s16642_s1 + $0x2a8] sm:$0xff] %v4782_v12 }
 0x17c   :  { %v14384_v10 = vld [vmem:[%s16641_s0 + $0x1590] sm:$0xff]  ;;  %v9218_v16 = vld [vmem:[%s16641_s0 + $0xd58] sm:$0xff]  ;;  %v4806_v21 = vpack.c.bf16 %v9215_v15, %v14235_v37  ;;  %9211 = vst [vmem:[%s16642_s1 + $0x8a8] sm:$0xff] %v4790_v13 }
 0x17d   :  { %v14389_v11 = vld [vmem:[%s16641_s0 + $0x990] sm:$0xff]  ;;  %v9221_v17 = vld [vmem:[%s16641_s0 + $0x158] sm:$0xff]  ;;  %v4814_v22 = vpack.c.bf16 %v9218_v16, %v14240_v38  ;;  %9214 = vst [vmem:[%s16642_s1 + $0xea8] sm:$0xff] %v4798_v14 }
 0x17e   :  { %v14415_v18 = vld [vmem:[%s16641_s0 + $0x1d90] sm:$0xff]  ;;  %v4822_v23 = vpack.c.bf16 %v9221_v17, %v14245_v39  ;;  %v9224_v24 = vld [vmem:[%s16641_s0 + $0x2178] sm:$0xff]  ;;  %9217 = vst [vmem:[%s16642_s1 + $0x4a8] sm:$0xff] %v4806_v21 }
 0x17f   :  { %v14420_v19 = vld [vmem:[%s16641_s0 + $0x1190] sm:$0xff]  ;;  %v9227_v25 = vld [vmem:[%s16641_s0 + $0x1578] sm:$0xff]  ;;  %v4830_v30 = vpack.c.bf16 %v9224_v24, %v14271_v46  ;;  %9220 = vst [vmem:[%s16642_s1 + $0xaa8] sm:$0xff] %v4814_v22 }
 0x180   :  { %v14425_v20 = vld [vmem:[%s16641_s0 + $0x590] sm:$0xff]  ;;  %v9230_v26 = vld [vmem:[%s16641_s0 + $0x978] sm:$0xff]  ;;  %v4838_v31 = vpack.c.bf16 %v9227_v25, %v14276_v47  ;;  %9223 = vst [vmem:[%s16642_s1 + $0x10a8] sm:$0xff] %v4822_v23 }
 0x181   :  { %v14451_v27 = vld [vmem:[%s16641_s0 + $0x1990] sm:$0xff]  ;;  %v4846_v32 = vpack.c.bf16 %v9230_v26, %v14281_v48  ;;  %v9233_v33 = vld [vmem:[%s16641_s0 + $0x1d78] sm:$0xff]  ;;  %9226 = vst [vmem:[%s16642_s1 + $0xb8] sm:$0xff] %v4830_v30 }
 0x182   :  { %v14456_v28 = vld [vmem:[%s16641_s0 + $0xd90] sm:$0xff]  ;;  %v9236_v34 = vld [vmem:[%s16641_s0 + $0x1178] sm:$0xff]  ;;  %v4854_v39 = vpack.c.bf16 %v9233_v33, %v14307_v55  ;;  %9229 = vst [vmem:[%s16642_s1 + $0x6b8] sm:$0xff] %v4838_v31 }
 0x183   :  { %v14461_v29 = vld [vmem:[%s16641_s0 + $0x190] sm:$0xff]  ;;  %v9239_v35 = vld [vmem:[%s16641_s0 + $0x578] sm:$0xff]  ;;  %v4862_v40 = vpack.c.bf16 %v9236_v34, %v14312_v56  ;;  %9232 = vst [vmem:[%s16642_s1 + $0xcb8] sm:$0xff] %v4846_v32 }
 0x184   :  { %v14487_v36 = vld [vmem:[%s16641_s0 + $0x21b0] sm:$0xff]  ;;  %v4870_v41 = vpack.c.bf16 %v9239_v35, %v14317_v57  ;;  %v9242_v42 = vld [vmem:[%s16641_s0 + $0x1978] sm:$0xff]  ;;  %9235 = vst [vmem:[%s16642_s1 + $0x2b8] sm:$0xff] %v4854_v39 }
 0x185   :  { %v14492_v37 = vld [vmem:[%s16641_s0 + $0x15b0] sm:$0xff]  ;;  %v9245_v43 = vld [vmem:[%s16641_s0 + $0xd78] sm:$0xff]  ;;  %v4878_v48 = vpack.c.bf16 %v9242_v42, %v14343_v0  ;;  %9238 = vst [vmem:[%s16642_s1 + $0x8b8] sm:$0xff] %v4862_v40 }
 0x186   :  { %v14497_v38 = vld [vmem:[%s16641_s0 + $0x9b0] sm:$0xff]  ;;  %v9248_v44 = vld [vmem:[%s16641_s0 + $0x178] sm:$0xff]  ;;  %v4886_v49 = vpack.c.bf16 %v9245_v43, %v14348_v1  ;;  %9241 = vst [vmem:[%s16642_s1 + $0xeb8] sm:$0xff] %v4870_v41 }
 0x187   :  { %v14523_v45 = vld [vmem:[%s16641_s0 + $0x1db0] sm:$0xff]  ;;  %v4894_v50 = vpack.c.bf16 %v9248_v44, %v14353_v2  ;;  %v9251_v51 = vld [vmem:[%s16641_s0 + $0x2198] sm:$0xff]  ;;  %9244 = vst [vmem:[%s16642_s1 + $0x4b8] sm:$0xff] %v4878_v48 }
 0x188   :  { %v14528_v46 = vld [vmem:[%s16641_s0 + $0x11b0] sm:$0xff]  ;;  %v9254_v52 = vld [vmem:[%s16641_s0 + $0x1598] sm:$0xff]  ;;  %v4902_v57 = vpack.c.bf16 %v9251_v51, %v14379_v9  ;;  %9247 = vst [vmem:[%s16642_s1 + $0xab8] sm:$0xff] %v4886_v49 }
 0x189   :  { %v14533_v47 = vld [vmem:[%s16641_s0 + $0x5b0] sm:$0xff]  ;;  %v9257_v53 = vld [vmem:[%s16641_s0 + $0x998] sm:$0xff]  ;;  %v4910_v58 = vpack.c.bf16 %v9254_v52, %v14384_v10  ;;  %9250 = vst [vmem:[%s16642_s1 + $0x10b8] sm:$0xff] %v4894_v50 }
 0x18a   :  { %v14559_v54 = vld [vmem:[%s16641_s0 + $0x19b0] sm:$0xff]  ;;  %v4918_v59 = vpack.c.bf16 %v9257_v53, %v14389_v11  ;;  %v9260_v60 = vld [vmem:[%s16641_s0 + $0x1d98] sm:$0xff]  ;;  %9253 = vst [vmem:[%s16642_s1 + $0xc8] sm:$0xff] %v4902_v57 }
 0x18b   :  { %v14564_v55 = vld [vmem:[%s16641_s0 + $0xdb0] sm:$0xff]  ;;  %v9263_v61 = vld [vmem:[%s16641_s0 + $0x1198] sm:$0xff]  ;;  %v4926_v2 = vpack.c.bf16 %v9260_v60, %v14415_v18  ;;  %9256 = vst [vmem:[%s16642_s1 + $0x6c8] sm:$0xff] %v4910_v58 }
 0x18c   :  { %v14569_v56 = vld [vmem:[%s16641_s0 + $0x1b0] sm:$0xff]  ;;  %v9266_v62 = vld [vmem:[%s16641_s0 + $0x598] sm:$0xff]  ;;  %v4934_v3 = vpack.c.bf16 %v9263_v61, %v14420_v19  ;;  %9259 = vst [vmem:[%s16642_s1 + $0xcc8] sm:$0xff] %v4918_v59 }
 0x18d   :  { %v14595_v63 = vld [vmem:[%s16641_s0 + $0x21d0] sm:$0xff]  ;;  %v4942_v4 = vpack.c.bf16 %v9266_v62, %v14425_v20  ;;  %v9269_v5 = vld [vmem:[%s16641_s0 + $0x1998] sm:$0xff]  ;;  %9262 = vst [vmem:[%s16642_s1 + $0x2c8] sm:$0xff] %v4926_v2 }
 0x18e   :  { %v14600_v0 = vld [vmem:[%s16641_s0 + $0x15d0] sm:$0xff]  ;;  %v9272_v6 = vld [vmem:[%s16641_s0 + $0xd98] sm:$0xff]  ;;  %v4950_v11 = vpack.c.bf16 %v9269_v5, %v14451_v27  ;;  %9265 = vst [vmem:[%s16642_s1 + $0x8c8] sm:$0xff] %v4934_v3 }
 0x18f   :  { %v14605_v1 = vld [vmem:[%s16641_s0 + $0x9d0] sm:$0xff]  ;;  %v9275_v7 = vld [vmem:[%s16641_s0 + $0x198] sm:$0xff]  ;;  %v4958_v12 = vpack.c.bf16 %v9272_v6, %v14456_v28  ;;  %9268 = vst [vmem:[%s16642_s1 + $0xec8] sm:$0xff] %v4942_v4 }
 0x190   :  { %v14631_v8 = vld [vmem:[%s16641_s0 + $0x1dd0] sm:$0xff]  ;;  %v4966_v13 = vpack.c.bf16 %v9275_v7, %v14461_v29  ;;  %v9278_v14 = vld [vmem:[%s16641_s0 + $0x21b8] sm:$0xff]  ;;  %9271 = vst [vmem:[%s16642_s1 + $0x4c8] sm:$0xff] %v4950_v11 }
 0x191   :  { %v14636_v9 = vld [vmem:[%s16641_s0 + $0x11d0] sm:$0xff]  ;;  %v9281_v15 = vld [vmem:[%s16641_s0 + $0x15b8] sm:$0xff]  ;;  %v4974_v20 = vpack.c.bf16 %v9278_v14, %v14487_v36  ;;  %9274 = vst [vmem:[%s16642_s1 + $0xac8] sm:$0xff] %v4958_v12 }
 0x192   :  { %v14641_v10 = vld [vmem:[%s16641_s0 + $0x5d0] sm:$0xff]  ;;  %v9284_v16 = vld [vmem:[%s16641_s0 + $0x9b8] sm:$0xff]  ;;  %v4982_v21 = vpack.c.bf16 %v9281_v15, %v14492_v37  ;;  %9277 = vst [vmem:[%s16642_s1 + $0x10c8] sm:$0xff] %v4966_v13 }
 0x193   :  { %v14667_v17 = vld [vmem:[%s16641_s0 + $0x19d0] sm:$0xff]  ;;  %v4990_v22 = vpack.c.bf16 %v9284_v16, %v14497_v38  ;;  %v9287_v23 = vld [vmem:[%s16641_s0 + $0x1db8] sm:$0xff]  ;;  %9280 = vst [vmem:[%s16642_s1 + $0xd8] sm:$0xff] %v4974_v20 }
 0x194   :  { %v14672_v18 = vld [vmem:[%s16641_s0 + $0xdd0] sm:$0xff]  ;;  %v9290_v24 = vld [vmem:[%s16641_s0 + $0x11b8] sm:$0xff]  ;;  %v4998_v29 = vpack.c.bf16 %v9287_v23, %v14523_v45  ;;  %9283 = vst [vmem:[%s16642_s1 + $0x6d8] sm:$0xff] %v4982_v21 }
 0x195   :  { %v14677_v19 = vld [vmem:[%s16641_s0 + $0x1d0] sm:$0xff]  ;;  %v9293_v25 = vld [vmem:[%s16641_s0 + $0x5b8] sm:$0xff]  ;;  %v5006_v30 = vpack.c.bf16 %v9290_v24, %v14528_v46  ;;  %9286 = vst [vmem:[%s16642_s1 + $0xcd8] sm:$0xff] %v4990_v22 }
 0x196   :  { %v14703_v26 = vld [vmem:[%s16641_s0 + $0x21f0] sm:$0xff]  ;;  %v5014_v31 = vpack.c.bf16 %v9293_v25, %v14533_v47  ;;  %v9296_v32 = vld [vmem:[%s16641_s0 + $0x19b8] sm:$0xff]  ;;  %9289 = vst [vmem:[%s16642_s1 + $0x2d8] sm:$0xff] %v4998_v29 }
 0x197   :  { %v14708_v27 = vld [vmem:[%s16641_s0 + $0x15f0] sm:$0xff]  ;;  %v9299_v33 = vld [vmem:[%s16641_s0 + $0xdb8] sm:$0xff]  ;;  %v5022_v38 = vpack.c.bf16 %v9296_v32, %v14559_v54  ;;  %9292 = vst [vmem:[%s16642_s1 + $0x8d8] sm:$0xff] %v5006_v30 }
 0x198   :  { %v14713_v28 = vld [vmem:[%s16641_s0 + $0x9f0] sm:$0xff]  ;;  %v9302_v34 = vld [vmem:[%s16641_s0 + $0x1b8] sm:$0xff]  ;;  %v5030_v39 = vpack.c.bf16 %v9299_v33, %v14564_v55  ;;  %9295 = vst [vmem:[%s16642_s1 + $0xed8] sm:$0xff] %v5014_v31 }
 0x199   :  { %v14739_v35 = vld [vmem:[%s16641_s0 + $0x1df0] sm:$0xff]  ;;  %v5038_v40 = vpack.c.bf16 %v9302_v34, %v14569_v56  ;;  %v9305_v41 = vld [vmem:[%s16641_s0 + $0x21d8] sm:$0xff]  ;;  %9298 = vst [vmem:[%s16642_s1 + $0x4d8] sm:$0xff] %v5022_v38 }
 0x19a   :  { %v14744_v36 = vld [vmem:[%s16641_s0 + $0x11f0] sm:$0xff]  ;;  %v9308_v42 = vld [vmem:[%s16641_s0 + $0x15d8] sm:$0xff]  ;;  %v5046_v47 = vpack.c.bf16 %v9305_v41, %v14595_v63  ;;  %9301 = vst [vmem:[%s16642_s1 + $0xad8] sm:$0xff] %v5030_v39 }
 0x19b   :  { %v14749_v37 = vld [vmem:[%s16641_s0 + $0x5f0] sm:$0xff]  ;;  %v9311_v43 = vld [vmem:[%s16641_s0 + $0x9d8] sm:$0xff]  ;;  %v5054_v48 = vpack.c.bf16 %v9308_v42, %v14600_v0  ;;  %9304 = vst [vmem:[%s16642_s1 + $0x10d8] sm:$0xff] %v5038_v40 }
 0x19c   :  { %v14775_v44 = vld [vmem:[%s16641_s0 + $0x19f0] sm:$0xff]  ;;  %v5062_v49 = vpack.c.bf16 %v9311_v43, %v14605_v1  ;;  %v9314_v50 = vld [vmem:[%s16641_s0 + $0x1dd8] sm:$0xff]  ;;  %9307 = vst [vmem:[%s16642_s1 + $0xe8] sm:$0xff] %v5046_v47 }
 0x19d   :  { %v14780_v45 = vld [vmem:[%s16641_s0 + $0xdf0] sm:$0xff]  ;;  %v9317_v51 = vld [vmem:[%s16641_s0 + $0x11d8] sm:$0xff]  ;;  %v5070_v56 = vpack.c.bf16 %v9314_v50, %v14631_v8  ;;  %9310 = vst [vmem:[%s16642_s1 + $0x6e8] sm:$0xff] %v5054_v48 }
 0x19e   :  { %v14785_v46 = vld [vmem:[%s16641_s0 + $0x1f0] sm:$0xff]  ;;  %v9320_v52 = vld [vmem:[%s16641_s0 + $0x5d8] sm:$0xff]  ;;  %v5078_v57 = vpack.c.bf16 %v9317_v51, %v14636_v9  ;;  %9313 = vst [vmem:[%s16642_s1 + $0xce8] sm:$0xff] %v5062_v49 }
 0x19f   :  { %v14811_v53 = vld [vmem:[%s16641_s0 + $0x2210] sm:$0xff]  ;;  %v5086_v58 = vpack.c.bf16 %v9320_v52, %v14641_v10  ;;  %v9323_v59 = vld [vmem:[%s16641_s0 + $0x19d8] sm:$0xff]  ;;  %9316 = vst [vmem:[%s16642_s1 + $0x2e8] sm:$0xff] %v5070_v56 }
 0x1a0   :  { %v14816_v54 = vld [vmem:[%s16641_s0 + $0x1610] sm:$0xff]  ;;  %v9326_v60 = vld [vmem:[%s16641_s0 + $0xdd8] sm:$0xff]  ;;  %v5094_v1 = vpack.c.bf16 %v9323_v59, %v14667_v17  ;;  %9319 = vst [vmem:[%s16642_s1 + $0x8e8] sm:$0xff] %v5078_v57 }
 0x1a1   :  { %v14821_v55 = vld [vmem:[%s16641_s0 + $0xa10] sm:$0xff]  ;;  %v9329_v61 = vld [vmem:[%s16641_s0 + $0x1d8] sm:$0xff]  ;;  %v5102_v2 = vpack.c.bf16 %v9326_v60, %v14672_v18  ;;  %9322 = vst [vmem:[%s16642_s1 + $0xee8] sm:$0xff] %v5086_v58 }
 0x1a2   :  { %v14847_v62 = vld [vmem:[%s16641_s0 + $0x1e10] sm:$0xff]  ;;  %v5110_v3 = vpack.c.bf16 %v9329_v61, %v14677_v19  ;;  %v9332_v4 = vld [vmem:[%s16641_s0 + $0x21f8] sm:$0xff]  ;;  %9325 = vst [vmem:[%s16642_s1 + $0x4e8] sm:$0xff] %v5094_v1 }
 0x1a3   :  { %v14852_v63 = vld [vmem:[%s16641_s0 + $0x1210] sm:$0xff]  ;;  %v9335_v5 = vld [vmem:[%s16641_s0 + $0x15f8] sm:$0xff]  ;;  %v5118_v10 = vpack.c.bf16 %v9332_v4, %v14703_v26  ;;  %9328 = vst [vmem:[%s16642_s1 + $0xae8] sm:$0xff] %v5102_v2 }
 0x1a4   :  { %v14857_v0 = vld [vmem:[%s16641_s0 + $0x610] sm:$0xff]  ;;  %v9338_v6 = vld [vmem:[%s16641_s0 + $0x9f8] sm:$0xff]  ;;  %v5126_v11 = vpack.c.bf16 %v9335_v5, %v14708_v27  ;;  %9331 = vst [vmem:[%s16642_s1 + $0x10e8] sm:$0xff] %v5110_v3 }
 0x1a5   :  { %v14883_v7 = vld [vmem:[%s16641_s0 + $0x1a10] sm:$0xff]  ;;  %v5134_v12 = vpack.c.bf16 %v9338_v6, %v14713_v28  ;;  %v9341_v13 = vld [vmem:[%s16641_s0 + $0x1df8] sm:$0xff]  ;;  %9334 = vst [vmem:[%s16642_s1 + $0xf8] sm:$0xff] %v5118_v10 }
 0x1a6   :  { %v14888_v8 = vld [vmem:[%s16641_s0 + $0xe10] sm:$0xff]  ;;  %v9344_v14 = vld [vmem:[%s16641_s0 + $0x11f8] sm:$0xff]  ;;  %v5142_v19 = vpack.c.bf16 %v9341_v13, %v14739_v35  ;;  %9337 = vst [vmem:[%s16642_s1 + $0x6f8] sm:$0xff] %v5126_v11 }
 0x1a7   :  { %v14893_v9 = vld [vmem:[%s16641_s0 + $0x210] sm:$0xff]  ;;  %v9347_v15 = vld [vmem:[%s16641_s0 + $0x5f8] sm:$0xff]  ;;  %v5150_v20 = vpack.c.bf16 %v9344_v14, %v14744_v36  ;;  %9340 = vst [vmem:[%s16642_s1 + $0xcf8] sm:$0xff] %v5134_v12 }
 0x1a8   :  { %v14919_v16 = vld [vmem:[%s16641_s0 + $0x2230] sm:$0xff]  ;;  %v5158_v21 = vpack.c.bf16 %v9347_v15, %v14749_v37  ;;  %v9350_v22 = vld [vmem:[%s16641_s0 + $0x19f8] sm:$0xff]  ;;  %9343 = vst [vmem:[%s16642_s1 + $0x2f8] sm:$0xff] %v5142_v19 }
 0x1a9   :  { %v14924_v17 = vld [vmem:[%s16641_s0 + $0x1630] sm:$0xff]  ;;  %v9353_v23 = vld [vmem:[%s16641_s0 + $0xdf8] sm:$0xff]  ;;  %v5166_v28 = vpack.c.bf16 %v9350_v22, %v14775_v44  ;;  %9346 = vst [vmem:[%s16642_s1 + $0x8f8] sm:$0xff] %v5150_v20 }
 0x1aa   :  { %v14929_v18 = vld [vmem:[%s16641_s0 + $0xa30] sm:$0xff]  ;;  %v9356_v24 = vld [vmem:[%s16641_s0 + $0x1f8] sm:$0xff]  ;;  %v5174_v29 = vpack.c.bf16 %v9353_v23, %v14780_v45  ;;  %9349 = vst [vmem:[%s16642_s1 + $0xef8] sm:$0xff] %v5158_v21 }
 0x1ab   :  { %v14955_v25 = vld [vmem:[%s16641_s0 + $0x1e30] sm:$0xff]  ;;  %v5182_v30 = vpack.c.bf16 %v9356_v24, %v14785_v46  ;;  %v9359_v31 = vld [vmem:[%s16641_s0 + $0x2218] sm:$0xff]  ;;  %9352 = vst [vmem:[%s16642_s1 + $0x4f8] sm:$0xff] %v5166_v28 }
 0x1ac   :  { %v14960_v26 = vld [vmem:[%s16641_s0 + $0x1230] sm:$0xff]  ;;  %v9362_v32 = vld [vmem:[%s16641_s0 + $0x1618] sm:$0xff]  ;;  %v5190_v37 = vpack.c.bf16 %v9359_v31, %v14811_v53  ;;  %9355 = vst [vmem:[%s16642_s1 + $0xaf8] sm:$0xff] %v5174_v29 }
 0x1ad   :  { %v14965_v27 = vld [vmem:[%s16641_s0 + $0x630] sm:$0xff]  ;;  %v9365_v33 = vld [vmem:[%s16641_s0 + $0xa18] sm:$0xff]  ;;  %v5198_v38 = vpack.c.bf16 %v9362_v32, %v14816_v54  ;;  %9358 = vst [vmem:[%s16642_s1 + $0x10f8] sm:$0xff] %v5182_v30 }
 0x1ae   :  { %v14991_v34 = vld [vmem:[%s16641_s0 + $0x1a30] sm:$0xff]  ;;  %v5206_v39 = vpack.c.bf16 %v9365_v33, %v14821_v55  ;;  %v9368_v40 = vld [vmem:[%s16641_s0 + $0x1e18] sm:$0xff]  ;;  %9361 = vst [vmem:[%s16642_s1 + $0x108] sm:$0xff] %v5190_v37 }
 0x1af   :  { %v14996_v35 = vld [vmem:[%s16641_s0 + $0xe30] sm:$0xff]  ;;  %v9371_v41 = vld [vmem:[%s16641_s0 + $0x1218] sm:$0xff]  ;;  %v5214_v46 = vpack.c.bf16 %v9368_v40, %v14847_v62  ;;  %9364 = vst [vmem:[%s16642_s1 + $0x708] sm:$0xff] %v5198_v38 }
 0x1b0   :  { %v15001_v36 = vld [vmem:[%s16641_s0 + $0x230] sm:$0xff]  ;;  %v9374_v42 = vld [vmem:[%s16641_s0 + $0x618] sm:$0xff]  ;;  %v5222_v47 = vpack.c.bf16 %v9371_v41, %v14852_v63  ;;  %9367 = vst [vmem:[%s16642_s1 + $0xd08] sm:$0xff] %v5206_v39 }
 0x1b1   :  { %v15027_v43 = vld [vmem:[%s16641_s0 + $0x2250] sm:$0xff]  ;;  %v5230_v48 = vpack.c.bf16 %v9374_v42, %v14857_v0  ;;  %v9377_v49 = vld [vmem:[%s16641_s0 + $0x1a18] sm:$0xff]  ;;  %9370 = vst [vmem:[%s16642_s1 + $0x308] sm:$0xff] %v5214_v46 }
 0x1b2   :  { %v15032_v44 = vld [vmem:[%s16641_s0 + $0x1650] sm:$0xff]  ;;  %v9380_v50 = vld [vmem:[%s16641_s0 + $0xe18] sm:$0xff]  ;;  %v5238_v55 = vpack.c.bf16 %v9377_v49, %v14883_v7  ;;  %9373 = vst [vmem:[%s16642_s1 + $0x908] sm:$0xff] %v5222_v47 }
 0x1b3   :  { %v15037_v45 = vld [vmem:[%s16641_s0 + $0xa50] sm:$0xff]  ;;  %v9383_v51 = vld [vmem:[%s16641_s0 + $0x218] sm:$0xff]  ;;  %v5246_v56 = vpack.c.bf16 %v9380_v50, %v14888_v8  ;;  %9376 = vst [vmem:[%s16642_s1 + $0xf08] sm:$0xff] %v5230_v48 }
 0x1b4   :  { %v15063_v52 = vld [vmem:[%s16641_s0 + $0x1e50] sm:$0xff]  ;;  %v5254_v57 = vpack.c.bf16 %v9383_v51, %v14893_v9  ;;  %v9386_v58 = vld [vmem:[%s16641_s0 + $0x2238] sm:$0xff]  ;;  %9379 = vst [vmem:[%s16642_s1 + $0x508] sm:$0xff] %v5238_v55 }
 0x1b5   :  { %v15068_v53 = vld [vmem:[%s16641_s0 + $0x1250] sm:$0xff]  ;;  %v9389_v59 = vld [vmem:[%s16641_s0 + $0x1638] sm:$0xff]  ;;  %v5262_v0 = vpack.c.bf16 %v9386_v58, %v14919_v16  ;;  %9382 = vst [vmem:[%s16642_s1 + $0xb08] sm:$0xff] %v5246_v56 }
 0x1b6   :  { %v15073_v54 = vld [vmem:[%s16641_s0 + $0x650] sm:$0xff]  ;;  %v9392_v60 = vld [vmem:[%s16641_s0 + $0xa38] sm:$0xff]  ;;  %v5270_v1 = vpack.c.bf16 %v9389_v59, %v14924_v17  ;;  %9385 = vst [vmem:[%s16642_s1 + $0x1108] sm:$0xff] %v5254_v57 }
 0x1b7   :  { %v15099_v61 = vld [vmem:[%s16641_s0 + $0x1a50] sm:$0xff]  ;;  %v5278_v2 = vpack.c.bf16 %v9392_v60, %v14929_v18  ;;  %v9395_v3 = vld [vmem:[%s16641_s0 + $0x1e38] sm:$0xff]  ;;  %9388 = vst [vmem:[%s16642_s1 + $0x118] sm:$0xff] %v5262_v0 }
 0x1b8   :  { %v15104_v62 = vld [vmem:[%s16641_s0 + $0xe50] sm:$0xff]  ;;  %v9398_v4 = vld [vmem:[%s16641_s0 + $0x1238] sm:$0xff]  ;;  %v5286_v9 = vpack.c.bf16 %v9395_v3, %v14955_v25  ;;  %9391 = vst [vmem:[%s16642_s1 + $0x718] sm:$0xff] %v5270_v1 }
 0x1b9   :  { %v15109_v63 = vld [vmem:[%s16641_s0 + $0x250] sm:$0xff]  ;;  %v9401_v5 = vld [vmem:[%s16641_s0 + $0x638] sm:$0xff]  ;;  %v5294_v10 = vpack.c.bf16 %v9398_v4, %v14960_v26  ;;  %9394 = vst [vmem:[%s16642_s1 + $0xd18] sm:$0xff] %v5278_v2 }
 0x1ba   :  { %v15135_v6 = vld [vmem:[%s16641_s0 + $0x2270] sm:$0xff]  ;;  %v5302_v11 = vpack.c.bf16 %v9401_v5, %v14965_v27  ;;  %v9404_v12 = vld [vmem:[%s16641_s0 + $0x1a38] sm:$0xff]  ;;  %9397 = vst [vmem:[%s16642_s1 + $0x318] sm:$0xff] %v5286_v9 }
 0x1bb   :  { %v15140_v7 = vld [vmem:[%s16641_s0 + $0x1670] sm:$0xff]  ;;  %v9407_v13 = vld [vmem:[%s16641_s0 + $0xe38] sm:$0xff]  ;;  %v5310_v18 = vpack.c.bf16 %v9404_v12, %v14991_v34  ;;  %9400 = vst [vmem:[%s16642_s1 + $0x918] sm:$0xff] %v5294_v10 }
 0x1bc   :  { %v15145_v8 = vld [vmem:[%s16641_s0 + $0xa70] sm:$0xff]  ;;  %v9410_v14 = vld [vmem:[%s16641_s0 + $0x238] sm:$0xff]  ;;  %v5318_v19 = vpack.c.bf16 %v9407_v13, %v14996_v35  ;;  %9403 = vst [vmem:[%s16642_s1 + $0xf18] sm:$0xff] %v5302_v11 }
 0x1bd   :  { %v15171_v15 = vld [vmem:[%s16641_s0 + $0x1e70] sm:$0xff]  ;;  %v5326_v20 = vpack.c.bf16 %v9410_v14, %v15001_v36  ;;  %v9413_v21 = vld [vmem:[%s16641_s0 + $0x2258] sm:$0xff]  ;;  %9406 = vst [vmem:[%s16642_s1 + $0x518] sm:$0xff] %v5310_v18 }
 0x1be   :  { %v15176_v16 = vld [vmem:[%s16641_s0 + $0x1270] sm:$0xff]  ;;  %v9416_v22 = vld [vmem:[%s16641_s0 + $0x1658] sm:$0xff]  ;;  %v5334_v27 = vpack.c.bf16 %v9413_v21, %v15027_v43  ;;  %9409 = vst [vmem:[%s16642_s1 + $0xb18] sm:$0xff] %v5318_v19 }
 0x1bf   :  { %v15181_v17 = vld [vmem:[%s16641_s0 + $0x670] sm:$0xff]  ;;  %v9419_v23 = vld [vmem:[%s16641_s0 + $0xa58] sm:$0xff]  ;;  %v5342_v28 = vpack.c.bf16 %v9416_v22, %v15032_v44  ;;  %9412 = vst [vmem:[%s16642_s1 + $0x1118] sm:$0xff] %v5326_v20 }
 0x1c0   :  { %v15207_v24 = vld [vmem:[%s16641_s0 + $0x1a70] sm:$0xff]  ;;  %v5350_v29 = vpack.c.bf16 %v9419_v23, %v15037_v45  ;;  %v9422_v30 = vld [vmem:[%s16641_s0 + $0x1e58] sm:$0xff]  ;;  %9415 = vst [vmem:[%s16642_s1 + $0x128] sm:$0xff] %v5334_v27 }
 0x1c1   :  { %v15212_v25 = vld [vmem:[%s16641_s0 + $0xe70] sm:$0xff]  ;;  %v9425_v31 = vld [vmem:[%s16641_s0 + $0x1258] sm:$0xff]  ;;  %v5358_v36 = vpack.c.bf16 %v9422_v30, %v15063_v52  ;;  %9418 = vst [vmem:[%s16642_s1 + $0x728] sm:$0xff] %v5342_v28 }
 0x1c2   :  { %v15217_v26 = vld [vmem:[%s16641_s0 + $0x270] sm:$0xff]  ;;  %v9428_v32 = vld [vmem:[%s16641_s0 + $0x658] sm:$0xff]  ;;  %v5366_v37 = vpack.c.bf16 %v9425_v31, %v15068_v53  ;;  %9421 = vst [vmem:[%s16642_s1 + $0xd28] sm:$0xff] %v5350_v29 }
 0x1c3   :  { %v15243_v33 = vld [vmem:[%s16641_s0 + $0x2290] sm:$0xff]  ;;  %v5374_v38 = vpack.c.bf16 %v9428_v32, %v15073_v54  ;;  %v9431_v39 = vld [vmem:[%s16641_s0 + $0x1a58] sm:$0xff]  ;;  %9424 = vst [vmem:[%s16642_s1 + $0x328] sm:$0xff] %v5358_v36 }
 0x1c4   :  { %v15248_v34 = vld [vmem:[%s16641_s0 + $0x1690] sm:$0xff]  ;;  %v9434_v40 = vld [vmem:[%s16641_s0 + $0xe58] sm:$0xff]  ;;  %v5382_v45 = vpack.c.bf16 %v9431_v39, %v15099_v61  ;;  %9427 = vst [vmem:[%s16642_s1 + $0x928] sm:$0xff] %v5366_v37 }
 0x1c5   :  { %v15253_v35 = vld [vmem:[%s16641_s0 + $0xa90] sm:$0xff]  ;;  %v9437_v41 = vld [vmem:[%s16641_s0 + $0x258] sm:$0xff]  ;;  %v5390_v46 = vpack.c.bf16 %v9434_v40, %v15104_v62  ;;  %9430 = vst [vmem:[%s16642_s1 + $0xf28] sm:$0xff] %v5374_v38 }
 0x1c6   :  { %v15279_v42 = vld [vmem:[%s16641_s0 + $0x1e90] sm:$0xff]  ;;  %v5398_v47 = vpack.c.bf16 %v9437_v41, %v15109_v63  ;;  %v9440_v48 = vld [vmem:[%s16641_s0 + $0x2278] sm:$0xff]  ;;  %9433 = vst [vmem:[%s16642_s1 + $0x528] sm:$0xff] %v5382_v45 }
 0x1c7   :  { %v15284_v43 = vld [vmem:[%s16641_s0 + $0x1290] sm:$0xff]  ;;  %v9443_v49 = vld [vmem:[%s16641_s0 + $0x1678] sm:$0xff]  ;;  %v5406_v54 = vpack.c.bf16 %v9440_v48, %v15135_v6  ;;  %9436 = vst [vmem:[%s16642_s1 + $0xb28] sm:$0xff] %v5390_v46 }
 0x1c8   :  { %v15289_v44 = vld [vmem:[%s16641_s0 + $0x690] sm:$0xff]  ;;  %v9446_v50 = vld [vmem:[%s16641_s0 + $0xa78] sm:$0xff]  ;;  %v5414_v55 = vpack.c.bf16 %v9443_v49, %v15140_v7  ;;  %9439 = vst [vmem:[%s16642_s1 + $0x1128] sm:$0xff] %v5398_v47 }
 0x1c9   :  { %v15315_v51 = vld [vmem:[%s16641_s0 + $0x1a90] sm:$0xff]  ;;  %v5422_v56 = vpack.c.bf16 %v9446_v50, %v15145_v8  ;;  %v9449_v57 = vld [vmem:[%s16641_s0 + $0x1e78] sm:$0xff]  ;;  %9442 = vst [vmem:[%s16642_s1 + $0x138] sm:$0xff] %v5406_v54 }
 0x1ca   :  { %v15320_v52 = vld [vmem:[%s16641_s0 + $0xe90] sm:$0xff]  ;;  %v9452_v58 = vld [vmem:[%s16641_s0 + $0x1278] sm:$0xff]  ;;  %v5430_v63 = vpack.c.bf16 %v9449_v57, %v15171_v15  ;;  %9445 = vst [vmem:[%s16642_s1 + $0x738] sm:$0xff] %v5414_v55 }
 0x1cb   :  { %v15325_v53 = vld [vmem:[%s16641_s0 + $0x290] sm:$0xff]  ;;  %v9455_v59 = vld [vmem:[%s16641_s0 + $0x678] sm:$0xff]  ;;  %v5438_v0 = vpack.c.bf16 %v9452_v58, %v15176_v16  ;;  %9448 = vst [vmem:[%s16642_s1 + $0xd38] sm:$0xff] %v5422_v56 }
 0x1cc   :  { %v15351_v60 = vld [vmem:[%s16641_s0 + $0x22b0] sm:$0xff]  ;;  %v5446_v1 = vpack.c.bf16 %v9455_v59, %v15181_v17  ;;  %v9458_v2 = vld [vmem:[%s16641_s0 + $0x1a78] sm:$0xff]  ;;  %9451 = vst [vmem:[%s16642_s1 + $0x338] sm:$0xff] %v5430_v63 }
 0x1cd   :  { %v15356_v61 = vld [vmem:[%s16641_s0 + $0x16b0] sm:$0xff]  ;;  %v9461_v3 = vld [vmem:[%s16641_s0 + $0xe78] sm:$0xff]  ;;  %v5454_v8 = vpack.c.bf16 %v9458_v2, %v15207_v24  ;;  %9454 = vst [vmem:[%s16642_s1 + $0x938] sm:$0xff] %v5438_v0 }
 0x1ce   :  { %v15361_v62 = vld [vmem:[%s16641_s0 + $0xab0] sm:$0xff]  ;;  %v9464_v4 = vld [vmem:[%s16641_s0 + $0x278] sm:$0xff]  ;;  %v5462_v9 = vpack.c.bf16 %v9461_v3, %v15212_v25  ;;  %9457 = vst [vmem:[%s16642_s1 + $0xf38] sm:$0xff] %v5446_v1 }
 0x1cf   :  { %v15387_v5 = vld [vmem:[%s16641_s0 + $0x1eb0] sm:$0xff]  ;;  %v5470_v10 = vpack.c.bf16 %v9464_v4, %v15217_v26  ;;  %v9467_v11 = vld [vmem:[%s16641_s0 + $0x2298] sm:$0xff]  ;;  %9460 = vst [vmem:[%s16642_s1 + $0x538] sm:$0xff] %v5454_v8 }
 0x1d0   :  { %v15392_v6 = vld [vmem:[%s16641_s0 + $0x12b0] sm:$0xff]  ;;  %v9470_v12 = vld [vmem:[%s16641_s0 + $0x1698] sm:$0xff]  ;;  %v5478_v17 = vpack.c.bf16 %v9467_v11, %v15243_v33  ;;  %9463 = vst [vmem:[%s16642_s1 + $0xb38] sm:$0xff] %v5462_v9 }
 0x1d1   :  { %v15397_v7 = vld [vmem:[%s16641_s0 + $0x6b0] sm:$0xff]  ;;  %v9473_v13 = vld [vmem:[%s16641_s0 + $0xa98] sm:$0xff]  ;;  %v5486_v18 = vpack.c.bf16 %v9470_v12, %v15248_v34  ;;  %9466 = vst [vmem:[%s16642_s1 + $0x1138] sm:$0xff] %v5470_v10 }
 0x1d2   :  { %v15423_v14 = vld [vmem:[%s16641_s0 + $0x1ab0] sm:$0xff]  ;;  %v5494_v19 = vpack.c.bf16 %v9473_v13, %v15253_v35  ;;  %v9476_v20 = vld [vmem:[%s16641_s0 + $0x1e98] sm:$0xff]  ;;  %9469 = vst [vmem:[%s16642_s1 + $0x148] sm:$0xff] %v5478_v17 }
 0x1d3   :  { %v15428_v15 = vld [vmem:[%s16641_s0 + $0xeb0] sm:$0xff]  ;;  %v9479_v21 = vld [vmem:[%s16641_s0 + $0x1298] sm:$0xff]  ;;  %v5502_v26 = vpack.c.bf16 %v9476_v20, %v15279_v42  ;;  %9472 = vst [vmem:[%s16642_s1 + $0x748] sm:$0xff] %v5486_v18 }
 0x1d4   :  { %v15433_v16 = vld [vmem:[%s16641_s0 + $0x2b0] sm:$0xff]  ;;  %v9482_v22 = vld [vmem:[%s16641_s0 + $0x698] sm:$0xff]  ;;  %v5510_v27 = vpack.c.bf16 %v9479_v21, %v15284_v43  ;;  %9475 = vst [vmem:[%s16642_s1 + $0xd48] sm:$0xff] %v5494_v19 }
 0x1d5   :  { %v15459_v23 = vld [vmem:[%s16641_s0 + $0x22d0] sm:$0xff]  ;;  %v5518_v28 = vpack.c.bf16 %v9482_v22, %v15289_v44  ;;  %v9485_v29 = vld [vmem:[%s16641_s0 + $0x1a98] sm:$0xff]  ;;  %9478 = vst [vmem:[%s16642_s1 + $0x348] sm:$0xff] %v5502_v26 }
 0x1d6   :  { %v15464_v24 = vld [vmem:[%s16641_s0 + $0x16d0] sm:$0xff]  ;;  %v9488_v30 = vld [vmem:[%s16641_s0 + $0xe98] sm:$0xff]  ;;  %v5526_v35 = vpack.c.bf16 %v9485_v29, %v15315_v51  ;;  %9481 = vst [vmem:[%s16642_s1 + $0x948] sm:$0xff] %v5510_v27 }
 0x1d7   :  { %v15469_v25 = vld [vmem:[%s16641_s0 + $0xad0] sm:$0xff]  ;;  %v9491_v31 = vld [vmem:[%s16641_s0 + $0x298] sm:$0xff]  ;;  %v5534_v36 = vpack.c.bf16 %v9488_v30, %v15320_v52  ;;  %9484 = vst [vmem:[%s16642_s1 + $0xf48] sm:$0xff] %v5518_v28 }
 0x1d8   :  { %v15495_v32 = vld [vmem:[%s16641_s0 + $0x1ed0] sm:$0xff]  ;;  %v5542_v37 = vpack.c.bf16 %v9491_v31, %v15325_v53  ;;  %v9494_v38 = vld [vmem:[%s16641_s0 + $0x22b8] sm:$0xff]  ;;  %9487 = vst [vmem:[%s16642_s1 + $0x548] sm:$0xff] %v5526_v35 }
 0x1d9   :  { %v15500_v33 = vld [vmem:[%s16641_s0 + $0x12d0] sm:$0xff]  ;;  %v9497_v39 = vld [vmem:[%s16641_s0 + $0x16b8] sm:$0xff]  ;;  %v5550_v44 = vpack.c.bf16 %v9494_v38, %v15351_v60  ;;  %9490 = vst [vmem:[%s16642_s1 + $0xb48] sm:$0xff] %v5534_v36 }
 0x1da   :  { %v15505_v34 = vld [vmem:[%s16641_s0 + $0x6d0] sm:$0xff]  ;;  %v9500_v40 = vld [vmem:[%s16641_s0 + $0xab8] sm:$0xff]  ;;  %v5558_v45 = vpack.c.bf16 %v9497_v39, %v15356_v61  ;;  %9493 = vst [vmem:[%s16642_s1 + $0x1148] sm:$0xff] %v5542_v37 }
 0x1db   :  { %v15531_v41 = vld [vmem:[%s16641_s0 + $0x1ad0] sm:$0xff]  ;;  %v5566_v46 = vpack.c.bf16 %v9500_v40, %v15361_v62  ;;  %v9503_v47 = vld [vmem:[%s16641_s0 + $0x1eb8] sm:$0xff]  ;;  %9496 = vst [vmem:[%s16642_s1 + $0x158] sm:$0xff] %v5550_v44 }
 0x1dc   :  { %v15536_v42 = vld [vmem:[%s16641_s0 + $0xed0] sm:$0xff]  ;;  %v9506_v48 = vld [vmem:[%s16641_s0 + $0x12b8] sm:$0xff]  ;;  %v5574_v53 = vpack.c.bf16 %v9503_v47, %v15387_v5  ;;  %9499 = vst [vmem:[%s16642_s1 + $0x758] sm:$0xff] %v5558_v45 }
 0x1dd   :  { %v15541_v43 = vld [vmem:[%s16641_s0 + $0x2d0] sm:$0xff]  ;;  %v9509_v49 = vld [vmem:[%s16641_s0 + $0x6b8] sm:$0xff]  ;;  %v5582_v54 = vpack.c.bf16 %v9506_v48, %v15392_v6  ;;  %9502 = vst [vmem:[%s16642_s1 + $0xd58] sm:$0xff] %v5566_v46 }
 0x1de   :  { %v15567_v50 = vld [vmem:[%s16641_s0 + $0x22f0] sm:$0xff]  ;;  %v5590_v55 = vpack.c.bf16 %v9509_v49, %v15397_v7  ;;  %v9512_v56 = vld [vmem:[%s16641_s0 + $0x1ab8] sm:$0xff]  ;;  %9505 = vst [vmem:[%s16642_s1 + $0x358] sm:$0xff] %v5574_v53 }
 0x1df   :  { %v15572_v51 = vld [vmem:[%s16641_s0 + $0x16f0] sm:$0xff]  ;;  %v9515_v57 = vld [vmem:[%s16641_s0 + $0xeb8] sm:$0xff]  ;;  %v5598_v62 = vpack.c.bf16 %v9512_v56, %v15423_v14  ;;  %9508 = vst [vmem:[%s16642_s1 + $0x958] sm:$0xff] %v5582_v54 }
 0x1e0   :  { %v15577_v52 = vld [vmem:[%s16641_s0 + $0xaf0] sm:$0xff]  ;;  %v9518_v58 = vld [vmem:[%s16641_s0 + $0x2b8] sm:$0xff]  ;;  %v5606_v63 = vpack.c.bf16 %v9515_v57, %v15428_v15  ;;  %9511 = vst [vmem:[%s16642_s1 + $0xf58] sm:$0xff] %v5590_v55 }
 0x1e1   :  { %v15603_v59 = vld [vmem:[%s16641_s0 + $0x1ef0] sm:$0xff]  ;;  %v5614_v0 = vpack.c.bf16 %v9518_v58, %v15433_v16  ;;  %v9521_v1 = vld [vmem:[%s16641_s0 + $0x22d8] sm:$0xff]  ;;  %9514 = vst [vmem:[%s16642_s1 + $0x558] sm:$0xff] %v5598_v62 }
 0x1e2   :  { %v15608_v60 = vld [vmem:[%s16641_s0 + $0x12f0] sm:$0xff]  ;;  %v9524_v2 = vld [vmem:[%s16641_s0 + $0x16d8] sm:$0xff]  ;;  %v5622_v7 = vpack.c.bf16 %v9521_v1, %v15459_v23  ;;  %9517 = vst [vmem:[%s16642_s1 + $0xb58] sm:$0xff] %v5606_v63 }
 0x1e3   :  { %v15613_v61 = vld [vmem:[%s16641_s0 + $0x6f0] sm:$0xff]  ;;  %v9527_v3 = vld [vmem:[%s16641_s0 + $0xad8] sm:$0xff]  ;;  %v5630_v8 = vpack.c.bf16 %v9524_v2, %v15464_v24  ;;  %9520 = vst [vmem:[%s16642_s1 + $0x1158] sm:$0xff] %v5614_v0 }
 0x1e4   :  { %v15639_v4 = vld [vmem:[%s16641_s0 + $0x1af0] sm:$0xff]  ;;  %v5638_v9 = vpack.c.bf16 %v9527_v3, %v15469_v25  ;;  %v9530_v10 = vld [vmem:[%s16641_s0 + $0x1ed8] sm:$0xff]  ;;  %9523 = vst [vmem:[%s16642_s1 + $0x168] sm:$0xff] %v5622_v7 }
 0x1e5   :  { %v15644_v5 = vld [vmem:[%s16641_s0 + $0xef0] sm:$0xff]  ;;  %v9533_v11 = vld [vmem:[%s16641_s0 + $0x12d8] sm:$0xff]  ;;  %v5646_v16 = vpack.c.bf16 %v9530_v10, %v15495_v32  ;;  %9526 = vst [vmem:[%s16642_s1 + $0x768] sm:$0xff] %v5630_v8 }
 0x1e6   :  { %v15649_v6 = vld [vmem:[%s16641_s0 + $0x2f0] sm:$0xff]  ;;  %v9536_v12 = vld [vmem:[%s16641_s0 + $0x6d8] sm:$0xff]  ;;  %v5654_v17 = vpack.c.bf16 %v9533_v11, %v15500_v33  ;;  %9529 = vst [vmem:[%s16642_s1 + $0xd68] sm:$0xff] %v5638_v9 }
 0x1e7   :  { %v15675_v13 = vld [vmem:[%s16641_s0 + $0x2310] sm:$0xff]  ;;  %v5662_v18 = vpack.c.bf16 %v9536_v12, %v15505_v34  ;;  %v9539_v19 = vld [vmem:[%s16641_s0 + $0x1ad8] sm:$0xff]  ;;  %9532 = vst [vmem:[%s16642_s1 + $0x368] sm:$0xff] %v5646_v16 }
 0x1e8   :  { %v15680_v14 = vld [vmem:[%s16641_s0 + $0x1710] sm:$0xff]  ;;  %v9542_v20 = vld [vmem:[%s16641_s0 + $0xed8] sm:$0xff]  ;;  %v5670_v25 = vpack.c.bf16 %v9539_v19, %v15531_v41  ;;  %9535 = vst [vmem:[%s16642_s1 + $0x968] sm:$0xff] %v5654_v17 }
 0x1e9   :  { %v15685_v15 = vld [vmem:[%s16641_s0 + $0xb10] sm:$0xff]  ;;  %v9545_v21 = vld [vmem:[%s16641_s0 + $0x2d8] sm:$0xff]  ;;  %v5678_v26 = vpack.c.bf16 %v9542_v20, %v15536_v42  ;;  %9538 = vst [vmem:[%s16642_s1 + $0xf68] sm:$0xff] %v5662_v18 }
 0x1ea   :  { %v15711_v22 = vld [vmem:[%s16641_s0 + $0x1f10] sm:$0xff]  ;;  %v5686_v27 = vpack.c.bf16 %v9545_v21, %v15541_v43  ;;  %v9548_v28 = vld [vmem:[%s16641_s0 + $0x22f8] sm:$0xff]  ;;  %9541 = vst [vmem:[%s16642_s1 + $0x568] sm:$0xff] %v5670_v25 }
 0x1eb   :  { %v15716_v23 = vld [vmem:[%s16641_s0 + $0x1310] sm:$0xff]  ;;  %v9551_v29 = vld [vmem:[%s16641_s0 + $0x16f8] sm:$0xff]  ;;  %v5694_v34 = vpack.c.bf16 %v9548_v28, %v15567_v50  ;;  %9544 = vst [vmem:[%s16642_s1 + $0xb68] sm:$0xff] %v5678_v26 }
 0x1ec   :  { %v15721_v24 = vld [vmem:[%s16641_s0 + $0x710] sm:$0xff]  ;;  %v9554_v30 = vld [vmem:[%s16641_s0 + $0xaf8] sm:$0xff]  ;;  %v5702_v35 = vpack.c.bf16 %v9551_v29, %v15572_v51  ;;  %9547 = vst [vmem:[%s16642_s1 + $0x1168] sm:$0xff] %v5686_v27 }
 0x1ed   :  { %v15747_v31 = vld [vmem:[%s16641_s0 + $0x1b10] sm:$0xff]  ;;  %v5710_v36 = vpack.c.bf16 %v9554_v30, %v15577_v52  ;;  %v9557_v37 = vld [vmem:[%s16641_s0 + $0x1ef8] sm:$0xff]  ;;  %9550 = vst [vmem:[%s16642_s1 + $0x178] sm:$0xff] %v5694_v34 }
 0x1ee   :  { %v15752_v32 = vld [vmem:[%s16641_s0 + $0xf10] sm:$0xff]  ;;  %v9560_v38 = vld [vmem:[%s16641_s0 + $0x12f8] sm:$0xff]  ;;  %v5718_v43 = vpack.c.bf16 %v9557_v37, %v15603_v59  ;;  %9553 = vst [vmem:[%s16642_s1 + $0x778] sm:$0xff] %v5702_v35 }
 0x1ef   :  { %v15757_v33 = vld [vmem:[%s16641_s0 + $0x310] sm:$0xff]  ;;  %v9563_v39 = vld [vmem:[%s16641_s0 + $0x6f8] sm:$0xff]  ;;  %v5726_v44 = vpack.c.bf16 %v9560_v38, %v15608_v60  ;;  %9556 = vst [vmem:[%s16642_s1 + $0xd78] sm:$0xff] %v5710_v36 }
 0x1f0   :  { %v15783_v40 = vld [vmem:[%s16641_s0 + $0x2330] sm:$0xff]  ;;  %v5734_v45 = vpack.c.bf16 %v9563_v39, %v15613_v61  ;;  %v9566_v46 = vld [vmem:[%s16641_s0 + $0x1af8] sm:$0xff]  ;;  %9559 = vst [vmem:[%s16642_s1 + $0x378] sm:$0xff] %v5718_v43 }
 0x1f1   :  { %v15788_v41 = vld [vmem:[%s16641_s0 + $0x1730] sm:$0xff]  ;;  %v9569_v47 = vld [vmem:[%s16641_s0 + $0xef8] sm:$0xff]  ;;  %v5742_v52 = vpack.c.bf16 %v9566_v46, %v15639_v4  ;;  %9562 = vst [vmem:[%s16642_s1 + $0x978] sm:$0xff] %v5726_v44 }
 0x1f2   :  { %v15793_v42 = vld [vmem:[%s16641_s0 + $0xb30] sm:$0xff]  ;;  %v9572_v48 = vld [vmem:[%s16641_s0 + $0x2f8] sm:$0xff]  ;;  %v5750_v53 = vpack.c.bf16 %v9569_v47, %v15644_v5  ;;  %9565 = vst [vmem:[%s16642_s1 + $0xf78] sm:$0xff] %v5734_v45 }
 0x1f3   :  { %v15819_v49 = vld [vmem:[%s16641_s0 + $0x1f30] sm:$0xff]  ;;  %v5758_v54 = vpack.c.bf16 %v9572_v48, %v15649_v6  ;;  %v9575_v55 = vld [vmem:[%s16641_s0 + $0x2318] sm:$0xff]  ;;  %9568 = vst [vmem:[%s16642_s1 + $0x578] sm:$0xff] %v5742_v52 }
 0x1f4   :  { %v15824_v50 = vld [vmem:[%s16641_s0 + $0x1330] sm:$0xff]  ;;  %v9578_v56 = vld [vmem:[%s16641_s0 + $0x1718] sm:$0xff]  ;;  %v5766_v61 = vpack.c.bf16 %v9575_v55, %v15675_v13  ;;  %9571 = vst [vmem:[%s16642_s1 + $0xb78] sm:$0xff] %v5750_v53 }
 0x1f5   :  { %v15829_v51 = vld [vmem:[%s16641_s0 + $0x730] sm:$0xff]  ;;  %v9581_v57 = vld [vmem:[%s16641_s0 + $0xb18] sm:$0xff]  ;;  %v5774_v62 = vpack.c.bf16 %v9578_v56, %v15680_v14  ;;  %9574 = vst [vmem:[%s16642_s1 + $0x1178] sm:$0xff] %v5758_v54 }
 0x1f6   :  { %v15855_v58 = vld [vmem:[%s16641_s0 + $0x1b30] sm:$0xff]  ;;  %v5782_v63 = vpack.c.bf16 %v9581_v57, %v15685_v15  ;;  %v9584_v0 = vld [vmem:[%s16641_s0 + $0x1f18] sm:$0xff]  ;;  %9577 = vst [vmem:[%s16642_s1 + $0x188] sm:$0xff] %v5766_v61 }
 0x1f7   :  { %v15860_v59 = vld [vmem:[%s16641_s0 + $0xf30] sm:$0xff]  ;;  %v9587_v1 = vld [vmem:[%s16641_s0 + $0x1318] sm:$0xff]  ;;  %v5790_v6 = vpack.c.bf16 %v9584_v0, %v15711_v22  ;;  %9580 = vst [vmem:[%s16642_s1 + $0x788] sm:$0xff] %v5774_v62 }
 0x1f8   :  { %v15865_v60 = vld [vmem:[%s16641_s0 + $0x330] sm:$0xff]  ;;  %v9590_v2 = vld [vmem:[%s16641_s0 + $0x718] sm:$0xff]  ;;  %v5798_v7 = vpack.c.bf16 %v9587_v1, %v15716_v23  ;;  %9583 = vst [vmem:[%s16642_s1 + $0xd88] sm:$0xff] %v5782_v63 }
 0x1f9   :  { %v15891_v3 = vld [vmem:[%s16641_s0 + $0x2350] sm:$0xff]  ;;  %v5806_v8 = vpack.c.bf16 %v9590_v2, %v15721_v24  ;;  %v9593_v9 = vld [vmem:[%s16641_s0 + $0x1b18] sm:$0xff]  ;;  %9586 = vst [vmem:[%s16642_s1 + $0x388] sm:$0xff] %v5790_v6 }
 0x1fa   :  { %v15896_v4 = vld [vmem:[%s16641_s0 + $0x1750] sm:$0xff]  ;;  %v9596_v10 = vld [vmem:[%s16641_s0 + $0xf18] sm:$0xff]  ;;  %v5814_v15 = vpack.c.bf16 %v9593_v9, %v15747_v31  ;;  %9589 = vst [vmem:[%s16642_s1 + $0x988] sm:$0xff] %v5798_v7 }
 0x1fb   :  { %v15901_v5 = vld [vmem:[%s16641_s0 + $0xb50] sm:$0xff]  ;;  %v9599_v11 = vld [vmem:[%s16641_s0 + $0x318] sm:$0xff]  ;;  %v5822_v16 = vpack.c.bf16 %v9596_v10, %v15752_v32  ;;  %9592 = vst [vmem:[%s16642_s1 + $0xf88] sm:$0xff] %v5806_v8 }
 0x1fc   :  { %v15927_v12 = vld [vmem:[%s16641_s0 + $0x1f50] sm:$0xff]  ;;  %v5830_v17 = vpack.c.bf16 %v9599_v11, %v15757_v33  ;;  %v9602_v18 = vld [vmem:[%s16641_s0 + $0x2338] sm:$0xff]  ;;  %9595 = vst [vmem:[%s16642_s1 + $0x588] sm:$0xff] %v5814_v15 }
 0x1fd   :  { %v15932_v13 = vld [vmem:[%s16641_s0 + $0x1350] sm:$0xff]  ;;  %v9605_v19 = vld [vmem:[%s16641_s0 + $0x1738] sm:$0xff]  ;;  %v5838_v24 = vpack.c.bf16 %v9602_v18, %v15783_v40  ;;  %9598 = vst [vmem:[%s16642_s1 + $0xb88] sm:$0xff] %v5822_v16 }
 0x1fe   :  { %v15937_v14 = vld [vmem:[%s16641_s0 + $0x750] sm:$0xff]  ;;  %v9608_v20 = vld [vmem:[%s16641_s0 + $0xb38] sm:$0xff]  ;;  %v5846_v25 = vpack.c.bf16 %v9605_v19, %v15788_v41  ;;  %9601 = vst [vmem:[%s16642_s1 + $0x1188] sm:$0xff] %v5830_v17 }
 0x1ff   :  { %v15963_v21 = vld [vmem:[%s16641_s0 + $0x1b50] sm:$0xff]  ;;  %v5854_v26 = vpack.c.bf16 %v9608_v20, %v15793_v42  ;;  %v9611_v27 = vld [vmem:[%s16641_s0 + $0x1f38] sm:$0xff]  ;;  %9604 = vst [vmem:[%s16642_s1 + $0x198] sm:$0xff] %v5838_v24 }
 0x200   :  { %v15968_v22 = vld [vmem:[%s16641_s0 + $0xf50] sm:$0xff]  ;;  %v9614_v28 = vld [vmem:[%s16641_s0 + $0x1338] sm:$0xff]  ;;  %v5862_v33 = vpack.c.bf16 %v9611_v27, %v15819_v49  ;;  %9607 = vst [vmem:[%s16642_s1 + $0x798] sm:$0xff] %v5846_v25 }
 0x201   :  { %v15973_v23 = vld [vmem:[%s16641_s0 + $0x350] sm:$0xff]  ;;  %v9617_v29 = vld [vmem:[%s16641_s0 + $0x738] sm:$0xff]  ;;  %v5870_v34 = vpack.c.bf16 %v9614_v28, %v15824_v50  ;;  %9610 = vst [vmem:[%s16642_s1 + $0xd98] sm:$0xff] %v5854_v26 }
 0x202   :  { %v15999_v30 = vld [vmem:[%s16641_s0 + $0x2370] sm:$0xff]  ;;  %v5878_v35 = vpack.c.bf16 %v9617_v29, %v15829_v51  ;;  %v9620_v36 = vld [vmem:[%s16641_s0 + $0x1b38] sm:$0xff]  ;;  %9613 = vst [vmem:[%s16642_s1 + $0x398] sm:$0xff] %v5862_v33 }
 0x203   :  { %v16004_v31 = vld [vmem:[%s16641_s0 + $0x1770] sm:$0xff]  ;;  %v9623_v37 = vld [vmem:[%s16641_s0 + $0xf38] sm:$0xff]  ;;  %v5886_v42 = vpack.c.bf16 %v9620_v36, %v15855_v58  ;;  %9616 = vst [vmem:[%s16642_s1 + $0x998] sm:$0xff] %v5870_v34 }
 0x204   :  { %v16009_v32 = vld [vmem:[%s16641_s0 + $0xb70] sm:$0xff]  ;;  %v9626_v38 = vld [vmem:[%s16641_s0 + $0x338] sm:$0xff]  ;;  %v5894_v43 = vpack.c.bf16 %v9623_v37, %v15860_v59  ;;  %9619 = vst [vmem:[%s16642_s1 + $0xf98] sm:$0xff] %v5878_v35 }
 0x205   :  { %v16035_v39 = vld [vmem:[%s16641_s0 + $0x1f70] sm:$0xff]  ;;  %v5902_v44 = vpack.c.bf16 %v9626_v38, %v15865_v60  ;;  %v9629_v45 = vld [vmem:[%s16641_s0 + $0x2358] sm:$0xff]  ;;  %9622 = vst [vmem:[%s16642_s1 + $0x598] sm:$0xff] %v5886_v42 }
 0x206   :  { %v16040_v40 = vld [vmem:[%s16641_s0 + $0x1370] sm:$0xff]  ;;  %v9632_v46 = vld [vmem:[%s16641_s0 + $0x1758] sm:$0xff]  ;;  %v5910_v51 = vpack.c.bf16 %v9629_v45, %v15891_v3  ;;  %9625 = vst [vmem:[%s16642_s1 + $0xb98] sm:$0xff] %v5894_v43 }
 0x207   :  { %v16045_v41 = vld [vmem:[%s16641_s0 + $0x770] sm:$0xff]  ;;  %v9635_v47 = vld [vmem:[%s16641_s0 + $0xb58] sm:$0xff]  ;;  %v5918_v52 = vpack.c.bf16 %v9632_v46, %v15896_v4  ;;  %9628 = vst [vmem:[%s16642_s1 + $0x1198] sm:$0xff] %v5902_v44 }
 0x208   :  { %v16071_v48 = vld [vmem:[%s16641_s0 + $0x1b70] sm:$0xff]  ;;  %v5926_v53 = vpack.c.bf16 %v9635_v47, %v15901_v5  ;;  %v9638_v54 = vld [vmem:[%s16641_s0 + $0x1f58] sm:$0xff]  ;;  %9631 = vst [vmem:[%s16642_s1 + $0x1a8] sm:$0xff] %v5910_v51 }
 0x209   :  { %v16076_v49 = vld [vmem:[%s16641_s0 + $0xf70] sm:$0xff]  ;;  %v9641_v55 = vld [vmem:[%s16641_s0 + $0x1358] sm:$0xff]  ;;  %v5934_v60 = vpack.c.bf16 %v9638_v54, %v15927_v12  ;;  %9634 = vst [vmem:[%s16642_s1 + $0x7a8] sm:$0xff] %v5918_v52 }
 0x20a   :  { %v16081_v50 = vld [vmem:[%s16641_s0 + $0x370] sm:$0xff]  ;;  %v9644_v56 = vld [vmem:[%s16641_s0 + $0x758] sm:$0xff]  ;;  %v5942_v61 = vpack.c.bf16 %v9641_v55, %v15932_v13  ;;  %9637 = vst [vmem:[%s16642_s1 + $0xda8] sm:$0xff] %v5926_v53 }
 0x20b   :  { %v16107_v57 = vld [vmem:[%s16641_s0 + $0x2390] sm:$0xff]  ;;  %v5950_v62 = vpack.c.bf16 %v9644_v56, %v15937_v14  ;;  %v9647_v63 = vld [vmem:[%s16641_s0 + $0x1b58] sm:$0xff]  ;;  %9640 = vst [vmem:[%s16642_s1 + $0x3a8] sm:$0xff] %v5934_v60 }
 0x20c   :  { %v16112_v58 = vld [vmem:[%s16641_s0 + $0x1790] sm:$0xff]  ;;  %v9650_v0 = vld [vmem:[%s16641_s0 + $0xf58] sm:$0xff]  ;;  %v5958_v5 = vpack.c.bf16 %v9647_v63, %v15963_v21  ;;  %9643 = vst [vmem:[%s16642_s1 + $0x9a8] sm:$0xff] %v5942_v61 }
 0x20d   :  { %v16117_v59 = vld [vmem:[%s16641_s0 + $0xb90] sm:$0xff]  ;;  %v9653_v1 = vld [vmem:[%s16641_s0 + $0x358] sm:$0xff]  ;;  %v5966_v6 = vpack.c.bf16 %v9650_v0, %v15968_v22  ;;  %9646 = vst [vmem:[%s16642_s1 + $0xfa8] sm:$0xff] %v5950_v62 }
 0x20e   :  { %v16143_v2 = vld [vmem:[%s16641_s0 + $0x1f90] sm:$0xff]  ;;  %v5974_v7 = vpack.c.bf16 %v9653_v1, %v15973_v23  ;;  %v9656_v8 = vld [vmem:[%s16641_s0 + $0x2378] sm:$0xff]  ;;  %9649 = vst [vmem:[%s16642_s1 + $0x5a8] sm:$0xff] %v5958_v5 }
 0x20f   :  { %v16148_v3 = vld [vmem:[%s16641_s0 + $0x1390] sm:$0xff]  ;;  %v9659_v9 = vld [vmem:[%s16641_s0 + $0x1778] sm:$0xff]  ;;  %v5982_v14 = vpack.c.bf16 %v9656_v8, %v15999_v30  ;;  %9652 = vst [vmem:[%s16642_s1 + $0xba8] sm:$0xff] %v5966_v6 }
 0x210   :  { %v16153_v4 = vld [vmem:[%s16641_s0 + $0x790] sm:$0xff]  ;;  %v9662_v10 = vld [vmem:[%s16641_s0 + $0xb78] sm:$0xff]  ;;  %v5990_v15 = vpack.c.bf16 %v9659_v9, %v16004_v31  ;;  %9655 = vst [vmem:[%s16642_s1 + $0x11a8] sm:$0xff] %v5974_v7 }
 0x211   :  { %v16179_v11 = vld [vmem:[%s16641_s0 + $0x1b90] sm:$0xff]  ;;  %v5998_v16 = vpack.c.bf16 %v9662_v10, %v16009_v32  ;;  %v9665_v17 = vld [vmem:[%s16641_s0 + $0x1f78] sm:$0xff]  ;;  %9658 = vst [vmem:[%s16642_s1 + $0x1b8] sm:$0xff] %v5982_v14 }
 0x212   :  { %v16184_v12 = vld [vmem:[%s16641_s0 + $0xf90] sm:$0xff]  ;;  %v9668_v18 = vld [vmem:[%s16641_s0 + $0x1378] sm:$0xff]  ;;  %v6006_v23 = vpack.c.bf16 %v9665_v17, %v16035_v39  ;;  %9661 = vst [vmem:[%s16642_s1 + $0x7b8] sm:$0xff] %v5990_v15 }
 0x213   :  { %v16189_v13 = vld [vmem:[%s16641_s0 + $0x390] sm:$0xff]  ;;  %v9671_v19 = vld [vmem:[%s16641_s0 + $0x778] sm:$0xff]  ;;  %v6014_v24 = vpack.c.bf16 %v9668_v18, %v16040_v40  ;;  %9664 = vst [vmem:[%s16642_s1 + $0xdb8] sm:$0xff] %v5998_v16 }
 0x214   :  { %v16215_v20 = vld [vmem:[%s16641_s0 + $0x23b0] sm:$0xff]  ;;  %v6022_v25 = vpack.c.bf16 %v9671_v19, %v16045_v41  ;;  %v9674_v26 = vld [vmem:[%s16641_s0 + $0x1b78] sm:$0xff]  ;;  %9667 = vst [vmem:[%s16642_s1 + $0x3b8] sm:$0xff] %v6006_v23 }
 0x215   :  { %v16220_v21 = vld [vmem:[%s16641_s0 + $0x17b0] sm:$0xff]  ;;  %v9677_v27 = vld [vmem:[%s16641_s0 + $0xf78] sm:$0xff]  ;;  %v6030_v32 = vpack.c.bf16 %v9674_v26, %v16071_v48  ;;  %9670 = vst [vmem:[%s16642_s1 + $0x9b8] sm:$0xff] %v6014_v24 }
 0x216   :  { %v16225_v22 = vld [vmem:[%s16641_s0 + $0xbb0] sm:$0xff]  ;;  %v9680_v28 = vld [vmem:[%s16641_s0 + $0x378] sm:$0xff]  ;;  %v6038_v33 = vpack.c.bf16 %v9677_v27, %v16076_v49  ;;  %9673 = vst [vmem:[%s16642_s1 + $0xfb8] sm:$0xff] %v6022_v25 }
 0x217   :  { %v16251_v29 = vld [vmem:[%s16641_s0 + $0x1fb0] sm:$0xff]  ;;  %v6046_v34 = vpack.c.bf16 %v9680_v28, %v16081_v50  ;;  %v9683_v35 = vld [vmem:[%s16641_s0 + $0x2398] sm:$0xff]  ;;  %9676 = vst [vmem:[%s16642_s1 + $0x5b8] sm:$0xff] %v6030_v32 }
 0x218   :  { %v16256_v30 = vld [vmem:[%s16641_s0 + $0x13b0] sm:$0xff]  ;;  %v9686_v36 = vld [vmem:[%s16641_s0 + $0x1798] sm:$0xff]  ;;  %v6054_v41 = vpack.c.bf16 %v9683_v35, %v16107_v57  ;;  %9679 = vst [vmem:[%s16642_s1 + $0xbb8] sm:$0xff] %v6038_v33 }
 0x219   :  { %v16261_v31 = vld [vmem:[%s16641_s0 + $0x7b0] sm:$0xff]  ;;  %v9689_v37 = vld [vmem:[%s16641_s0 + $0xb98] sm:$0xff]  ;;  %v6062_v42 = vpack.c.bf16 %v9686_v36, %v16112_v58  ;;  %9682 = vst [vmem:[%s16642_s1 + $0x11b8] sm:$0xff] %v6046_v34 }
 0x21a   :  { %v16287_v38 = vld [vmem:[%s16641_s0 + $0x1bb0] sm:$0xff]  ;;  %v6070_v43 = vpack.c.bf16 %v9689_v37, %v16117_v59  ;;  %v9692_v44 = vld [vmem:[%s16641_s0 + $0x1f98] sm:$0xff]  ;;  %9685 = vst [vmem:[%s16642_s1 + $0x1c8] sm:$0xff] %v6054_v41 }
 0x21b   :  { %v16292_v39 = vld [vmem:[%s16641_s0 + $0xfb0] sm:$0xff]  ;;  %v9695_v45 = vld [vmem:[%s16641_s0 + $0x1398] sm:$0xff]  ;;  %v6078_v50 = vpack.c.bf16 %v9692_v44, %v16143_v2  ;;  %9688 = vst [vmem:[%s16642_s1 + $0x7c8] sm:$0xff] %v6062_v42 }
 0x21c   :  { %v16297_v40 = vld [vmem:[%s16641_s0 + $0x3b0] sm:$0xff]  ;;  %v9698_v46 = vld [vmem:[%s16641_s0 + $0x798] sm:$0xff]  ;;  %v6086_v51 = vpack.c.bf16 %v9695_v45, %v16148_v3  ;;  %9691 = vst [vmem:[%s16642_s1 + $0xdc8] sm:$0xff] %v6070_v43 }
 0x21d   :  { %v16323_v47 = vld [vmem:[%s16641_s0 + $0x23d0] sm:$0xff]  ;;  %v6094_v52 = vpack.c.bf16 %v9698_v46, %v16153_v4  ;;  %v9701_v53 = vld [vmem:[%s16641_s0 + $0x1b98] sm:$0xff]  ;;  %9694 = vst [vmem:[%s16642_s1 + $0x3c8] sm:$0xff] %v6078_v50 }
 0x21e   :  { %v16328_v48 = vld [vmem:[%s16641_s0 + $0x17d0] sm:$0xff]  ;;  %v9704_v54 = vld [vmem:[%s16641_s0 + $0xf98] sm:$0xff]  ;;  %v6102_v59 = vpack.c.bf16 %v9701_v53, %v16179_v11  ;;  %9697 = vst [vmem:[%s16642_s1 + $0x9c8] sm:$0xff] %v6086_v51 }
 0x21f   :  { %v16333_v49 = vld [vmem:[%s16641_s0 + $0xbd0] sm:$0xff]  ;;  %v9707_v55 = vld [vmem:[%s16641_s0 + $0x398] sm:$0xff]  ;;  %v6110_v60 = vpack.c.bf16 %v9704_v54, %v16184_v12  ;;  %9700 = vst [vmem:[%s16642_s1 + $0xfc8] sm:$0xff] %v6094_v52 }
 0x220   :  { %v16359_v56 = vld [vmem:[%s16641_s0 + $0x1fd0] sm:$0xff]  ;;  %v6118_v61 = vpack.c.bf16 %v9707_v55, %v16189_v13  ;;  %v9710_v62 = vld [vmem:[%s16641_s0 + $0x23b8] sm:$0xff]  ;;  %9703 = vst [vmem:[%s16642_s1 + $0x5c8] sm:$0xff] %v6102_v59 }
 0x221   :  { %v16364_v57 = vld [vmem:[%s16641_s0 + $0x13d0] sm:$0xff]  ;;  %v9713_v63 = vld [vmem:[%s16641_s0 + $0x17b8] sm:$0xff]  ;;  %v6126_v4 = vpack.c.bf16 %v9710_v62, %v16215_v20  ;;  %9706 = vst [vmem:[%s16642_s1 + $0xbc8] sm:$0xff] %v6110_v60 }
 0x222   :  { %v16369_v58 = vld [vmem:[%s16641_s0 + $0x7d0] sm:$0xff]  ;;  %v9716_v0 = vld [vmem:[%s16641_s0 + $0xbb8] sm:$0xff]  ;;  %v6134_v5 = vpack.c.bf16 %v9713_v63, %v16220_v21  ;;  %9709 = vst [vmem:[%s16642_s1 + $0x11c8] sm:$0xff] %v6118_v61 }
 0x223   :  { %v16395_v1 = vld [vmem:[%s16641_s0 + $0x1bd0] sm:$0xff]  ;;  %v6142_v6 = vpack.c.bf16 %v9716_v0, %v16225_v22  ;;  %v9719_v7 = vld [vmem:[%s16641_s0 + $0x1fb8] sm:$0xff]  ;;  %9712 = vst [vmem:[%s16642_s1 + $0x1d8] sm:$0xff] %v6126_v4 }
 0x224   :  { %v16400_v2 = vld [vmem:[%s16641_s0 + $0xfd0] sm:$0xff]  ;;  %v9722_v8 = vld [vmem:[%s16641_s0 + $0x13b8] sm:$0xff]  ;;  %v6150_v13 = vpack.c.bf16 %v9719_v7, %v16251_v29  ;;  %9715 = vst [vmem:[%s16642_s1 + $0x7d8] sm:$0xff] %v6134_v5 }
 0x225   :  { %v16405_v3 = vld [vmem:[%s16641_s0 + $0x3d0] sm:$0xff]  ;;  %v9725_v9 = vld [vmem:[%s16641_s0 + $0x7b8] sm:$0xff]  ;;  %v6158_v14 = vpack.c.bf16 %v9722_v8, %v16256_v30  ;;  %9718 = vst [vmem:[%s16642_s1 + $0xdd8] sm:$0xff] %v6142_v6 }
 0x226   :  { %v16431_v10 = vld [vmem:[%s16641_s0 + $0x23f0] sm:$0xff]  ;;  %v6166_v15 = vpack.c.bf16 %v9725_v9, %v16261_v31  ;;  %v9728_v16 = vld [vmem:[%s16641_s0 + $0x1bb8] sm:$0xff]  ;;  %9721 = vst [vmem:[%s16642_s1 + $0x3d8] sm:$0xff] %v6150_v13 }
 0x227   :  { %v16436_v11 = vld [vmem:[%s16641_s0 + $0x17f0] sm:$0xff]  ;;  %v9731_v17 = vld [vmem:[%s16641_s0 + $0xfb8] sm:$0xff]  ;;  %v6174_v22 = vpack.c.bf16 %v9728_v16, %v16287_v38  ;;  %9724 = vst [vmem:[%s16642_s1 + $0x9d8] sm:$0xff] %v6158_v14 }
 0x228   :  { %v16441_v12 = vld [vmem:[%s16641_s0 + $0xbf0] sm:$0xff]  ;;  %v9734_v18 = vld [vmem:[%s16641_s0 + $0x3b8] sm:$0xff]  ;;  %v6182_v23 = vpack.c.bf16 %v9731_v17, %v16292_v39  ;;  %9727 = vst [vmem:[%s16642_s1 + $0xfd8] sm:$0xff] %v6166_v15 }
 0x229   :  { %v16467_v19 = vld [vmem:[%s16641_s0 + $0x1ff0] sm:$0xff]  ;;  %v6190_v24 = vpack.c.bf16 %v9734_v18, %v16297_v40  ;;  %v9737_v25 = vld [vmem:[%s16641_s0 + $0x23d8] sm:$0xff]  ;;  %9730 = vst [vmem:[%s16642_s1 + $0x5d8] sm:$0xff] %v6174_v22 }
 0x22a   :  { %v16472_v20 = vld [vmem:[%s16641_s0 + $0x13f0] sm:$0xff]  ;;  %v9740_v26 = vld [vmem:[%s16641_s0 + $0x17d8] sm:$0xff]  ;;  %v6198_v31 = vpack.c.bf16 %v9737_v25, %v16323_v47  ;;  %9733 = vst [vmem:[%s16642_s1 + $0xbd8] sm:$0xff] %v6182_v23 }
 0x22b   :  { %v16477_v21 = vld [vmem:[%s16641_s0 + $0x7f0] sm:$0xff]  ;;  %v9743_v27 = vld [vmem:[%s16641_s0 + $0xbd8] sm:$0xff]  ;;  %v6206_v32 = vpack.c.bf16 %v9740_v26, %v16328_v48  ;;  %9736 = vst [vmem:[%s16642_s1 + $0x11d8] sm:$0xff] %v6190_v24 }
 0x22c   :  { %v8924_v28 = vld [vmem:[%s16641_s0 + $0x1bf0] sm:$0xff]  ;;  %v6214_v33 = vpack.c.bf16 %v9743_v27, %v16333_v49  ;;  %v9746_v34 = vld [vmem:[%s16641_s0 + $0x1fd8] sm:$0xff]  ;;  %9739 = vst [vmem:[%s16642_s1 + $0x1e8] sm:$0xff] %v6198_v31 }
 0x22d   :  { %v8925_v29 = vld [vmem:[%s16641_s0 + $0xff0] sm:$0xff]  ;;  %v9749_v35 = vld [vmem:[%s16641_s0 + $0x13d8] sm:$0xff]  ;;  %v6222_v37 = vpack.c.bf16 %v9746_v34, %v16359_v56  ;;  %9742 = vst [vmem:[%s16642_s1 + $0x7e8] sm:$0xff] %v6206_v32 }
 0x22e   :  { %v8926_v30 = vld [vmem:[%s16641_s0 + $0x3f0] sm:$0xff]  ;;  %v9752_v36 = vld [vmem:[%s16641_s0 + $0x7d8] sm:$0xff]  ;;  %v6230_v38 = vpack.c.bf16 %v9749_v35, %v16364_v57  ;;  %9745 = vst [vmem:[%s16642_s1 + $0xde8] sm:$0xff] %v6214_v33 }
 0x22f   :  { %v6238_v39 = vpack.c.bf16 %v9752_v36, %v16369_v58  ;;  %v9755_v40 = vld [vmem:[%s16641_s0 + $0x1bd8] sm:$0xff]  ;;  %9748 = vst [vmem:[%s16642_s1 + $0x3e8] sm:$0xff] %v6222_v37 }
 0x230   :  { %v9758_v41 = vld [vmem:[%s16641_s0 + $0xfd8] sm:$0xff]  ;;  %v6246_v43 = vpack.c.bf16 %v9755_v40, %v16395_v1  ;;  %9751 = vst [vmem:[%s16642_s1 + $0x9e8] sm:$0xff] %v6230_v38 }
 0x231   :  { %v9761_v42 = vld [vmem:[%s16641_s0 + $0x3d8] sm:$0xff]  ;;  %v6254_v44 = vpack.c.bf16 %v9758_v41, %v16400_v2  ;;  %9754 = vst [vmem:[%s16642_s1 + $0xfe8] sm:$0xff] %v6238_v39 }
 0x232   :  { %v6262_v45 = vpack.c.bf16 %v9761_v42, %v16405_v3  ;;  %v9764_v46 = vld [vmem:[%s16641_s0 + $0x23f8] sm:$0xff]  ;;  %9757 = vst [vmem:[%s16642_s1 + $0x5e8] sm:$0xff] %v6246_v43 }
 0x233   :  { %v9767_v47 = vld [vmem:[%s16641_s0 + $0x17f8] sm:$0xff]  ;;  %v6270_v49 = vpack.c.bf16 %v9764_v46, %v16431_v10  ;;  %9760 = vst [vmem:[%s16642_s1 + $0xbe8] sm:$0xff] %v6254_v44 }
 0x234   :  { %v9770_v48 = vld [vmem:[%s16641_s0 + $0xbf8] sm:$0xff]  ;;  %v6278_v50 = vpack.c.bf16 %v9767_v47, %v16436_v11  ;;  %9763 = vst [vmem:[%s16642_s1 + $0x11e8] sm:$0xff] %v6262_v45 }
 0x235   :  { %v6286_v51 = vpack.c.bf16 %v9770_v48, %v16441_v12  ;;  %v9773_v52 = vld [vmem:[%s16641_s0 + $0x1ff8] sm:$0xff]  ;;  %9766 = vst [vmem:[%s16642_s1 + $0x1f8] sm:$0xff] %v6270_v49 }
 0x236   :  { %v9776_v53 = vld [vmem:[%s16641_s0 + $0x13f8] sm:$0xff]  ;;  %v6294_v55 = vpack.c.bf16 %v9773_v52, %v16467_v19  ;;  %9769 = vst [vmem:[%s16642_s1 + $0x7f8] sm:$0xff] %v6278_v50 }
 0x237   :  { %v9779_v54 = vld [vmem:[%s16641_s0 + $0x7f8] sm:$0xff]  ;;  %v6302_v56 = vpack.c.bf16 %v9776_v53, %v16472_v20  ;;  %9772 = vst [vmem:[%s16642_s1 + $0xdf8] sm:$0xff] %v6286_v51 }
 0x238   :  { %v6310_v57 = vpack.c.bf16 %v9779_v54, %v16477_v21  ;;  %v9782_v58 = vld [vmem:[%s16641_s0 + $0x1bf8] sm:$0xff]  ;;  %9775 = vst [vmem:[%s16642_s1 + $0x3f8] sm:$0xff] %v6294_v55 }
 0x239   :  { %v9785_v59 = vld [vmem:[%s16641_s0 + $0xff8] sm:$0xff]  ;;  %v6318_v61 = vpack.c.bf16 %v9782_v58, %v8924_v28  ;;  %9778 = vst [vmem:[%s16642_s1 + $0x9f8] sm:$0xff] %v6302_v56 }
 0x23a   :  { %v9788_v60 = vld [vmem:[%s16641_s0 + $0x3f8] sm:$0xff]  ;;  %v6326_v62 = vpack.c.bf16 %v9785_v59, %v8925_v29  ;;  %9781 = vst [vmem:[%s16642_s1 + $0xff8] sm:$0xff] %v6310_v57 }
 0x23b   :  { %v6334_v63 = vpack.c.bf16 %v9788_v60, %v8926_v30  ;;  %9784 = vst [vmem:[%s16642_s1 + $0x5f8] sm:$0xff] %v6318_v61 }
 0x23c   :  { %9787 = vst [vmem:[%s16642_s1 + $0xbf8] sm:$0xff] %v6326_v62 }
 0x23d   :  { %9790 = vst [vmem:[%s16642_s1 + $0x11f8] sm:$0xff] %v6334_v63 }

// kernel: clustering_model_forward.1
= control target key start
LH: loop header
LB: loop body
LE: loop exit
PB: predicated region body
PF: predicated region fallthrough
CT: control target
= control target key end

     0   :  { %s1802_s1 = inlined_call_operand.vmem [shape: bf16[512,512], index: 1, kind: input, shape index: {}]   ;;  %s1803_s0 = inlined_call_operand.vmem [shape: f32[8,512], index: 0, kind: input, shape index: {}]   ;;  %s1804_s2 = inlined_call_operand.vmem [shape: f32[1,512], index: 2, kind: input, shape index: {}]   ;;  %s1805_s3 = inlined_call_operand.vmem [shape: f32[8,512], index: 3, kind: output, shape index: {}]  }
   0x1   :  { %v1151_v0 = vld [vmem:[%s1802_s1 + $0xe4] ss:$16 sps:$4 sm:$0xff]   ;;  %v1155_v2 = vld [vmem:[%s1802_s1 + $0xe0] ss:$16 sps:$4 sm:$0xff]   ;;  %v15_v48 = vld [vmem:[%s1803_s0 + $0x8] sm:$0xff] }
   0x2   :  { %v1153_v1 = vld [vmem:[%s1802_s1 + $0x2e4] ss:$16 sps:$4 sm:$0xff]   ;;  %790 = vmatprep.subr.bf16.mxu0 %v1151_v0  ;;  %v1156_v3 = vld [vmem:[%s1802_s1 + $0x2e0] ss:$16 sps:$4 sm:$0xff]   ;;  %v1525_v50 = vpack.c.bf16 %v15_v48, %v15_v48  ;;  %v955_v51 = vmul.f32 %v15_v48, %v15_v48  ;;  %v17_v52 = vld [vmem:[%s1803_s0 + $0x18] sm:$0xff] }
   0x3   :  { %831 = vmatprep.subr.bf16.mxu1 %v1153_v1  ;;  %v1157_v4 = vld [vmem:[%s1802_s1 + $0xc4] ss:$16 sps:$4 sm:$0xff]   ;;  %791 = vmatpush1.bf16.msra.mxu0 %v1155_v2  ;;  %v1161_v6 = vld [vmem:[%s1802_s1 + $0xc0] ss:$16 sps:$4 sm:$0xff]   ;;  %v1533_v54 = vpack.c.bf16 %v17_v52, %v17_v52  ;;  %v957_v61 = vmul.f32 %v17_v52, %v17_v52  ;;  %v1300_v48 = vld [vmem:[%s1802_s1 + $0x3ec] ss:$16 sps:$4 sm:$0xff]  }
   0x4   :  { %832 = vmatpush1.bf16.msra.mxu1 %v1156_v3  ;;  %v1159_v5 = vld [vmem:[%s1802_s1 + $0x2c4] ss:$16 sps:$4 sm:$0xff]   ;;  %792 = vmatprep.subr.bf16.mxu0 %v1157_v4  ;;  %v1162_v7 = vld [vmem:[%s1802_s1 + $0x2c0] ss:$16 sps:$4 sm:$0xff]   ;;  %v1306_v52 = vld [vmem:[%s1802_s1 + $0x3cc] ss:$16 sps:$4 sm:$0xff]  }
   0x5   :  { %833 = vmatprep.subr.bf16.mxu1 %v1159_v5  ;;  %v1163_v8 = vld [vmem:[%s1802_s1 + $0xa4] ss:$16 sps:$4 sm:$0xff]   ;;  %v1167_v10 = vld [vmem:[%s1802_s1 + $0xa0] ss:$16 sps:$4 sm:$0xff]   ;;  %822 = vmatprep.mubr.bf16.mxu0 %v1525_v50 }
   0x6   :  { %v1165_v9 = vld [vmem:[%s1802_s1 + $0x2a4] ss:$16 sps:$4 sm:$0xff]   ;;  %v1168_v11 = vld [vmem:[%s1802_s1 + $0x2a0] ss:$16 sps:$4 sm:$0xff]   ;;  %863 = vmatprep.mubr.bf16.mxu1 %v1533_v54 }
   0x7   :  { %793 = vmatpush1.bf16.msra.mxu0 %v1161_v6  ;;  %v1169_v12 = vld [vmem:[%s1802_s1 + $0x84] ss:$16 sps:$4 sm:$0xff]   ;;  %v1173_v14 = vld [vmem:[%s1802_s1 + $0x80] ss:$16 sps:$4 sm:$0xff]  }
   0x8   :  { %834 = vmatpush1.bf16.msra.mxu1 %v1162_v7  ;;  %794 = vmatprep.subr.bf16.mxu0 %v1163_v8  ;;  %v1171_v13 = vld [vmem:[%s1802_s1 + $0x284] ss:$16 sps:$4 sm:$0xff]   ;;  %v1174_v15 = vld [vmem:[%s1802_s1 + $0x280] ss:$16 sps:$4 sm:$0xff]  }
   0x9   :  { %835 = vmatprep.subr.bf16.mxu1 %v1165_v9  ;;  %v1175_v16 = vld [vmem:[%s1802_s1 + $0x64] ss:$16 sps:$4 sm:$0xff]   ;;  %v1179_v18 = vld [vmem:[%s1802_s1 + $0x60] ss:$16 sps:$4 sm:$0xff]  }
   0xa   :  { %v1177_v17 = vld [vmem:[%s1802_s1 + $0x264] ss:$16 sps:$4 sm:$0xff]   ;;  %v1180_v19 = vld [vmem:[%s1802_s1 + $0x260] ss:$16 sps:$4 sm:$0xff]  }
   0xb   :  { %795 = vmatpush1.bf16.msra.mxu0 %v1167_v10  ;;  %v1181_v20 = vld [vmem:[%s1802_s1 + $0x44] ss:$16 sps:$4 sm:$0xff]   ;;  %v1185_v22 = vld [vmem:[%s1802_s1 + $0x40] ss:$16 sps:$4 sm:$0xff]  }
   0xc   :  { %836 = vmatpush1.bf16.msra.mxu1 %v1168_v11  ;;  %796 = vmatprep.subr.bf16.mxu0 %v1169_v12  ;;  %v1183_v21 = vld [vmem:[%s1802_s1 + $0x244] ss:$16 sps:$4 sm:$0xff]   ;;  %v1186_v23 = vld [vmem:[%s1802_s1 + $0x240] ss:$16 sps:$4 sm:$0xff]  }
   0xd   :  { %837 = vmatprep.subr.bf16.mxu1 %v1171_v13  ;;  %v1187_v24 = vld [vmem:[%s1802_s1 + $0x24] ss:$16 sps:$4 sm:$0xff]   ;;  %v1191_v26 = vld [vmem:[%s1802_s1 + $0x20] ss:$16 sps:$4 sm:$0xff]   ;;  %v1249_v13 = vld [vmem:[%s1802_s1 + $0xec] ss:$16 sps:$4 sm:$0xff]  }
   0xe   :  { %v1189_v25 = vld [vmem:[%s1802_s1 + $0x224] ss:$16 sps:$4 sm:$0xff]   ;;  %v1192_v27 = vld [vmem:[%s1802_s1 + $0x220] ss:$16 sps:$4 sm:$0xff]  }
   0xf   :  { %797 = vmatpush1.bf16.msra.mxu0 %v1173_v14  ;;  %v1193_v28 = vld [vmem:[%s1802_s1 + $0x4] ss:$16 sps:$4 sm:$0xff]   ;;  %v1197_v30 = vld [vmem:[%s1802_s1] ss:$16 sps:$4 sm:$0xff]   ;;  %v1252_v14 = vld [vmem:[%s1802_s1 + $0x2ec] ss:$16 sps:$4 sm:$0xff]  }
  0x10   :  { %838 = vmatpush1.bf16.msra.mxu1 %v1174_v15  ;;  %798 = vmatprep.subr.bf16.mxu0 %v1175_v16  ;;  %v1195_v29 = vld [vmem:[%s1802_s1 + $0x204] ss:$16 sps:$4 sm:$0xff]   ;;  %v1198_v31 = vld [vmem:[%s1802_s1 + $0x200] ss:$16 sps:$4 sm:$0xff]  }
  0x11   :  { %839 = vmatprep.subr.bf16.mxu1 %v1177_v17  ;;  %v1199_v32 = vld [vmem:[%s1802_s1 + $0x1e4] ss:$16 sps:$4 sm:$0xff]   ;;  %v1203_v34 = vld [vmem:[%s1802_s1 + $0x1e0] ss:$16 sps:$4 sm:$0xff]   ;;  %v1247_v17 = vld [vmem:[%s1802_s1 + $0xe8] ss:$16 sps:$4 sm:$0xff]  }
  0x12   :  { %v1201_v33 = vld [vmem:[%s1802_s1 + $0x3e4] ss:$16 sps:$4 sm:$0xff]   ;;  %v1204_v35 = vld [vmem:[%s1802_s1 + $0x3e0] ss:$16 sps:$4 sm:$0xff]  }
  0x13   :  { %799 = vmatpush1.bf16.msra.mxu0 %v1179_v18  ;;  %v1205_v36 = vld [vmem:[%s1802_s1 + $0x1c4] ss:$16 sps:$4 sm:$0xff]   ;;  %v1209_v38 = vld [vmem:[%s1802_s1 + $0x1c0] ss:$16 sps:$4 sm:$0xff]   ;;  %v1250_v18 = vld [vmem:[%s1802_s1 + $0x2e8] ss:$16 sps:$4 sm:$0xff]  }
  0x14   :  { %840 = vmatpush1.bf16.msra.mxu1 %v1180_v19  ;;  %800 = vmatprep.subr.bf16.mxu0 %v1181_v20  ;;  %v1207_v37 = vld [vmem:[%s1802_s1 + $0x3c4] ss:$16 sps:$4 sm:$0xff]   ;;  %v1210_v39 = vld [vmem:[%s1802_s1 + $0x3c0] ss:$16 sps:$4 sm:$0xff]   ;;  %v1255_v19 = vld [vmem:[%s1802_s1 + $0xcc] ss:$16 sps:$4 sm:$0xff]  }
  0x15   :  { %841 = vmatprep.subr.bf16.mxu1 %v1183_v21  ;;  %v1211_v40 = vld [vmem:[%s1802_s1 + $0x1a4] ss:$16 sps:$4 sm:$0xff]   ;;  %v1215_v42 = vld [vmem:[%s1802_s1 + $0x1a0] ss:$16 sps:$4 sm:$0xff]   ;;  %v1258_v20 = vld [vmem:[%s1802_s1 + $0x2cc] ss:$16 sps:$4 sm:$0xff]  }
  0x16   :  { %v1213_v41 = vld [vmem:[%s1802_s1 + $0x3a4] ss:$16 sps:$4 sm:$0xff]   ;;  %v1216_v43 = vld [vmem:[%s1802_s1 + $0x3a0] ss:$16 sps:$4 sm:$0xff]   ;;  %v1253_v21 = vld [vmem:[%s1802_s1 + $0xc8] ss:$16 sps:$4 sm:$0xff]  }
  0x17   :  { %801 = vmatpush1.bf16.msra.mxu0 %v1185_v22  ;;  %v1217_v44 = vld [vmem:[%s1802_s1 + $0x184] ss:$16 sps:$4 sm:$0xff]   ;;  %v1221_v46 = vld [vmem:[%s1802_s1 + $0x180] ss:$16 sps:$4 sm:$0xff]   ;;  %v1256_v22 = vld [vmem:[%s1802_s1 + $0x2c8] ss:$16 sps:$4 sm:$0xff]  }
  0x18   :  { %842 = vmatpush1.bf16.msra.mxu1 %v1186_v23  ;;  %802 = vmatprep.subr.bf16.mxu0 %v1187_v24  ;;  %v1219_v45 = vld [vmem:[%s1802_s1 + $0x384] ss:$16 sps:$4 sm:$0xff]   ;;  %v1222_v47 = vld [vmem:[%s1802_s1 + $0x380] ss:$16 sps:$4 sm:$0xff]   ;;  %v1261_v23 = vld [vmem:[%s1802_s1 + $0xac] ss:$16 sps:$4 sm:$0xff]  }
  0x19   :  { %843 = vmatprep.subr.bf16.mxu1 %v1189_v25  ;;  %v1223_v49 = vld [vmem:[%s1802_s1 + $0x164] ss:$16 sps:$4 sm:$0xff]   ;;  %v1227_v59 = vld [vmem:[%s1802_s1 + $0x160] ss:$16 sps:$4 sm:$0xff]   ;;  %v1264_v24 = vld [vmem:[%s1802_s1 + $0x2ac] ss:$16 sps:$4 sm:$0xff]  }
  0x1a   :  { %v14_v53 = vld [vmem:[%s1803_s0] sm:$0xff]  ;;  %v16_v55 = vld [vmem:[%s1803_s0 + $0x10] sm:$0xff]  ;;  %v1259_v25 = vld [vmem:[%s1802_s1 + $0xa8] ss:$16 sps:$4 sm:$0xff]  }
  0x1b   :  { %803 = vmatpush1.bf16.msra.mxu0 %v1191_v26  ;;  %v1225_v56 = vld [vmem:[%s1802_s1 + $0x364] ss:$16 sps:$4 sm:$0xff]   ;;  %v954_v57 = vmul.f32 %v14_v53, %v14_v53  ;;  %v956_v58 = vmul.f32 %v16_v55, %v16_v55  ;;  %v1228_v60 = vld [vmem:[%s1802_s1 + $0x360] ss:$16 sps:$4 sm:$0xff]   ;;  %v1591_v15 = vpack.c.bf16 %v14_v53, %v14_v53  ;;  %v1593_v16 = vpack.c.bf16 %v16_v55, %v16_v55  ;;  %v1262_v26 = vld [vmem:[%s1802_s1 + $0x2a8] ss:$16 sps:$4 sm:$0xff]  }
  0x1c   :  { %844 = vmatpush1.bf16.msra.mxu1 %v1192_v27  ;;  %804 = vmatprep.subr.bf16.mxu0 %v1193_v28  ;;  %v1229_v63 = vld [vmem:[%s1802_s1 + $0x144] ss:$16 sps:$4 sm:$0xff]   ;;  %v1233_v2 = vld [vmem:[%s1802_s1 + $0x140] ss:$16 sps:$4 sm:$0xff]   ;;  %v1267_v27 = vld [vmem:[%s1802_s1 + $0x8c] ss:$16 sps:$4 sm:$0xff]  }
  0x1d   :  { %845 = vmatprep.subr.bf16.mxu1 %v1195_v29  ;;  %v958_v62 = vadd.f32 %v955_v51, %v954_v57  ;;  %v1231_v0 = vld [vmem:[%s1802_s1 + $0x344] ss:$16 sps:$4 sm:$0xff]   ;;  %v1234_v3 = vld [vmem:[%s1802_s1 + $0x340] ss:$16 sps:$4 sm:$0xff]   ;;  %v1270_v28 = vld [vmem:[%s1802_s1 + $0x28c] ss:$16 sps:$4 sm:$0xff]  }
  0x1e   :  { %v1235_v5 = vld [vmem:[%s1802_s1 + $0x124] ss:$16 sps:$4 sm:$0xff]   ;;  %v1239_v7 = vld [vmem:[%s1802_s1 + $0x120] ss:$16 sps:$4 sm:$0xff]   ;;  %v1265_v29 = vld [vmem:[%s1802_s1 + $0x88] ss:$16 sps:$4 sm:$0xff]  }
  0x1f   :  { %805 = vmatpush1.bf16.msra.mxu0 %v1197_v30  ;;  %v959_v1 = vadd.f32 %v958_v62, %v956_v58  ;;  %v1237_v6 = vld [vmem:[%s1802_s1 + $0x324] ss:$16 sps:$4 sm:$0xff]   ;;  %v1240_v8 = vld [vmem:[%s1802_s1 + $0x320] ss:$16 sps:$4 sm:$0xff]   ;;  %v1268_v30 = vld [vmem:[%s1802_s1 + $0x288] ss:$16 sps:$4 sm:$0xff]  }
  0x20   :  { %846 = vmatpush1.bf16.msra.mxu1 %v1198_v31  ;;  %806 = vmatprep.subr.bf16.mxu0 %v1199_v32  ;;  %v1241_v9 = vld [vmem:[%s1802_s1 + $0x104] ss:$16 sps:$4 sm:$0xff]   ;;  %v1245_v11 = vld [vmem:[%s1802_s1 + $0x100] ss:$16 sps:$4 sm:$0xff]   ;;  %v1273_v31 = vld [vmem:[%s1802_s1 + $0x6c] ss:$16 sps:$4 sm:$0xff]  }
  0x21   :  { %847 = vmatprep.subr.bf16.mxu1 %v1201_v33  ;;  %v960_v4 = vadd.f32 %v959_v1, %v957_v61  ;;  %v1243_v10 = vld [vmem:[%s1802_s1 + $0x304] ss:$16 sps:$4 sm:$0xff]   ;;  %v1246_v12 = vld [vmem:[%s1802_s1 + $0x300] ss:$16 sps:$4 sm:$0xff]   ;;  %v1276_v32 = vld [vmem:[%s1802_s1 + $0x26c] ss:$16 sps:$4 sm:$0xff]  }
  0x22   :  { %v1271_v33 = vld [vmem:[%s1802_s1 + $0x68] ss:$16 sps:$4 sm:$0xff]   ;;  %v1303_v51 = vld [vmem:[%s1802_s1 + $0x1cc] ss:$16 sps:$4 sm:$0xff]  }
  0x23   :  { %807 = vmatpush2.bf16.msra.mxu0 %v1203_v34  ;;  %961 = vadd.xlane.f32.xlu0 %v960_v4  ;;  %v1274_v34 = vld [vmem:[%s1802_s1 + $0x268] ss:$16 sps:$4 sm:$0xff]   ;;  %v1309_v55 = vld [vmem:[%s1802_s1 + $0x3ac] ss:$16 sps:$4 sm:$0xff]  }
  0x24   :  { %848 = vmatpush2.bf16.msra.mxu1 %v1204_v35  ;;  %808 = vmatprep.subr.bf16.mxu0 %v1205_v36  ;;  %v1279_v35 = vld [vmem:[%s1802_s1 + $0x4c] ss:$16 sps:$4 sm:$0xff]   ;;  %v1301_v53 = vld [vmem:[%s1802_s1 + $0x1c8] ss:$16 sps:$4 sm:$0xff]  }
  0x25   :  { %849 = vmatprep.subr.bf16.mxu1 %v1207_v37  ;;  %v1282_v36 = vld [vmem:[%s1802_s1 + $0x24c] ss:$16 sps:$4 sm:$0xff]   ;;  %v1277_v37 = vld [vmem:[%s1802_s1 + $0x48] ss:$16 sps:$4 sm:$0xff]  }
  0x26   :  { %v1307_v57 = vld [vmem:[%s1802_s1 + $0x3a8] ss:$16 sps:$4 sm:$0xff]   ;;  %v1330_v4 = vld [vmem:[%s1802_s1 + $0x34c] ss:$16 sps:$4 sm:$0xff]  }
  0x27   :  { %809 = vmatpush2.bf16.msra.mxu0 %v1209_v38  ;;  %v1280_v38 = vld [vmem:[%s1802_s1 + $0x248] ss:$16 sps:$4 sm:$0xff]  }
  0x28   :  { %850 = vmatpush2.bf16.msra.mxu1 %v1210_v39  ;;  %810 = vmatprep.subr.bf16.mxu0 %v1211_v40  ;;  %v1285_v39 = vld [vmem:[%s1802_s1 + $0x2c] ss:$16 sps:$4 sm:$0xff]   ;;  %v1310_v58 = vld [vmem:[%s1802_s1 + $0x1a8] ss:$16 sps:$4 sm:$0xff]  }
  0x29   :  { %851 = vmatprep.subr.bf16.mxu1 %v1213_v41  ;;  %v1288_v40 = vld [vmem:[%s1802_s1 + $0x22c] ss:$16 sps:$4 sm:$0xff]   ;;  %v1283_v41 = vld [vmem:[%s1802_s1 + $0x28] ss:$16 sps:$4 sm:$0xff]  }
  0x2a   :  { %v1313_v61 = vld [vmem:[%s1802_s1 + $0x188] ss:$16 sps:$4 sm:$0xff]  }
  0x2b   :  { %811 = vmatpush2.bf16.msra.mxu0 %v1215_v42  ;;  %v1286_v42 = vld [vmem:[%s1802_s1 + $0x228] ss:$16 sps:$4 sm:$0xff]  }
  0x2c   :  { %852 = vmatpush2.bf16.msra.mxu1 %v1216_v43  ;;  %812 = vmatprep.subr.bf16.mxu0 %v1217_v44  ;;  %v1291_v43 = vld [vmem:[%s1802_s1 + $0xc] ss:$16 sps:$4 sm:$0xff]   ;;  %v1316_v62 = vld [vmem:[%s1802_s1 + $0x388] ss:$16 sps:$4 sm:$0xff]  }
  0x2d   :  { %853 = vmatprep.subr.bf16.mxu1 %v1219_v45  ;;  %v1294_v44 = vld [vmem:[%s1802_s1 + $0x20c] ss:$16 sps:$4 sm:$0xff]   ;;  %v1289_v45 = vld [vmem:[%s1802_s1 + $0x8] ss:$16 sps:$4 sm:$0xff]  }
  0x2e   :  { %v1319_v1 = vld [vmem:[%s1802_s1 + $0x168] ss:$16 sps:$4 sm:$0xff]  }
  0x2f   :  { %813 = vmatpush2.bf16.msra.mxu0 %v1221_v46  ;;  %v1292_v46 = vld [vmem:[%s1802_s1 + $0x208] ss:$16 sps:$4 sm:$0xff]  }
  0x30   :  { %854 = vmatpush2.bf16.msra.mxu1 %v1222_v47  ;;  %814 = vmatprep.subr.bf16.mxu0 %v1223_v49  ;;  %v1297_v47 = vld [vmem:[%s1802_s1 + $0x1ec] ss:$16 sps:$4 sm:$0xff]   ;;  %v1295_v49 = vld [vmem:[%s1802_s1 + $0x1e8] ss:$16 sps:$4 sm:$0xff]  }
  0x31   :  { %855 = vmatprep.subr.bf16.mxu1 %v1225_v56  ;;  %v1312_v56 = vld [vmem:[%s1802_s1 + $0x1ac] ss:$16 sps:$4 sm:$0xff]  }
  0x33   :  { %815 = vmatpush2.bf16.msra.mxu0 %v1227_v59  ;;  %v1315_v59 = vld [vmem:[%s1802_s1 + $0x18c] ss:$16 sps:$4 sm:$0xff]  }
  0x34   :  { %856 = vmatpush2.bf16.msra.mxu1 %v1228_v60  ;;  %816 = vmatprep.subr.bf16.mxu0 %v1229_v63  ;;  %v1318_v60 = vld [vmem:[%s1802_s1 + $0x38c] ss:$16 sps:$4 sm:$0xff]  }
  0x35   :  { %857 = vmatprep.subr.bf16.mxu1 %v1231_v0  ;;  %v1321_v63 = vld [vmem:[%s1802_s1 + $0x16c] ss:$16 sps:$4 sm:$0xff]  }
  0x36   :  { %v1324_v0 = vld [vmem:[%s1802_s1 + $0x36c] ss:$16 sps:$4 sm:$0xff]  }
  0x37   :  { %817 = vmatpush2.bf16.msra.mxu0 %v1233_v2  ;;  %v1322_v2 = vld [vmem:[%s1802_s1 + $0x368] ss:$16 sps:$4 sm:$0xff]  }
  0x38   :  { %858 = vmatpush2.bf16.msra.mxu1 %v1234_v3  ;;  %818 = vmatprep.subr.bf16.mxu0 %v1235_v5  ;;  %v1327_v3 = vld [vmem:[%s1802_s1 + $0x14c] ss:$16 sps:$4 sm:$0xff]   ;;  %v1325_v5 = vld [vmem:[%s1802_s1 + $0x148] ss:$16 sps:$4 sm:$0xff]  }
  0x39   :  { %859 = vmatprep.subr.bf16.mxu1 %v1237_v6  ;;  %v1328_v6 = vld [vmem:[%s1802_s1 + $0x348] ss:$16 sps:$4 sm:$0xff]  }
  0x3b   :  { %819 = vmatpush2.bf16.msra.mxu0 %v1239_v7  ;;  %v1333_v7 = vld [vmem:[%s1802_s1 + $0x12c] ss:$16 sps:$4 sm:$0xff]  }
  0x3c   :  { %860 = vmatpush2.bf16.msra.mxu1 %v1240_v8  ;;  %820 = vmatprep.subr.bf16.mxu0 %v1241_v9  ;;  %v1336_v8 = vld [vmem:[%s1802_s1 + $0x32c] ss:$16 sps:$4 sm:$0xff]   ;;  %v1331_v9 = vld [vmem:[%s1802_s1 + $0x128] ss:$16 sps:$4 sm:$0xff]  }
  0x3d   :  { %861 = vmatprep.subr.bf16.mxu1 %v1243_v10  ;;  %v1334_v10 = vld [vmem:[%s1802_s1 + $0x328] ss:$16 sps:$4 sm:$0xff]  }
  0x3f   :  { %821 = vmatpush2.bf16.msra.mxu0 %v1245_v11  ;;  %v1339_v11 = vld [vmem:[%s1802_s1 + $0x10c] ss:$16 sps:$4 sm:$0xff]  }
  0x40   :  { %862 = vmatpush2.bf16.msra.mxu1 %v1246_v12  ;;  %872 = vmatprep.subr.bf16.mxu0 %v1249_v13  ;;  %v1342_v12 = vld [vmem:[%s1802_s1 + $0x30c] ss:$16 sps:$4 sm:$0xff]   ;;  %v1337_v13 = vld [vmem:[%s1802_s1 + $0x108] ss:$16 sps:$4 sm:$0xff]  }
  0x41   :  { %913 = vmatprep.subr.bf16.mxu1 %v1252_v14  ;;  %v1340_v14 = vld [vmem:[%s1802_s1 + $0x308] ss:$16 sps:$4 sm:$0xff]  }
  0x42   :  { %823 = vmatmul.mubr.bf16.vlgmr.msra.gmra.mxu0 %v1591_v15 }
  0x43   :  { %864 = vmatmul.mubr.bf16.vlgmr.msra.gmra.mxu1 %v1593_v16  ;;  %873 = vmatpush1.bf16.msra.mxu0 %v1247_v17 }
  0x44   :  { %914 = vmatpush1.bf16.msra.mxu1 %v1250_v18  ;;  %874 = vmatprep.subr.bf16.mxu0 %v1255_v19 }
  0x45   :  { %915 = vmatprep.subr.bf16.mxu1 %v1258_v20  ;;  %904 = vmatprep.mubr.bf16.mxu0 %v1525_v50  ;;  %v1298_v50 = vld [vmem:[%s1802_s1 + $0x3e8] ss:$16 sps:$4 sm:$0xff]  }
  0x46   :  { %945 = vmatprep.mubr.bf16.mxu1 %v1533_v54  ;;  %v1304_v54 = vld [vmem:[%s1802_s1 + $0x3c8] ss:$16 sps:$4 sm:$0xff]  }
  0x47   :  { %875 = vmatpush1.bf16.msra.mxu0 %v1253_v21 }
  0x48   :  { %916 = vmatpush1.bf16.msra.mxu1 %v1256_v22  ;;  %876 = vmatprep.subr.bf16.mxu0 %v1261_v23 }
  0x49   :  { %917 = vmatprep.subr.bf16.mxu1 %v1264_v24 }
  0x4b   :  { %877 = vmatpush1.bf16.msra.mxu0 %v1259_v25 }
  0x4c   :  { %918 = vmatpush1.bf16.msra.mxu1 %v1262_v26  ;;  %878 = vmatprep.subr.bf16.mxu0 %v1267_v27  ;;  %v973_v27 = vlaneseq }
  0x4d   :  { %919 = vmatprep.subr.bf16.mxu1 %v1270_v28 }
  0x4e   :  { %v974_v28 = vshrl.u32 %v973_v27, 7 }
  0x4f   :  { %879 = vmatpush1.bf16.msra.mxu0 %v1265_v29 }
  0x50   :  { %920 = vmatpush1.bf16.msra.mxu1 %v1268_v30  ;;  %880 = vmatprep.subr.bf16.mxu0 %v1273_v31 }
  0x51   :  { %921 = vmatprep.subr.bf16.mxu1 %v1276_v32  ;;  %v975_v32 = vsub.s32 0, %v974_v28 }
  0x53   :  { %881 = vmatpush1.bf16.msra.mxu0 %v1271_v33 }
  0x54   :  { %922 = vmatpush1.bf16.msra.mxu1 %v1274_v34  ;;  %882 = vmatprep.subr.bf16.mxu0 %v1279_v35  ;;  %v979_v34 = vsub.s32 1, %v974_v28 }
  0x55   :  { %923 = vmatprep.subr.bf16.mxu1 %v1282_v36 }
  0x57   :  { %883 = vmatpush1.bf16.msra.mxu0 %v1277_v37 }
  0x58   :  { %924 = vmatpush1.bf16.msra.mxu1 %v1280_v38  ;;  %884 = vmatprep.subr.bf16.mxu0 %v1285_v39 }
  0x59   :  { %925 = vmatprep.subr.bf16.mxu1 %v1288_v40 }
  0x5b   :  { %885 = vmatpush1.bf16.msra.mxu0 %v1283_v41  ;;  %v983_v41 = vsub.s32 2, %v974_v28 }
  0x5c   :  { %926 = vmatpush1.bf16.msra.mxu1 %v1286_v42  ;;  %886 = vmatprep.subr.bf16.mxu0 %v1291_v43  ;;  %v987_v42 = vsub.s32 3, %v974_v28 }
  0x5d   :  { %927 = vmatprep.subr.bf16.mxu1 %v1294_v44 }
  0x5f   :  { %887 = vmatpush1.bf16.msra.mxu0 %v1289_v45 }
  0x60   :  { %928 = vmatpush1.bf16.msra.mxu1 %v1292_v46  ;;  %888 = vmatprep.subr.bf16.mxu0 %v1297_v47 }
  0x61   :  { %929 = vmatprep.subr.bf16.mxu1 %v1300_v48 }
  0x63   :  { %889 = vmatpush2.bf16.msra.mxu0 %v1295_v49 }
  0x64   :  { %930 = vmatpush2.bf16.msra.mxu1 %v1298_v50  ;;  %890 = vmatprep.subr.bf16.mxu0 %v1303_v51 }
  0x65   :  { %931 = vmatprep.subr.bf16.mxu1 %v1306_v52 }
  0x67   :  { %891 = vmatpush2.bf16.msra.mxu0 %v1301_v53 }
  0x68   :  { %932 = vmatpush2.bf16.msra.mxu1 %v1304_v54  ;;  %892 = vmatprep.subr.bf16.mxu0 %v1312_v56 }
  0x69   :  { %933 = vmatprep.subr.bf16.mxu1 %v1309_v55 }
  0x6b   :  { %893 = vmatpush2.bf16.msra.mxu0 %v1310_v58 }
  0x6c   :  { %934 = vmatpush2.bf16.msra.mxu1 %v1307_v57  ;;  %894 = vmatprep.subr.bf16.mxu0 %v1315_v59 }
  0x6d   :  { %935 = vmatprep.subr.bf16.mxu1 %v1318_v60 }
  0x6f   :  { %895 = vmatpush2.bf16.msra.mxu0 %v1313_v61 }
  0x70   :  { %936 = vmatpush2.bf16.msra.mxu1 %v1316_v62  ;;  %896 = vmatprep.subr.bf16.mxu0 %v1321_v63 }
  0x71   :  { %937 = vmatprep.subr.bf16.mxu1 %v1324_v0 }
  0x73   :  { %897 = vmatpush2.bf16.msra.mxu0 %v1319_v1 }
  0x74   :  { %938 = vmatpush2.bf16.msra.mxu1 %v1322_v2  ;;  %898 = vmatprep.subr.bf16.mxu0 %v1327_v3 }
  0x75   :  { %939 = vmatprep.subr.bf16.mxu1 %v1330_v4 }
  0x77   :  { %899 = vmatpush2.bf16.msra.mxu0 %v1325_v5 }
  0x78   :  { %940 = vmatpush2.bf16.msra.mxu1 %v1328_v6  ;;  %900 = vmatprep.subr.bf16.mxu0 %v1333_v7 }
  0x79   :  { %941 = vmatprep.subr.bf16.mxu1 %v1336_v8 }
  0x7b   :  { %901 = vmatpush2.bf16.msra.mxu0 %v1331_v9 }
  0x7c   :  { %942 = vmatpush2.bf16.msra.mxu1 %v1334_v10  ;;  %902 = vmatprep.subr.bf16.mxu0 %v1339_v11 }
  0x7d   :  { %943 = vmatprep.subr.bf16.mxu1 %v1342_v12 }
  0x7f   :  { %903 = vmatpush2.bf16.msra.mxu0 %v1337_v13 }
  0x80   :  { %944 = vmatpush2.bf16.msra.mxu1 %v1340_v14 }
  0x82   :  { %905 = vmatmul.mubr.bf16.vlgmr.msra.gmra.mxu0 %v1591_v15  ;;  %v966_v15 = vld [vmem:[%s1804_s2] sm:$0xf] }
  0x83   :  { %946 = vmatmul.mubr.bf16.vlgmr.msra.gmra.mxu1 %v1593_v16  ;;  %v967_v31 = vadd.f32 1.0, %v966_v15 }
  0x85   :  { %v976_v36 = vrot.slane %v967_v31, %v975_v32  ;;  %v980_v38 = vrot.slane %v967_v31, %v979_v34  ;;  %v984_v48 = vrot.slane %v967_v31, %v983_v41  ;;  %v988_v53 = vrot.slane %v967_v31, %v987_v42 }
  0xac   :  { %v962_v25 = vpop.xlane.xlu0 %961 }
  0xad   :  { %v963_v26 = vmax.f32 %v962_v25, 1e-24 }
  0xaf   :  { %1343 = vrsqrt.f32 %v963_v26 }
  0xbc   :  { %v1344_v29 = vpop.eup %1343 }
  0xbd   :  { %v965_v30 = vmul.f32 2.0, %v1344_v29 }
 0x102   :  { %v824_v17 = vpop.f32.mrf.mxu0 }
 0x103   :  { %v865_v18 = vpop.f32.mrf.mxu1 }
 0x104   :  { %v826_v19 = vpop.f32.mrf.mxu0  ;;  %v866_v16 = vadd.f32 %v865_v18, %v824_v17 }
 0x105   :  { %v867_v20 = vpop.f32.mrf.mxu1 }
 0x106   :  { %v828_v21 = vpop.f32.mrf.mxu0  ;;  %v868_v33 = vadd.f32 %v867_v20, %v826_v19  ;;  %v968_v35 = vmul.f32 %v965_v30, %v866_v16 }
 0x107   :  { %v869_v22 = vpop.f32.mrf.mxu1 }
 0x108   :  { %v829_v23 = vpop.f32.mrf.mxu0  ;;  %v969_v37 = vmul.f32 %v965_v30, %v868_v33  ;;  %v993_v39 = vsub.f32 %v976_v36, %v968_v35 }
 0x109   :  { %v870_v24 = vpop.f32.mrf.mxu1 }
 0x10a   :  { %v994_v40 = vsub.f32 %v980_v38, %v969_v37  ;;  %v997_v43 = vmax.f32 %v993_v39, 1e-12 }
 0x10c   :  { %v998_v46 = vmax.f32 %v994_v40, 1e-12  ;;  %1345 = vrcp.f32 %v997_v43 }
 0x10e   :  { %1347 = vrcp.f32 %v998_v46 }
 0x119   :  { %v1346_v63 = vpop.eup %1345 }
 0x11b   :  { %v1348_v0 = vpop.eup %1347 }
 0x11c   :  { %v1005_v1 = vadd.f32 %v1348_v0, %v1346_v63 }
 0x142   :  { %v906_v44 = vpop.f32.mrf.mxu0 }
 0x143   :  { %v947_v45 = vpop.f32.mrf.mxu1 }
 0x144   :  { %v948_v47 = vadd.f32 %v947_v45, %v906_v44  ;;  %v908_v49 = vpop.f32.mrf.mxu0 }
 0x145   :  { %v949_v50 = vpop.f32.mrf.mxu1 }
 0x146   :  { %v970_v51 = vmul.f32 %v965_v30, %v948_v47  ;;  %v950_v52 = vadd.f32 %v949_v50, %v908_v49  ;;  %v910_v54 = vpop.f32.mrf.mxu0 }
 0x147   :  { %v951_v55 = vpop.f32.mrf.mxu1 }
 0x148   :  { %v995_v56 = vsub.f32 %v984_v48, %v970_v51  ;;  %v971_v57 = vmul.f32 %v965_v30, %v950_v52  ;;  %v911_v58 = vpop.f32.mrf.mxu0 }
 0x149   :  { %v952_v59 = vpop.f32.mrf.mxu1 }
 0x14a   :  { %v999_v60 = vmax.f32 %v995_v56, 1e-12  ;;  %v996_v61 = vsub.f32 %v988_v53, %v971_v57 }
 0x14c   :  { %1349 = vrcp.f32 %v999_v60  ;;  %v1000_v62 = vmax.f32 %v996_v61, 1e-12 }
 0x14e   :  { %1351 = vrcp.f32 %v1000_v62 }
 0x159   :  { %v1350_v2 = vpop.eup %1349 }
 0x15a   :  { %v1006_v3 = vadd.f32 %v1350_v2, %v1005_v1 }
 0x15b   :  { %v1352_v4 = vpop.eup %1351 }
 0x15c   :  { %v1007_v5 = vadd.f32 %v1352_v4, %v1006_v3 }
 0x15e   :  { %1008 = vadd.xlane.f32.xlu0 %v1007_v5 }
 0x1e7   :  { %v1009_v6 = vpop.xlane.xlu0 %1008 }
 0x1e8   :  { %1353 = vrcp.f32 %v1009_v6 }
 0x1f5   :  { %v1354_v7 = vpop.eup %1353 }
 0x1f6   :  { %v1011_v8 = vmul.f32 %v1354_v7, %v1346_v63  ;;  %v1012_v9 = vmul.f32 %v1354_v7, %v1348_v0  ;;  %v1013_v10 = vmul.f32 %v1354_v7, %v1350_v2  ;;  %v1014_v11 = vmul.f32 %v1354_v7, %v1352_v4 }
 0x1f8   :  { %1015 = vst [vmem:[%s1805_s3] sm:$0xff] %v1011_v8  ;;  %1016 = vst [vmem:[%s1805_s3 + $0x8] sm:$0xff] %v1012_v9 }
 0x1f9   :  { %1017 = vst [vmem:[%s1805_s3 + $0x10] sm:$0xff] %v1013_v10  ;;  %1018 = vst [vmem:[%s1805_s3 + $0x18] sm:$0xff] %v1014_v11 }

</bundles_post_ra>
